<compile_context>
chip_gen: v7x
topology: tpu7x:2x2x1
jax: 0.10.0
libtpu: 0.0.40
codegen_flags: <defaults>
</compile_context>

<pallas_src>
import functools

import jax
import jax.numpy as jnp
from jax.experimental import pallas as pl
from jax.experimental.pallas import tpu as pltpu

BN_EPS = 1e-5
LEAKY_SLOPE = 0.01   # torch.nn.LeakyReLU default negative_slope
LANE = 128


def _round_up(x, m):
    return (x + m - 1) // m * m


# ----------------------------- in-kernel helpers ----------------------------

def _conv3x3_from_padded(xpad_ref, w_ref, Nb, H, W, Cp):
    """im2col-in-VMEM 3x3 SAME conv: 9 shifted windows from the spatially padded
    VMEM scratch, concatenated along K (each window is Cp lanes -> 128-aligned
    concat), then ONE long-K bf16 matmul with f32 accumulation on the MXU."""
    cols = [
        xpad_ref[:, dy:dy + H, dx:dx + W, :].astype(jnp.bfloat16)
        for dy in range(3) for dx in range(3)
    ]
    col = jnp.concatenate(cols, axis=-1).reshape(Nb * H * W, 9 * Cp)
    return jnp.dot(col, w_ref[...], preferred_element_type=jnp.float32)   # (M, Cp) f32


# ----------------------------- Pallas kernels ------------------------------

def _conv1_relu_stats_kernel(x_ref, w1_ref, y1_ref, bsum_ref, bm2_ref, xpad_ref,
                             *, Nb, H, W, C, Cp):
    """conv1 (3x3, SAME) -> ReLU; writes y1 (bf16, spatially & channel unpadded) and
    per-block BatchNorm partial stats (sum, centered M2) so the batch axis can stay
    'parallel' (v7x megacore) and the finalize is numerically stable."""
    m = Nb * H * W

    # Build the +1 halo in VMEM: zero scratch, copy interior.  x never carries halo
    # or channel-pad bytes through HBM.
    xpad_ref[...] = jnp.zeros_like(xpad_ref)
    xpad_ref[:, 1:H + 1, 1:W + 1, 0:C] = x_ref[...].astype(xpad_ref.dtype)

    z = jnp.maximum(_conv3x3_from_padded(xpad_ref, w1_ref, Nb, H, W, Cp), 0.0)  # (m,Cp)

    # relu(conv1) back to HBM: bf16, one full-block store, no padded border.
    y1_ref[...] = z[:, :C].reshape(Nb, H, W, C).astype(y1_ref.dtype)

    # Per-block partials: block sum and centered sum-of-squares (Welford-style M2).
    s = jnp.sum(z, axis=0, keepdims=True)                         # (1, Cp)
    mu = s * (1.0 / m)
    d = z - mu
    m2 = jnp.sum(d * d, axis=0, keepdims=True)                    # (1, Cp)
    bsum_ref[...] = s.reshape(1, 1, Cp)
    bm2_ref[...] = m2.reshape(1, 1, Cp)


def _bn_conv2_leaky_res_kernel(y1_ref, x_ref, w2_ref, scale_ref, shift_ref,
                               o_ref, tpad_ref, *, Nb, H, W, C, Cp):
    """BatchNorm affine (precomputed per-channel scale/shift) -> 3x3 conv ->
    LeakyReLU(0.01) -> + original (unpadded) input.  Fully fused per grid step."""
    # Affine on the unpadded activation; the zero halo is added AFTER the affine,
    # which is exactly the SAME-conv zero padding (no border mask needed).
    y1 = y1_ref[...].astype(jnp.float32)                          # (Nb, H, W, C)
    tn = (y1 * scale_ref[...].reshape(1, 1, 1, C)
          + shift_ref[...].reshape(1, 1, 1, C))

    tpad_ref[...] = jnp.zeros_like(tpad_ref)
    tpad_ref[:, 1:H + 1, 1:W + 1, 0:C] = tn

    acc = _conv3x3_from_padded(tpad_ref, w2_ref, Nb, H, W, Cp)    # (m, Cp) f32
    z = jnp.where(acc >= 0.0, acc, LEAKY_SLOPE * acc)             # LeakyReLU

    resid = x_ref[...].astype(jnp.float32)                        # unpadded residual
    o_ref[...] = z[:, :C].reshape(Nb, H, W, C) + resid


# ------------------------------ wrapper -------------------------------------

def residual_block_no_bn(x_nchw, w1_hwio, w2_hwio, gamma, beta):
    N, C, H, W = x_nchw.shape
    Cp = _round_up(C, LANE)

    # NHWC bf16 activations in HBM; channels are NOT padded to 128 in HBM (lane
    # padding only exists inside VMEM), halving/shrinking DMA bytes for the tensors
    # read by both stages.
    # TODO(synk): accept/return NHWC directly (or allow_input_fusion) to drop the two
    # wrapper-side layout transposes for callers that already hold NHWC.
    x_nhwc = jnp.transpose(x_nchw, (0, 2, 3, 1)).astype(jnp.bfloat16)

    def prep_w(w_hwio):  # (3,3,C,C) HWIO -> (9*Cp, Cp) bf16, tap-major along K
        wp = jnp.pad(w_hwio, ((0, 0), (0, 0), (0, Cp - C), (0, Cp - C)))
        return wp.reshape(9 * Cp, Cp).astype(jnp.bfloat16)

    w1 = prep_w(w1_hwio)
    w2 = prep_w(w2_hwio)

    # Images per grid step: amortize the ~0.35 us per-step overhead while keeping the
    # per-step VMEM working set <= ~4 MiB (safe for v7x's 64 MiB physical / 32 MiB
    # scoped VMEM; v5e/v6e just get fewer, larger steps).
    per_img = ((H + 2) * (W + 2) * Cp * 4        # padded f32 scratch
               + H * W * 9 * Cp * 2              # im2col operand (bf16)
               + H * W * Cp * 4)                 # f32 matmul result
    budget = 4 * 1024 * 1024
    Nb = 1
    for d in range(1, N + 1):
        if N % d == 0 and d * per_img <= budget:
            Nb = d
    n_blocks = N // Nb
    m_blk = Nb * H * W
    # TODO(synk): if even Nb=1 exceeds the budget (large H*W), add H-tiling with a
    # manual halo DMA (memory_space=pl.ANY + pltpu.make_async_copy).

    img_spec = pl.BlockSpec((Nb, H, W, C), lambda n: (n, 0, 0, 0))
    w_spec = pl.BlockSpec((9 * Cp, Cp), lambda n: (0, 0))          # VMEM-resident
    vec_spec = pl.BlockSpec((1, C), lambda n: (0, 0))              # VMEM-resident
    stat_spec = pl.BlockSpec((1, 1, Cp), lambda n: (n, 0, 0))      # per-block partials

    # ---- stage 1: conv1 + ReLU + per-block BN partial stats ----
    y1, bsum, bm2 = pl.pallas_call(
        functools.partial(_conv1_relu_stats_kernel, Nb=Nb, H=H, W=W, C=C, Cp=Cp),
        grid=(n_blocks,),
        in_specs=[img_spec, w_spec],
        out_specs=[img_spec, stat_spec, stat_spec],
        out_shape=[jax.ShapeDtypeStruct((N, H, W, C), jnp.bfloat16),
                   jax.ShapeDtypeStruct((n_blocks, 1, Cp), jnp.float32),
                   jax.ShapeDtypeStruct((n_blocks, 1, Cp), jnp.float32)],
        scratch_shapes=[pltpu.VMEM((Nb, H + 2, W + 2, Cp), jnp.float32)],
        compiler_params=pltpu.CompilerParams(dimension_semantics=("parallel",)),
    )(x_nhwc, w1)

    # ---- finalize BatchNorm batch stats (tiny O(C) JAX glue, Chan/Welford combine) ----
    sums = bsum[:, 0, :C]                          # (n_blocks, C)
    m2s = bm2[:, 0, :C]                            # (n_blocks, C)
    mean_b = sums / m_blk
    mean = jnp.mean(mean_b, axis=0)                # equal-size blocks
    m2_tot = jnp.sum(m2s, axis=0) + m_blk * jnp.sum((mean_b - mean) ** 2, axis=0)
    var = m2_tot / (n_blocks * m_blk)              # biased variance (training-mode BN)
    inv = jax.lax.rsqrt(var + BN_EPS)
    g = gamma.astype(jnp.float32)
    scale = (g * inv).reshape(1, C)
    shift = (beta.astype(jnp.float32) - mean * inv * g).reshape(1, C)

    # ---- stage 2: BN affine + conv2 + LeakyReLU + residual add (fused) ----
    out_nhwc = pl.pallas_call(
        functools.partial(_bn_conv2_leaky_res_kernel, Nb=Nb, H=H, W=W, C=C, Cp=Cp),
        grid=(n_blocks,),
        in_specs=[img_spec, img_spec, w_spec, vec_spec, vec_spec],
        out_specs=pl.BlockSpec((Nb, H, W, C), lambda n: (n, 0, 0, 0)),
        out_shape=jax.ShapeDtypeStruct((N, H, W, C), jnp.float32),
        scratch_shapes=[pltpu.VMEM((Nb, H + 2, W + 2, Cp), jnp.float32)],
        compiler_params=pltpu.CompilerParams(dimension_semantics=("parallel",)),
    )(y1, x_nhwc, w2, scale, shift)

    return jnp.transpose(out_nhwc, (0, 3, 1, 2))                   # back to NCHW


# ------------------------- plain-JAX reference -----------------------------

def _reference(x_nchw, w1_hwio, w2_hwio, gamma, beta):
    dn = ('NCHW', 'HWIO', 'NCHW')
    z = jax.lax.conv_general_dilated(x_nchw, w1_hwio, (1, 1), 'SAME', dimension_numbers=dn)
    z = jnp.maximum(z, 0.0)
    mean = jnp.mean(z, axis=(0, 2, 3), keepdims=True)
    var = jnp.mean((z - mean) ** 2, axis=(0, 2, 3), keepdims=True)
    z = (z - mean) * jax.lax.rsqrt(var + BN_EPS) * gamma.reshape(1, -1, 1, 1) + beta.reshape(1, -1, 1, 1)
    z2 = jax.lax.conv_general_dilated(z, w2_hwio, (1, 1), 'SAME', dimension_numbers=dn)
    z2 = jnp.where(z2 >= 0.0, z2, LEAKY_SLOPE * z2)
    return z2 + x_nchw


# --------------------------------- main -------------------------------------

if __name__ == "__main__":
    key = jax.random.PRNGKey(0)
    k_x, k_w1, k_w2 = jax.random.split(key, 3)

    N, C, H, W = 2, 4, 16, 16
    x = jax.random.normal(k_x, (N, C, H, W), dtype=jnp.float32)

    # deterministic synthetic weights (Conv2d bias=False in both layers); HWIO layout.
    fan_in = 9 * C
    w1 = jax.random.normal(k_w1, (3, 3, C, C), jnp.float32) * (2.0 / fan_in) ** 0.5
    w2 = jax.random.normal(k_w2, (3, 3, C, C), jnp.float32) * (2.0 / fan_in) ** 0.5
    gamma = jnp.ones((C,), jnp.float32)   # BatchNorm2d weight init
    beta = jnp.zeros((C,), jnp.float32)   # BatchNorm2d bias init

    out = jax.jit(residual_block_no_bn)(x, w1, w2, gamma, beta)
    out = jax.block_until_ready(out)

    ref = _reference(x, w1, w2, gamma, beta)
    assert out.shape == (N, C, H, W), out.shape
    # bf16 HBM activations + bf16 MXU operands (f32 accumulation) -> loosened tolerance.
    assert jnp.allclose(out, ref, rtol=5e-2, atol=5e-2), float(jnp.max(jnp.abs(out - ref)))

    print("KERNEL_OK")
</pallas_src>

<mosaic_0001>
module attributes {stable_mosaic.version = 11 : i64} {
  func.func @_bn_conv2_leaky_res_kernel(%arg0: i32, %arg1: memref<2x16x16x4xbf16, #tpu.memory_space<vmem>>, %arg2: memref<2x16x16x4xbf16, #tpu.memory_space<vmem>>, %arg3: memref<1152x128xbf16, #tpu.memory_space<vmem>>, %arg4: memref<1x4xf32, #tpu.memory_space<vmem>>, %arg5: memref<1x4xf32, #tpu.memory_space<vmem>>, %arg6: memref<2x16x16x4xf32, #tpu.memory_space<vmem>>, %arg7: memref<2x18x18x128xf32, #tpu.memory_space<vmem>>) attributes {dimension_semantics = [#tpu.dimension_semantics<parallel>], iteration_bounds = array<i64: 1>, scalar_prefetch = 0 : i64, scratch_operands = 1 : i64, tpu.core_type = #tpu.core_type<tc>, window_params = [{transform_indices = @transform_0, window_bounds = array<i64: 2, 16, 16, 4>}, {transform_indices = @transform_1, window_bounds = array<i64: 2, 16, 16, 4>}, {pipeline_mode = #tpu.pipeline_mode<synchronous>, transform_indices = @transform_2, window_bounds = array<i64: 1152, 128>}, {pipeline_mode = #tpu.pipeline_mode<synchronous>, transform_indices = @transform_3, window_bounds = array<i64: 1, 4>}, {pipeline_mode = #tpu.pipeline_mode<synchronous>, transform_indices = @transform_4, window_bounds = array<i64: 1, 4>}, {transform_indices = @transform_5, window_bounds = array<i64: 2, 16, 16, 4>}]} {
    %c0 = arith.constant 0 : index
    %c0_0 = arith.constant 0 : index
    %c0_1 = arith.constant 0 : index
    %c0_2 = arith.constant 0 : index
    %0 = vector.load %arg1[%c0, %c0_0, %c0_1, %c0_2] : memref<2x16x16x4xbf16, #tpu.memory_space<vmem>>, vector<2x16x16x4xbf16>
    %1 = arith.extf %0 : vector<2x16x16x4xbf16> to vector<2x16x16x4xf32>
    %c0_3 = arith.constant 0 : index
    %c0_4 = arith.constant 0 : index
    %2 = vector.load %arg4[%c0_3, %c0_4] : memref<1x4xf32, #tpu.memory_space<vmem>>, vector<1x4xf32>
    %3 = vector.shape_cast %2 : vector<1x4xf32> to vector<1x1x1x4xf32>
    %4 = vector.broadcast %3 : vector<1x1x1x4xf32> to vector<2x16x16x4xf32>
    %5 = arith.mulf %1, %4 : vector<2x16x16x4xf32>
    %c0_5 = arith.constant 0 : index
    %c0_6 = arith.constant 0 : index
    %6 = vector.load %arg5[%c0_5, %c0_6] : memref<1x4xf32, #tpu.memory_space<vmem>>, vector<1x4xf32>
    %7 = vector.shape_cast %6 : vector<1x4xf32> to vector<1x1x1x4xf32>
    %8 = vector.broadcast %7 : vector<1x1x1x4xf32> to vector<2x16x16x4xf32>
    %9 = arith.addf %5, %8 : vector<2x16x16x4xf32>
    %cst = arith.constant 0.000000e+00 : f32
    %10 = vector.broadcast %cst : f32 to vector<2x18x18x128xf32>
    %c0_7 = arith.constant 0 : index
    %c0_8 = arith.constant 0 : index
    %c0_9 = arith.constant 0 : index
    %c0_10 = arith.constant 0 : index
    %11 = vector.load %arg7[%c0_7, %c0_8, %c0_9, %c0_10] : memref<2x18x18x128xf32, #tpu.memory_space<vmem>>, vector<2x18x18x128xf32>
    tpu.vector_store %arg7[%c0_7, %c0_8, %c0_9, %c0_10], %10 {strides = array<i32>} : memref<2x18x18x128xf32, #tpu.memory_space<vmem>>, vector<2x18x18x128xf32>,
    %c0_11 = arith.constant 0 : index
    %c1 = arith.constant 1 : index
    %c1_12 = arith.constant 1 : index
    %c0_13 = arith.constant 0 : index
    %12 = vector.load %arg7[%c0_11, %c1, %c1_12, %c0_13] : memref<2x18x18x128xf32, #tpu.memory_space<vmem>>, vector<2x16x16x4xf32>
    tpu.vector_store %arg7[%c0_11, %c1, %c1_12, %c0_13], %9 {strides = array<i32>} : memref<2x18x18x128xf32, #tpu.memory_space<vmem>>, vector<2x16x16x4xf32>,
    %c0_14 = arith.constant 0 : index
    %c0_15 = arith.constant 0 : index
    %c0_16 = arith.constant 0 : index
    %c0_17 = arith.constant 0 : index
    %13 = vector.load %arg7[%c0_14, %c0_15, %c0_16, %c0_17] : memref<2x18x18x128xf32, #tpu.memory_space<vmem>>, vector<2x16x16x128xf32>
    %14 = arith.truncf %13 : vector<2x16x16x128xf32> to vector<2x16x16x128xbf16>
    %c0_18 = arith.constant 0 : index
    %c0_19 = arith.constant 0 : index
    %c1_20 = arith.constant 1 : index
    %c0_21 = arith.constant 0 : index
    %15 = vector.load %arg7[%c0_18, %c0_19, %c1_20, %c0_21] : memref<2x18x18x128xf32, #tpu.memory_space<vmem>>, vector<2x16x16x128xf32>
    %16 = arith.truncf %15 : vector<2x16x16x128xf32> to vector<2x16x16x128xbf16>
    %c0_22 = arith.constant 0 : index
    %c0_23 = arith.constant 0 : index
    %c2 = arith.constant 2 : index
    %c0_24 = arith.constant 0 : index
    %17 = vector.load %arg7[%c0_22, %c0_23, %c2, %c0_24] : memref<2x18x18x128xf32, #tpu.memory_space<vmem>>, vector<2x16x16x128xf32>
    %18 = arith.truncf %17 : vector<2x16x16x128xf32> to vector<2x16x16x128xbf16>
    %c0_25 = arith.constant 0 : index
    %c1_26 = arith.constant 1 : index
    %c0_27 = arith.constant 0 : index
    %c0_28 = arith.constant 0 : index
    %19 = vector.load %arg7[%c0_25, %c1_26, %c0_27, %c0_28] : memref<2x18x18x128xf32, #tpu.memory_space<vmem>>, vector<2x16x16x128xf32>
    %20 = arith.truncf %19 : vector<2x16x16x128xf32> to vector<2x16x16x128xbf16>
    %c0_29 = arith.constant 0 : index
    %c1_30 = arith.constant 1 : index
    %c1_31 = arith.constant 1 : index
    %c0_32 = arith.constant 0 : index
    %21 = vector.load %arg7[%c0_29, %c1_30, %c1_31, %c0_32] : memref<2x18x18x128xf32, #tpu.memory_space<vmem>>, vector<2x16x16x128xf32>
    %22 = arith.truncf %21 : vector<2x16x16x128xf32> to vector<2x16x16x128xbf16>
    %c0_33 = arith.constant 0 : index
    %c1_34 = arith.constant 1 : index
    %c2_35 = arith.constant 2 : index
    %c0_36 = arith.constant 0 : index
    %23 = vector.load %arg7[%c0_33, %c1_34, %c2_35, %c0_36] : memref<2x18x18x128xf32, #tpu.memory_space<vmem>>, vector<2x16x16x128xf32>
    %24 = arith.truncf %23 : vector<2x16x16x128xf32> to vector<2x16x16x128xbf16>
    %c0_37 = arith.constant 0 : index
    %c2_38 = arith.constant 2 : index
    %c0_39 = arith.constant 0 : index
    %c0_40 = arith.constant 0 : index
    %25 = vector.load %arg7[%c0_37, %c2_38, %c0_39, %c0_40] : memref<2x18x18x128xf32, #tpu.memory_space<vmem>>, vector<2x16x16x128xf32>
    %26 = arith.truncf %25 : vector<2x16x16x128xf32> to vector<2x16x16x128xbf16>
    %c0_41 = arith.constant 0 : index
    %c2_42 = arith.constant 2 : index
    %c1_43 = arith.constant 1 : index
    %c0_44 = arith.constant 0 : index
    %27 = vector.load %arg7[%c0_41, %c2_42, %c1_43, %c0_44] : memref<2x18x18x128xf32, #tpu.memory_space<vmem>>, vector<2x16x16x128xf32>
    %28 = arith.truncf %27 : vector<2x16x16x128xf32> to vector<2x16x16x128xbf16>
    %c0_45 = arith.constant 0 : index
    %c2_46 = arith.constant 2 : index
    %c2_47 = arith.constant 2 : index
    %c0_48 = arith.constant 0 : index
    %29 = vector.load %arg7[%c0_45, %c2_46, %c2_47, %c0_48] : memref<2x18x18x128xf32, #tpu.memory_space<vmem>>, vector<2x16x16x128xf32>
    %30 = arith.truncf %29 : vector<2x16x16x128xf32> to vector<2x16x16x128xbf16>
    %31 = tpu.concatenate %14, %16, %18, %20, %22, %24, %26, %28, %30 in 3 : vector<2x16x16x128xbf16>, vector<2x16x16x128xbf16>, vector<2x16x16x128xbf16>, vector<2x16x16x128xbf16>, vector<2x16x16x128xbf16>, vector<2x16x16x128xbf16>, vector<2x16x16x128xbf16>, vector<2x16x16x128xbf16>, vector<2x16x16x128xbf16> -> vector<2x16x16x1152xbf16>
    %32 = vector.shape_cast %31 : vector<2x16x16x1152xbf16> to vector<512x1152xbf16>
    %c0_49 = arith.constant 0 : index
    %c0_50 = arith.constant 0 : index
    %33 = vector.load %arg3[%c0_49, %c0_50] : memref<1152x128xbf16, #tpu.memory_space<vmem>>, vector<1152x128xbf16>
    %cst_51 = arith.constant dense<0.000000e+00> : vector<512x128xf32>
    %34 = tpu.matmul %32, %33, %cst_51 {dimension_numbers = #tpu.dot_dimension_numbers<[1], [0], [0], [1], [0, 0, 1, 1], [], []>} : vector<512x1152xbf16>, vector<1152x128xbf16>, vector<512x128xf32> -> vector<512x128xf32>
    %cst_52 = arith.constant 0.000000e+00 : f32
    %35 = vector.broadcast %cst_52 : f32 to vector<512x128xf32>
    %36 = arith.cmpf oge, %34, %35 : vector<512x128xf32>
    %cst_53 = arith.constant 0.00999999977 : f32
    %37 = vector.broadcast %cst_53 : f32 to vector<512x128xf32>
    %38 = arith.mulf %37, %34 : vector<512x128xf32>
    %39 = arith.select %36, %34, %38 : vector<512x128xi1>, vector<512x128xf32>
    %c0_54 = arith.constant 0 : index
    %c0_55 = arith.constant 0 : index
    %c0_56 = arith.constant 0 : index
    %c0_57 = arith.constant 0 : index
    %40 = vector.load %arg2[%c0_54, %c0_55, %c0_56, %c0_57] : memref<2x16x16x4xbf16, #tpu.memory_space<vmem>>, vector<2x16x16x4xbf16>
    %41 = arith.extf %40 : vector<2x16x16x4xbf16> to vector<2x16x16x4xf32>
    %42 = vector.extract_strided_slice %39 {offsets = [0, 0], sizes = [512, 4], strides = [1, 1]} : vector<512x128xf32> to vector<512x4xf32>
    %43 = vector.shape_cast %42 : vector<512x4xf32> to vector<2x16x16x4xf32>
    %44 = arith.addf %43, %41 : vector<2x16x16x4xf32>
    %c0_58 = arith.constant 0 : index
    %c0_59 = arith.constant 0 : index
    %c0_60 = arith.constant 0 : index
    %c0_61 = arith.constant 0 : index
    %45 = vector.load %arg6[%c0_58, %c0_59, %c0_60, %c0_61] : memref<2x16x16x4xf32, #tpu.memory_space<vmem>>, vector<2x16x16x4xf32>
    tpu.vector_store %arg6[%c0_58, %c0_59, %c0_60, %c0_61], %44 {strides = array<i32>} : memref<2x16x16x4xf32, #tpu.memory_space<vmem>>, vector<2x16x16x4xf32>,
    return
  }
  func.func @transform_0(%arg0: i32) -> (i32, i32, i32, i32) {
    %c0_i32 = arith.constant 0 : i32
    %c0_i32_0 = arith.constant 0 : i32
    %c0_i32_1 = arith.constant 0 : i32
    %c0_i32_2 = arith.constant 0 : i32
    return %arg0, %c0_i32, %c0_i32_0, %c0_i32_1 : i32, i32, i32, i32
  }
  func.func @transform_1(%arg0: i32) -> (i32, i32, i32, i32) {
    %c0_i32 = arith.constant 0 : i32
    %c0_i32_0 = arith.constant 0 : i32
    %c0_i32_1 = arith.constant 0 : i32
    %c0_i32_2 = arith.constant 0 : i32
    return %arg0, %c0_i32, %c0_i32_0, %c0_i32_1 : i32, i32, i32, i32
  }
  func.func @transform_2(%arg0: i32) -> (i32, i32) {
    %c0_i32 = arith.constant 0 : i32
    %c0_i32_0 = arith.constant 0 : i32
    %c0_i32_1 = arith.constant 0 : i32
    return %c0_i32, %c0_i32_0 : i32, i32
  }
  func.func @transform_3(%arg0: i32) -> (i32, i32) {
    %c0_i32 = arith.constant 0 : i32
    %c0_i32_0 = arith.constant 0 : i32
    %c0_i32_1 = arith.constant 0 : i32
    return %c0_i32, %c0_i32_0 : i32, i32
  }
  func.func @transform_4(%arg0: i32) -> (i32, i32) {
    %c0_i32 = arith.constant 0 : i32
    %c0_i32_0 = arith.constant 0 : i32
    %c0_i32_1 = arith.constant 0 : i32
    return %c0_i32, %c0_i32_0 : i32, i32
  }
  func.func @transform_5(%arg0: i32) -> (i32, i32, i32, i32) {
    %c0_i32 = arith.constant 0 : i32
    %c0_i32_0 = arith.constant 0 : i32
    %c0_i32_1 = arith.constant 0 : i32
    %c0_i32_2 = arith.constant 0 : i32
    return %arg0, %c0_i32, %c0_i32_0, %c0_i32_1 : i32, i32, i32, i32
  }
}

module attributes {stable_mosaic.version = 11 : i64} {
  func.func @_conv1_relu_stats_kernel(%arg0: i32, %arg1: memref<2x16x16x4xbf16, #tpu.memory_space<vmem>>, %arg2: memref<1152x128xbf16, #tpu.memory_space<vmem>>, %arg3: memref<2x16x16x4xbf16, #tpu.memory_space<vmem>>, %arg4: memref<1x1x128xf32, #tpu.memory_space<vmem>>, %arg5: memref<1x1x128xf32, #tpu.memory_space<vmem>>, %arg6: memref<2x18x18x128xf32, #tpu.memory_space<vmem>>) attributes {dimension_semantics = [#tpu.dimension_semantics<parallel>], iteration_bounds = array<i64: 1>, scalar_prefetch = 0 : i64, scratch_operands = 1 : i64, tpu.core_type = #tpu.core_type<tc>, window_params = [{transform_indices = @transform_0, window_bounds = array<i64: 2, 16, 16, 4>}, {pipeline_mode = #tpu.pipeline_mode<synchronous>, transform_indices = @transform_1, window_bounds = array<i64: 1152, 128>}, {transform_indices = @transform_2, window_bounds = array<i64: 2, 16, 16, 4>}, {transform_indices = @transform_3, window_bounds = array<i64: 1, 1, 128>}, {transform_indices = @transform_4, window_bounds = array<i64: 1, 1, 128>}]} {
    %cst = arith.constant 0.000000e+00 : f32
    %0 = vector.broadcast %cst : f32 to vector<2x18x18x128xf32>
    %c0 = arith.constant 0 : index
    %c0_0 = arith.constant 0 : index
    %c0_1 = arith.constant 0 : index
    %c0_2 = arith.constant 0 : index
    %1 = vector.load %arg6[%c0, %c0_0, %c0_1, %c0_2] : memref<2x18x18x128xf32, #tpu.memory_space<vmem>>, vector<2x18x18x128xf32>
    tpu.vector_store %arg6[%c0, %c0_0, %c0_1, %c0_2], %0 {strides = array<i32>} : memref<2x18x18x128xf32, #tpu.memory_space<vmem>>, vector<2x18x18x128xf32>,
    %c0_3 = arith.constant 0 : index
    %c0_4 = arith.constant 0 : index
    %c0_5 = arith.constant 0 : index
    %c0_6 = arith.constant 0 : index
    %2 = vector.load %arg1[%c0_3, %c0_4, %c0_5, %c0_6] : memref<2x16x16x4xbf16, #tpu.memory_space<vmem>>, vector<2x16x16x4xbf16>
    %3 = arith.extf %2 : vector<2x16x16x4xbf16> to vector<2x16x16x4xf32>
    %c0_7 = arith.constant 0 : index
    %c1 = arith.constant 1 : index
    %c1_8 = arith.constant 1 : index
    %c0_9 = arith.constant 0 : index
    %4 = vector.load %arg6[%c0_7, %c1, %c1_8, %c0_9] : memref<2x18x18x128xf32, #tpu.memory_space<vmem>>, vector<2x16x16x4xf32>
    tpu.vector_store %arg6[%c0_7, %c1, %c1_8, %c0_9], %3 {strides = array<i32>} : memref<2x18x18x128xf32, #tpu.memory_space<vmem>>, vector<2x16x16x4xf32>,
    %c0_10 = arith.constant 0 : index
    %c0_11 = arith.constant 0 : index
    %c0_12 = arith.constant 0 : index
    %c0_13 = arith.constant 0 : index
    %5 = vector.load %arg6[%c0_10, %c0_11, %c0_12, %c0_13] : memref<2x18x18x128xf32, #tpu.memory_space<vmem>>, vector<2x16x16x128xf32>
    %6 = arith.truncf %5 : vector<2x16x16x128xf32> to vector<2x16x16x128xbf16>
    %c0_14 = arith.constant 0 : index
    %c0_15 = arith.constant 0 : index
    %c1_16 = arith.constant 1 : index
    %c0_17 = arith.constant 0 : index
    %7 = vector.load %arg6[%c0_14, %c0_15, %c1_16, %c0_17] : memref<2x18x18x128xf32, #tpu.memory_space<vmem>>, vector<2x16x16x128xf32>
    %8 = arith.truncf %7 : vector<2x16x16x128xf32> to vector<2x16x16x128xbf16>
    %c0_18 = arith.constant 0 : index
    %c0_19 = arith.constant 0 : index
    %c2 = arith.constant 2 : index
    %c0_20 = arith.constant 0 : index
    %9 = vector.load %arg6[%c0_18, %c0_19, %c2, %c0_20] : memref<2x18x18x128xf32, #tpu.memory_space<vmem>>, vector<2x16x16x128xf32>
    %10 = arith.truncf %9 : vector<2x16x16x128xf32> to vector<2x16x16x128xbf16>
    %c0_21 = arith.constant 0 : index
    %c1_22 = arith.constant 1 : index
    %c0_23 = arith.constant 0 : index
    %c0_24 = arith.constant 0 : index
    %11 = vector.load %arg6[%c0_21, %c1_22, %c0_23, %c0_24] : memref<2x18x18x128xf32, #tpu.memory_space<vmem>>, vector<2x16x16x128xf32>
    %12 = arith.truncf %11 : vector<2x16x16x128xf32> to vector<2x16x16x128xbf16>
    %c0_25 = arith.constant 0 : index
    %c1_26 = arith.constant 1 : index
    %c1_27 = arith.constant 1 : index
    %c0_28 = arith.constant 0 : index
    %13 = vector.load %arg6[%c0_25, %c1_26, %c1_27, %c0_28] : memref<2x18x18x128xf32, #tpu.memory_space<vmem>>, vector<2x16x16x128xf32>
    %14 = arith.truncf %13 : vector<2x16x16x128xf32> to vector<2x16x16x128xbf16>
    %c0_29 = arith.constant 0 : index
    %c1_30 = arith.constant 1 : index
    %c2_31 = arith.constant 2 : index
    %c0_32 = arith.constant 0 : index
    %15 = vector.load %arg6[%c0_29, %c1_30, %c2_31, %c0_32] : memref<2x18x18x128xf32, #tpu.memory_space<vmem>>, vector<2x16x16x128xf32>
    %16 = arith.truncf %15 : vector<2x16x16x128xf32> to vector<2x16x16x128xbf16>
    %c0_33 = arith.constant 0 : index
    %c2_34 = arith.constant 2 : index
    %c0_35 = arith.constant 0 : index
    %c0_36 = arith.constant 0 : index
    %17 = vector.load %arg6[%c0_33, %c2_34, %c0_35, %c0_36] : memref<2x18x18x128xf32, #tpu.memory_space<vmem>>, vector<2x16x16x128xf32>
    %18 = arith.truncf %17 : vector<2x16x16x128xf32> to vector<2x16x16x128xbf16>
    %c0_37 = arith.constant 0 : index
    %c2_38 = arith.constant 2 : index
    %c1_39 = arith.constant 1 : index
    %c0_40 = arith.constant 0 : index
    %19 = vector.load %arg6[%c0_37, %c2_38, %c1_39, %c0_40] : memref<2x18x18x128xf32, #tpu.memory_space<vmem>>, vector<2x16x16x128xf32>
    %20 = arith.truncf %19 : vector<2x16x16x128xf32> to vector<2x16x16x128xbf16>
    %c0_41 = arith.constant 0 : index
    %c2_42 = arith.constant 2 : index
    %c2_43 = arith.constant 2 : index
    %c0_44 = arith.constant 0 : index
    %21 = vector.load %arg6[%c0_41, %c2_42, %c2_43, %c0_44] : memref<2x18x18x128xf32, #tpu.memory_space<vmem>>, vector<2x16x16x128xf32>
    %22 = arith.truncf %21 : vector<2x16x16x128xf32> to vector<2x16x16x128xbf16>
    %23 = tpu.concatenate %6, %8, %10, %12, %14, %16, %18, %20, %22 in 3 : vector<2x16x16x128xbf16>, vector<2x16x16x128xbf16>, vector<2x16x16x128xbf16>, vector<2x16x16x128xbf16>, vector<2x16x16x128xbf16>, vector<2x16x16x128xbf16>, vector<2x16x16x128xbf16>, vector<2x16x16x128xbf16>, vector<2x16x16x128xbf16> -> vector<2x16x16x1152xbf16>
    %24 = vector.shape_cast %23 : vector<2x16x16x1152xbf16> to vector<512x1152xbf16>
    %c0_45 = arith.constant 0 : index
    %c0_46 = arith.constant 0 : index
    %25 = vector.load %arg2[%c0_45, %c0_46] : memref<1152x128xbf16, #tpu.memory_space<vmem>>, vector<1152x128xbf16>
    %cst_47 = arith.constant dense<0.000000e+00> : vector<512x128xf32>
    %26 = tpu.matmul %24, %25, %cst_47 {dimension_numbers = #tpu.dot_dimension_numbers<[1], [0], [0], [1], [0, 0, 1, 1], [], []>} : vector<512x1152xbf16>, vector<1152x128xbf16>, vector<512x128xf32> -> vector<512x128xf32>
    %cst_48 = arith.constant 0.000000e+00 : f32
    %27 = vector.broadcast %cst_48 : f32 to vector<512x128xf32>
    %28 = arith.maximumf %26, %27 : vector<512x128xf32>
    %29 = vector.extract_strided_slice %28 {offsets = [0, 0], sizes = [512, 4], strides = [1, 1]} : vector<512x128xf32> to vector<512x4xf32>
    %30 = vector.shape_cast %29 : vector<512x4xf32> to vector<2x16x16x4xf32>
    %31 = arith.truncf %30 : vector<2x16x16x4xf32> to vector<2x16x16x4xbf16>
    %c0_49 = arith.constant 0 : index
    %c0_50 = arith.constant 0 : index
    %c0_51 = arith.constant 0 : index
    %c0_52 = arith.constant 0 : index
    %32 = vector.load %arg3[%c0_49, %c0_50, %c0_51, %c0_52] : memref<2x16x16x4xbf16, #tpu.memory_space<vmem>>, vector<2x16x16x4xbf16>
    tpu.vector_store %arg3[%c0_49, %c0_50, %c0_51, %c0_52], %31 {strides = array<i32>} : memref<2x16x16x4xbf16, #tpu.memory_space<vmem>>, vector<2x16x16x4xbf16>,
    %cst_53 = arith.constant dense<0.000000e+00> : vector<128xf32>
    %33 = vector.multi_reduction <add>, %28, %cst_53 [0] : vector<512x128xf32> to vector<128xf32>
    %34 = vector.shape_cast %33 : vector<128xf32> to vector<1x128xf32>
    %cst_54 = arith.constant 0.001953125 : f32
    %35 = vector.broadcast %cst_54 : f32 to vector<1x128xf32>
    %36 = arith.mulf %34, %35 : vector<1x128xf32>
    %37 = vector.broadcast %36 : vector<1x128xf32> to vector<512x128xf32>
    %38 = arith.subf %28, %37 : vector<512x128xf32>
    %39 = arith.mulf %38, %38 : vector<512x128xf32>
    %cst_55 = arith.constant dense<0.000000e+00> : vector<128xf32>
    %40 = vector.multi_reduction <add>, %39, %cst_55 [0] : vector<512x128xf32> to vector<128xf32>
    %41 = vector.shape_cast %40 : vector<128xf32> to vector<1x128xf32>
    %42 = vector.shape_cast %34 : vector<1x128xf32> to vector<1x1x128xf32>
    %c0_56 = arith.constant 0 : index
    %c0_57 = arith.constant 0 : index
    %c0_58 = arith.constant 0 : index
    %43 = vector.load %arg4[%c0_56, %c0_57, %c0_58] : memref<1x1x128xf32, #tpu.memory_space<vmem>>, vector<1x1x128xf32>
    tpu.vector_store %arg4[%c0_56, %c0_57, %c0_58], %42 {strides = array<i32>} : memref<1x1x128xf32, #tpu.memory_space<vmem>>, vector<1x1x128xf32>,
    %44 = vector.shape_cast %41 : vector<1x128xf32> to vector<1x1x128xf32>
    %c0_59 = arith.constant 0 : index
    %c0_60 = arith.constant 0 : index
    %c0_61 = arith.constant 0 : index
    %45 = vector.load %arg5[%c0_59, %c0_60, %c0_61] : memref<1x1x128xf32, #tpu.memory_space<vmem>>, vector<1x1x128xf32>
    tpu.vector_store %arg5[%c0_59, %c0_60, %c0_61], %44 {strides = array<i32>} : memref<1x1x128xf32, #tpu.memory_space<vmem>>, vector<1x1x128xf32>,
    return
  }
  func.func @transform_0(%arg0: i32) -> (i32, i32, i32, i32) {
    %c0_i32 = arith.constant 0 : i32
    %c0_i32_0 = arith.constant 0 : i32
    %c0_i32_1 = arith.constant 0 : i32
    %c0_i32_2 = arith.constant 0 : i32
    return %arg0, %c0_i32, %c0_i32_0, %c0_i32_1 : i32, i32, i32, i32
  }
  func.func @transform_1(%arg0: i32) -> (i32, i32) {
    %c0_i32 = arith.constant 0 : i32
    %c0_i32_0 = arith.constant 0 : i32
    %c0_i32_1 = arith.constant 0 : i32
    return %c0_i32, %c0_i32_0 : i32, i32
  }
  func.func @transform_2(%arg0: i32) -> (i32, i32, i32, i32) {
    %c0_i32 = arith.constant 0 : i32
    %c0_i32_0 = arith.constant 0 : i32
    %c0_i32_1 = arith.constant 0 : i32
    %c0_i32_2 = arith.constant 0 : i32
    return %arg0, %c0_i32, %c0_i32_0, %c0_i32_1 : i32, i32, i32, i32
  }
  func.func @transform_3(%arg0: i32) -> (i32, i32, i32) {
    %c0_i32 = arith.constant 0 : i32
    %c0_i32_0 = arith.constant 0 : i32
    %c0_i32_1 = arith.constant 0 : i32
    return %arg0, %c0_i32, %c0_i32_0 : i32, i32, i32
  }
  func.func @transform_4(%arg0: i32) -> (i32, i32, i32) {
    %c0_i32 = arith.constant 0 : i32
    %c0_i32_0 = arith.constant 0 : i32
    %c0_i32_1 = arith.constant 0 : i32
    return %arg0, %c0_i32, %c0_i32_0 : i32, i32, i32
  }
}

</mosaic_0001>

<bundles_post_ra>
// kernel: residual_block_no_bn.2
= control target key start
LH: loop header
LB: loop body
LE: loop exit
PB: predicated region body
PF: predicated region fallthrough
CT: control target
= control target key end

     0   :  { %v4775_v0 = vmov 0   ;;  %v4776_v2 = vmov 0.0   ;;  %vm252_vm0 = vcmask 31744   ;;  %vm3523_vm1 = vcmask 27648   ;;  %s6908_s1 = inlined_call_operand.vmem [shape: bf16[1152,128], index: 1, kind: input, shape index: {}]   ;;  %s6909_s0 = inlined_call_operand.vmem [shape: bf16[2,16,16,4], index: 0, kind: input, shape index: {}]   ;;  %s6910_s2 = inlined_call_operand.vmem [shape: bf16[2,16,16,4], index: 2, kind: output, shape index: {0}]   ;;  %s6911_s3 = inlined_call_operand.vmem [shape: f32[1,1,128], index: 3, kind: output, shape index: {1}]   ;;  %s6912_s4 = inlined_call_operand.vmem [shape: f32[1,1,128], index: 4, kind: output, shape index: {2}]  }
   0x1   :  { %1758 = vmatprep.subr.bf16.mxu1 %v4775_v0  ;;  %2047 = vmatprep.subr.bf16.mxu0 %v4775_v0  ;;  %v4808_v1 = vld [vmem:[%s6908_s1] sm:$0xff]   ;;  %15 = vst [vmem:[#allocation2] sm:$0xff] %v4776_v2  ;;  %16 = vst [vmem:[#allocation2 + $0x8] sm:$0xff] %v4776_v2  ;;  %v4704_v4 = vld [vmem:[%s6908_s1 + $0x8] sm:$0xff]  }
   0x2   :  { %17 = vst [vmem:[#allocation2 + $0x10] sm:$0x3] %v4776_v2  ;;  %18 = vst [vmem:[#allocation2 + $0x18] sm:$0xff] %v4776_v2  ;;  %v4921_v3 = vld [vmem:[%s6908_s1 + $0x80] sm:$0xff]   ;;  %1759 = vmatpush1.bf16.msra.mxu1 %v4808_v1  ;;  %v4932_v5 = vld [vmem:[%s6908_s1 + $0x88] sm:$0xff]  }
   0x3   :  { %19 = vst [vmem:[#allocation2 + $0x20] sm:$0xff] %v4776_v2  ;;  %20 = vst [vmem:[#allocation2 + $0x28] sm:$0x3] %v4776_v2  ;;  %2048 = vmatpush1.bf16.msra.mxu0 %v4921_v3  ;;  %1760 = vmatprep.subr.bf16.mxu1 %v4775_v0  ;;  %v4706_v6 = vld [vmem:[%s6908_s1 + $0x10] sm:$0xff]   ;;  %v4708_v8 = vld [vmem:[%s6908_s1 + $0x18] sm:$0xff]  }
   0x4   :  { %21 = vst [vmem:[#allocation2 + $0x30] sm:$0xff] %v4776_v2  ;;  %22 = vst [vmem:[#allocation2 + $0x38] sm:$0xff] %v4776_v2  ;;  %2049 = vmatprep.subr.bf16.mxu0 %v4775_v0  ;;  %v4943_v7 = vld [vmem:[%s6908_s1 + $0x90] sm:$0xff]   ;;  %v4954_v9 = vld [vmem:[%s6908_s1 + $0x98] sm:$0xff]  }
   0x5   :  { %23 = vst [vmem:[#allocation2 + $0x40] sm:$0x3] %v4776_v2  ;;  %24 = vst [vmem:[#allocation2 + $0x48] sm:$0xff] %v4776_v2  ;;  %v4710_v10 = vld [vmem:[%s6908_s1 + $0x20] sm:$0xff]   ;;  %v4712_v12 = vld [vmem:[%s6908_s1 + $0x28] sm:$0xff]  }
   0x6   :  { %25 = vst [vmem:[#allocation2 + $0x50] sm:$0xff] %v4776_v2  ;;  %26 = vst [vmem:[#allocation2 + $0x58] sm:$0x3] %v4776_v2  ;;  %1761 = vmatpush1.bf16.msra.mxu1 %v4704_v4  ;;  %v4965_v11 = vld [vmem:[%s6908_s1 + $0xa0] sm:$0xff]   ;;  %v4976_v13 = vld [vmem:[%s6908_s1 + $0xa8] sm:$0xff]  }
   0x7   :  { %27 = vst [vmem:[#allocation2 + $0x60] sm:$0xff] %v4776_v2  ;;  %28 = vst [vmem:[#allocation2 + $0x68] sm:$0xff] %v4776_v2  ;;  %2050 = vmatpush1.bf16.msra.mxu0 %v4932_v5  ;;  %1762 = vmatprep.subr.bf16.mxu1 %v4775_v0  ;;  %v4714_v14 = vld [vmem:[%s6908_s1 + $0x30] sm:$0xff]   ;;  %v4716_v16 = vld [vmem:[%s6908_s1 + $0x38] sm:$0xff]  }
   0x8   :  { %29 = vst [vmem:[#allocation2 + $0x70] sm:$0x3] %v4776_v2  ;;  %30 = vst [vmem:[#allocation2 + $0x78] sm:$0xff] %v4776_v2  ;;  %2051 = vmatprep.subr.bf16.mxu0 %v4775_v0  ;;  %v4987_v15 = vld [vmem:[%s6908_s1 + $0xb0] sm:$0xff]   ;;  %v4998_v17 = vld [vmem:[%s6908_s1 + $0xb8] sm:$0xff]  }
   0x9   :  { %31 = vst [vmem:[#allocation2 + $0x80] sm:$0xff] %v4776_v2  ;;  %32 = vst [vmem:[#allocation2 + $0x88] sm:$0x3] %v4776_v2  ;;  %v4718_v18 = vld [vmem:[%s6908_s1 + $0x40] sm:$0xff]   ;;  %v414_v21 = vld [vmem:[#allocation2 + $0x9] sm:$0xff] }
   0xa   :  { %33 = vst [vmem:[#allocation2 + $0x90] sm:$0xff] %v4776_v2  ;;  %34 = vst [vmem:[#allocation2 + $0x98] sm:$0xff] %v4776_v2  ;;  %1763 = vmatpush1.bf16.msra.mxu1 %v4706_v6  ;;  %v5009_v19 = vld [vmem:[%s6908_s1 + $0xc0] sm:$0xff]   ;;  %v4720_v26 = vld [vmem:[%s6908_s1 + $0x48] sm:$0xff]  }
   0xb   :  { %35 = vst [vmem:[#allocation2 + $0xa0] sm:$0x3] %v4776_v2  ;;  %36 = vst [vmem:[#allocation2 + $0xa8] sm:$0xff] %v4776_v2  ;;  %2052 = vmatpush1.bf16.msra.mxu0 %v4943_v7  ;;  %1764 = vmatprep.subr.bf16.mxu1 %v4775_v0  ;;  %v413_v20 = vld [vmem:[#allocation2 + $0x1] sm:$0xff]  ;;  %v4722_v31 = vld [vmem:[%s6908_s1 + $0x50] sm:$0xff]  }
   0xc   :  { %37 = vst [vmem:[#allocation2 + $0xb0] sm:$0xff] %v4776_v2  ;;  %38 = vst [vmem:[#allocation2 + $0xb8] sm:$0x3] %v4776_v2  ;;  %2053 = vmatprep.subr.bf16.mxu0 %v4775_v0  ;;  %v4070_v22 = vld [vmem:[%s6909_s0] sm:$0xff]   ;;  %v477_v23 = vpack.c.bf16 %v414_v21, %v413_v20  ;;  %v5023_v27 = vld [vmem:[%s6908_s1 + $0xc8] sm:$0xff]   ;;  %v4777_v20 = vmov 0.0|0.0  }
   0xd   :  { %39 = vst [vmem:[#allocation2 + $0xc0] sm:$0xff] %v4776_v2  ;;  %40 = vst [vmem:[#allocation2 + $0xc8] sm:$0xff] %v4776_v2  ;;  %v4071_v24 = vunpack.c.l.bf16 %v4070_v22  ;;  %v4072_v25 = vunpack.c.h.bf16 %v4070_v22  ;;  %v4197_v28 = vld [vmem:[%s6909_s0 + $0x8] sm:$0xff]   ;;  %v4198_v32 = vld [vmem:[%s6909_s0 + $0x10] sm:$0xff]  }
   0xe   :  { %41 = vst [vmem:[#allocation2 + $0xd0] sm:$0x3] %v4776_v2  ;;  %42 = vst [vmem:[#allocation2 + $0xd8] sm:$0xff] %v4776_v2  ;;  %1765 = vmatpush1.bf16.msra.mxu1 %v4708_v8  ;;  %1790 = vmatprep.mubr.bf16.mxu1 %v477_v23  ;;  %v4075_v29 = vunpack.c.l.bf16 %v4197_v28  ;;  %v4076_v30 = vunpack.c.h.bf16 %v4197_v28  ;;  %v5044_v33 = vld [vmem:[%s6908_s1 + $0xd0] sm:$0xff]   ;;  %v4079_v34 = vunpack.c.l.bf16 %v4198_v32  ;;  %v4080_v35 = vunpack.c.h.bf16 %v4198_v32  ;;  %v4199_v36 = vld [vmem:[%s6909_s0 + $0x18] sm:$0xff]  }
   0xf   :  { %43 = vst [vmem:[#allocation2 + $0xe0] sm:$0xff] %v4776_v2  ;;  %44 = vst [vmem:[#allocation2 + $0xe8] sm:$0x3] %v4776_v2  ;;  %2054 = vmatpush1.bf16.msra.mxu0 %v4954_v9  ;;  %1766 = vmatprep.subr.bf16.mxu1 %v4775_v0  ;;  %v4083_v37 = vunpack.c.l.bf16 %v4199_v36  ;;  %v4084_v38 = vunpack.c.h.bf16 %v4199_v36  ;;  %v4724_v39 = vld [vmem:[%s6908_s1 + $0x58] sm:$0xff]   ;;  %v4200_v44 = vld [vmem:[%s6909_s0 + $0x20] sm:$0xff]  }
  0x10   :  { %45 = vst [vmem:[#allocation2 + $0xf0] sm:$0xff] %v4776_v2  ;;  %46 = vst [vmem:[#allocation2 + $0xf8] sm:$0xff] %v4776_v2  ;;  %2055 = vmatprep.subr.bf16.mxu0 %v4775_v0  ;;  %v5060_v42 = vld [vmem:[%s6908_s1 + $0xd8] sm:$0xff]   ;;  %v4087_v45 = vunpack.c.l.bf16 %v4200_v44  ;;  %v4088_v46 = vunpack.c.h.bf16 %v4200_v44  ;;  %v4726_v47 = vld [vmem:[%s6908_s1 + $0x60] sm:$0xff]  }
  0x11   :  { %47 = vst [vmem:[#allocation2 + $0x100] sm:$0x3] %v4776_v2  ;;  %48 = vst [vmem:[#allocation2 + $0x108] sm:$0xff] %v4776_v2  ;;  %v5079_v48 = vld [vmem:[%s6908_s1 + $0xe0] sm:$0xff]   ;;  %v4728_v49 = vld [vmem:[%s6908_s1 + $0x68] sm:$0xff]  }
  0x12   :  { %49 = vst [vmem:[#allocation2 + $0x110] sm:$0xff] %v4776_v2  ;;  %50 = vst [vmem:[#allocation2 + $0x118] sm:$0x3] %v4776_v2  ;;  %1767 = vmatpush1.bf16.msra.mxu1 %v4710_v10  ;;  %v5092_v50 = vld [vmem:[%s6908_s1 + $0xe8] sm:$0xff]   ;;  %v4730_v52 = vld [vmem:[%s6908_s1 + $0x70] sm:$0xff]  }
  0x13   :  { %51 = vst [vmem:[#allocation2 + $0x120] sm:$0xff] %v4776_v2  ;;  %52 = vst [vmem:[#allocation2 + $0x128] sm:$0xff] %v4776_v2  ;;  %2056 = vmatpush1.bf16.msra.mxu0 %v4965_v11  ;;  %1768 = vmatprep.subr.bf16.mxu1 %v4775_v0  ;;  %v4201_v51 = vld [vmem:[%s6909_s0 + $0x28] sm:$0xff]   ;;  %v5106_v55 = vld [vmem:[%s6908_s1 + $0xf0] sm:$0xff]  }
  0x14   :  { %53 = vst [vmem:[#allocation2 + $0x130] sm:$0x3] %v4776_v2  ;;  %54 = vst [vmem:[#allocation2 + $0x138] sm:$0xff] %v4776_v2  ;;  %2057 = vmatprep.subr.bf16.mxu0 %v4775_v0  ;;  %v4091_v53 = vunpack.c.l.bf16 %v4201_v51  ;;  %v4092_v54 = vunpack.c.h.bf16 %v4201_v51  ;;  %v4732_v56 = vld [vmem:[%s6908_s1 + $0x78] sm:$0xff]   ;;  %v509_v58 = vld [vmem:[#allocation2 + $0x2] sm:$0xff] }
  0x15   :  { %55 = vst [vmem:[#allocation2 + $0x140] sm:$0xff] %v4776_v2  ;;  %56 = vst [vmem:[#allocation2 + $0x148] sm:$0x3] %v4776_v2  ;;  %v5117_v57 = vld [vmem:[%s6908_s1 + $0xf8] sm:$0xff]   ;;  %v510_v59 = vld [vmem:[#allocation2 + $0xa] sm:$0xff] }
  0x16   :  { %57 = vst [vmem:[#allocation2 + $0x150] sm:$0xff] %v4776_v2  ;;  %58 = vst [vmem:[#allocation2 + $0x158] sm:$0xff] %v4776_v2  ;;  %1769 = vmatpush1.bf16.msra.mxu1 %v4712_v12  ;;  %v4202_v60 = vld [vmem:[%s6909_s0 + $0x30] sm:$0xff]   ;;  %v573_v12 = vpack.c.bf16 %v510_v59, %v509_v58  ;;  %v4735_v21 = vld [vmem:[%s6908_s1 + $0x108] sm:$0xff]  }
  0x17   :  { %59 = vst [vmem:[#allocation2 + $0x160] sm:$0x3] %v4776_v2  ;;  %60 = vst [vmem:[#allocation2 + $0x168] sm:$0xff] %v4776_v2  ;;  %2058 = vmatpush1.bf16.msra.mxu0 %v4976_v13  ;;  %1770 = vmatprep.subr.bf16.mxu1 %v4775_v0  ;;  %v4095_v62 = vunpack.c.l.bf16 %v4202_v60  ;;  %v4096_v63 = vunpack.c.h.bf16 %v4202_v60  ;;  %v4204_v22 = vld [vmem:[%s6909_s0 + $0x40] sm:$0xff]   ;;  %v4205_v23 = vld [vmem:[%s6909_s0 + $0x48] sm:$0xff]  }
  0x18   :  { %61 = vst [vmem:[#allocation2 + $0x170] sm:$0xff] %v4776_v2  ;;  %62 = vst [vmem:[#allocation2 + $0x178] sm:$0x3] %v4776_v2  ;;  %2059 = vmatprep.subr.bf16.mxu0 %v4775_v0  ;;  %v4107_v28 = vunpack.c.l.bf16 %v4205_v23  ;;  %v4209_v51 = vld [vmem:[%s6909_s0 + $0x68] sm:$0xff]  }
  0x19   :  { %63 = vst [vmem:[#allocation2 + $0x180] sm:$0xff] %v4776_v2  ;;  %64 = vst [vmem:[#allocation2 + $0x188] sm:$0xff] %v4776_v2 }
  0x1a   :  { %65 = vst [vmem:[#allocation2 + $0x190] sm:$0x3] %v4776_v2  ;;  %66 = vst [vmem:[#allocation2 + $0x198] sm:$0xff] %v4776_v2  ;;  %1771 = vmatpush1.bf16.msra.mxu1 %v4714_v14  ;;  %v4734_v14 = vld [vmem:[%s6908_s1 + $0x100] sm:$0xff]  }
  0x1b   :  { %67 = vst [vmem:[#allocation2 + $0x1a0] sm:$0xff] %v4776_v2  ;;  %68 = vst [vmem:[#allocation2 + $0x1a8] sm:$0x3] %v4776_v2  ;;  %2060 = vmatpush1.bf16.msra.mxu0 %v4987_v15  ;;  %1772 = vmatprep.subr.bf16.mxu1 %v4775_v0 }
  0x1c   :  { %69 = vst [vmem:[#allocation2 + $0x1b0] sm:$0xff] %v4776_v2  ;;  %70 = vst [vmem:[#allocation2 + $0x1b8] sm:$0xff] %v4776_v2  ;;  %2061 = vmatprep.subr.bf16.mxu0 %v4775_v0 }
  0x1d   :  { %71 = vst [vmem:[#allocation2 + $0x1c0] sm:$0x3] %v4776_v2  ;;  %72 = vst [vmem:[#allocation2 + $0x1c8] sm:$0xff] %v4776_v2 }
  0x1e   :  { %73 = vst [vmem:[#allocation2 + $0x1d0] sm:$0xff] %v4776_v2  ;;  %74 = vst [vmem:[#allocation2 + $0x1d8] sm:$0x3] %v4776_v2  ;;  %1773 = vmatpush1.bf16.msra.mxu1 %v4716_v16 }
  0x1f   :  { %75 = vst [vmem:[#allocation2 + $0x1e0] sm:$0xff] %v4776_v2  ;;  %76 = vst [vmem:[#allocation2 + $0x1e8] sm:$0xff] %v4776_v2  ;;  %2062 = vmatpush1.bf16.msra.mxu0 %v4998_v17  ;;  %1774 = vmatprep.subr.bf16.mxu1 %v4775_v0 }
  0x20   :  { %77 = vst [vmem:[#allocation2 + $0x1f0] sm:$0x3] %v4776_v2  ;;  %78 = vst [vmem:[#allocation2 + $0x1f8] sm:$0xff] %v4776_v2  ;;  %2063 = vmatprep.subr.bf16.mxu0 %v4775_v0 }
  0x21   :  { %79 = vst [vmem:[#allocation2 + $0x200] sm:$0xff] %v4776_v2  ;;  %80 = vst [vmem:[#allocation2 + $0x208] sm:$0x3] %v4776_v2 }
  0x22   :  { %81 = vst [vmem:[#allocation2 + $0x210] sm:$0xff] %v4776_v2  ;;  %82 = vst [vmem:[#allocation2 + $0x218] sm:$0xff] %v4776_v2  ;;  %1775 = vmatpush1.bf16.msra.mxu1 %v4718_v18 }
  0x23   :  { %83 = vst [vmem:[#allocation2 + $0x220] sm:$0x3] %v4776_v2  ;;  %84 = vst [vmem:[#allocation2 + $0x228] sm:$0xff] %v4776_v2  ;;  %2064 = vmatpush1.bf16.msra.mxu0 %v5009_v19  ;;  %1776 = vmatprep.subr.bf16.mxu1 %v4775_v0 }
  0x24   :  { %85 = vst [vmem:[#allocation2 + $0x230] sm:$0xff] %v4776_v2  ;;  %86 = vst [vmem:[#allocation2 + $0x238] sm:$0x3] %v4776_v2  ;;  %2065 = vmatprep.subr.bf16.mxu0 %v4775_v0 }
  0x25   :  { %87 = vst [vmem:[#allocation2 + $0x240] sm:$0xff] %v4776_v2  ;;  %88 = vst [vmem:[#allocation2 + $0x248] sm:$0xff] %v4776_v2 }
  0x26   :  { %89 = vst [vmem:[#allocation2 + $0x250] sm:$0x3] %v4776_v2  ;;  %90 = vst [vmem:[#allocation2 + $0x258] sm:$0xff] %v4776_v2  ;;  %1777 = vmatpush1.bf16.msra.mxu1 %v4720_v26  ;;  %v4104_v26 = vunpack.c.h.bf16 %v4204_v22 }
  0x27   :  { %91 = vst [vmem:[#allocation2 + $0x260] sm:$0xff] %v4776_v2  ;;  %92 = vst [vmem:[#allocation2 + $0x268] sm:$0x3] %v4776_v2  ;;  %2066 = vmatpush1.bf16.msra.mxu0 %v5023_v27  ;;  %1778 = vmatprep.subr.bf16.mxu1 %v4775_v0 }
  0x28   :  { %93 = vst [vmem:[#allocation2 + $0x270] sm:$0xff] %v4776_v2  ;;  %94 = vst [vmem:[#allocation2 + $0x278] sm:$0xff] %v4776_v2  ;;  %2067 = vmatprep.subr.bf16.mxu0 %v4775_v0 }
  0x29   :  { %95 = vst [vmem:[#allocation2 + $0x280] sm:$0x3] %v4776_v2  ;;  %96 = vst [vmem:[#allocation2 + $0x288] sm:$0xff] %v4776_v2 }
  0x2a   :  { %97 = vst [vmem:[#allocation2 + $0x290] sm:$0xff] %v4776_v2  ;;  %98 = vst [vmem:[#allocation2 + $0x298] sm:$0x3] %v4776_v2  ;;  %1779 = vmatpush1.bf16.msra.mxu1 %v4722_v31 }
  0x2b   :  { %99 = vst [vmem:[#allocation2 + $0x2a0] sm:$0xff] %v4776_v2  ;;  %100 = vst [vmem:[#allocation2 + $0x2a8] sm:$0xff] %v4776_v2  ;;  %2068 = vmatpush1.bf16.msra.mxu0 %v5044_v33  ;;  %1780 = vmatprep.subr.bf16.mxu1 %v4775_v0 }
  0x2c   :  { %101 = vst [vmem:[#allocation2 + $0x2b0] sm:$0x3] %v4776_v2  ;;  %102 = vst [vmem:[#allocation2 + $0x2b8] sm:$0xff] %v4776_v2  ;;  %2069 = vmatprep.subr.bf16.mxu0 %v4775_v0 }
  0x2d   :  { %103 = vst [vmem:[#allocation2 + $0x2c0] sm:$0xff] %v4776_v2  ;;  %104 = vst [vmem:[#allocation2 + $0x2c8] sm:$0x3] %v4776_v2 }
  0x2e   :  { %105 = vst [vmem:[#allocation2 + $0x2d0] sm:$0xff] %v4776_v2  ;;  %106 = vst [vmem:[#allocation2 + $0x2d8] sm:$0xff] %v4776_v2  ;;  %1781 = vmatpush1.bf16.msra.mxu1 %v4724_v39 }
  0x2f   :  { %107 = vst [vmem:[#allocation2 + $0x2e0] sm:$0x3] %v4776_v2  ;;  %108 = vst [vmem:[#allocation2 + $0x2e8] sm:$0xff] %v4776_v2  ;;  %2070 = vmatpush1.bf16.msra.mxu0 %v5060_v42  ;;  %1782 = vmatprep.subr.bf16.mxu1 %v4775_v0 }
  0x30   :  { %109 = vst [vmem:[#allocation2 + $0x2f0] sm:$0xff] %v4776_v2  ;;  %110 = vst [vmem:[#allocation2 + $0x2f8] sm:$0x3] %v4776_v2  ;;  %2071 = vmatprep.subr.bf16.mxu0 %v4775_v0 }
  0x31   :  { %111 = vst [vmem:[#allocation2 + $0x300] sm:$0xff] %v4776_v2  ;;  %112 = vst [vmem:[#allocation2 + $0x308] sm:$0xff] %v4776_v2 }
  0x32   :  { %113 = vst [vmem:[#allocation2 + $0x310] sm:$0x3] %v4776_v2  ;;  %114 = vst [vmem:[#allocation2 + $0x318] sm:$0xff] %v4776_v2  ;;  %1783 = vmatpush1.bf16.msra.mxu1 %v4726_v47  ;;  %v4208_v47 = vld [vmem:[%s6909_s0 + $0x60] sm:$0xff]  }
  0x33   :  { %115 = vst [vmem:[#allocation2 + $0x320] sm:$0xff] %v4776_v2  ;;  %116 = vst [vmem:[#allocation2 + $0x328] sm:$0x3] %v4776_v2  ;;  %2072 = vmatpush1.bf16.msra.mxu0 %v5079_v48  ;;  %1784 = vmatprep.subr.bf16.mxu1 %v4775_v0 }
  0x34   :  { %117 = vst [vmem:[#allocation2 + $0x330] sm:$0xff] %v4776_v2  ;;  %118 = vst [vmem:[#allocation2 + $0x338] sm:$0xff] %v4776_v2  ;;  %2073 = vmatprep.subr.bf16.mxu0 %v4775_v0 }
  0x35   :  { %119 = vst [vmem:[#allocation2 + $0x340] sm:$0x3] %v4776_v2  ;;  %120 = vst [vmem:[#allocation2 + $0x348] sm:$0xff] %v4776_v2 }
  0x36   :  { %121 = vst [vmem:[#allocation2 + $0x350] sm:$0xff] %v4776_v2  ;;  %122 = vst [vmem:[#allocation2 + $0x358] sm:$0x3] %v4776_v2  ;;  %1785 = vmatpush1.bf16.msra.mxu1 %v4728_v49  ;;  %v4203_v2 = vld [vmem:[%s6909_s0 + $0x38] sm:$0xff]   ;;  %v4120_v49 = vunpack.c.h.bf16 %v4208_v47 }
  0x37   :  { %253 = vst.msk [vmem:[#allocation2 + $0x19] sm:$0xff] %vm252_vm0, %v4071_v24  ;;  %254 = vst.msk [vmem:[#allocation2 + $0x21] sm:$0xff] %vm252_vm0, %v4072_v25  ;;  %2074 = vmatpush1.bf16.msra.mxu0 %v5092_v50  ;;  %1786 = vmatprep.subr.bf16.mxu1 %v4775_v0  ;;  %v4099_v6 = vunpack.c.l.bf16 %v4203_v2  ;;  %v4100_v8 = vunpack.c.h.bf16 %v4203_v2  ;;  %v4103_v25 = vunpack.c.l.bf16 %v4204_v22 }
  0x38   :  { %255 = vst.msk [vmem:[#allocation2 + $0x31] sm:$0xff] %vm252_vm0, %v4075_v29  ;;  %256 = vst.msk [vmem:[#allocation2 + $0x39] sm:$0xff] %vm252_vm0, %v4076_v30  ;;  %2075 = vmatprep.subr.bf16.mxu0 %v4775_v0  ;;  %v4108_v29 = vunpack.c.h.bf16 %v4205_v23  ;;  %v4206_v30 = vld [vmem:[%s6909_s0 + $0x50] sm:$0xff]  }
  0x39   :  { %257 = vst.msk [vmem:[#allocation2 + $0x49] sm:$0xff] %vm252_vm0, %v4079_v34  ;;  %258 = vst.msk [vmem:[#allocation2 + $0x51] sm:$0xff] %vm252_vm0, %v4080_v35  ;;  %v4111_v35 = vunpack.c.l.bf16 %v4206_v30  ;;  %v4112_v36 = vunpack.c.h.bf16 %v4206_v30 }
  0x3a   :  { %259 = vst.msk [vmem:[#allocation2 + $0x61] sm:$0xff] %vm252_vm0, %v4083_v37  ;;  %260 = vst.msk [vmem:[#allocation2 + $0x69] sm:$0xff] %vm252_vm0, %v4084_v38  ;;  %1787 = vmatpush1.bf16.msra.mxu1 %v4730_v52  ;;  %v4123_v52 = vunpack.c.l.bf16 %v4209_v51 }
  0x3b   :  { %261 = vst.msk [vmem:[#allocation2 + $0x79] sm:$0xff] %vm252_vm0, %v4087_v45  ;;  %262 = vst.msk [vmem:[#allocation2 + $0x81] sm:$0xff] %vm252_vm0, %v4088_v46  ;;  %2076 = vmatpush1.bf16.msra.mxu0 %v5106_v55  ;;  %1788 = vmatprep.subr.bf16.mxu1 %v4775_v0 }
  0x3c   :  { %263 = vst.msk [vmem:[#allocation2 + $0x91] sm:$0xff] %vm252_vm0, %v4091_v53  ;;  %264 = vst.msk [vmem:[#allocation2 + $0x99] sm:$0xff] %vm252_vm0, %v4092_v54  ;;  %2077 = vmatprep.subr.bf16.mxu0 %v4775_v0  ;;  %v4124_v53 = vunpack.c.h.bf16 %v4209_v51  ;;  %v4210_v54 = vld [vmem:[%s6909_s0 + $0x70] sm:$0xff]  }
  0x3d   :  { %265 = vst.msk [vmem:[#allocation2 + $0xa9] sm:$0xff] %vm252_vm0, %v4095_v62  ;;  %266 = vst.msk [vmem:[#allocation2 + $0xb1] sm:$0xff] %vm252_vm0, %v4096_v63  ;;  %v4128_v59 = vunpack.c.h.bf16 %v4210_v54 }
  0x3e   :  { %v605_v40 = vld [vmem:[#allocation2 + $0x18] sm:$0xff]  ;;  %v606_v41 = vld [vmem:[#allocation2 + $0x20] sm:$0xff]  ;;  %1789 = vmatpush1.bf16.msra.mxu1 %v4732_v56  ;;  %267 = vst.msk [vmem:[#allocation2 + $0xc1] sm:$0xff] %vm252_vm0, %v4099_v6  ;;  %268 = vst.msk [vmem:[#allocation2 + $0xc9] sm:$0xff] %vm252_vm0, %v4100_v8 }
  0x3f   :  { %v5062_v43 = vpack.c.bf16 %v606_v41, %v605_v40  ;;  %v415_v61 = vld [vmem:[#allocation2 + $0x19] sm:$0xff]  ;;  %v416_v1 = vld [vmem:[#allocation2 + $0x21] sm:$0xff]  ;;  %v607_v4 = vld [vmem:[#allocation2 + $0x30] sm:$0xff]  ;;  %2078 = vmatpush1.bf16.msra.mxu0 %v5117_v57  ;;  %4348 = vmatprep.subr.bf16.mxu1 %v4775_v0  ;;  %269 = vst.msk [vmem:[#allocation2 + $0xd9] sm:$0xff] %vm252_vm0, %v4103_v25 }
  0x40   :  { %v608_v10 = vld [vmem:[#allocation2 + $0x38] sm:$0xff]  ;;  %v5137_v16 = vpack.c.bf16 %v416_v1, %v415_v61  ;;  %2336 = vmatprep.subr.bf16.mxu0 %v4775_v0  ;;  %v512_v31 = vld [vmem:[#allocation2 + $0x22] sm:$0xff]  ;;  %v610_v37 = vld [vmem:[#allocation2 + $0x50] sm:$0xff]  ;;  %270 = vst.msk [vmem:[#allocation2 + $0xe1] sm:$0xff] %vm252_vm0, %v4104_v26 }
  0x41   :  { %2079 = vmatprep.mubr.bf16.mxu0 %v5062_v43  ;;  %v5140_v18 = vpack.c.bf16 %v608_v10, %v607_v4  ;;  %1791 = vmatmul.mubr.bf16.vlgmr.msra.gmra.mrb[0].mxu1 %v4777_v20  ;;  %v511_v24 = vld [vmem:[#allocation2 + $0x1a] sm:$0xff]  ;;  %v417_v32 = vld [vmem:[#allocation2 + $0x31] sm:$0xff]  ;;  %271 = vst.msk [vmem:[#allocation2 + $0xf1] sm:$0xff] %vm252_vm0, %v4107_v28  ;;  %272 = vst.msk [vmem:[#allocation2 + $0xf9] sm:$0xff] %vm252_vm0, %v4108_v29 }
  0x42   :  { %2080 = vmatmul.mubr.bf16.vlgmr.msra.gmra.mrb[0].mxu0 %v573_v12  ;;  %4364 = vmatpush1.bf16.msra.mxu1 %v4921_v3  ;;  %v418_v34 = vld [vmem:[#allocation2 + $0x39] sm:$0xff]  ;;  %v609_v3 = vld [vmem:[#allocation2 + $0x48] sm:$0xff]  ;;  %273 = vst.msk [vmem:[#allocation2 + $0x109] sm:$0xff] %vm252_vm0, %v4111_v35  ;;  %274 = vst.msk [vmem:[#allocation2 + $0x111] sm:$0xff] %vm252_vm0, %v4112_v36  ;;  %v5166_v38 = vpack.c.bf16 %v512_v31, %v511_v24 }
  0x43   :  { %2337 = vmatpush1.bf16.msra.mxu0 %v4734_v14  ;;  %1798 = vmatprep.mubr.bf16.mxu1 %v5137_v16  ;;  %v5168_v39 = vpack.c.bf16 %v418_v34, %v417_v32  ;;  %v4207_v40 = vld [vmem:[%s6909_s0 + $0x58] sm:$0xff]   ;;  %v4736_v41 = vld [vmem:[%s6908_s1 + $0x110] sm:$0xff]   ;;  %v5177_v44 = vpack.c.bf16 %v610_v37, %v609_v3  ;;  %278 = vst.msk [vmem:[#allocation2 + $0x141] sm:$0xff] %vm252_vm0, %v4120_v49  ;;  %279 = vst.msk [vmem:[#allocation2 + $0x151] sm:$0xff] %vm252_vm0, %v4123_v52 }
  0x44   :  { %2338 = vmatprep.subr.bf16.mxu0 %v4775_v0  ;;  %2087 = vmatprep.mubr.bf16.mxu0 %v5140_v18  ;;  %v4115_v45 = vunpack.c.l.bf16 %v4207_v40  ;;  %v4116_v46 = vunpack.c.h.bf16 %v4207_v40  ;;  %v4737_v56 = vld [vmem:[%s6908_s1 + $0x118] sm:$0xff]   ;;  %v419_v61 = vld [vmem:[#allocation2 + $0x49] sm:$0xff]  ;;  %280 = vst.msk [vmem:[#allocation2 + $0x159] sm:$0xff] %vm252_vm0, %v4124_v53  ;;  %v611_v63 = vld [vmem:[#allocation2 + $0x60] sm:$0xff] }
  0x45   :  { %4349 = vmatprep.subr.bf16.mxu1 %v4775_v0  ;;  %v513_v58 = vld [vmem:[#allocation2 + $0x32] sm:$0xff]  ;;  %v514_v60 = vld [vmem:[#allocation2 + $0x3a] sm:$0xff]  ;;  %v612_v1 = vld [vmem:[#allocation2 + $0x68] sm:$0xff]  ;;  %282 = vst.msk [vmem:[#allocation2 + $0x171] sm:$0xff] %vm252_vm0, %v4128_v59 }
  0x46   :  { %4365 = vmatpush1.bf16.msra.mxu1 %v4932_v5  ;;  %v4119_v5 = vunpack.c.l.bf16 %v4208_v47  ;;  %275 = vst.msk [vmem:[#allocation2 + $0x121] sm:$0xff] %vm252_vm0, %v4115_v45  ;;  %276 = vst.msk [vmem:[#allocation2 + $0x129] sm:$0xff] %vm252_vm0, %v4116_v46  ;;  %v420_v62 = vld [vmem:[#allocation2 + $0x51] sm:$0xff]  ;;  %v5208_v2 = vpack.c.bf16 %v514_v60, %v513_v58  ;;  %v4738_v6 = vld [vmem:[%s6908_s1 + $0x120] sm:$0xff]   ;;  %v5215_v8 = vpack.c.bf16 %v612_v1, %v611_v63 }
  0x47   :  { %2339 = vmatpush1.bf16.msra.mxu0 %v4735_v21  ;;  %4350 = vmatprep.subr.bf16.mxu1 %v4775_v0  ;;  %v5210_v4 = vpack.c.bf16 %v420_v62, %v419_v61  ;;  %v515_v10 = vld [vmem:[#allocation2 + $0x4a] sm:$0xff]  ;;  %v516_v12 = vld [vmem:[#allocation2 + $0x52] sm:$0xff]  ;;  %v421_v14 = vld [vmem:[#allocation2 + $0x61] sm:$0xff] }
  0x48   :  { %2340 = vmatprep.subr.bf16.mxu0 %v4775_v0  ;;  %277 = vst.msk [vmem:[#allocation2 + $0x139] sm:$0xff] %vm252_vm0, %v4119_v5  ;;  %v422_v21 = vld [vmem:[#allocation2 + $0x69] sm:$0xff]  ;;  %v5230_v22 = vpack.c.bf16 %v516_v12, %v515_v10  ;;  %v4212_v24 = vld [vmem:[%s6909_s0 + $0x80] sm:$0xff]   ;;  %v4741_v32 = vld [vmem:[%s6908_s1 + $0x138] sm:$0xff]  }
  0x49   :  { %1799 = vmatmul.mubr.bf16.gmra.mrb[4].mxu1 %v5062_v43  ;;  %v4127_v43 = vunpack.c.l.bf16 %v4210_v54  ;;  %v5232_v23 = vpack.c.bf16 %v422_v21, %v421_v14  ;;  %v4740_v25 = vld [vmem:[%s6908_s1 + $0x130] sm:$0xff]   ;;  %v4135_v28 = vunpack.c.l.bf16 %v4212_v24  ;;  %v4136_v29 = vunpack.c.h.bf16 %v4212_v24  ;;  %v517_v34 = vld [vmem:[#allocation2 + $0x62] sm:$0xff]  ;;  %v423_v36 = vld [vmem:[#allocation2 + $0x79] sm:$0xff] }
  0x4a   :  { %2088 = vmatmul.mubr.bf16.gmra.mrb[4].mxu0 %v5166_v38  ;;  %1806 = vmatprep.mubr.bf16.mxu1 %v5168_v39  ;;  %v518_v35 = vld [vmem:[#allocation2 + $0x6a] sm:$0xff]  ;;  %v424_v3 = vld [vmem:[#allocation2 + $0x81] sm:$0xff]  ;;  %v616_v40 = vld [vmem:[#allocation2 + $0x98] sm:$0xff] }
  0x4b   :  { %2341 = vmatpush1.bf16.msra.mxu0 %v4736_v41  ;;  %2095 = vmatprep.mubr.bf16.mxu0 %v5177_v44  ;;  %281 = vst.msk [vmem:[#allocation2 + $0x169] sm:$0xff] %vm252_vm0, %v4127_v43  ;;  %285 = vst.msk [vmem:[#allocation2 + $0x1c9] sm:$0xff] %vm252_vm0, %v4135_v28  ;;  %v615_v37 = vld [vmem:[#allocation2 + $0x90] sm:$0xff]  ;;  %v4215_v45 = vld [vmem:[%s6909_s0 + $0x98] sm:$0xff]   ;;  %v5278_v52 = vpack.c.bf16 %v518_v35, %v517_v34  ;;  %v5280_v53 = vpack.c.bf16 %v424_v3, %v423_v36 }
  0x4c   :  { %2342 = vmatprep.subr.bf16.mxu0 %v4775_v0  ;;  %4366 = vmatpush1.bf16.msra.mxu1 %v4943_v7  ;;  %v4739_v7 = vld [vmem:[%s6908_s1 + $0x128] sm:$0xff]   ;;  %286 = vst.msk [vmem:[#allocation2 + $0x1d1] sm:$0xff] %vm252_vm0, %v4136_v29  ;;  %v4147_v46 = vunpack.c.l.bf16 %v4215_v45  ;;  %v4148_v47 = vunpack.c.h.bf16 %v4215_v45  ;;  %v4216_v5 = vld [vmem:[%s6909_s0 + $0xa0] sm:$0xff]   ;;  %v5282_v54 = vpack.c.bf16 %v616_v40, %v615_v37  ;;  %v425_v59 = vld [vmem:[#allocation2 + $0x91] sm:$0xff] }
  0x4d   :  { %4351 = vmatprep.subr.bf16.mxu1 %v4775_v0  ;;  %v4742_v49 = vld [vmem:[%s6908_s1 + $0x140] sm:$0xff]   ;;  %v4151_v51 = vunpack.c.l.bf16 %v4216_v5  ;;  %v618_v61 = vld [vmem:[#allocation2 + $0xb0] sm:$0xff]  ;;  %v4745_v10 = vld [vmem:[%s6908_s1 + $0x158] sm:$0xff]  }
  0x4e   :  { %291 = vst.msk [vmem:[#allocation2 + $0x211] sm:$0xff] %vm252_vm0, %v4147_v46  ;;  %292 = vst.msk [vmem:[#allocation2 + $0x219] sm:$0xff] %vm252_vm0, %v4148_v47  ;;  %v519_v58 = vld [vmem:[#allocation2 + $0x7a] sm:$0xff]  ;;  %v520_v43 = vld [vmem:[#allocation2 + $0x82] sm:$0xff] }
  0x4f   :  { %2343 = vmatpush1.bf16.msra.mxu0 %v4737_v56  ;;  %293 = vst.msk [vmem:[#allocation2 + $0x229] sm:$0xff] %vm252_vm0, %v4151_v51  ;;  %v4743_v56 = vld [vmem:[%s6908_s1 + $0x148] sm:$0xff]   ;;  %v426_v60 = vld [vmem:[#allocation2 + $0x99] sm:$0xff]  ;;  %v5299_v62 = vpack.c.bf16 %v520_v43, %v519_v58  ;;  %v4744_v1 = vld [vmem:[%s6908_s1 + $0x150] sm:$0xff]  }
  0x50   :  { %2344 = vmatprep.subr.bf16.mxu0 %v4775_v0  ;;  %4367 = vmatpush1.bf16.msra.mxu1 %v4954_v9  ;;  %v613_v9 = vld [vmem:[#allocation2 + $0x78] sm:$0xff]  ;;  %v5301_v63 = vpack.c.bf16 %v426_v60, %v425_v59  ;;  %v427_v21 = vld [vmem:[#allocation2 + $0xa9] sm:$0xff]  ;;  %v429_v3 = vld [vmem:[#allocation2 + $0xc1] sm:$0xff] }
  0x51   :  { %1807 = vmatmul.mubr.bf16.gmra.mrb[8].mxu1 %v5140_v18  ;;  %4352 = vmatprep.subr.bf16.mxu1 %v4775_v0  ;;  %v614_v18 = vld [vmem:[#allocation2 + $0x80] sm:$0xff]  ;;  %v521_v12 = vld [vmem:[#allocation2 + $0x92] sm:$0xff]  ;;  %v4747_v34 = vld [vmem:[%s6908_s1 + $0x168] sm:$0xff]  }
  0x52   :  { %2096 = vmatmul.mubr.bf16.gmra.mrb[8].mxu0 %v5208_v2  ;;  %1814 = vmatprep.mubr.bf16.mxu1 %v5210_v4  ;;  %v5240_v26 = vpack.c.bf16 %v614_v18, %v613_v9  ;;  %v522_v14 = vld [vmem:[#allocation2 + $0x9a] sm:$0xff]  ;;  %v428_v9 = vld [vmem:[#allocation2 + $0xb1] sm:$0xff]  ;;  %v4751_v58 = vld [vmem:[%s6908_s1 + $0x188] sm:$0xff]  }
  0x53   :  { %2345 = vmatpush1.bf16.msra.mxu0 %v4738_v6  ;;  %2103 = vmatprep.mubr.bf16.mxu0 %v5215_v8  ;;  %v619_v18 = vld [vmem:[#allocation2 + $0xc0] sm:$0xff]  ;;  %v4218_v24 = vld [vmem:[%s6909_s0 + $0xb0] sm:$0xff]  }
  0x54   :  { %2346 = vmatprep.subr.bf16.mxu0 %v4775_v0  ;;  %4368 = vmatpush1.bf16.msra.mxu1 %v4965_v11  ;;  %v4213_v11 = vld [vmem:[%s6909_s0 + $0x88] sm:$0xff]   ;;  %v4159_v28 = vunpack.c.l.bf16 %v4218_v24  ;;  %v4160_v29 = vunpack.c.h.bf16 %v4218_v24  ;;  %v524_v36 = vld [vmem:[#allocation2 + $0xb2] sm:$0xff] }
  0x55   :  { %4353 = vmatprep.subr.bf16.mxu1 %v4775_v0  ;;  %v4139_v30 = vunpack.c.l.bf16 %v4213_v11  ;;  %v4140_v31 = vunpack.c.h.bf16 %v4213_v11  ;;  %v523_v35 = vld [vmem:[#allocation2 + $0xaa] sm:$0xff]  ;;  %v431_v46 = vld [vmem:[#allocation2 + $0xd9] sm:$0xff]  ;;  %v432_v47 = vld [vmem:[#allocation2 + $0xe1] sm:$0xff] }
  0x56   :  { %297 = vst.msk [vmem:[#allocation2 + $0x259] sm:$0xff] %vm252_vm0, %v4159_v28  ;;  %298 = vst.msk [vmem:[#allocation2 + $0x261] sm:$0xff] %vm252_vm0, %v4160_v29  ;;  %v4748_v45 = vld [vmem:[%s6908_s1 + $0x170] sm:$0xff]   ;;  %v5383_v51 = vpack.c.bf16 %v432_v47, %v431_v46  ;;  %v4223_v24 = vld [vmem:[%s6909_s0 + $0xd8] sm:$0xff]  }
  0x57   :  { %2347 = vmatpush1.bf16.msra.mxu0 %v4739_v7  ;;  %287 = vst.msk [vmem:[#allocation2 + $0x1e1] sm:$0xff] %vm252_vm0, %v4139_v30  ;;  %288 = vst.msk [vmem:[#allocation2 + $0x1e9] sm:$0xff] %vm252_vm0, %v4140_v31  ;;  %v5335_v31 = vpack.c.bf16 %v522_v14, %v521_v12  ;;  %v339_v14 = vld [vmem:[#allocation2 + $0x108] sm:$0xff]  ;;  %v341_v29 = vld [vmem:[#allocation2 + $0x120] sm:$0xff] }
  0x58   :  { %2348 = vmatprep.subr.bf16.mxu0 %v4775_v0  ;;  %4369 = vmatpush1.bf16.msra.mxu1 %v4976_v13  ;;  %v4214_v13 = vld [vmem:[%s6909_s0 + $0x90] sm:$0xff]   ;;  %v4225_v46 = vld [vmem:[%s6909_s0 + $0xe8] sm:$0xff]  }
  0x59   :  { %1815 = vmatmul.mubr.bf16.gmra.mrb[12].mxu1 %v5177_v44  ;;  %4354 = vmatprep.subr.bf16.mxu1 %v4775_v0  ;;  %v4143_v41 = vunpack.c.l.bf16 %v4214_v13  ;;  %v4144_v44 = vunpack.c.h.bf16 %v4214_v13  ;;  %v430_v13 = vld [vmem:[#allocation2 + $0xc9] sm:$0xff]  ;;  %v4187_v47 = vunpack.c.l.bf16 %v4225_v46 }
  0x5a   :  { %2104 = vmatmul.mubr.bf16.gmra.mrb[12].mxu0 %v5230_v22  ;;  %1822 = vmatprep.mubr.bf16.mxu1 %v5232_v23 }
  0x5b   :  { %2349 = vmatpush1.bf16.msra.mxu0 %v4740_v25  ;;  %2111 = vmatprep.mubr.bf16.mxu0 %v5240_v26  ;;  %289 = vst.msk [vmem:[#allocation2 + $0x1f9] sm:$0xff] %vm252_vm0, %v4143_v41  ;;  %290 = vst.msk [vmem:[#allocation2 + $0x201] sm:$0xff] %vm252_vm0, %v4144_v44  ;;  %v4211_v25 = vld [vmem:[%s6909_s0 + $0x78] sm:$0xff]   ;;  %v5358_v41 = vpack.c.bf16 %v524_v36, %v523_v35  ;;  %v5360_v44 = vpack.c.bf16 %v430_v13, %v429_v3  ;;  %v4224_v35 = vld [vmem:[%s6909_s0 + $0xe0] sm:$0xff]  }
  0x5c   :  { %2350 = vmatprep.subr.bf16.mxu0 %v4775_v0  ;;  %4370 = vmatpush1.bf16.msra.mxu1 %v4987_v15  ;;  %v4152_v15 = vunpack.c.h.bf16 %v4216_v5  ;;  %v4131_v11 = vunpack.c.l.bf16 %v4211_v25  ;;  %v4132_v30 = vunpack.c.h.bf16 %v4211_v25  ;;  %v4179_v25 = vunpack.c.l.bf16 %v4223_v24  ;;  %311 = vst.msk [vmem:[#allocation2 + $0x301] sm:$0xff] %vm252_vm0, %v4187_v47 }
  0x5d   :  { %4355 = vmatprep.subr.bf16.mxu1 %v4775_v0  ;;  %v4183_v36 = vunpack.c.l.bf16 %v4224_v35  ;;  %v4184_v3 = vunpack.c.h.bf16 %v4224_v35  ;;  %v819_v35 = vld [vmem:[#allocation2 + $0x122] sm:$0xff] }
  0x5e   :  { %294 = vst.msk [vmem:[#allocation2 + $0x231] sm:$0xff] %vm252_vm0, %v4152_v15  ;;  %283 = vst.msk [vmem:[#allocation2 + $0x181] sm:$0xff] %vm252_vm0, %v4131_v11  ;;  %v336_v15 = vld [vmem:[#allocation2 + $0xe0] sm:$0xff]  ;;  %v342_v11 = vld [vmem:[#allocation2 + $0x128] sm:$0xff] }
  0x5f   :  { %2351 = vmatpush1.bf16.msra.mxu0 %v4741_v32  ;;  %284 = vst.msk [vmem:[#allocation2 + $0x189] sm:$0xff] %vm252_vm0, %v4132_v30  ;;  %307 = vst.msk [vmem:[#allocation2 + $0x2d1] sm:$0xff] %vm252_vm0, %v4179_v25  ;;  %v439_v30 = vld [vmem:[#allocation2 + $0x139] sm:$0xff]  ;;  %v817_v25 = vld [vmem:[#allocation2 + $0x10a] sm:$0xff] }
  0x60   :  { %2352 = vmatprep.subr.bf16.mxu0 %v4775_v0  ;;  %4371 = vmatpush1.bf16.msra.mxu1 %v4998_v17  ;;  %v617_v17 = vld [vmem:[#allocation2 + $0xa8] sm:$0xff]  ;;  %309 = vst.msk [vmem:[#allocation2 + $0x2e9] sm:$0xff] %vm252_vm0, %v4183_v36  ;;  %310 = vst.msk [vmem:[#allocation2 + $0x2f1] sm:$0xff] %vm252_vm0, %v4184_v3 }
  0x61   :  { %1823 = vmatmul.mubr.bf16.gmra.mrb[16].mxu1 %v5215_v8  ;;  %4356 = vmatprep.subr.bf16.mxu1 %v4775_v0  ;;  %v5306_v6 = vpack.c.bf16 %v618_v61, %v617_v17  ;;  %v4217_v8 = vld [vmem:[%s6909_s0 + $0xa8] sm:$0xff]   ;;  %v337_v17 = vld [vmem:[#allocation2 + $0xf0] sm:$0xff]  ;;  %v338_v61 = vld [vmem:[#allocation2 + $0xf8] sm:$0xff] }
  0x62   :  { %2112 = vmatmul.mubr.bf16.gmra.mrb[16].mxu0 %v5278_v52  ;;  %1830 = vmatprep.mubr.bf16.mxu1 %v5280_v53  ;;  %v4156_v7 = vunpack.c.h.bf16 %v4217_v8 }
  0x63   :  { %2353 = vmatpush1.bf16.msra.mxu0 %v4742_v49  ;;  %2119 = vmatprep.mubr.bf16.mxu0 %v5282_v54 }
  0x64   :  { %2354 = vmatprep.subr.bf16.mxu0 %v4775_v0  ;;  %4372 = vmatpush1.bf16.msra.mxu1 %v5009_v19  ;;  %v4155_v19 = vunpack.c.l.bf16 %v4217_v8  ;;  %296 = vst.msk [vmem:[#allocation2 + $0x249] sm:$0xff] %vm252_vm0, %v4156_v7  ;;  %v4753_v8 = vld [vmem:[%s6908_s1 + $0x198] sm:$0xff]  }
  0x65   :  { %4357 = vmatprep.subr.bf16.mxu1 %v4775_v0 }
  0x66   :  { %295 = vst.msk [vmem:[#allocation2 + $0x241] sm:$0xff] %vm252_vm0, %v4155_v19  ;;  %v4222_v19 = vld [vmem:[%s6909_s0 + $0xd0] sm:$0xff]  }
  0x67   :  { %2355 = vmatpush1.bf16.msra.mxu0 %v4743_v56  ;;  %v434_v56 = vld [vmem:[#allocation2 + $0xf9] sm:$0xff]  ;;  %v4175_v7 = vunpack.c.l.bf16 %v4222_v19 }
  0x68   :  { %2356 = vmatprep.subr.bf16.mxu0 %v4775_v0  ;;  %4373 = vmatpush1.bf16.msra.mxu1 %v5023_v27  ;;  %v620_v27 = vld [vmem:[#allocation2 + $0xc8] sm:$0xff] }
  0x69   :  { %1831 = vmatmul.mubr.bf16.gmra.mrb[20].mxu1 %v5240_v26  ;;  %4358 = vmatprep.subr.bf16.mxu1 %v4775_v0  ;;  %v4746_v26 = vld [vmem:[%s6908_s1 + $0x160] sm:$0xff]   ;;  %v676_v32 = vpack.c.bf16 %v620_v27, %v619_v18  ;;  %305 = vst.msk [vmem:[#allocation2 + $0x2b9] sm:$0xff] %vm252_vm0, %v4175_v7  ;;  %v438_v18 = vld [vmem:[#allocation2 + $0x129] sm:$0xff] }
  0x6a   :  { %2120 = vmatmul.mubr.bf16.gmra.mrb[20].mxu0 %v5299_v62  ;;  %1838 = vmatprep.mubr.bf16.mxu1 %v5301_v63  ;;  %v4755_v27 = vld [vmem:[%s6908_s1 + $0x1a8] sm:$0xff]  }
  0x6b   :  { %2357 = vmatpush1.bf16.msra.mxu0 %v4744_v1  ;;  %2127 = vmatprep.mubr.bf16.mxu0 %v5306_v6  ;;  %v435_v1 = vld [vmem:[#allocation2 + $0x109] sm:$0xff] }
  0x6c   :  { %2358 = vmatprep.subr.bf16.mxu0 %v4775_v0  ;;  %4374 = vmatpush1.bf16.msra.mxu1 %v5044_v33  ;;  %v5337_v33 = vpack.c.bf16 %v428_v9, %v427_v21  ;;  %v340_v21 = vld [vmem:[#allocation2 + $0x110] sm:$0xff]  ;;  %v437_v9 = vld [vmem:[#allocation2 + $0x121] sm:$0xff] }
  0x6d   :  { %4359 = vmatprep.subr.bf16.mxu1 %v4775_v0  ;;  %v5438_v28 = vpack.c.bf16 %v438_v18, %v437_v9  ;;  %v351_v18 = vld [vmem:[#allocation2 + $0x1c8] sm:$0xff] }
  0x6f   :  { %2359 = vmatpush1.bf16.msra.mxu0 %v4745_v10  ;;  %v4176_v10 = vunpack.c.h.bf16 %v4222_v19  ;;  %v4761_v19 = vld [vmem:[%s6908_s1 + $0x1d8] sm:$0xff]  }
  0x70   :  { %2360 = vmatprep.subr.bf16.mxu0 %v4775_v0  ;;  %4375 = vmatpush1.bf16.msra.mxu1 %v5060_v42  ;;  %v4219_v42 = vld [vmem:[%s6909_s0 + $0xb8] sm:$0xff]  }
  0x71   :  { %1839 = vmatmul.mubr.bf16.gmra.mrb[24].mxu1 %v5282_v54  ;;  %4360 = vmatprep.subr.bf16.mxu1 %v4775_v0  ;;  %v4163_v37 = vunpack.c.l.bf16 %v4219_v42  ;;  %v4164_v40 = vunpack.c.h.bf16 %v4219_v42  ;;  %v433_v54 = vld [vmem:[#allocation2 + $0xf1] sm:$0xff]  ;;  %306 = vst.msk [vmem:[#allocation2 + $0x2c1] sm:$0xff] %vm252_vm0, %v4176_v10 }
  0x72   :  { %2128 = vmatmul.mubr.bf16.gmra.mrb[24].mxu0 %v5335_v31  ;;  %1846 = vmatprep.mubr.bf16.mxu1 %v5337_v33  ;;  %v5402_v60 = vpack.c.bf16 %v434_v56, %v433_v54  ;;  %v343_v42 = vld [vmem:[#allocation2 + $0x138] sm:$0xff]  ;;  %v811_v54 = vld [vmem:[#allocation2 + $0xc2] sm:$0xff]  ;;  %v812_v56 = vld [vmem:[#allocation2 + $0xca] sm:$0xff] }
  0x73   :  { %2361 = vmatpush1.bf16.msra.mxu0 %v4746_v26  ;;  %2135 = vmatprep.mubr.bf16.mxu0 %v676_v32  ;;  %299 = vst.msk [vmem:[#allocation2 + $0x271] sm:$0xff] %vm252_vm0, %v4163_v37  ;;  %300 = vst.msk [vmem:[#allocation2 + $0x279] sm:$0xff] %vm252_vm0, %v4164_v40  ;;  %v4180_v26 = vunpack.c.h.bf16 %v4223_v24  ;;  %v344_v37 = vld [vmem:[#allocation2 + $0x140] sm:$0xff]  ;;  %v441_v40 = vld [vmem:[#allocation2 + $0x151] sm:$0xff] }
  0x74   :  { %2362 = vmatprep.subr.bf16.mxu0 %v4775_v0  ;;  %4376 = vmatpush1.bf16.msra.mxu1 %v5079_v48  ;;  %v4749_v48 = vld [vmem:[%s6908_s1 + $0x178] sm:$0xff]   ;;  %v449_v24 = vld [vmem:[#allocation2 + $0x1e1] sm:$0xff] }
  0x75   :  { %4361 = vmatprep.subr.bf16.mxu1 %v4775_v0  ;;  %308 = vst.msk [vmem:[#allocation2 + $0x2d9] sm:$0xff] %vm252_vm0, %v4180_v26  ;;  %v448_v10 = vld [vmem:[#allocation2 + $0x1d1] sm:$0xff] }
  0x76   :  { %v818_v26 = vld [vmem:[#allocation2 + $0x112] sm:$0xff] }
  0x77   :  { %2363 = vmatpush1.bf16.msra.mxu0 %v4747_v34  ;;  %v4757_v34 = vld [vmem:[%s6908_s1 + $0x1b8] sm:$0xff]  }
  0x78   :  { %2364 = vmatprep.subr.bf16.mxu0 %v4775_v0  ;;  %4377 = vmatpush1.bf16.msra.mxu1 %v5092_v50  ;;  %v4220_v50 = vld [vmem:[%s6909_s0 + $0xc0] sm:$0xff]  }
  0x79   :  { %1847 = vmatmul.mubr.bf16.gmra.mrb[28].mxu1 %v5306_v6  ;;  %4362 = vmatprep.subr.bf16.mxu1 %v4775_v0  ;;  %v4167_v5 = vunpack.c.l.bf16 %v4220_v50  ;;  %v4168_v49 = vunpack.c.h.bf16 %v4220_v50  ;;  %v436_v6 = vld [vmem:[#allocation2 + $0x111] sm:$0xff]  ;;  %v4188_v50 = vunpack.c.h.bf16 %v4225_v46  ;;  %v822_v46 = vld [vmem:[#allocation2 + $0x142] sm:$0xff] }
  0x7a   :  { %2136 = vmatmul.mubr.bf16.gmra.mrb[28].mxu0 %v5358_v41  ;;  %1854 = vmatprep.mubr.bf16.mxu1 %v5360_v44  ;;  %v5420_v12 = vpack.c.bf16 %v436_v6, %v435_v1  ;;  %v813_v1 = vld [vmem:[#allocation2 + $0xda] sm:$0xff]  ;;  %v814_v6 = vld [vmem:[#allocation2 + $0xe2] sm:$0xff] }
  0x7b   :  { %2365 = vmatpush1.bf16.msra.mxu0 %v4748_v45  ;;  %2368 = vmatprep.mubr.bf16.mxu0 %v5166_v38  ;;  %v4750_v38 = vld [vmem:[%s6908_s1 + $0x180] sm:$0xff]   ;;  %301 = vst.msk [vmem:[#allocation2 + $0x289] sm:$0xff] %vm252_vm0, %v4167_v5  ;;  %302 = vst.msk [vmem:[#allocation2 + $0x291] sm:$0xff] %vm252_vm0, %v4168_v49  ;;  %v345_v49 = vld [vmem:[#allocation2 + $0x150] sm:$0xff]  ;;  %v5501_v7 = vpack.c.bf16 %v814_v6, %v813_v1 }
  0x7c   :  { %2366 = vmatprep.subr.bf16.mxu0 %v4775_v0  ;;  %4378 = vmatpush1.bf16.msra.mxu1 %v5106_v55  ;;  %v335_v55 = vld [vmem:[#allocation2 + $0xd8] sm:$0xff]  ;;  %312 = vst.msk [vmem:[#allocation2 + $0x309] sm:$0xff] %vm252_vm0, %v4188_v50  ;;  %v357_v50 = vld [vmem:[#allocation2 + $0x210] sm:$0xff]  ;;  %v361_v6 = vld [vmem:[#allocation2 + $0x240] sm:$0xff] }
  0x7d   :  { %4363 = vmatprep.subr.bf16.mxu1 %v4775_v0  ;;  %v442_v45 = vld [vmem:[#allocation2 + $0x159] sm:$0xff] }
  0x7e   :  { %v5474_v5 = vpack.c.bf16 %v442_v45, %v441_v40  ;;  %v453_v40 = vld [vmem:[#allocation2 + $0x211] sm:$0xff]  ;;  %v454_v45 = vld [vmem:[#allocation2 + $0x219] sm:$0xff] }
  0x7f   :  { %2367 = vmatpush1.bf16.msra.mxu0 %v4749_v48  ;;  %v4759_v48 = vld [vmem:[%s6908_s1 + $0x1c8] sm:$0xff]   ;;  %v5542_v47 = vpack.c.bf16 %v454_v45, %v453_v40 }
  0x80   :  { %2625 = vmatprep.subr.bf16.mxu0 %v4775_v0  ;;  %4379 = vmatpush1.bf16.msra.mxu1 %v5117_v57  ;;  %v4221_v57 = vld [vmem:[%s6909_s0 + $0xc8] sm:$0xff]  }
  0x81   :  { %1855 = vmatmul.mubr.bf16.gmra.mrb[32].mxu1 %v676_v32  ;;  %v4171_v43 = vunpack.c.l.bf16 %v4221_v57  ;;  %v4172_v59 = vunpack.c.h.bf16 %v4221_v57  ;;  %v440_v32 = vld [vmem:[#allocation2 + $0x141] sm:$0xff]  ;;  %v832_v45 = vld [vmem:[#allocation2 + $0x1ea] sm:$0xff] }
  0x82   :  { %2369 = vmatmul.mubr.bf16.vlgmr.msra.gmra.mrb[0].mxu0 %v5137_v16  ;;  %1862 = vmatprep.mubr.bf16.mxu1 %v5383_v51  ;;  %v390_v16 = vpack.c.bf16 %v336_v15, %v335_v55  ;;  %v5456_v13 = vpack.c.bf16 %v440_v32, %v439_v30  ;;  %v443_v55 = vld [vmem:[#allocation2 + $0x169] sm:$0xff]  ;;  %v444_v15 = vld [vmem:[#allocation2 + $0x171] sm:$0xff]  ;;  %v451_v32 = vld [vmem:[#allocation2 + $0x1f9] sm:$0xff] }
  0x83   :  { %2626 = vmatpush1.bf16.msra.mxu0 %v4750_v38  ;;  %2376 = vmatprep.mubr.bf16.mxu0 %v5208_v2  ;;  %v4752_v2 = vld [vmem:[%s6908_s1 + $0x190] sm:$0xff]   ;;  %303 = vst.msk [vmem:[#allocation2 + $0x2a1] sm:$0xff] %vm252_vm0, %v4171_v43  ;;  %304 = vst.msk [vmem:[#allocation2 + $0x2a9] sm:$0xff] %vm252_vm0, %v4172_v59  ;;  %v346_v38 = vld [vmem:[#allocation2 + $0x158] sm:$0xff]  ;;  %v5489_v43 = vpack.c.bf16 %v444_v15, %v443_v55  ;;  %v5491_v59 = vpack.c.bf16 %v812_v56, %v811_v54 }
  0x84   :  { %2627 = vmatprep.subr.bf16.mxu0 %v4775_v0  ;;  %v395_v57 = vpack.c.bf16 %v346_v38, %v345_v49  ;;  %v354_v30 = vld [vmem:[#allocation2 + $0x1e8] sm:$0xff]  ;;  %v456_v38 = vld [vmem:[#allocation2 + $0x231] sm:$0xff]  ;;  %v824_v15 = vld [vmem:[#allocation2 + $0x15a] sm:$0xff] }
  0x85   :  { %v455_v49 = vld [vmem:[#allocation2 + $0x229] sm:$0xff]  ;;  %v823_v55 = vld [vmem:[#allocation2 + $0x152] sm:$0xff] }
  0x86   :  { %v5549_v56 = vpack.c.bf16 %v456_v38, %v455_v49  ;;  %v831_v40 = vld [vmem:[#allocation2 + $0x1e2] sm:$0xff] }
  0x87   :  { %2628 = vmatpush1.bf16.msra.mxu0 %v4751_v58  ;;  %v4226_v58 = vld [vmem:[%s6909_s0 + $0xf0] sm:$0xff]  }
  0x88   :  { %2629 = vmatprep.subr.bf16.mxu0 %v4775_v0 }
  0x89   :  { %1863 = vmatmul.mubr.bf16.gmra.mrb[36].mxu1 %v390_v16  ;;  %v4191_v16 = vunpack.c.l.bf16 %v4226_v58 }
  0x8a   :  { %2377 = vmatmul.mubr.bf16.gmra.mrb[4].mxu0 %v5168_v39  ;;  %1870 = vmatprep.mubr.bf16.mxu1 %v5402_v60  ;;  %v391_v39 = vpack.c.bf16 %v338_v61, %v337_v17  ;;  %v445_v17 = vld [vmem:[#allocation2 + $0x1b1] sm:$0xff]  ;;  %v446_v61 = vld [vmem:[#allocation2 + $0x1b9] sm:$0xff]  ;;  %v465_v49 = vld [vmem:[#allocation2 + $0x2a1] sm:$0xff] }
  0x8b   :  { %2384 = vmatprep.mubr.bf16.mxu0 %v5230_v22  ;;  %2630 = vmatpush1.bf16.msra.mxu0 %v4752_v2  ;;  %v4754_v22 = vld [vmem:[%s6908_s1 + $0x1a0] sm:$0xff]   ;;  %313 = vst.msk [vmem:[#allocation2 + $0x319] sm:$0xff] %vm252_vm0, %v4191_v16  ;;  %v348_v2 = vld [vmem:[#allocation2 + $0x170] sm:$0xff] }
  0x8c   :  { %2631 = vmatprep.subr.bf16.mxu0 %v4775_v0  ;;  %v4766_v16 = vld [vmem:[%s6908_s1 + $0x1f0] sm:$0xff]  }
  0x8d   :  { %v466_v38 = vld [vmem:[#allocation2 + $0x2a9] sm:$0xff] }
  0x8f   :  { %2632 = vmatpush1.bf16.msra.mxu0 %v4753_v8 }
  0x90   :  { %2633 = vmatprep.subr.bf16.mxu0 %v4775_v0 }
  0x91   :  { %1871 = vmatmul.mubr.bf16.gmra.mrb[40].mxu1 %v391_v39  ;;  %v493_v39 = vpack.c.bf16 %v446_v61, %v445_v17  ;;  %v826_v17 = vld [vmem:[#allocation2 + $0x172] sm:$0xff] }
  0x92   :  { %2385 = vmatmul.mubr.bf16.gmra.mrb[8].mxu0 %v5210_v4  ;;  %1878 = vmatprep.mubr.bf16.mxu1 %v5420_v12  ;;  %v392_v4 = vpack.c.bf16 %v340_v21, %v339_v14  ;;  %v816_v14 = vld [vmem:[#allocation2 + $0xfa] sm:$0xff] }
  0x93   :  { %2392 = vmatprep.mubr.bf16.mxu0 %v5278_v52  ;;  %2634 = vmatpush1.bf16.msra.mxu0 %v4754_v22  ;;  %v4756_v52 = vld [vmem:[%s6908_s1 + $0x1b0] sm:$0xff]  }
  0x94   :  { %2635 = vmatprep.subr.bf16.mxu0 %v4775_v0  ;;  %v815_v22 = vld [vmem:[#allocation2 + $0xf2] sm:$0xff] }
  0x95   :  { %v5508_v9 = vpack.c.bf16 %v816_v14, %v815_v22 }
  0x97   :  { %2636 = vmatpush1.bf16.msra.mxu0 %v4755_v27  ;;  %v352_v27 = vld [vmem:[#allocation2 + $0x1d0] sm:$0xff] }
  0x98   :  { %2637 = vmatprep.subr.bf16.mxu0 %v4775_v0 }
  0x99   :  { %1879 = vmatmul.mubr.bf16.gmra.mrb[44].mxu1 %v392_v4  ;;  %v450_v4 = vld [vmem:[#allocation2 + $0x1e9] sm:$0xff] }
  0x9a   :  { %2393 = vmatmul.mubr.bf16.gmra.mrb[12].mxu0 %v5232_v23  ;;  %1886 = vmatprep.mubr.bf16.mxu1 %v5438_v28  ;;  %v393_v23 = vpack.c.bf16 %v342_v11, %v341_v29  ;;  %v5525_v29 = vpack.c.bf16 %v818_v26, %v817_v25  ;;  %v353_v11 = vld [vmem:[#allocation2 + $0x1e0] sm:$0xff]  ;;  %v4768_v26 = vld [vmem:[%s6908_s1 + $0x1f8] sm:$0xff]  }
  0x9b   :  { %2400 = vmatprep.mubr.bf16.mxu0 %v5299_v62  ;;  %2638 = vmatpush1.bf16.msra.mxu0 %v4756_v52  ;;  %v4758_v62 = vld [vmem:[%s6908_s1 + $0x1c0] sm:$0xff]   ;;  %v5523_v52 = vpack.c.bf16 %v450_v4, %v449_v24  ;;  %v399_v36 = vpack.c.bf16 %v354_v30, %v353_v11  ;;  %v363_v24 = vld [vmem:[#allocation2 + $0x258] sm:$0xff]  ;;  %v829_v30 = vld [vmem:[#allocation2 + $0x1ca] sm:$0xff] }
  0x9c   :  { %2639 = vmatprep.subr.bf16.mxu0 %v4775_v0  ;;  %v364_v4 = vld [vmem:[#allocation2 + $0x260] sm:$0xff] }
  0x9d   :  { %v731_v25 = vld [vmem:[#allocation2 + $0x181] sm:$0xff]  ;;  %v462_v11 = vld [vmem:[#allocation2 + $0x279] sm:$0xff] }
  0x9f   :  { %2640 = vmatpush1.bf16.msra.mxu0 %v4757_v34  ;;  %v452_v34 = vld [vmem:[#allocation2 + $0x201] sm:$0xff] }
  0xa0   :  { %2641 = vmatprep.subr.bf16.mxu0 %v4775_v0  ;;  %v5531_v3 = vpack.c.bf16 %v452_v34, %v451_v32  ;;  %v830_v32 = vld [vmem:[#allocation2 + $0x1d2] sm:$0xff]  ;;  %v5579_v34 = vpack.c.bf16 %v364_v4, %v363_v24 }
  0xa1   :  { %1887 = vmatmul.mubr.bf16.gmra.mrb[48].mxu1 %v393_v23  ;;  %v820_v23 = vld [vmem:[#allocation2 + $0x12a] sm:$0xff] }
  0xa2   :  { %2401 = vmatmul.mubr.bf16.gmra.mrb[16].mxu0 %v5280_v53  ;;  %1894 = vmatprep.mubr.bf16.mxu1 %v5456_v13  ;;  %v394_v53 = vpack.c.bf16 %v344_v37, %v343_v42  ;;  %v356_v42 = vld [vmem:[#allocation2 + $0x200] sm:$0xff]  ;;  %v4764_v37 = vld [vmem:[%s6908_s1 + $0x1e8] sm:$0xff]  }
  0xa3   :  { %2408 = vmatprep.mubr.bf16.mxu0 %v5335_v31  ;;  %2642 = vmatpush1.bf16.msra.mxu0 %v4758_v62  ;;  %v4760_v31 = vld [vmem:[%s6908_s1 + $0x1d0] sm:$0xff]   ;;  %v5533_v62 = vpack.c.bf16 %v820_v23, %v819_v35 }
  0xa4   :  { %2643 = vmatprep.subr.bf16.mxu0 %v4775_v0 }
  0xa7   :  { %2644 = vmatpush1.bf16.msra.mxu0 %v4759_v48  ;;  %v821_v48 = vld [vmem:[#allocation2 + $0x13a] sm:$0xff] }
  0xa8   :  { %2645 = vmatprep.subr.bf16.mxu0 %v4775_v0 }
  0xa9   :  { %1895 = vmatmul.mubr.bf16.gmra.mrb[52].mxu1 %v394_v53 }
  0xaa   :  { %2409 = vmatmul.mubr.bf16.gmra.mrb[20].mxu0 %v5301_v63  ;;  %1902 = vmatprep.mubr.bf16.mxu1 %v5474_v5  ;;  %v4192_v63 = vunpack.c.h.bf16 %v4226_v58  ;;  %v5551_v58 = vpack.c.bf16 %v824_v15, %v823_v55  ;;  %v833_v55 = vld [vmem:[#allocation2 + $0x1fa] sm:$0xff]  ;;  %v834_v15 = vld [vmem:[#allocation2 + $0x202] sm:$0xff] }
  0xab   :  { %2416 = vmatprep.mubr.bf16.mxu0 %v5358_v41  ;;  %2646 = vmatpush1.bf16.msra.mxu0 %v4760_v31  ;;  %v347_v41 = vld [vmem:[#allocation2 + $0x168] sm:$0xff]  ;;  %v358_v31 = vld [vmem:[#allocation2 + $0x218] sm:$0xff] }
  0xac   :  { %2647 = vmatprep.subr.bf16.mxu0 %v4775_v0  ;;  %314 = vst.msk [vmem:[#allocation2 + $0x321] sm:$0xff] %vm252_vm0, %v4192_v63  ;;  %v396_v8 = vpack.c.bf16 %v348_v2, %v347_v41  ;;  %v401_v54 = vpack.c.bf16 %v358_v31, %v357_v50  ;;  %v457_v63 = vld [vmem:[#allocation2 + $0x241] sm:$0xff]  ;;  %v458_v41 = vld [vmem:[#allocation2 + $0x249] sm:$0xff] }
  0xad   :  { %v825_v2 = vld [vmem:[#allocation2 + $0x16a] sm:$0xff]  ;;  %v5560_v1 = vpack.c.bf16 %v458_v41, %v457_v63  ;;  %v467_v63 = vld [vmem:[#allocation2 + $0x2b9] sm:$0xff]  ;;  %v468_v41 = vld [vmem:[#allocation2 + $0x2c1] sm:$0xff] }
  0xae   :  { %v367_v50 = vld [vmem:[#allocation2 + $0x288] sm:$0xff]  ;;  %v368_v31 = vld [vmem:[#allocation2 + $0x290] sm:$0xff] }
  0xaf   :  { %2648 = vmatpush1.bf16.msra.mxu0 %v4761_v19  ;;  %v459_v19 = vld [vmem:[#allocation2 + $0x259] sm:$0xff] }
  0xb0   :  { %2649 = vmatprep.subr.bf16.mxu0 %v4775_v0 }
  0xb1   :  { %1903 = vmatmul.mubr.bf16.gmra.mrb[56].mxu1 %v395_v57  ;;  %v360_v57 = vld [vmem:[#allocation2 + $0x230] sm:$0xff] }
  0xb2   :  { %2417 = vmatmul.mubr.bf16.gmra.mrb[24].mxu0 %v5337_v33  ;;  %1910 = vmatprep.mubr.bf16.mxu1 %v5489_v43  ;;  %v447_v33 = vld [vmem:[#allocation2 + $0x1c9] sm:$0xff] }
  0xb3   :  { %2424 = vmatprep.mubr.bf16.mxu0 %v5491_v59  ;;  %v5506_v21 = vpack.c.bf16 %v448_v10, %v447_v33  ;;  %v827_v33 = vld [vmem:[#allocation2 + $0x182] sm:$0xff]  ;;  %v828_v10 = vld [vmem:[#allocation2 + $0x18a] sm:$0xff] }
  0xb9   :  { %1911 = vmatmul.mubr.bf16.gmra.mrb[60].mxu1 %v396_v8  ;;  %v362_v8 = vld [vmem:[#allocation2 + $0x248] sm:$0xff] }
  0xba   :  { %2425 = vmatmul.mubr.bf16.gmra.mrb[28].mxu0 %v5360_v44  ;;  %1918 = vmatprep.mubr.bf16.mxu1 %v493_v39  ;;  %v5516_v44 = vld [vmem:[%s6908_s1 + $0x200] sm:$0xff]   ;;  %v403_v22 = vpack.c.bf16 %v362_v8, %v361_v6  ;;  %v5610_v6 = vpack.c.bf16 %v468_v41, %v467_v63 }
  0xbb   :  { %2432 = vmatprep.mubr.bf16.mxu0 %v5501_v7  ;;  %4268 = vmatprep.subr.bf16.mxu1 %v5516_v44  ;;  %v460_v39 = vld [vmem:[#allocation2 + $0x261] sm:$0xff] }
  0xc1   :  { %1919 = vmatmul.mubr.bf16.gmra.mrb[64].mxu1 %v4777_v20  ;;  %v398_v20 = vpack.c.bf16 %v352_v27, %v351_v18  ;;  %v5570_v27 = vpack.c.bf16 %v460_v39, %v459_v19  ;;  %v372_v19 = vld [vmem:[#allocation2 + $0x2c0] sm:$0xff]  ;;  %v469_v39 = vld [vmem:[#allocation2 + $0x2d1] sm:$0xff] }
  0xc2   :  { %2433 = vmatmul.mubr.bf16.gmra.mrb[32].mxu0 %v5383_v51  ;;  %1926 = vmatprep.mubr.bf16.mxu1 %v5506_v21  ;;  %v4763_v51 = vld [vmem:[%s6908_s1 + $0x1e0] sm:$0xff]  }
  0xc3   :  { %2440 = vmatprep.mubr.bf16.mxu0 %v5508_v9  ;;  %2650 = vmatpush1.bf16.msra.mxu0 %v4763_v51  ;;  %v461_v51 = vld [vmem:[#allocation2 + $0x271] sm:$0xff] }
  0xc4   :  { %2651 = vmatprep.subr.bf16.mxu0 %v4775_v0  ;;  %v5581_v23 = vpack.c.bf16 %v462_v11, %v461_v51  ;;  %v472_v51 = vld [vmem:[#allocation2 + $0x2f1] sm:$0xff] }
  0xc7   :  { %2652 = vmatpush1.bf16.msra.mxu0 %v4764_v37  ;;  %v464_v37 = vld [vmem:[#allocation2 + $0x291] sm:$0xff] }
  0xc8   :  { %2653 = vmatprep.subr.bf16.mxu0 %v4775_v0 }
  0xc9   :  { %1927 = vmatmul.mubr.bf16.gmra.mrb[68].mxu1 %v398_v20  ;;  %v732_v20 = vld [vmem:[#allocation2 + $0x189] sm:$0xff] }
  0xca   :  { %2441 = vmatmul.mubr.bf16.gmra.mrb[36].mxu0 %v5402_v60  ;;  %1934 = vmatprep.mubr.bf16.mxu1 %v5523_v52  ;;  %v355_v60 = vld [vmem:[#allocation2 + $0x1f8] sm:$0xff]  ;;  %v780_v35 = vpack.c.bf16 %v732_v20, %v731_v25  ;;  %v373_v25 = vld [vmem:[#allocation2 + $0x2d0] sm:$0xff] }
  0xcb   :  { %2448 = vmatprep.mubr.bf16.mxu0 %v5525_v29  ;;  %v400_v53 = vpack.c.bf16 %v356_v42, %v355_v60  ;;  %2654 = vmatpush1.bf16.msra.mxu0 %v4766_v16  ;;  %v366_v60 = vld [vmem:[#allocation2 + $0x278] sm:$0xff]  ;;  %v463_v42 = vld [vmem:[#allocation2 + $0x289] sm:$0xff] }
  0xcc   :  { %2655 = vmatprep.subr.bf16.mxu0 %v4775_v0  ;;  %v4227_v0 = vld [vmem:[%s6909_s0 + $0xf8] sm:$0xff]   ;;  %v370_v16 = vld [vmem:[#allocation2 + $0x2a8] sm:$0xff] }
  0xcd   :  { %v4195_v14 = vunpack.c.l.bf16 %v4227_v0  ;;  %v4196_v18 = vunpack.c.h.bf16 %v4227_v0  ;;  %v837_v0 = vld [vmem:[#allocation2 + $0x22a] sm:$0xff] }
  0xce   :  { %v471_v20 = vld [vmem:[#allocation2 + $0x2e9] sm:$0xff] }
  0xcf   :  { %315 = vst.msk [vmem:[#allocation2 + $0x331] sm:$0xff] %vm252_vm0, %v4195_v14  ;;  %316 = vst.msk [vmem:[#allocation2 + $0x339] sm:$0xff] %vm252_vm0, %v4196_v18  ;;  %2656 = vmatpush1.bf16.msra.mxu0 %v4768_v26  ;;  %v374_v26 = vld [vmem:[#allocation2 + $0x2d8] sm:$0xff] }
  0xd1   :  { %1935 = vmatmul.mubr.bf16.gmra.mrb[72].mxu1 %v399_v36  ;;  %v365_v36 = vld [vmem:[#allocation2 + $0x270] sm:$0xff] }
  0xd2   :  { %2449 = vmatmul.mubr.bf16.gmra.mrb[40].mxu0 %v5420_v12  ;;  %1942 = vmatprep.mubr.bf16.mxu1 %v5531_v3  ;;  %v5544_v12 = vpack.c.bf16 %v822_v46, %v821_v48  ;;  %v5588_v48 = vpack.c.bf16 %v366_v60, %v365_v36  ;;  %v5590_v46 = vpack.c.bf16 %v464_v37, %v463_v42 }
  0xd3   :  { %2456 = vmatprep.mubr.bf16.mxu0 %v5533_v62  ;;  %v5634_v36 = vpack.c.bf16 %v374_v26, %v373_v25  ;;  %v5638_v42 = vpack.c.bf16 %v472_v51, %v471_v20  ;;  %v379_v20 = vld [vmem:[#allocation2 + $0x318] sm:$0xff]  ;;  %v380_v51 = vld [vmem:[#allocation2 + $0x320] sm:$0xff] }
  0xd9   :  { %1943 = vmatmul.mubr.bf16.gmra.mrb[76].mxu1 %v400_v53  ;;  %v5592_v53 = vpack.c.bf16 %v832_v45, %v831_v40  ;;  %v375_v40 = vld [vmem:[#allocation2 + $0x2e8] sm:$0xff]  ;;  %v376_v45 = vld [vmem:[#allocation2 + $0x2f0] sm:$0xff] }
  0xda   :  { %2457 = vmatmul.mubr.bf16.gmra.mrb[44].mxu0 %v5438_v28  ;;  %1950 = vmatprep.mubr.bf16.mxu1 %v5542_v47  ;;  %v359_v28 = vld [vmem:[#allocation2 + $0x228] sm:$0xff] }
  0xdb   :  { %2464 = vmatprep.mubr.bf16.mxu0 %v5544_v12  ;;  %v402_v61 = vpack.c.bf16 %v360_v57, %v359_v28  ;;  %v5600_v28 = vpack.c.bf16 %v466_v38, %v465_v49  ;;  %v5602_v57 = vpack.c.bf16 %v834_v15, %v833_v55  ;;  %v841_v38 = vld [vmem:[#allocation2 + $0x25a] sm:$0xff]  ;;  %v842_v55 = vld [vmem:[#allocation2 + $0x262] sm:$0xff] }
  0xdc   :  { %v5654_v41 = vpack.c.bf16 %v842_v55, %v841_v38 }
  0xe1   :  { %1951 = vmatmul.mubr.bf16.gmra.mrb[80].mxu1 %v401_v54  ;;  %v5598_v54 = vpack.c.bf16 %v368_v31, %v367_v50  ;;  %v473_v50 = vld [vmem:[#allocation2 + $0x301] sm:$0xff]  ;;  %v474_v31 = vld [vmem:[#allocation2 + $0x309] sm:$0xff] }
  0xe2   :  { %2465 = vmatmul.mubr.bf16.gmra.mrb[48].mxu0 %v5456_v13  ;;  %1958 = vmatprep.mubr.bf16.mxu1 %v5549_v56  ;;  %v5562_v13 = vpack.c.bf16 %v826_v17, %v825_v2  ;;  %v835_v2 = vld [vmem:[#allocation2 + $0x212] sm:$0xff]  ;;  %v836_v17 = vld [vmem:[#allocation2 + $0x21a] sm:$0xff]  ;;  %v5652_v63 = vpack.c.bf16 %v474_v31, %v473_v50  ;;  %v5676_v50 = vpack.c.bf16 %v380_v51, %v379_v20  ;;  %v625_v20 = vld [vmem:[#allocation2 + $0x108] sm:$0xff] }
  0xe3   :  { %2472 = vmatprep.mubr.bf16.mxu0 %v5551_v58  ;;  %v5612_v8 = vpack.c.bf16 %v836_v17, %v835_v2  ;;  %v377_v2 = vld [vmem:[#allocation2 + $0x300] sm:$0xff]  ;;  %v378_v17 = vld [vmem:[#allocation2 + $0x308] sm:$0xff]  ;;  %v626_v51 = vld [vmem:[#allocation2 + $0x110] sm:$0xff] }
  0xe9   :  { %1959 = vmatmul.mubr.bf16.gmra.mrb[84].mxu1 %v402_v61 }
  0xea   :  { %2473 = vmatmul.mubr.bf16.gmra.mrb[52].mxu0 %v5474_v5  ;;  %1966 = vmatprep.mubr.bf16.mxu1 %v5560_v1  ;;  %v876_v5 = vpack.c.bf16 %v828_v10, %v827_v33  ;;  %v470_v33 = vld [vmem:[#allocation2 + $0x2d9] sm:$0xff] }
  0xeb   :  { %2480 = vmatprep.mubr.bf16.mxu0 %v5562_v13  ;;  %v5624_v24 = vpack.c.bf16 %v470_v33, %v469_v39  ;;  %v843_v33 = vld [vmem:[#allocation2 + $0x272] sm:$0xff] }
  0xf1   :  { %1967 = vmatmul.mubr.bf16.gmra.mrb[88].mxu1 %v403_v22  ;;  %v838_v22 = vld [vmem:[#allocation2 + $0x232] sm:$0xff] }
  0xf2   :  { %2481 = vmatmul.mubr.bf16.gmra.mrb[56].mxu0 %v5489_v43  ;;  %1974 = vmatprep.mubr.bf16.mxu1 %v5570_v27  ;;  %v5583_v43 = vpack.c.bf16 %v830_v32, %v829_v30  ;;  %v5626_v4 = vpack.c.bf16 %v838_v22, %v837_v0  ;;  %v839_v30 = vld [vmem:[#allocation2 + $0x242] sm:$0xff]  ;;  %v840_v32 = vld [vmem:[#allocation2 + $0x24a] sm:$0xff]  ;;  %v844_v0 = vld [vmem:[#allocation2 + $0x27a] sm:$0xff] }
  0xf3   :  { %2488 = vmatprep.mubr.bf16.mxu0 %v876_v5  ;;  %v5640_v37 = vpack.c.bf16 %v840_v32, %v839_v30  ;;  %v5668_v26 = vpack.c.bf16 %v844_v0, %v843_v33  ;;  %v621_v30 = vld [vmem:[#allocation2 + $0xd8] sm:$0xff]  ;;  %v622_v32 = vld [vmem:[#allocation2 + $0xe0] sm:$0xff] }
  0xf4   :  { %v5680_v38 = vpack.c.bf16 %v622_v32, %v621_v30  ;;  %v4767_v30 = vld [vmem:[%s6908_s1 + $0x210] sm:$0xff]  }
  0xf9   :  { %1975 = vmatmul.mubr.bf16.gmra.mrb[92].mxu1 %v5579_v34 }
  0xfa   :  { %2489 = vmatmul.mubr.bf16.gmra.mrb[60].mxu0 %v780_v35  ;;  %1982 = vmatprep.mubr.bf16.mxu1 %v5581_v23 }
  0xfb   :  { %2496 = vmatprep.mubr.bf16.mxu0 %v5583_v43 }
 0x101   :  { %1983 = vmatmul.mubr.bf16.gmra.mrb[96].mxu1 %v5588_v48 }
 0x102   :  { %2497 = vmatmul.mubr.bf16.gmra.mrb[64].mxu0 %v5506_v21  ;;  %1990 = vmatprep.mubr.bf16.mxu1 %v5590_v46  ;;  %v369_v21 = vld [vmem:[#allocation2 + $0x2a0] sm:$0xff] }
 0x103   :  { %2504 = vmatprep.mubr.bf16.mxu0 %v5592_v53  ;;  %v5608_v61 = vpack.c.bf16 %v370_v16, %v369_v21  ;;  %v5648_v21 = vpack.c.bf16 %v376_v45, %v375_v40  ;;  %v846_v40 = vld [vmem:[#allocation2 + $0x292] sm:$0xff] }
 0x109   :  { %1991 = vmatmul.mubr.bf16.gmra.mrb[100].mxu1 %v5598_v54 }
 0x10a   :  { %2505 = vmatmul.mubr.bf16.gmra.mrb[68].mxu0 %v5523_v52  ;;  %1998 = vmatprep.mubr.bf16.mxu1 %v5600_v28  ;;  %v371_v52 = vld [vmem:[#allocation2 + $0x2b8] sm:$0xff] }
 0x10b   :  { %2512 = vmatprep.mubr.bf16.mxu0 %v5602_v57  ;;  %v5620_v18 = vpack.c.bf16 %v372_v19, %v371_v52  ;;  %v475_v52 = vld [vmem:[#allocation2 + $0x319] sm:$0xff]  ;;  %v476_v19 = vld [vmem:[#allocation2 + $0x321] sm:$0xff] }
 0x10c   :  { %v5666_v25 = vpack.c.bf16 %v476_v19, %v475_v52  ;;  %v848_v52 = vld [vmem:[#allocation2 + $0x2aa] sm:$0xff] }
 0x111   :  { %1999 = vmatmul.mubr.bf16.gmra.mrb[104].mxu1 %v5608_v61 }
 0x112   :  { %2513 = vmatmul.mubr.bf16.gmra.mrb[72].mxu0 %v5531_v3  ;;  %2006 = vmatprep.mubr.bf16.mxu1 %v5610_v6 }
 0x113   :  { %2520 = vmatprep.mubr.bf16.mxu0 %v5612_v8 }
 0x114   :  { %v5618_v10 = vpop.f32.mrb[0].mxu1 }
 0x115   :  { %v1794_v14 = vpop.f32.mrb[1].mxu1 }
 0x116   :  { %v5622_v5 = vpop.f32.mrb[2].mxu1  ;;  %v5662_v14 = vpack.c.bf16 %v378_v17, %v377_v2  ;;  %v624_v2 = vld [vmem:[#allocation2 + $0xf8] sm:$0xff]  ;;  %v847_v17 = vld [vmem:[#allocation2 + $0x2a2] sm:$0xff] }
 0x117   :  { %v1797_v3 = vpop.f32.mrb[3].mxu1 }
 0x119   :  { %2007 = vmatmul.mubr.bf16.gmra.mrb[108].mxu1 %v5620_v18 }
 0x11a   :  { %2521 = vmatmul.mubr.bf16.gmra.mrb[76].mxu0 %v5542_v47  ;;  %2014 = vmatprep.mubr.bf16.mxu1 %v5624_v24 }
 0x11b   :  { %2528 = vmatprep.mubr.bf16.mxu0 %v5626_v4 }
 0x11c   :  { %v5632_v11 = vpop.f32.mrb[4].mxu1 }
 0x11d   :  { %v1802_v35 = vpop.f32.mrb[5].mxu1 }
 0x11e   :  { %v5636_v60 = vpop.f32.mrb[6].mxu1 }
 0x11f   :  { %v1805_v47 = vpop.f32.mrb[7].mxu1 }
 0x120   :  { %v845_v47 = vld [vmem:[#allocation2 + $0x28a] sm:$0xff] }
 0x121   :  { %2015 = vmatmul.mubr.bf16.gmra.mrb[112].mxu1 %v5634_v36  ;;  %v5682_v55 = vpack.c.bf16 %v846_v40, %v845_v47  ;;  %v849_v47 = vld [vmem:[#allocation2 + $0x2ba] sm:$0xff]  ;;  %v850_v40 = vld [vmem:[#allocation2 + $0x2c2] sm:$0xff] }
 0x122   :  { %2529 = vmatmul.mubr.bf16.gmra.mrb[80].mxu0 %v5549_v56  ;;  %2022 = vmatprep.mubr.bf16.mxu1 %v5638_v42 }
 0x123   :  { %2536 = vmatprep.mubr.bf16.mxu0 %v5640_v37 }
 0x124   :  { %v5646_v49 = vpop.f32.mrb[8].mxu1 }
 0x125   :  { %v1810_v15 = vpop.f32.mrb[9].mxu1 }
 0x126   :  { %v5650_v16 = vpop.f32.mrb[10].mxu1  ;;  %v623_v15 = vld [vmem:[#allocation2 + $0xf0] sm:$0xff] }
 0x127   :  { %v1813_v56 = vpop.f32.mrb[11].mxu1 }
 0x129   :  { %2023 = vmatmul.mubr.bf16.gmra.mrb[116].mxu1 %v5648_v21 }
 0x12a   :  { %2537 = vmatmul.mubr.bf16.gmra.mrb[84].mxu0 %v5560_v1  ;;  %2030 = vmatprep.mubr.bf16.mxu1 %v5652_v63 }
 0x12b   :  { %2544 = vmatprep.mubr.bf16.mxu0 %v5654_v41 }
 0x12c   :  { %v5660_v39 = vpop.f32.mrb[12].mxu1 }
 0x12d   :  { %v1818_v22 = vpop.f32.mrb[13].mxu1 }
 0x12e   :  { %v5664_v3 = vpop.f32.mrb[14].mxu1  ;;  %v5692_v22 = vpack.c.bf16 %v624_v2, %v623_v15  ;;  %v4769_v15 = vld [vmem:[%s6908_s1 + $0x218] sm:$0xff]   ;;  %v627_v2 = vld [vmem:[#allocation2 + $0x120] sm:$0xff] }
 0x12f   :  { %v1821_v1 = vpop.f32.mrb[15].mxu1 }
 0x130   :  { %v5694_v1 = vpack.c.bf16 %v848_v52, %v847_v17  ;;  %v628_v17 = vld [vmem:[#allocation2 + $0x128] sm:$0xff] }
 0x131   :  { %2031 = vmatmul.mubr.bf16.gmra.mrb[120].mxu1 %v5662_v14 }
 0x132   :  { %2545 = vmatmul.mubr.bf16.gmra.mrb[88].mxu0 %v5570_v27  ;;  %2038 = vmatprep.mubr.bf16.mxu1 %v5666_v25 }
 0x133   :  { %2552 = vmatprep.mubr.bf16.mxu0 %v5668_v26 }
 0x134   :  { %v5674_v35 = vpop.f32.mrb[16].mxu1 }
 0x135   :  { %v1826_v45 = vpop.f32.mrb[17].mxu1 }
 0x136   :  { %v5678_v31 = vpop.f32.mrb[18].mxu1 }
 0x137   :  { %v1829_v27 = vpop.f32.mrb[19].mxu1 }
 0x138   :  { %v5713_v27 = vpack.c.bf16 %v850_v40, %v849_v47  ;;  %v629_v40 = vld [vmem:[#allocation2 + $0x138] sm:$0xff] }
 0x139   :  { %2039 = vmatmul.mubr.bf16.gmra.mrb[124].mxu1 %v5676_v50 }
 0x13a   :  { %2553 = vmatmul.mubr.bf16.gmra.mrb[92].mxu0 %v5581_v23  ;;  %2143 = vmatprep.mubr.bf16.mxu1 %v5680_v38  ;;  %v4765_v23 = vld [vmem:[%s6908_s1 + $0x208] sm:$0xff]  }
 0x13b   :  { %2560 = vmatprep.mubr.bf16.mxu0 %v5682_v55 }
 0x13c   :  { %v5688_v56 = vpop.f32.mrb[20].mxu1 }
 0x13d   :  { %v1834_v19 = vpop.f32.mrb[21].mxu1 }
 0x13e   :  { %v5690_v33 = vpop.f32.mrb[22].mxu1  ;;  %v851_v19 = vld [vmem:[#allocation2 + $0x2d2] sm:$0xff] }
 0x13f   :  { %6935 = vst [vmem:[#allocation3_spill] sm:$0xff] %v5690_v33  ;;  %v1837_v0 = vpop.f32.mrb[23].mxu1 }
 0x140   :  { %v852_v0 = vld [vmem:[#allocation2 + $0x2da] sm:$0xff] }
 0x141   :  { %2144 = vmatmul.mubr.bf16.vlgmr.msra.gmra.mrb[32].mxu1 %v5491_v59  ;;  %v5731_v47 = vpack.c.bf16 %v852_v0, %v851_v19  ;;  %v855_v0 = vld [vmem:[#allocation2 + $0x302] sm:$0xff] }
 0x142   :  { %2561 = vmatmul.mubr.bf16.gmra.mrb[96].mxu0 %v5590_v46  ;;  %4269 = vmatpush3.bf16.msra.mxu1 %v5516_v44  ;;  %v5711_v46 = vpack.c.bf16 %v626_v51, %v625_v20 }
 0x143   :  { %2151 = vmatprep.mubr.bf16.mxu1 %v5692_v22  ;;  %2568 = vmatprep.mubr.bf16.mxu0 %v5694_v1 }
 0x144   :  { %v5707_v32 = vpop.f32.mrb[24].mxu1  ;;  %4270 = vmatprep.subr.bf16.mxu1 %v4765_v23 }
 0x145   :  { %6936 = vst [vmem:[#allocation4_spill] sm:$0xff] %v5707_v32  ;;  %v1842_v59 = vpop.f32.mrb[25].mxu1 }
 0x146   :  { %v5709_v45 = vpop.f32.mrb[26].mxu1  ;;  %4271 = vmatpush3.bf16.msra.mxu1 %v4765_v23  ;;  %v4770_v23 = vld [vmem:[%s6908_s1 + $0x220] sm:$0xff]  }
 0x147   :  { %6937 = vst [vmem:[#allocation5_spill] sm:$0xff] %v5709_v45  ;;  %v1845_v44 = vpop.f32.mrb[27].mxu1  ;;  %4272 = vmatprep.subr.bf16.mxu1 %v4767_v30  ;;  %v630_v59 = vld [vmem:[#allocation2 + $0x140] sm:$0xff] }
 0x148   :  { %v853_v44 = vld [vmem:[#allocation2 + $0x2ea] sm:$0xff] }
 0x149   :  { %2152 = vmatmul.mubr.bf16.gmra.mrb[36].mxu1 %v5501_v7 }
 0x14a   :  { %2569 = vmatmul.mubr.bf16.gmra.mrb[100].mxu0 %v5600_v28  ;;  %2159 = vmatprep.mubr.bf16.mxu1 %v5711_v46  ;;  %v5729_v28 = vpack.c.bf16 %v628_v17, %v627_v2  ;;  %v854_v2 = vld [vmem:[#allocation2 + $0x2f2] sm:$0xff]  ;;  %v5743_v17 = vpack.c.bf16 %v630_v59, %v629_v40  ;;  %v858_v40 = vld [vmem:[#allocation2 + $0x322] sm:$0xff] }
 0x14b   :  { %2576 = vmatprep.mubr.bf16.mxu0 %v5713_v27  ;;  %4273 = vmatpush3.bf16.msra.mxu1 %v4767_v30  ;;  %v4771_v30 = vld [vmem:[%s6908_s1 + $0x228] sm:$0xff]   ;;  %v5745_v19 = vpack.c.bf16 %v854_v2, %v853_v44 }
 0x14c   :  { %v5722_v52 = vpop.f32.mrb[28].mxu1  ;;  %4274 = vmatprep.subr.bf16.mxu1 %v4769_v15  ;;  %v636_v2 = vld [vmem:[#allocation2 + $0x188] sm:$0xff] }
 0x14d   :  { %6938 = vst [vmem:[#allocation6_spill] sm:$0xff] %v5722_v52  ;;  %v1850_v20 = vpop.f32.mrb[29].mxu1 }
 0x14e   :  { %v5727_v7 = vpop.f32.mrb[30].mxu1 }
 0x14f   :  { %6939 = vst [vmem:[#allocation7_spill] sm:$0xff] %v5727_v7  ;;  %v1853_v51 = vpop.f32.mrb[31].mxu1  ;;  %4275 = vmatpush3.bf16.msra.mxu1 %v4769_v15  ;;  %v4772_v15 = vld [vmem:[%s6908_s1 + $0x230] sm:$0xff]  }
 0x150   :  { %4276 = vmatprep.subr.bf16.mxu1 %v4770_v23 }
 0x151   :  { %2160 = vmatmul.mubr.bf16.gmra.mrb[40].mxu1 %v5508_v9  ;;  %v631_v9 = vld [vmem:[#allocation2 + $0x150] sm:$0xff] }
 0x152   :  { %2577 = vmatmul.mubr.bf16.gmra.mrb[104].mxu0 %v5610_v6  ;;  %2167 = vmatprep.mubr.bf16.mxu1 %v5729_v28  ;;  %v632_v6 = vld [vmem:[#allocation2 + $0x158] sm:$0xff] }
 0x153   :  { %2584 = vmatprep.mubr.bf16.mxu0 %v5731_v47  ;;  %4277 = vmatpush3.bf16.msra.mxu1 %v4770_v23  ;;  %v856_v23 = vld [vmem:[#allocation2 + $0x30a] sm:$0xff]  ;;  %v5751_v20 = vpack.c.bf16 %v632_v6, %v631_v9  ;;  %v860_v9 = vld [vmem:[#allocation2 + $0x33a] sm:$0xff] }
 0x154   :  { %4278 = vmatprep.subr.bf16.mxu1 %v4771_v30  ;;  %v5753_v51 = vpack.c.bf16 %v856_v23, %v855_v0  ;;  %v637_v23 = vld [vmem:[#allocation2 + $0x1c8] sm:$0xff] }
 0x157   :  { %4279 = vmatpush3.bf16.msra.mxu1 %v4771_v30  ;;  %v857_v30 = vld [vmem:[#allocation2 + $0x31a] sm:$0xff] }
 0x158   :  { %4280 = vmatprep.subr.bf16.mxu1 %v4772_v15  ;;  %v5761_v44 = vpack.c.bf16 %v858_v40, %v857_v30  ;;  %v991_v30 = vld [vmem:[#allocation2 + $0x39] sm:$0xff] }
 0x159   :  { %2168 = vmatmul.mubr.bf16.gmra.mrb[44].mxu1 %v5525_v29  ;;  %v633_v29 = vld [vmem:[#allocation2 + $0x168] sm:$0xff] }
 0x15a   :  { %2585 = vmatmul.mubr.bf16.gmra.mrb[108].mxu0 %v5624_v24  ;;  %2175 = vmatprep.mubr.bf16.mxu1 %v5743_v17  ;;  %v634_v24 = vld [vmem:[#allocation2 + $0x170] sm:$0xff] }
 0x15b   :  { %2592 = vmatprep.mubr.bf16.mxu0 %v5745_v19  ;;  %4281 = vmatpush3.bf16.msra.mxu1 %v4772_v15  ;;  %v5759_v59 = vpack.c.bf16 %v634_v24, %v633_v29  ;;  %v859_v15 = vld [vmem:[#allocation2 + $0x332] sm:$0xff] }
 0x15c   :  { %v892_v0 = vpack.c.bf16 %v860_v9, %v859_v15  ;;  %v638_v29 = vld [vmem:[#allocation2 + $0x1d0] sm:$0xff]  ;;  %v640_v15 = vld [vmem:[#allocation2 + $0x1e8] sm:$0xff] }
 0x15d   :  { %v990_v24 = vld [vmem:[#allocation2 + $0x31] sm:$0xff]  ;;  %v685_v7 = vpack.c.bf16 %v638_v29, %v637_v23  ;;  %v992_v9 = vld [vmem:[#allocation2 + $0x49] sm:$0xff]  ;;  %v642_v23 = vld [vmem:[#allocation2 + $0x200] sm:$0xff] }
 0x15e   :  { %v1054_v52 = vpack.c.bf16 %v991_v30, %v990_v24  ;;  %v995_v29 = vld [vmem:[#allocation2 + $0x69] sm:$0xff] }
 0x161   :  { %2176 = vmatmul.mubr.bf16.gmra.mrb[48].mxu1 %v5533_v62  ;;  %v4773_v62 = vld [vmem:[%s6908_s1 + $0x238] sm:$0xff]  }
 0x162   :  { %2593 = vmatmul.mubr.bf16.gmra.mrb[112].mxu0 %v5638_v42  ;;  %2183 = vmatprep.mubr.bf16.mxu1 %v5751_v20  ;;  %v635_v42 = vld [vmem:[#allocation2 + $0x180] sm:$0xff] }
 0x163   :  { %2600 = vmatprep.mubr.bf16.mxu0 %v5753_v51  ;;  %4282 = vmatprep.subr.bf16.mxu1 %v4773_v62  ;;  %v5770_v6 = vpack.c.bf16 %v636_v2, %v635_v42  ;;  %v894_v42 = vld [vmem:[#allocation2 + $0x30] sm:$0xff]  ;;  %v639_v2 = vld [vmem:[#allocation2 + $0x1e0] sm:$0xff] }
 0x164   :  { %4283 = vmatpush3.bf16.msra.mxu1 %v4773_v62  ;;  %v541_v62 = vld [vmem:[#allocation2 + $0x1b2] sm:$0xff]  ;;  %v5776_v33 = vpack.c.bf16 %v640_v15, %v639_v2 }
 0x169   :  { %2184 = vmatmul.mubr.bf16.gmra.mrb[52].mxu1 %v5544_v12  ;;  %v763_v12 = vld [vmem:[#allocation2 + $0x331] sm:$0xff] }
 0x16a   :  { %2601 = vmatmul.mubr.bf16.gmra.mrb[116].mxu0 %v5652_v63  ;;  %2191 = vmatprep.mubr.bf16.mxu1 %v5759_v59  ;;  %v764_v63 = vld [vmem:[#allocation2 + $0x339] sm:$0xff] }
 0x16b   :  { %2608 = vmatprep.mubr.bf16.mxu0 %v5761_v44  ;;  %v796_v40 = vpack.c.bf16 %v764_v63, %v763_v12  ;;  %v641_v63 = vld [vmem:[#allocation2 + $0x1f8] sm:$0xff] }
 0x16c   :  { %v5779_v30 = vpack.c.bf16 %v642_v23, %v641_v63  ;;  %v999_v63 = vld [vmem:[#allocation2 + $0x99] sm:$0xff] }
 0x171   :  { %2192 = vmatmul.mubr.bf16.gmra.mrb[56].mxu1 %v5551_v58  ;;  %v542_v58 = vld [vmem:[#allocation2 + $0x1ba] sm:$0xff] }
 0x172   :  { %2609 = vmatmul.mubr.bf16.gmra.mrb[120].mxu0 %v5666_v25  ;;  %2199 = vmatprep.mubr.bf16.mxu1 %v5770_v6  ;;  %v895_v25 = vld [vmem:[#allocation2 + $0x38] sm:$0xff]  ;;  %v589_v45 = vpack.c.bf16 %v542_v58, %v541_v62  ;;  %v643_v62 = vld [vmem:[#allocation2 + $0x210] sm:$0xff] }
 0x173   :  { %2616 = vmatprep.mubr.bf16.mxu0 %v892_v0  ;;  %v993_v0 = vld [vmem:[#allocation2 + $0x51] sm:$0xff]  ;;  %v958_v32 = vpack.c.bf16 %v895_v25, %v894_v42  ;;  %v996_v42 = vld [vmem:[#allocation2 + $0x79] sm:$0xff]  ;;  %v997_v25 = vld [vmem:[#allocation2 + $0x81] sm:$0xff] }
 0x174   :  { %v1055_v12 = vpack.c.bf16 %v993_v0, %v992_v9  ;;  %v644_v58 = vld [vmem:[#allocation2 + $0x218] sm:$0xff]  ;;  %v1057_v9 = vpack.c.bf16 %v997_v25, %v996_v42  ;;  %v901_v0 = vld [vmem:[#allocation2 + $0x80] sm:$0xff] }
 0x175   :  { %v5783_v15 = vpack.c.bf16 %v644_v58, %v643_v62  ;;  %v1001_v62 = vld [vmem:[#allocation2 + $0xb1] sm:$0xff] }
 0x179   :  { %2200 = vmatmul.mubr.bf16.gmra.mrb[60].mxu1 %v5562_v13  ;;  %v896_v13 = vld [vmem:[#allocation2 + $0x48] sm:$0xff] }
 0x17a   :  { %2617 = vmatmul.mubr.bf16.gmra.mrb[124].mxu0 %v796_v40  ;;  %2207 = vmatprep.mubr.bf16.mxu1 %v685_v7  ;;  %v897_v7 = vld [vmem:[#allocation2 + $0x50] sm:$0xff] }
 0x17b   :  { %2657 = vmatprep.mubr.bf16.mxu0 %v1054_v52  ;;  %v994_v52 = vld [vmem:[#allocation2 + $0x61] sm:$0xff]  ;;  %v959_v24 = vpack.c.bf16 %v897_v7, %v896_v13  ;;  %v646_v13 = vld [vmem:[#allocation2 + $0x230] sm:$0xff] }
 0x17c   :  { %v1056_v40 = vpack.c.bf16 %v995_v29, %v994_v52  ;;  %v998_v7 = vld [vmem:[#allocation2 + $0x91] sm:$0xff] }
 0x17d   :  { %v1058_v29 = vpack.c.bf16 %v999_v63, %v998_v7  ;;  %v907_v7 = vld [vmem:[#allocation2 + $0xc8] sm:$0xff]  ;;  %v1004_v63 = vld [vmem:[#allocation2 + $0xd9] sm:$0xff] }
 0x181   :  { %2208 = vmatmul.mubr.bf16.gmra.mrb[64].mxu1 %v589_v45  ;;  %v898_v45 = vld [vmem:[#allocation2 + $0x60] sm:$0xff] }
 0x182   :  { %2658 = vmatmul.mubr.bf16.vlgmr.msra.gmra.mrb[0].mxu0 %v958_v32  ;;  %2215 = vmatprep.mubr.bf16.mxu1 %v5776_v33  ;;  %v899_v32 = vld [vmem:[#allocation2 + $0x68] sm:$0xff] }
 0x183   :  { %2665 = vmatprep.mubr.bf16.mxu0 %v1055_v12  ;;  %v960_v2 = vpack.c.bf16 %v899_v32, %v898_v45  ;;  %v645_v12 = vld [vmem:[#allocation2 + $0x228] sm:$0xff] }
 0x184   :  { %v5787_v52 = vpack.c.bf16 %v646_v13, %v645_v12  ;;  %v648_v45 = vld [vmem:[#allocation2 + $0x248] sm:$0xff]  ;;  %v906_v13 = vld [vmem:[#allocation2 + $0xc0] sm:$0xff] }
 0x185   :  { %v1000_v32 = vld [vmem:[#allocation2 + $0xa9] sm:$0xff] }
 0x186   :  { %v1059_v25 = vpack.c.bf16 %v1001_v62, %v1000_v32  ;;  %v1021_v62 = vld [vmem:[#allocation2 + $0x1a1] sm:$0xff] }
 0x189   :  { %2216 = vmatmul.mubr.bf16.gmra.mrb[68].mxu1 %v5583_v43  ;;  %v900_v43 = vld [vmem:[#allocation2 + $0x78] sm:$0xff] }
 0x18a   :  { %2666 = vmatmul.mubr.bf16.gmra.mrb[4].mxu0 %v959_v24  ;;  %2223 = vmatprep.mubr.bf16.mxu1 %v5779_v30  ;;  %v961_v23 = vpack.c.bf16 %v901_v0, %v900_v43  ;;  %v903_v24 = vld [vmem:[#allocation2 + $0x98] sm:$0xff]  ;;  %v1003_v43 = vld [vmem:[#allocation2 + $0xc9] sm:$0xff] }
 0x18b   :  { %2673 = vmatprep.mubr.bf16.mxu0 %v1056_v40  ;;  %v647_v40 = vld [vmem:[#allocation2 + $0x240] sm:$0xff] }
 0x18c   :  { %v5791_v42 = vpack.c.bf16 %v648_v45, %v647_v40 }
 0x191   :  { %2224 = vmatmul.mubr.bf16.gmra.mrb[72].mxu1 %v5592_v53  ;;  %v902_v53 = vld [vmem:[#allocation2 + $0x90] sm:$0xff] }
 0x192   :  { %2674 = vmatmul.mubr.bf16.gmra.mrb[8].mxu0 %v960_v2  ;;  %2231 = vmatprep.mubr.bf16.mxu1 %v5783_v15  ;;  %v962_v58 = vpack.c.bf16 %v903_v24, %v902_v53  ;;  %v905_v2 = vld [vmem:[#allocation2 + $0xb0] sm:$0xff]  ;;  %v1007_v24 = vld [vmem:[#allocation2 + $0xf9] sm:$0xff] }
 0x193   :  { %2681 = vmatprep.mubr.bf16.mxu0 %v1057_v9  ;;  %v1002_v9 = vld [vmem:[#allocation2 + $0xc1] sm:$0xff]  ;;  %v1006_v53 = vld [vmem:[#allocation2 + $0xf1] sm:$0xff] }
 0x194   :  { %v1060_v12 = vpack.c.bf16 %v1003_v43, %v1002_v9  ;;  %v1062_v40 = vpack.c.bf16 %v1007_v24, %v1006_v53  ;;  %v1089_v9 = vld [vmem:[#allocation2 + $0x52] sm:$0xff]  ;;  %v1091_v43 = vld [vmem:[#allocation2 + $0x6a] sm:$0xff] }
 0x195   :  { %v1026_v53 = vld [vmem:[#allocation2 + $0x211] sm:$0xff]  ;;  %v1027_v24 = vld [vmem:[#allocation2 + $0x219] sm:$0xff] }
 0x199   :  { %2232 = vmatmul.mubr.bf16.gmra.mrb[76].mxu1 %v5602_v57  ;;  %v904_v57 = vld [vmem:[#allocation2 + $0xa8] sm:$0xff] }
 0x19a   :  { %2682 = vmatmul.mubr.bf16.gmra.mrb[12].mxu0 %v961_v23  ;;  %2239 = vmatprep.mubr.bf16.mxu1 %v5787_v52  ;;  %v963_v0 = vpack.c.bf16 %v905_v2, %v904_v57  ;;  %v964_v23 = vpack.c.bf16 %v907_v7, %v906_v13 }
 0x19b   :  { %2689 = vmatprep.mubr.bf16.mxu0 %v1058_v29 }
 0x1a1   :  { %2240 = vmatmul.mubr.bf16.gmra.mrb[80].mxu1 %v5612_v8  ;;  %v1005_v8 = vld [vmem:[#allocation2 + $0xe1] sm:$0xff] }
 0x1a2   :  { %2690 = vmatmul.mubr.bf16.gmra.mrb[16].mxu0 %v962_v58  ;;  %2247 = vmatprep.mubr.bf16.mxu1 %v5791_v42  ;;  %v1061_v29 = vpack.c.bf16 %v1005_v8, %v1004_v63  ;;  %v1023_v58 = vld [vmem:[#allocation2 + $0x1e9] sm:$0xff]  ;;  %v1092_v8 = vld [vmem:[#allocation2 + $0x7a] sm:$0xff] }
 0x1a3   :  { %2697 = vmatprep.mubr.bf16.mxu0 %v1059_v25 }
 0x1a9   :  { %2248 = vmatmul.mubr.bf16.gmra.mrb[84].mxu1 %v5626_v4  ;;  %v1009_v4 = vld [vmem:[#allocation2 + $0x111] sm:$0xff] }
 0x1aa   :  { %2698 = vmatmul.mubr.bf16.gmra.mrb[20].mxu0 %v963_v0  ;;  %2255 = vmatprep.mubr.bf16.mxu1 %v5579_v34  ;;  %v1008_v34 = vld [vmem:[#allocation2 + $0x109] sm:$0xff]  ;;  %v1024_v0 = vld [vmem:[#allocation2 + $0x1f9] sm:$0xff] }
 0x1ab   :  { %2705 = vmatprep.mubr.bf16.mxu0 %v1060_v12  ;;  %v1063_v45 = vpack.c.bf16 %v1009_v4, %v1008_v34  ;;  %v1025_v12 = vld [vmem:[#allocation2 + $0x201] sm:$0xff]  ;;  %v1072_v4 = vpack.c.bf16 %v1027_v24, %v1026_v53 }
 0x1ac   :  { %v1071_v63 = vpack.c.bf16 %v1025_v12, %v1024_v0  ;;  %v1108_v0 = vld [vmem:[#allocation2 + $0x13a] sm:$0xff]  ;;  %v1109_v12 = vld [vmem:[#allocation2 + $0x142] sm:$0xff] }
 0x1ad   :  { %v1161_v53 = vpack.c.bf16 %v1109_v12, %v1108_v0  ;;  %v942_v0 = vld [vmem:[#allocation2 + $0x2a0] sm:$0xff] }
 0x1ae   :  { %v1120_v12 = vld [vmem:[#allocation2 + $0x1fa] sm:$0xff] }
 0x1b1   :  { %2256 = vmatmul.mubr.bf16.gmra.mrb[88].mxu1 %v5640_v37  ;;  %v1011_v37 = vld [vmem:[#allocation2 + $0x129] sm:$0xff] }
 0x1b2   :  { %2706 = vmatmul.mubr.bf16.gmra.mrb[24].mxu0 %v964_v23  ;;  %2263 = vmatprep.mubr.bf16.mxu1 %v5588_v48  ;;  %v1010_v48 = vld [vmem:[#allocation2 + $0x121] sm:$0xff] }
 0x1b3   :  { %2713 = vmatprep.mubr.bf16.mxu0 %v1061_v29  ;;  %v1064_v32 = vpack.c.bf16 %v1011_v37, %v1010_v48  ;;  %v1093_v23 = vld [vmem:[#allocation2 + $0x82] sm:$0xff]  ;;  %v1095_v29 = vld [vmem:[#allocation2 + $0x9a] sm:$0xff]  ;;  %v1097_v48 = vld [vmem:[#allocation2 + $0xb2] sm:$0xff] }
 0x1b4   :  { %v1098_v37 = vld [vmem:[#allocation2 + $0xc2] sm:$0xff] }
 0x1b9   :  { %2264 = vmatmul.mubr.bf16.gmra.mrb[92].mxu1 %v5654_v41  ;;  %v1013_v41 = vld [vmem:[#allocation2 + $0x141] sm:$0xff] }
 0x1ba   :  { %2714 = vmatmul.mubr.bf16.gmra.mrb[28].mxu0 %v5680_v38  ;;  %2271 = vmatprep.mubr.bf16.mxu1 %v5598_v54  ;;  %v1012_v54 = vld [vmem:[#allocation2 + $0x139] sm:$0xff] }
 0x1bb   :  { %2721 = vmatprep.mubr.bf16.mxu0 %v1062_v40  ;;  %v1065_v38 = vpack.c.bf16 %v1013_v41, %v1012_v54  ;;  %v1153_v40 = vpack.c.bf16 %v1093_v23, %v1092_v8  ;;  %v1029_v54 = vld [vmem:[#allocation2 + $0x231] sm:$0xff] }
 0x1bc   :  { %v1034_v23 = vld [vmem:[#allocation2 + $0x271] sm:$0xff] }
 0x1c1   :  { %2272 = vmatmul.mubr.bf16.gmra.mrb[96].mxu1 %v5668_v26  ;;  %v1015_v26 = vld [vmem:[#allocation2 + $0x159] sm:$0xff] }
 0x1c2   :  { %2722 = vmatmul.mubr.bf16.gmra.mrb[32].mxu0 %v5692_v22  ;;  %2279 = vmatprep.mubr.bf16.mxu1 %v5608_v61  ;;  %v1014_v61 = vld [vmem:[#allocation2 + $0x151] sm:$0xff] }
 0x1c3   :  { %2729 = vmatprep.mubr.bf16.mxu0 %v1063_v45  ;;  %v1066_v22 = vpack.c.bf16 %v1015_v26, %v1014_v61  ;;  %v1096_v45 = vld [vmem:[#allocation2 + $0xaa] sm:$0xff]  ;;  %v1100_v26 = vld [vmem:[#allocation2 + $0xda] sm:$0xff] }
 0x1c4   :  { %v1155_v41 = vpack.c.bf16 %v1097_v48, %v1096_v45  ;;  %v938_v45 = vld [vmem:[#allocation2 + $0x270] sm:$0xff] }
 0x1c5   :  { %v1112_v48 = vld [vmem:[#allocation2 + $0x16a] sm:$0xff] }
 0x1c9   :  { %2280 = vmatmul.mubr.bf16.gmra.mrb[100].mxu1 %v5682_v55  ;;  %v1017_v55 = vld [vmem:[#allocation2 + $0x171] sm:$0xff] }
 0x1ca   :  { %2730 = vmatmul.mubr.bf16.gmra.mrb[36].mxu0 %v5711_v46  ;;  %2287 = vmatprep.mubr.bf16.mxu1 %v5620_v18  ;;  %v1016_v18 = vld [vmem:[#allocation2 + $0x169] sm:$0xff] }
 0x1cb   :  { %2737 = vmatprep.mubr.bf16.mxu0 %v1064_v32  ;;  %v1067_v46 = vpack.c.bf16 %v1017_v55, %v1016_v18  ;;  %v1028_v32 = vld [vmem:[#allocation2 + $0x229] sm:$0xff]  ;;  %v1102_v18 = vld [vmem:[#allocation2 + $0xf2] sm:$0xff] }
 0x1cc   :  { %v1073_v61 = vpack.c.bf16 %v1029_v54, %v1028_v32  ;;  %v1114_v32 = vld [vmem:[#allocation2 + $0x182] sm:$0xff]  ;;  %v1115_v54 = vld [vmem:[#allocation2 + $0x18a] sm:$0xff] }
 0x1d1   :  { %2288 = vmatmul.mubr.bf16.gmra.mrb[104].mxu1 %v5694_v1  ;;  %v1019_v1 = vld [vmem:[#allocation2 + $0x189] sm:$0xff] }
 0x1d2   :  { %2738 = vmatmul.mubr.bf16.gmra.mrb[40].mxu0 %v5729_v28  ;;  %2295 = vmatprep.mubr.bf16.mxu1 %v5634_v36  ;;  %v1018_v36 = vld [vmem:[#allocation2 + $0x181] sm:$0xff] }
 0x1d3   :  { %2745 = vmatprep.mubr.bf16.mxu0 %v1065_v38  ;;  %v1068_v28 = vpack.c.bf16 %v1019_v1, %v1018_v36  ;;  %v1031_v36 = vld [vmem:[#allocation2 + $0x249] sm:$0xff] }
 0x1d9   :  { %2296 = vmatmul.mubr.bf16.gmra.mrb[108].mxu1 %v5713_v27  ;;  %v668_v27 = vld [vmem:[#allocation2 + $0x338] sm:$0xff] }
 0x1da   :  { %2746 = vmatmul.mubr.bf16.gmra.mrb[44].mxu0 %v5743_v17  ;;  %2303 = vmatprep.mubr.bf16.mxu1 %v5648_v21  ;;  %v667_v21 = vld [vmem:[#allocation2 + $0x330] sm:$0xff]  ;;  %v1020_v17 = vld [vmem:[#allocation2 + $0x199] sm:$0xff] }
 0x1db   :  { %2753 = vmatprep.mubr.bf16.mxu0 %v1066_v22  ;;  %v1101_v22 = vld [vmem:[#allocation2 + $0xe2] sm:$0xff] }
 0x1e1   :  { %2304 = vmatmul.mubr.bf16.gmra.mrb[112].mxu1 %v5731_v47  ;;  %v5820_v47 = vpack.c.bf16 %v668_v27, %v667_v21 }
 0x1e2   :  { %2754 = vmatmul.mubr.bf16.gmra.mrb[48].mxu0 %v5751_v20  ;;  %2311 = vmatprep.mubr.bf16.mxu1 %v5662_v14  ;;  %v1069_v20 = vpack.c.bf16 %v1021_v62, %v1020_v17  ;;  %v1086_v14 = vld [vmem:[#allocation2 + $0x32] sm:$0xff] }
 0x1e3   :  { %2761 = vmatprep.mubr.bf16.mxu0 %v1067_v46  ;;  %v1030_v46 = vld [vmem:[#allocation2 + $0x241] sm:$0xff] }
 0x1e4   :  { %v1074_v62 = vpack.c.bf16 %v1031_v36, %v1030_v46  ;;  %v1164_v46 = vpack.c.bf16 %v1115_v54, %v1114_v32  ;;  %v1124_v32 = vld [vmem:[#allocation2 + $0x22a] sm:$0xff]  ;;  %v1125_v54 = vld [vmem:[#allocation2 + $0x232] sm:$0xff] }
 0x1e9   :  { %2312 = vmatmul.mubr.bf16.gmra.mrb[116].mxu1 %v5745_v19  ;;  %v1087_v19 = vld [vmem:[#allocation2 + $0x3a] sm:$0xff] }
 0x1ea   :  { %2762 = vmatmul.mubr.bf16.gmra.mrb[52].mxu0 %v5759_v59  ;;  %2319 = vmatprep.mubr.bf16.mxu1 %v5676_v50  ;;  %v1022_v59 = vld [vmem:[#allocation2 + $0x1e1] sm:$0xff]  ;;  %v1150_v57 = vpack.c.bf16 %v1087_v19, %v1086_v14  ;;  %v1107_v19 = vld [vmem:[#allocation2 + $0x12a] sm:$0xff] }
 0x1eb   :  { %2769 = vmatprep.mubr.bf16.mxu0 %v1068_v28  ;;  %v4774_v50 = vld [vmem:[#allocation2] sm:$0xff]  ;;  %v1070_v2 = vpack.c.bf16 %v1023_v58, %v1022_v59  ;;  %v1157_v28 = vpack.c.bf16 %v1101_v22, %v1100_v26 }
 0x1ec   :  { %v5825_v25 = vpack.c.bf16 %v4774_v50, %v4774_v50  ;;  %v1106_v14 = vld [vmem:[#allocation2 + $0x122] sm:$0xff]  ;;  %v1032_v58 = vld [vmem:[#allocation2 + $0x259] sm:$0xff] }
 0x1ed   :  { %v1033_v50 = vld [vmem:[#allocation2 + $0x261] sm:$0xff] }
 0x1f1   :  { %2320 = vmatmul.mubr.bf16.gmra.mrb[120].mxu1 %v5753_v51  ;;  %v1088_v51 = vld [vmem:[#allocation2 + $0x4a] sm:$0xff] }
 0x1f2   :  { %2770 = vmatmul.mubr.bf16.gmra.mrb[56].mxu0 %v5770_v6  ;;  %2327 = vmatprep.mubr.bf16.mxu1 %v5820_v47  ;;  %v1090_v6 = vld [vmem:[#allocation2 + $0x62] sm:$0xff]  ;;  %v1151_v13 = vpack.c.bf16 %v1089_v9, %v1088_v51  ;;  %v1160_v9 = vpack.c.bf16 %v1107_v19, %v1106_v14 }
 0x1f3   :  { %2777 = vmatprep.mubr.bf16.mxu0 %v1069_v20  ;;  %v1152_v7 = vpack.c.bf16 %v1091_v43, %v1090_v6  ;;  %v1105_v20 = vld [vmem:[#allocation2 + $0x112] sm:$0xff]  ;;  %v1075_v43 = vpack.c.bf16 %v1033_v50, %v1032_v58  ;;  %v1038_v19 = vld [vmem:[#allocation2 + $0x2a1] sm:$0xff]  ;;  %v1039_v58 = vld [vmem:[#allocation2 + $0x2a9] sm:$0xff] }
 0x1f9   :  { %2328 = vmatmul.mubr.bf16.gmra.mrb[124].mxu1 %v5761_v44  ;;  %v1094_v44 = vld [vmem:[#allocation2 + $0x92] sm:$0xff] }
 0x1fa   :  { %2778 = vmatmul.mubr.bf16.gmra.mrb[60].mxu0 %v5825_v25  ;;  %4284 = vmatprep.mubr.bf16.mxu1 %v1150_v57  ;;  %v1154_v34 = vpack.c.bf16 %v1095_v29, %v1094_v44  ;;  %v1035_v44 = vld [vmem:[#allocation2 + $0x279] sm:$0xff] }
 0x1fb   :  { %2785 = vmatprep.mubr.bf16.mxu0 %v1070_v2 }
 0x201   :  { %4285 = vmatmul.mubr.bf16.vlgmr.msra.gmra.mrb[128].mxu1 %v1151_v13  ;;  %v937_v13 = vld [vmem:[#allocation2 + $0x260] sm:$0xff] }
 0x202   :  { %2786 = vmatmul.mubr.bf16.gmra.mrb[64].mxu0 %v5776_v33  ;;  %4288 = vmatprep.mubr.bf16.mxu1 %v1152_v7  ;;  %v1099_v33 = vld [vmem:[#allocation2 + $0xca] sm:$0xff]  ;;  %v1110_v7 = vld [vmem:[#allocation2 + $0x152] sm:$0xff] }
 0x203   :  { %2793 = vmatprep.mubr.bf16.mxu0 %v1071_v63  ;;  %v1156_v38 = vpack.c.bf16 %v1099_v33, %v1098_v37  ;;  %v1111_v63 = vld [vmem:[#allocation2 + $0x15a] sm:$0xff]  ;;  %v1113_v37 = vld [vmem:[#allocation2 + $0x172] sm:$0xff] }
 0x204   :  { %v939_v33 = vld [vmem:[#allocation2 + $0x278] sm:$0xff]  ;;  %v1163_v22 = vpack.c.bf16 %v1113_v37, %v1112_v48 }
 0x209   :  { %4289 = vmatmul.mubr.bf16.gmra.mrb[132].mxu1 %v1153_v40 }
 0x20a   :  { %2794 = vmatmul.mubr.bf16.gmra.mrb[68].mxu0 %v5779_v30  ;;  %4292 = vmatprep.mubr.bf16.mxu1 %v1154_v34  ;;  %v1103_v30 = vld [vmem:[#allocation2 + $0xfa] sm:$0xff]  ;;  %v1162_v34 = vpack.c.bf16 %v1111_v63, %v1110_v7  ;;  %v943_v7 = vld [vmem:[#allocation2 + $0x2a8] sm:$0xff]  ;;  %v1122_v63 = vld [vmem:[#allocation2 + $0x212] sm:$0xff] }
 0x20b   :  { %2801 = vmatprep.mubr.bf16.mxu0 %v1072_v4  ;;  %v1158_v27 = vpack.c.bf16 %v1103_v30, %v1102_v18  ;;  %v980_v30 = vpack.c.bf16 %v939_v33, %v938_v45  ;;  %v944_v33 = vld [vmem:[#allocation2 + $0x2b8] sm:$0xff] }
 0x211   :  { %4293 = vmatmul.mubr.bf16.gmra.mrb[136].mxu1 %v1155_v41 }
 0x212   :  { %2802 = vmatmul.mubr.bf16.gmra.mrb[72].mxu0 %v5783_v15  ;;  %4296 = vmatprep.mubr.bf16.mxu1 %v1156_v38  ;;  %v1104_v15 = vld [vmem:[#allocation2 + $0x10a] sm:$0xff] }
 0x213   :  { %2809 = vmatprep.mubr.bf16.mxu0 %v1073_v61  ;;  %v1159_v2 = vpack.c.bf16 %v1105_v20, %v1104_v15  ;;  %v1036_v38 = vld [vmem:[#allocation2 + $0x289] sm:$0xff]  ;;  %v1037_v61 = vld [vmem:[#allocation2 + $0x291] sm:$0xff] }
 0x214   :  { %v5832_v55 = vpop.f32.mrb[32].mxu1  ;;  %v1118_v15 = vld [vmem:[#allocation2 + $0x1e2] sm:$0xff]  ;;  %v1119_v20 = vld [vmem:[#allocation2 + $0x1ea] sm:$0xff] }
 0x215   :  { %v2147_v1 = vpop.f32.mrb[33].mxu1 }
 0x216   :  { %v5834_v21 = vpop.f32.mrb[34].mxu1  ;;  %v1077_v1 = vpack.c.bf16 %v1037_v61, %v1036_v38  ;;  %v945_v38 = vld [vmem:[#allocation2 + $0x2c0] sm:$0xff] }
 0x217   :  { %v2150_v17 = vpop.f32.mrb[35].mxu1  ;;  %v1126_v61 = vld [vmem:[#allocation2 + $0x242] sm:$0xff] }
 0x218   :  { %v1117_v17 = vld [vmem:[#allocation2 + $0x1a2] sm:$0xff] }
 0x219   :  { %4297 = vmatmul.mubr.bf16.gmra.mrb[140].mxu1 %v1157_v28  ;;  %v940_v28 = vld [vmem:[#allocation2 + $0x288] sm:$0xff] }
 0x21a   :  { %2810 = vmatmul.mubr.bf16.gmra.mrb[76].mxu0 %v5787_v52  ;;  %4300 = vmatprep.mubr.bf16.mxu1 %v1158_v27  ;;  %v936_v52 = vld [vmem:[#allocation2 + $0x258] sm:$0xff] }
 0x21b   :  { %2817 = vmatprep.mubr.bf16.mxu0 %v1074_v62  ;;  %v979_v40 = vpack.c.bf16 %v937_v13, %v936_v52  ;;  %v1116_v27 = vld [vmem:[#allocation2 + $0x19a] sm:$0xff]  ;;  %v941_v62 = vld [vmem:[#allocation2 + $0x290] sm:$0xff]  ;;  %v1078_v52 = vpack.c.bf16 %v1039_v58, %v1038_v19  ;;  %v1121_v13 = vld [vmem:[#allocation2 + $0x202] sm:$0xff] }
 0x21c   :  { %v5837_v59 = vpop.f32.mrb[36].mxu1  ;;  %v1128_v19 = vld [vmem:[#allocation2 + $0x25a] sm:$0xff]  ;;  %v1129_v58 = vld [vmem:[#allocation2 + $0x262] sm:$0xff] }
 0x21d   :  { %v2155_v57 = vpop.f32.mrb[37].mxu1 }
 0x21e   :  { %v5839_v51 = vpop.f32.mrb[38].mxu1  ;;  %v1165_v57 = vpack.c.bf16 %v1117_v17, %v1116_v27  ;;  %v983_v27 = vpack.c.bf16 %v945_v38, %v944_v33  ;;  %v1046_v33 = vld [vmem:[#allocation2 + $0x301] sm:$0xff] }
 0x21f   :  { %v2158_v6 = vpop.f32.mrb[39].mxu1 }
 0x220   :  { %v1166_v6 = vpack.c.bf16 %v1119_v20, %v1118_v15  ;;  %v946_v20 = vld [vmem:[#allocation2 + $0x2d0] sm:$0xff] }
 0x221   :  { %4301 = vmatmul.mubr.bf16.gmra.mrb[144].mxu1 %v1159_v2 }
 0x222   :  { %2818 = vmatmul.mubr.bf16.gmra.mrb[80].mxu0 %v5791_v42  ;;  %4304 = vmatprep.mubr.bf16.mxu1 %v1160_v9  ;;  %v1076_v42 = vpack.c.bf16 %v1035_v44, %v1034_v23  ;;  %v981_v9 = vpack.c.bf16 %v941_v62, %v940_v28  ;;  %v1123_v23 = vld [vmem:[#allocation2 + $0x21a] sm:$0xff] }
 0x223   :  { %2825 = vmatprep.mubr.bf16.mxu0 %v1075_v43  ;;  %v1168_v45 = vpack.c.bf16 %v1123_v23, %v1122_v63 }
 0x224   :  { %v5842_v8 = vpop.f32.mrb[40].mxu1 }
 0x225   :  { %v2163_v29 = vpop.f32.mrb[41].mxu1 }
 0x226   :  { %v5844_v24 = vpop.f32.mrb[42].mxu1  ;;  %v1040_v29 = vld [vmem:[#allocation2 + $0x2b9] sm:$0xff] }
 0x227   :  { %v2166_v4 = vpop.f32.mrb[43].mxu1 }
 0x229   :  { %4305 = vmatmul.mubr.bf16.gmra.mrb[148].mxu1 %v1161_v53  ;;  %v1041_v53 = vld [vmem:[#allocation2 + $0x2c1] sm:$0xff] }
 0x22a   :  { %2826 = vmatmul.mubr.bf16.gmra.mrb[84].mxu0 %v979_v40  ;;  %4308 = vmatprep.mubr.bf16.mxu1 %v1162_v34  ;;  %v1167_v34 = vpack.c.bf16 %v1121_v13, %v1120_v12  ;;  %v1079_v37 = vpack.c.bf16 %v1041_v53, %v1040_v29  ;;  %v1171_v12 = vpack.c.bf16 %v1129_v58, %v1128_v19  ;;  %v948_v53 = vld [vmem:[#allocation2 + $0x2e8] sm:$0xff]  ;;  %v950_v19 = vld [vmem:[#allocation2 + $0x300] sm:$0xff] }
 0x22b   :  { %2833 = vmatprep.mubr.bf16.mxu0 %v1076_v42  ;;  %v982_v42 = vpack.c.bf16 %v943_v7, %v942_v0  ;;  %v1136_v58 = vld [vmem:[#allocation2 + $0x2ba] sm:$0xff] }
 0x22c   :  { %v5846_v41 = vpop.f32.mrb[44].mxu1 }
 0x22d   :  { %v2171_v26 = vpop.f32.mrb[45].mxu1 }
 0x22e   :  { %v5848_v18 = vpop.f32.mrb[46].mxu1  ;;  %v1127_v26 = vld [vmem:[#allocation2 + $0x24a] sm:$0xff] }
 0x22f   :  { %v2174_v36 = vpop.f32.mrb[47].mxu1  ;;  %v1170_v17 = vpack.c.bf16 %v1127_v26, %v1126_v61 }
 0x231   :  { %4309 = vmatmul.mubr.bf16.gmra.mrb[152].mxu1 %v1163_v22 }
 0x232   :  { %2834 = vmatmul.mubr.bf16.gmra.mrb[88].mxu0 %v980_v30  ;;  %4312 = vmatprep.mubr.bf16.mxu1 %v1164_v46  ;;  %v1042_v30 = vld [vmem:[#allocation2 + $0x2d1] sm:$0xff]  ;;  %v1043_v46 = vld [vmem:[#allocation2 + $0x2d9] sm:$0xff] }
 0x233   :  { %2841 = vmatprep.mubr.bf16.mxu0 %v1077_v1  ;;  %v1169_v1 = vpack.c.bf16 %v1125_v54, %v1124_v32  ;;  %v1080_v15 = vpack.c.bf16 %v1043_v46, %v1042_v30  ;;  %v1047_v32 = vld [vmem:[#allocation2 + $0x309] sm:$0xff] }
 0x234   :  { %v5850_v14 = vpop.f32.mrb[48].mxu1 }
 0x235   :  { %v2179_v50 = vpop.f32.mrb[49].mxu1 }
 0x236   :  { %v5852_v2 = vpop.f32.mrb[50].mxu1  ;;  %v947_v50 = vld [vmem:[#allocation2 + $0x2d8] sm:$0xff] }
 0x237   :  { %v2182_v43 = vpop.f32.mrb[51].mxu1  ;;  %v984_v7 = vpack.c.bf16 %v947_v50, %v946_v20  ;;  %v1137_v50 = vld [vmem:[#allocation2 + $0x2c2] sm:$0xff] }
 0x238   :  { %v1044_v43 = vld [vmem:[#allocation2 + $0x2e9] sm:$0xff] }
 0x239   :  { %4313 = vmatmul.mubr.bf16.gmra.mrb[156].mxu1 %v1165_v57  ;;  %v1130_v57 = vld [vmem:[#allocation2 + $0x272] sm:$0xff] }
 0x23a   :  { %2842 = vmatmul.mubr.bf16.gmra.mrb[92].mxu0 %v981_v9  ;;  %4316 = vmatprep.mubr.bf16.mxu1 %v1166_v6  ;;  %v1131_v9 = vld [vmem:[#allocation2 + $0x27a] sm:$0xff] }
 0x23b   :  { %2849 = vmatprep.mubr.bf16.mxu0 %v1078_v52  ;;  %v1045_v52 = vld [vmem:[#allocation2 + $0x2f1] sm:$0xff]  ;;  %v1172_v63 = vpack.c.bf16 %v1131_v9, %v1130_v57  ;;  %v1139_v9 = vld [vmem:[#allocation2 + $0x2da] sm:$0xff] }
 0x23c   :  { %v5854_v44 = vpop.f32.mrb[52].mxu1  ;;  %v1081_v29 = vpack.c.bf16 %v1045_v52, %v1044_v43  ;;  %v1138_v57 = vld [vmem:[#allocation2 + $0x2d2] sm:$0xff] }
 0x23d   :  { %v2187_v40 = vpop.f32.mrb[53].mxu1  ;;  %v1048_v52 = vld [vmem:[#allocation2 + $0x319] sm:$0xff] }
 0x23e   :  { %v5856_v4 = vpop.f32.mrb[54].mxu1  ;;  %v1132_v40 = vld [vmem:[#allocation2 + $0x28a] sm:$0xff] }
 0x23f   :  { %v2190_v48 = vpop.f32.mrb[55].mxu1 }
 0x240   :  { %v1135_v48 = vld [vmem:[#allocation2 + $0x2aa] sm:$0xff] }
 0x241   :  { %4317 = vmatmul.mubr.bf16.gmra.mrb[160].mxu1 %v1167_v34  ;;  %v1133_v34 = vld [vmem:[#allocation2 + $0x292] sm:$0xff] }
 0x242   :  { %2850 = vmatmul.mubr.bf16.gmra.mrb[96].mxu0 %v982_v42  ;;  %4320 = vmatprep.mubr.bf16.mxu1 %v1168_v45  ;;  %v949_v42 = vld [vmem:[#allocation2 + $0x2f0] sm:$0xff]  ;;  %v1134_v45 = vld [vmem:[#allocation2 + $0x2a2] sm:$0xff]  ;;  %v1173_v61 = vpack.c.bf16 %v1133_v34, %v1132_v40  ;;  %v1176_v40 = vpack.c.bf16 %v1139_v9, %v1138_v57 }
 0x243   :  { %2857 = vmatprep.mubr.bf16.mxu0 %v1079_v37 }
 0x244   :  { %v5858_v22 = vpop.f32.mrb[56].mxu1 }
 0x245   :  { %v2195_v36 = vpop.f32.mrb[57].mxu1 }
 0x246   :  { %v5860_v28 = vpop.f32.mrb[58].mxu1  ;;  %v985_v36 = vpack.c.bf16 %v949_v42, %v948_v53 }
 0x247   :  { %v2198_v62 = vpop.f32.mrb[59].mxu1 }
 0x248   :  { %v1082_v62 = vpack.c.bf16 %v1047_v32, %v1046_v33  ;;  %v952_v32 = vld [vmem:[#allocation2 + $0x318] sm:$0xff] }
 0x249   :  { %4321 = vmatmul.mubr.bf16.gmra.mrb[164].mxu1 %v1169_v1  ;;  %v1174_v1 = vpack.c.bf16 %v1135_v48, %v1134_v45 }
 0x24a   :  { %2858 = vmatmul.mubr.bf16.gmra.mrb[100].mxu0 %v983_v27  ;;  %4324 = vmatprep.mubr.bf16.mxu1 %v1170_v17 }
 0x24b   :  { %2865 = vmatprep.mubr.bf16.mxu0 %v1080_v15 }
 0x24c   :  { %v5862_v6 = vpop.f32.mrb[60].mxu1 }
 0x24d   :  { %v2203_v0 = vpop.f32.mrb[61].mxu1 }
 0x24e   :  { %v5864_v13 = vpop.f32.mrb[62].mxu1  ;;  %v1049_v0 = vld [vmem:[#allocation2 + $0x321] sm:$0xff] }
 0x24f   :  { %v2206_v23 = vpop.f32.mrb[63].mxu1  ;;  %v1083_v45 = vpack.c.bf16 %v1049_v0, %v1048_v52 }
 0x251   :  { %4325 = vmatmul.mubr.bf16.gmra.mrb[168].mxu1 %v1171_v12 }
 0x252   :  { %2866 = vmatmul.mubr.bf16.gmra.mrb[104].mxu0 %v984_v7  ;;  %4328 = vmatprep.mubr.bf16.mxu1 %v1172_v63  ;;  %v1175_v63 = vpack.c.bf16 %v1137_v50, %v1136_v58 }
 0x253   :  { %2873 = vmatprep.mubr.bf16.mxu0 %v1081_v29 }
 0x254   :  { %v5866_v37 = vpop.f32.mrb[64].mxu1 }
 0x255   :  { %v2659_v54 = vpop.f32.mrb[0].mxu0  ;;  %v2211_v38 = vpop.f32.mrb[65].mxu1 }
 0x256   :  { %v5869_v26 = vadd.f32 %v2659_v54, %v5618_v10  ;;  %v2661_v30 = vpop.f32.mrb[1].mxu0  ;;  %v5871_v46 = vpop.f32.mrb[66].mxu1  ;;  %v951_v10 = vld [vmem:[#allocation2 + $0x308] sm:$0xff]  ;;  %v1141_v38 = vld [vmem:[#allocation2 + $0x2f2] sm:$0xff] }
 0x257   :  { %v2662_v27 = vpop.f32.mrb[2].mxu0  ;;  %v2214_v17 = vpop.f32.mrb[67].mxu1  ;;  %v986_v53 = vpack.c.bf16 %v951_v10, %v950_v19  ;;  %v1140_v54 = vld [vmem:[#allocation2 + $0x2ea] sm:$0xff] }
 0x258   :  { %v5874_v15 = vadd.f32 %v2662_v27, %v5622_v5  ;;  %v2664_v20 = vpop.f32.mrb[3].mxu0  ;;  %v1143_v30 = vld [vmem:[#allocation2 + $0x30a] sm:$0xff]  ;;  %v1051_v27 = vld [vmem:[#allocation2 + $0x339] sm:$0xff] }
 0x259   :  { %4329 = vmatmul.mubr.bf16.gmra.mrb[172].mxu1 %v1173_v61  ;;  %v1142_v61 = vld [vmem:[#allocation2 + $0x302] sm:$0xff]  ;;  %v1177_v20 = vpack.c.bf16 %v1141_v38, %v1140_v54 }
 0x25a   :  { %2874 = vmatmul.mubr.bf16.gmra.mrb[108].mxu0 %v985_v36  ;;  %4332 = vmatprep.mubr.bf16.mxu1 %v1174_v1  ;;  %v1050_v1 = vld [vmem:[#allocation2 + $0x331] sm:$0xff]  ;;  %v1178_v10 = vpack.c.bf16 %v1143_v30, %v1142_v61 }
 0x25b   :  { %2881 = vmatprep.mubr.bf16.mxu0 %v1082_v62  ;;  %v1084_v52 = vpack.c.bf16 %v1051_v27, %v1050_v1 }
 0x25c   :  { %v5876_v43 = vpop.f32.mrb[68].mxu1 }
 0x25d   :  { %v2667_v12 = vpop.f32.mrb[4].mxu0  ;;  %v2219_v7 = vpop.f32.mrb[69].mxu1 }
 0x25e   :  { %v5879_v5 = vadd.f32 %v2667_v12, %v5632_v11  ;;  %v2669_v23 = vpop.f32.mrb[5].mxu0  ;;  %v5881_v29 = vpop.f32.mrb[70].mxu1  ;;  %v953_v11 = vld [vmem:[#allocation2 + $0x320] sm:$0xff] }
 0x25f   :  { %v2670_v34 = vpop.f32.mrb[6].mxu0  ;;  %v2222_v42 = vpop.f32.mrb[71].mxu1  ;;  %v987_v50 = vpack.c.bf16 %v953_v11, %v952_v32  ;;  %v1144_v7 = vld [vmem:[#allocation2 + $0x31a] sm:$0xff] }
 0x260   :  { %v5884_v48 = vadd.f32 %v2670_v34, %v5636_v60  ;;  %v2672_v33 = vpop.f32.mrb[7].mxu0  ;;  %v1147_v23 = vld [vmem:[#allocation2 + $0x33a] sm:$0xff]  ;;  %v1053_v34 = vld [vmem:[#allocation2 + $0x351] sm:$0xff] }
 0x261   :  { %4333 = vmatmul.mubr.bf16.gmra.mrb[176].mxu1 %v1175_v63  ;;  %v1145_v63 = vld [vmem:[#allocation2 + $0x322] sm:$0xff] }
 0x262   :  { %2882 = vmatmul.mubr.bf16.gmra.mrb[112].mxu0 %v986_v53  ;;  %4336 = vmatprep.mubr.bf16.mxu1 %v1176_v40  ;;  %v1052_v40 = vld [vmem:[#allocation2 + $0x349] sm:$0xff]  ;;  %v1179_v33 = vpack.c.bf16 %v1145_v63, %v1144_v7 }
 0x263   :  { %2889 = vmatprep.mubr.bf16.mxu0 %v1083_v45  ;;  %v1085_v30 = vpack.c.bf16 %v1053_v34, %v1052_v40 }
 0x264   :  { %v5886_v36 = vpop.f32.mrb[72].mxu1 }
 0x265   :  { %v2675_v17 = vpop.f32.mrb[8].mxu0  ;;  %v2227_v62 = vpop.f32.mrb[73].mxu1 }
 0x266   :  { %v5889_v60 = vadd.f32 %v2675_v17, %v5646_v49  ;;  %v2677_v19 = vpop.f32.mrb[9].mxu0  ;;  %v5891_v58 = vpop.f32.mrb[74].mxu1  ;;  %v1146_v49 = vld [vmem:[#allocation2 + $0x332] sm:$0xff]  ;;  %v1148_v17 = vld [vmem:[#allocation2 + $0x34a] sm:$0xff] }
 0x267   :  { %v2678_v57 = vpop.f32.mrb[10].mxu0  ;;  %v2230_v9 = vpop.f32.mrb[75].mxu1  ;;  %v1180_v38 = vpack.c.bf16 %v1147_v23, %v1146_v49  ;;  %v1149_v62 = vld [vmem:[#allocation2 + $0x352] sm:$0xff] }
 0x268   :  { %v5894_v0 = vadd.f32 %v2678_v57, %v5650_v16  ;;  %v2680_v12 = vpop.f32.mrb[11].mxu0 }
 0x269   :  { %4337 = vmatmul.mubr.bf16.gmra.mrb[180].mxu1 %v1177_v20 }
 0x26a   :  { %2890 = vmatmul.mubr.bf16.gmra.mrb[116].mxu0 %v987_v50  ;;  %4340 = vmatprep.mubr.bf16.mxu1 %v1178_v10  ;;  %v1181_v50 = vpack.c.bf16 %v1149_v62, %v1148_v17  ;;  %v6942_v62 = vld [vmem:[#allocation5_spill] sm:$0xff] }
 0x26b   :  { %2897 = vmatprep.mubr.bf16.mxu0 %v1084_v52 }
 0x26c   :  { %v5896_v53 = vpop.f32.mrb[76].mxu1 }
 0x26d   :  { %v2683_v42 = vpop.f32.mrb[12].mxu0  ;;  %v2235_v45 = vpop.f32.mrb[77].mxu1 }
 0x26e   :  { %v5899_v32 = vadd.f32 %v2683_v42, %v5660_v39  ;;  %v2685_v16 = vpop.f32.mrb[13].mxu0  ;;  %v5901_v54 = vpop.f32.mrb[78].mxu1  ;;  %v6940_v45 = vld [vmem:[#allocation3_spill] sm:$0xff] }
 0x26f   :  { %v2686_v11 = vpop.f32.mrb[14].mxu0  ;;  %v2238_v61 = vpop.f32.mrb[79].mxu1 }
 0x270   :  { %v5904_v1 = vadd.f32 %v2686_v11, %v5664_v3  ;;  %v2688_v27 = vpop.f32.mrb[15].mxu0  ;;  %v6941_v11 = vld [vmem:[#allocation4_spill] sm:$0xff] }
 0x271   :  { %4341 = vmatmul.mubr.bf16.gmra.mrb[184].mxu1 %v1179_v33 }
 0x272   :  { %2898 = vmatmul.mubr.bf16.gmra.mrb[120].mxu0 %v5820_v47  ;;  %4344 = vmatprep.mubr.bf16.mxu1 %v1180_v38 }
 0x273   :  { %2905 = vmatprep.mubr.bf16.mxu0 %v1085_v30 }
 0x274   :  { %v5907_v39 = vpop.f32.mrb[80].mxu1 }
 0x275   :  { %v2691_v20 = vpop.f32.mrb[16].mxu0  ;;  %v2243_v19 = vpop.f32.mrb[81].mxu1 }
 0x276   :  { %v5910_v10 = vadd.f32 %v2691_v20, %v5674_v35  ;;  %v2693_v57 = vpop.f32.mrb[17].mxu0  ;;  %v5912_v9 = vpop.f32.mrb[82].mxu1 }
 0x277   :  { %v2694_v3 = vpop.f32.mrb[18].mxu0  ;;  %v2246_v52 = vpop.f32.mrb[83].mxu1 }
 0x278   :  { %v5915_v12 = vadd.f32 %v2694_v3, %v5678_v31  ;;  %v2696_v47 = vpop.f32.mrb[19].mxu0  ;;  %v6943_v52 = vld [vmem:[#allocation6_spill] sm:$0xff] }
 0x279   :  { %4345 = vmatmul.mubr.bf16.gmra.mrb[188].mxu1 %v1181_v50 }
 0x27a   :  { %2906 = vmatmul.mubr.bf16.gmra.mrb[124].mxu0 %v5825_v25 }
 0x27c   :  { %v5918_v7 = vpop.f32.mrb[84].mxu1 }
 0x27d   :  { %v2699_v63 = vpop.f32.mrb[20].mxu0  ;;  %v2251_v49 = vpop.f32.mrb[85].mxu1 }
 0x27e   :  { %v5921_v23 = vadd.f32 %v2699_v63, %v5688_v56  ;;  %v2701_v35 = vpop.f32.mrb[21].mxu0  ;;  %v5923_v40 = vpop.f32.mrb[86].mxu1 }
 0x27f   :  { %v2702_v34 = vpop.f32.mrb[22].mxu0  ;;  %v2254_v42 = vpop.f32.mrb[87].mxu1 }
 0x280   :  { %v5926_v33 = vadd.f32 %v2702_v34, %v6940_v45  ;;  %v2704_v31 = vpop.f32.mrb[23].mxu0  ;;  %v6944_v42 = vld [vmem:[#allocation7_spill] sm:$0xff] }
 0x284   :  { %v5928_v16 = vpop.f32.mrb[88].mxu1 }
 0x285   :  { %v2707_v38 = vpop.f32.mrb[24].mxu0  ;;  %v2259_v25 = vpop.f32.mrb[89].mxu1 }
 0x286   :  { %v5931_v61 = vadd.f32 %v2707_v38, %v6941_v11  ;;  %v2709_v30 = vpop.f32.mrb[25].mxu0  ;;  %v5933_v27 = vpop.f32.mrb[90].mxu1 }
 0x287   :  { %v2710_v56 = vpop.f32.mrb[26].mxu0  ;;  %v2262_v17 = vpop.f32.mrb[91].mxu1 }
 0x288   :  { %v5936_v20 = vadd.f32 %v2710_v56, %v6942_v62  ;;  %v2712_v19 = vpop.f32.mrb[27].mxu0 }
 0x28c   :  { %v5938_v50 = vpop.f32.mrb[92].mxu1 }
 0x28d   :  { %v2715_v57 = vpop.f32.mrb[28].mxu0  ;;  %v2267_v3 = vpop.f32.mrb[93].mxu1 }
 0x28e   :  { %v5941_v47 = vadd.f32 %v2715_v57, %v6943_v52  ;;  %v2717_v63 = vpop.f32.mrb[29].mxu0  ;;  %v5943_v49 = vpop.f32.mrb[94].mxu1 }
 0x28f   :  { %v2718_v35 = vpop.f32.mrb[30].mxu0  ;;  %v2270_v34 = vpop.f32.mrb[95].mxu1 }
 0x290   :  { %v5946_v45 = vadd.f32 %v2718_v35, %v6944_v42  ;;  %v2720_v31 = vpop.f32.mrb[31].mxu0 }
 0x294   :  { %v5948_v38 = vpop.f32.mrb[96].mxu1 }
 0x295   :  { %v2723_v25 = vpop.f32.mrb[32].mxu0  ;;  %v2275_v11 = vpop.f32.mrb[97].mxu1 }
 0x296   :  { %v5951_v30 = vadd.f32 %v2723_v25, %v5832_v55  ;;  %v2725_v56 = vpop.f32.mrb[33].mxu0  ;;  %v5953_v17 = vpop.f32.mrb[98].mxu1 }
 0x297   :  { %v2726_v62 = vpop.f32.mrb[34].mxu0  ;;  %v2278_v19 = vpop.f32.mrb[99].mxu1 }
 0x298   :  { %v5956_v57 = vadd.f32 %v2726_v62, %v5834_v21  ;;  %v2728_v3 = vpop.f32.mrb[35].mxu0 }
 0x29c   :  { %v5958_v52 = vpop.f32.mrb[100].mxu1 }
 0x29d   :  { %6945 = vst [vmem:[#allocation3_spill] sm:$0xff] %v5958_v52  ;;  %v2731_v63 = vpop.f32.mrb[36].mxu0  ;;  %v2283_v35 = vpop.f32.mrb[101].mxu1 }
 0x29e   :  { %v5961_v34 = vadd.f32 %v2731_v63, %v5837_v59  ;;  %v2733_v42 = vpop.f32.mrb[37].mxu0  ;;  %v5963_v31 = vpop.f32.mrb[102].mxu1 }
 0x29f   :  { %6946 = vst [vmem:[#allocation4_spill] sm:$0xff] %v5963_v31  ;;  %v2734_v55 = vpop.f32.mrb[38].mxu0  ;;  %v2286_v25 = vpop.f32.mrb[103].mxu1 }
 0x2a0   :  { %v5966_v11 = vadd.f32 %v2734_v55, %v5839_v51  ;;  %v2736_v56 = vpop.f32.mrb[39].mxu0 }
 0x2a4   :  { %v5968_v19 = vpop.f32.mrb[104].mxu1 }
 0x2a5   :  { %6947 = vst [vmem:[#allocation5_spill] sm:$0xff] %v5968_v19  ;;  %v2739_v21 = vpop.f32.mrb[40].mxu0  ;;  %v2291_v62 = vpop.f32.mrb[105].mxu1 }
 0x2a6   :  { %v5971_v3 = vadd.f32 %v2739_v21, %v5842_v8  ;;  %v2741_v35 = vpop.f32.mrb[41].mxu0  ;;  %v5973_v52 = vpop.f32.mrb[106].mxu1 }
 0x2a7   :  { %6948 = vst [vmem:[#allocation6_spill] sm:$0xff] %v5973_v52  ;;  %v2742_v59 = vpop.f32.mrb[42].mxu0  ;;  %v2294_v63 = vpop.f32.mrb[107].mxu1 }
 0x2a8   :  { %v5976_v42 = vadd.f32 %v2742_v59, %v5844_v24  ;;  %v2744_v25 = vpop.f32.mrb[43].mxu0 }
 0x2ac   :  { %v5978_v31 = vpop.f32.mrb[108].mxu1 }
 0x2ad   :  { %6949 = vst [vmem:[#allocation7_spill] sm:$0xff] %v5978_v31  ;;  %v2747_v51 = vpop.f32.mrb[44].mxu0  ;;  %v2299_v55 = vpop.f32.mrb[109].mxu1 }
 0x2ae   :  { %v5981_v56 = vadd.f32 %v2747_v51, %v5846_v41  ;;  %v2749_v62 = vpop.f32.mrb[45].mxu0  ;;  %v5983_v19 = vpop.f32.mrb[110].mxu1 }
 0x2af   :  { %6950 = vst [vmem:[#allocation8_spill] sm:$0xff] %v5983_v19  ;;  %v2750_v8 = vpop.f32.mrb[46].mxu0  ;;  %v2302_v21 = vpop.f32.mrb[111].mxu1 }
 0x2b0   :  { %v5986_v35 = vadd.f32 %v2750_v8, %v5848_v18  ;;  %v2752_v63 = vpop.f32.mrb[47].mxu0 }
 0x2b4   :  { %v5988_v52 = vpop.f32.mrb[112].mxu1 }
 0x2b5   :  { %6951 = vst [vmem:[#allocation9_spill] sm:$0xff] %v5988_v52  ;;  %v2755_v24 = vpop.f32.mrb[48].mxu0  ;;  %v2307_v59 = vpop.f32.mrb[113].mxu1 }
 0x2b6   :  { %v5991_v25 = vadd.f32 %v2755_v24, %v5850_v14  ;;  %v2757_v55 = vpop.f32.mrb[49].mxu0  ;;  %v5993_v31 = vpop.f32.mrb[114].mxu1 }
 0x2b7   :  { %6952 = vst [vmem:[#allocation10_spill] sm:$0xff] %v5993_v31  ;;  %v2758_v41 = vpop.f32.mrb[50].mxu0  ;;  %v2310_v51 = vpop.f32.mrb[115].mxu1 }
 0x2b8   :  { %v5996_v62 = vadd.f32 %v2758_v41, %v5852_v2  ;;  %v2760_v21 = vpop.f32.mrb[51].mxu0 }
 0x2bc   :  { %v5998_v19 = vpop.f32.mrb[116].mxu1 }
 0x2bd   :  { %6953 = vst [vmem:[#allocation11_spill] sm:$0xff] %v5998_v19  ;;  %v2763_v18 = vpop.f32.mrb[52].mxu0  ;;  %v2315_v8 = vpop.f32.mrb[117].mxu1 }
 0x2be   :  { %v6001_v63 = vadd.f32 %v2763_v18, %v5854_v44  ;;  %v2765_v59 = vpop.f32.mrb[53].mxu0  ;;  %v6003_v52 = vpop.f32.mrb[118].mxu1 }
 0x2bf   :  { %6954 = vst [vmem:[#allocation12_spill] sm:$0xff] %v6003_v52  ;;  %v2766_v14 = vpop.f32.mrb[54].mxu0  ;;  %v2318_v24 = vpop.f32.mrb[119].mxu1 }
 0x2c0   :  { %v6006_v55 = vadd.f32 %v2766_v14, %v5856_v4  ;;  %v2768_v51 = vpop.f32.mrb[55].mxu0 }
 0x2c4   :  { %v6008_v31 = vpop.f32.mrb[120].mxu1 }
 0x2c5   :  { %6955 = vst [vmem:[#allocation13_spill] sm:$0xff] %v6008_v31  ;;  %v2771_v2 = vpop.f32.mrb[56].mxu0  ;;  %v2323_v41 = vpop.f32.mrb[121].mxu1 }
 0x2c6   :  { %v6011_v21 = vadd.f32 %v2771_v2, %v5858_v22  ;;  %v2773_v8 = vpop.f32.mrb[57].mxu0  ;;  %v6013_v19 = vpop.f32.mrb[122].mxu1 }
 0x2c7   :  { %6956 = vst [vmem:[#allocation14_spill] sm:$0xff] %v6013_v19  ;;  %v2774_v44 = vpop.f32.mrb[58].mxu0  ;;  %v2326_v18 = vpop.f32.mrb[123].mxu1 }
 0x2c8   :  { %v6016_v59 = vadd.f32 %v2774_v44, %v5860_v28  ;;  %v2776_v24 = vpop.f32.mrb[59].mxu0 }
 0x2cc   :  { %v6018_v52 = vpop.f32.mrb[124].mxu1 }
 0x2cd   :  { %6957 = vst [vmem:[#allocation15_spill] sm:$0xff] %v6018_v52  ;;  %v2779_v4 = vpop.f32.mrb[60].mxu0  ;;  %v2331_v14 = vpop.f32.mrb[125].mxu1 }
 0x2ce   :  { %v6021_v51 = vadd.f32 %v2779_v4, %v5862_v6  ;;  %v2781_v41 = vpop.f32.mrb[61].mxu0  ;;  %v6023_v31 = vpop.f32.mrb[126].mxu1 }
 0x2cf   :  { %6958 = vst [vmem:[#allocation16_spill] sm:$0xff] %v6023_v31  ;;  %v2782_v22 = vpop.f32.mrb[62].mxu0  ;;  %v2334_v2 = vpop.f32.mrb[127].mxu1 }
 0x2d0   :  { %v6026_v8 = vadd.f32 %v2782_v22, %v5864_v13  ;;  %v2784_v18 = vpop.f32.mrb[63].mxu0 }
 0x2d4   :  { %v4286_v19 = vpop.f32.mrb[128].mxu1 }
 0x2d5   :  { %v2787_v28 = vpop.f32.mrb[64].mxu0  ;;  %v2957_v44 = vadd.f32 %v5879_v5, %v4286_v19  ;;  %v2948_v24 = vpop.f32.mrb[129].mxu1 }
 0x2d6   :  { %v6030_v52 = vadd.f32 %v2787_v28, %v5866_v37  ;;  %v2789_v14 = vpop.f32.mrb[65].mxu0  ;;  %v2949_v6 = vadd.f32 %v5869_v26, %v2948_v24  ;;  %v4287_v4 = vpop.f32.mrb[130].mxu1 }
 0x2d7   :  { %v6033_v41 = vmax.f32 %v2957_v44, 0.0  ;;  %v2790_v31 = vpop.f32.mrb[66].mxu0  ;;  %v2960_v2 = vadd.f32 %v5884_v48, %v4287_v4  ;;  %v2951_v13 = vpop.f32.mrb[131].mxu1 }
 0x2d8   :  { %v6036_v22 = vmax.f32 %v2949_v6, 0.0  ;;  %v6039_v18 = vadd.f32 %v2790_v31, %v5871_v46  ;;  %v2792_v5 = vpop.f32.mrb[67].mxu0  ;;  %v2952_v37 = vadd.f32 %v5874_v15, %v2951_v13 }
 0x2d9   :  { %v4007_v19 = vpack.c.bf16 %v6033_v41, %v6033_v41  ;;  %v6044_v26 = vmax.f32 %v2960_v2, 0.0 }
 0x2da   :  { %v4005_v28 = vpack.c.bf16 %v6036_v22, %v6036_v22  ;;  %v6048_v44 = vmax.f32 %v2952_v37, 0.0 }
 0x2db   :  { %3526 = vst.msk [vmem:[%s6910_s2 + $0x8] sm:$0xf] %vm3523_vm1, %v4007_v19  ;;  %v4008_v46 = vpack.c.bf16 %v6044_v26, %v6044_v26 }
 0x2dc   :  { %6959 = vst [vmem:[#allocation17_spill] sm:$0xff] %v6048_v44  ;;  %3524 = vst.msk [vmem:[%s6910_s2] sm:$0xf] %vm3523_vm1, %v4005_v28  ;;  %v4006_v15 = vpack.c.bf16 %v6048_v44, %v6048_v44  ;;  %v3588_v48 = vadd.f32 %v6048_v44, %v6036_v22  ;;  %v4290_v31 = vpop.f32.mrb[132].mxu1 }
 0x2dd   :  { %3527 = vst.msk [vmem:[%s6910_s2 + $0xc] sm:$0xf] %vm3523_vm1, %v4008_v46  ;;  %v2795_v24 = vpop.f32.mrb[68].mxu0  ;;  %v2973_v14 = vadd.f32 %v5899_v32, %v4290_v31  ;;  %v2964_v6 = vpop.f32.mrb[133].mxu1 }
 0x2de   :  { %3525 = vst.msk [vmem:[%s6910_s2 + $0x4] sm:$0xf] %vm3523_vm1, %v4006_v15  ;;  %v3589_v4 = vadd.f32 %v3588_v48, %v6033_v41  ;;  %v6075_v2 = vadd.f32 %v2795_v24, %v5876_v43  ;;  %v2797_v13 = vpop.f32.mrb[69].mxu0  ;;  %v2965_v5 = vadd.f32 %v5889_v60, %v2964_v6  ;;  %v4291_v37 = vpop.f32.mrb[134].mxu1 }
 0x2df   :  { %v6078_v19 = vmax.f32 %v2973_v14, 0.0  ;;  %v2798_v28 = vpop.f32.mrb[70].mxu0  ;;  %v2976_v32 = vadd.f32 %v5904_v1, %v4291_v37  ;;  %v2967_v46 = vpop.f32.mrb[135].mxu1 }
 0x2e0   :  { %v6081_v31 = vmax.f32 %v2965_v5, 0.0  ;;  %v3590_v44 = vadd.f32 %v3589_v4, %v6044_v26  ;;  %v6085_v15 = vadd.f32 %v2798_v28, %v5881_v29  ;;  %v2800_v48 = vpop.f32.mrb[71].mxu0  ;;  %v2968_v43 = vadd.f32 %v5894_v0, %v2967_v46 }
 0x2e1   :  { %v4011_v60 = vpack.c.bf16 %v6078_v19, %v6078_v19  ;;  %v6090_v24 = vmax.f32 %v2976_v32, 0.0 }
 0x2e2   :  { %v4009_v14 = vpack.c.bf16 %v6081_v31, %v6081_v31  ;;  %v3591_v1 = vadd.f32 %v3590_v44, %v6081_v31  ;;  %v6095_v6 = vmax.f32 %v2968_v43, 0.0 }
 0x2e3   :  { %3530 = vst.msk [vmem:[%s6910_s2 + $0x18] sm:$0xf] %vm3523_vm1, %v4011_v60  ;;  %v4012_v29 = vpack.c.bf16 %v6090_v24, %v6090_v24 }
 0x2e4   :  { %3528 = vst.msk [vmem:[%s6910_s2 + $0x10] sm:$0xf] %vm3523_vm1, %v4009_v14  ;;  %v4010_v0 = vpack.c.bf16 %v6095_v6, %v6095_v6  ;;  %v3592_v44 = vadd.f32 %v3591_v1, %v6095_v6  ;;  %v4294_v4 = vpop.f32.mrb[136].mxu1 }
 0x2e5   :  { %3531 = vst.msk [vmem:[%s6910_s2 + $0x1c] sm:$0xf] %vm3523_vm1, %v4012_v29  ;;  %v2803_v13 = vpop.f32.mrb[72].mxu0  ;;  %v2989_v5 = vadd.f32 %v5921_v23, %v4294_v4  ;;  %v2980_v37 = vpop.f32.mrb[137].mxu1 }
 0x2e6   :  { %3529 = vst.msk [vmem:[%s6910_s2 + $0x14] sm:$0xf] %vm3523_vm1, %v4010_v0  ;;  %v3593_v28 = vadd.f32 %v3592_v44, %v6078_v19  ;;  %v6121_v32 = vadd.f32 %v2803_v13, %v5886_v36  ;;  %v2805_v46 = vpop.f32.mrb[73].mxu0  ;;  %v2981_v48 = vadd.f32 %v5910_v10, %v2980_v37  ;;  %v4295_v43 = vpop.f32.mrb[138].mxu1 }
 0x2e7   :  { %v6124_v60 = vmax.f32 %v2989_v5, 0.0  ;;  %v2806_v14 = vpop.f32.mrb[74].mxu0  ;;  %v2992_v23 = vadd.f32 %v5926_v33, %v4295_v43  ;;  %v2983_v1 = vpop.f32.mrb[139].mxu1 }
 0x2e8   :  { %v6127_v29 = vmax.f32 %v2981_v48, 0.0  ;;  %v3594_v4 = vadd.f32 %v3593_v28, %v6090_v24  ;;  %v6131_v0 = vadd.f32 %v2806_v14, %v5891_v58  ;;  %v2808_v44 = vpop.f32.mrb[75].mxu0  ;;  %v2984_v36 = vadd.f32 %v5915_v12, %v2983_v1 }
 0x2e9   :  { %v4015_v10 = vpack.c.bf16 %v6124_v60, %v6124_v60  ;;  %v6136_v13 = vmax.f32 %v2992_v23, 0.0 }
 0x2ea   :  { %v4013_v5 = vpack.c.bf16 %v6127_v29, %v6127_v29  ;;  %v3595_v33 = vadd.f32 %v3594_v4, %v6127_v29  ;;  %v6141_v37 = vmax.f32 %v2984_v36, 0.0 }
 0x2eb   :  { %3534 = vst.msk [vmem:[%s6910_s2 + $0x28] sm:$0xf] %vm3523_vm1, %v4015_v10  ;;  %v4016_v58 = vpack.c.bf16 %v6136_v13, %v6136_v13 }
 0x2ec   :  { %3532 = vst.msk [vmem:[%s6910_s2 + $0x20] sm:$0xf] %vm3523_vm1, %v4013_v5  ;;  %v4014_v12 = vpack.c.bf16 %v6141_v37, %v6141_v37  ;;  %v3596_v28 = vadd.f32 %v3595_v33, %v6141_v37  ;;  %v4298_v46 = vpop.f32.mrb[140].mxu1 }
 0x2ed   :  { %3535 = vst.msk [vmem:[%s6910_s2 + $0x2c] sm:$0xf] %vm3523_vm1, %v4016_v58  ;;  %v2811_v48 = vpop.f32.mrb[76].mxu0  ;;  %v3005_v43 = vadd.f32 %v5941_v47, %v4298_v46  ;;  %v2996_v14 = vpop.f32.mrb[141].mxu1 }
 0x2ee   :  { %3533 = vst.msk [vmem:[%s6910_s2 + $0x24] sm:$0xf] %vm3523_vm1, %v4014_v12  ;;  %v3597_v23 = vadd.f32 %v3596_v28, %v6124_v60  ;;  %v6167_v1 = vadd.f32 %v2811_v48, %v5896_v53  ;;  %v2813_v4 = vpop.f32.mrb[77].mxu0  ;;  %v2997_v44 = vadd.f32 %v5931_v61, %v2996_v14  ;;  %v4299_v36 = vpop.f32.mrb[142].mxu1 }
 0x2ef   :  { %v6170_v10 = vmax.f32 %v3005_v43, 0.0  ;;  %v2814_v5 = vpop.f32.mrb[78].mxu0  ;;  %v3008_v47 = vadd.f32 %v5946_v45, %v4299_v36  ;;  %v2999_v33 = vpop.f32.mrb[143].mxu1 }
 0x2f0   :  { %v6173_v58 = vmax.f32 %v2997_v44, 0.0  ;;  %v3598_v46 = vadd.f32 %v3597_v23, %v6136_v13  ;;  %v6177_v12 = vadd.f32 %v2814_v5, %v5901_v54  ;;  %v2816_v28 = vpop.f32.mrb[79].mxu0  ;;  %v3000_v53 = vadd.f32 %v5936_v20, %v2999_v33 }
 0x2f1   :  { %v4019_v61 = vpack.c.bf16 %v6170_v10, %v6170_v10  ;;  %v6182_v48 = vmax.f32 %v3008_v47, 0.0 }
 0x2f2   :  { %v4017_v43 = vpack.c.bf16 %v6173_v58, %v6173_v58  ;;  %v3599_v45 = vadd.f32 %v3598_v46, %v6173_v58  ;;  %v6187_v14 = vmax.f32 %v3000_v53, 0.0 }
 0x2f3   :  { %3538 = vst.msk [vmem:[%s6910_s2 + $0x38] sm:$0xf] %vm3523_vm1, %v4019_v61  ;;  %v4020_v54 = vpack.c.bf16 %v6182_v48, %v6182_v48 }
 0x2f4   :  { %3536 = vst.msk [vmem:[%s6910_s2 + $0x30] sm:$0xf] %vm3523_vm1, %v4017_v43  ;;  %v4018_v20 = vpack.c.bf16 %v6187_v14, %v6187_v14  ;;  %v3600_v23 = vadd.f32 %v3599_v45, %v6187_v14  ;;  %v4302_v4 = vpop.f32.mrb[144].mxu1 }
 0x2f5   :  { %3539 = vst.msk [vmem:[%s6910_s2 + $0x3c] sm:$0xf] %vm3523_vm1, %v4020_v54  ;;  %v2819_v44 = vpop.f32.mrb[80].mxu0  ;;  %v3021_v36 = vadd.f32 %v5961_v34, %v4302_v4  ;;  %v3012_v5 = vpop.f32.mrb[145].mxu1 }
 0x2f6   :  { %3537 = vst.msk [vmem:[%s6910_s2 + $0x34] sm:$0xf] %vm3523_vm1, %v4018_v20  ;;  %v3601_v47 = vadd.f32 %v3600_v23, %v6170_v10  ;;  %v6213_v33 = vadd.f32 %v2819_v44, %v5907_v39  ;;  %v2821_v46 = vpop.f32.mrb[81].mxu0  ;;  %v3013_v28 = vadd.f32 %v5951_v30, %v3012_v5  ;;  %v4303_v53 = vpop.f32.mrb[146].mxu1 }
 0x2f7   :  { %v6216_v61 = vmax.f32 %v3021_v36, 0.0  ;;  %v2822_v43 = vpop.f32.mrb[82].mxu0  ;;  %v3024_v34 = vadd.f32 %v5966_v11, %v4303_v53  ;;  %v3015_v45 = vpop.f32.mrb[147].mxu1 }
 0x2f8   :  { %v6219_v54 = vmax.f32 %v3013_v28, 0.0  ;;  %v3602_v4 = vadd.f32 %v3601_v47, %v6182_v48  ;;  %v6223_v20 = vadd.f32 %v2822_v43, %v5912_v9  ;;  %v2824_v23 = vpop.f32.mrb[83].mxu0  ;;  %v3016_v39 = vadd.f32 %v5956_v57, %v3015_v45 }
 0x2f9   :  { %v4023_v30 = vpack.c.bf16 %v6216_v61, %v6216_v61  ;;  %v6228_v44 = vmax.f32 %v3024_v34, 0.0 }
 0x2fa   :  { %v4021_v36 = vpack.c.bf16 %v6219_v54, %v6219_v54  ;;  %v3603_v11 = vadd.f32 %v3602_v4, %v6219_v54  ;;  %v6233_v5 = vmax.f32 %v3016_v39, 0.0 }
 0x2fb   :  { %3542 = vst.msk [vmem:[%s6910_s2 + $0x48] sm:$0xf] %vm3523_vm1, %v4023_v30  ;;  %v4024_v9 = vpack.c.bf16 %v6228_v44, %v6228_v44 }
 0x2fc   :  { %3540 = vst.msk [vmem:[%s6910_s2 + $0x40] sm:$0xf] %vm3523_vm1, %v4021_v36  ;;  %v4022_v57 = vpack.c.bf16 %v6233_v5, %v6233_v5  ;;  %v3604_v47 = vadd.f32 %v3603_v11, %v6233_v5  ;;  %v4306_v46 = vpop.f32.mrb[148].mxu1 }
 0x2fd   :  { %3543 = vst.msk [vmem:[%s6910_s2 + $0x4c] sm:$0xf] %vm3523_vm1, %v4024_v9  ;;  %v2827_v28 = vpop.f32.mrb[84].mxu0  ;;  %v3037_v53 = vadd.f32 %v5981_v56, %v4306_v46  ;;  %v3028_v43 = vpop.f32.mrb[149].mxu1 }
 0x2fe   :  { %3541 = vst.msk [vmem:[%s6910_s2 + $0x44] sm:$0xf] %vm3523_vm1, %v4022_v57  ;;  %v3605_v34 = vadd.f32 %v3604_v47, %v6216_v61  ;;  %v6259_v45 = vadd.f32 %v2827_v28, %v5918_v7  ;;  %v2829_v4 = vpop.f32.mrb[85].mxu0  ;;  %v3029_v23 = vadd.f32 %v5971_v3, %v3028_v43  ;;  %v4307_v39 = vpop.f32.mrb[150].mxu1 }
 0x2ff   :  { %v6262_v30 = vmax.f32 %v3037_v53, 0.0  ;;  %v2830_v36 = vpop.f32.mrb[86].mxu0  ;;  %v3040_v56 = vadd.f32 %v5986_v35, %v4307_v39  ;;  %v3031_v11 = vpop.f32.mrb[151].mxu1 }
 0x300   :  { %v6265_v9 = vmax.f32 %v3029_v23, 0.0  ;;  %v3606_v46 = vadd.f32 %v3605_v34, %v6228_v44  ;;  %v6269_v57 = vadd.f32 %v2830_v36, %v5923_v40  ;;  %v2832_v47 = vpop.f32.mrb[87].mxu0  ;;  %v3032_v7 = vadd.f32 %v5976_v42, %v3031_v11 }
 0x301   :  { %v4027_v3 = vpack.c.bf16 %v6262_v30, %v6262_v30  ;;  %v6274_v28 = vmax.f32 %v3040_v56, 0.0 }
 0x302   :  { %v4025_v53 = vpack.c.bf16 %v6265_v9, %v6265_v9  ;;  %v3607_v35 = vadd.f32 %v3606_v46, %v6265_v9  ;;  %v6279_v43 = vmax.f32 %v3032_v7, 0.0 }
 0x303   :  { %3546 = vst.msk [vmem:[%s6910_s2 + $0x58] sm:$0xf] %vm3523_vm1, %v4027_v3  ;;  %v4028_v40 = vpack.c.bf16 %v6274_v28, %v6274_v28 }
 0x304   :  { %3544 = vst.msk [vmem:[%s6910_s2 + $0x50] sm:$0xf] %vm3523_vm1, %v4025_v53  ;;  %v4026_v42 = vpack.c.bf16 %v6279_v43, %v6279_v43  ;;  %v3608_v34 = vadd.f32 %v3607_v35, %v6279_v43  ;;  %v4310_v4 = vpop.f32.mrb[152].mxu1 }
 0x305   :  { %3547 = vst.msk [vmem:[%s6910_s2 + $0x5c] sm:$0xf] %vm3523_vm1, %v4028_v40  ;;  %v2835_v23 = vpop.f32.mrb[88].mxu0  ;;  %v3053_v39 = vadd.f32 %v6001_v63, %v4310_v4  ;;  %v3044_v36 = vpop.f32.mrb[153].mxu1 }
 0x306   :  { %3545 = vst.msk [vmem:[%s6910_s2 + $0x54] sm:$0xf] %vm3523_vm1, %v4026_v42  ;;  %v3609_v56 = vadd.f32 %v3608_v34, %v6262_v30  ;;  %v6305_v11 = vadd.f32 %v2835_v23, %v5928_v16  ;;  %v2837_v46 = vpop.f32.mrb[89].mxu0  ;;  %v3045_v47 = vadd.f32 %v5991_v25, %v3044_v36  ;;  %v4311_v7 = vpop.f32.mrb[154].mxu1 }
 0x307   :  { %v6308_v3 = vmax.f32 %v3053_v39, 0.0  ;;  %v2838_v53 = vpop.f32.mrb[90].mxu0  ;;  %v3056_v63 = vadd.f32 %v6006_v55, %v4311_v7  ;;  %v3047_v35 = vpop.f32.mrb[155].mxu1 }
 0x308   :  { %v6311_v40 = vmax.f32 %v3045_v47, 0.0  ;;  %v3610_v4 = vadd.f32 %v3609_v56, %v6274_v28  ;;  %v6315_v42 = vadd.f32 %v2838_v53, %v5933_v27  ;;  %v2840_v34 = vpop.f32.mrb[91].mxu0  ;;  %v3048_v16 = vadd.f32 %v5996_v62, %v3047_v35 }
 0x309   :  { %6960 = vst [vmem:[#allocation18_spill] sm:$0xff] %v6308_v3  ;;  %v4031_v25 = vpack.c.bf16 %v6308_v3, %v6308_v3  ;;  %v6320_v23 = vmax.f32 %v3056_v63, 0.0 }
 0x30a   :  { %v4029_v39 = vpack.c.bf16 %v6311_v40, %v6311_v40  ;;  %v3611_v55 = vadd.f32 %v3610_v4, %v6311_v40  ;;  %v6325_v36 = vmax.f32 %v3048_v16, 0.0 }
 0x30b   :  { %6961 = vst [vmem:[#allocation19_spill] sm:$0xff] %v6320_v23  ;;  %3550 = vst.msk [vmem:[%s6910_s2 + $0x68] sm:$0xf] %vm3523_vm1, %v4031_v25  ;;  %v4032_v27 = vpack.c.bf16 %v6320_v23, %v6320_v23 }
 0x30c   :  { %3548 = vst.msk [vmem:[%s6910_s2 + $0x60] sm:$0xf] %vm3523_vm1, %v4029_v39  ;;  %v4030_v62 = vpack.c.bf16 %v6325_v36, %v6325_v36  ;;  %v3612_v56 = vadd.f32 %v3611_v55, %v6325_v36  ;;  %v4314_v46 = vpop.f32.mrb[156].mxu1 }
 0x30d   :  { %3551 = vst.msk [vmem:[%s6910_s2 + $0x6c] sm:$0xf] %vm3523_vm1, %v4032_v27  ;;  %v2843_v47 = vpop.f32.mrb[92].mxu0  ;;  %v3069_v7 = vadd.f32 %v6021_v51, %v4314_v46  ;;  %v3060_v53 = vpop.f32.mrb[157].mxu1 }
 0x30e   :  { %3549 = vst.msk [vmem:[%s6910_s2 + $0x64] sm:$0xf] %vm3523_vm1, %v4030_v62  ;;  %v3613_v63 = vadd.f32 %v3612_v56, %v6308_v3  ;;  %v6351_v35 = vadd.f32 %v2843_v47, %v5938_v50  ;;  %v2845_v4 = vpop.f32.mrb[93].mxu0  ;;  %v3061_v34 = vadd.f32 %v6011_v21, %v3060_v53  ;;  %v4315_v16 = vpop.f32.mrb[158].mxu1 }
 0x30f   :  { %v6354_v25 = vmax.f32 %v3069_v7, 0.0  ;;  %v2846_v39 = vpop.f32.mrb[94].mxu0  ;;  %v3072_v51 = vadd.f32 %v6026_v8, %v4315_v16  ;;  %v3063_v55 = vpop.f32.mrb[159].mxu1 }
 0x310   :  { %v6357_v27 = vmax.f32 %v3061_v34, 0.0  ;;  %v3614_v46 = vadd.f32 %v3613_v63, %v6320_v23  ;;  %v6361_v62 = vadd.f32 %v2846_v39, %v5943_v49  ;;  %v2848_v56 = vpop.f32.mrb[95].mxu0  ;;  %v3064_v50 = vadd.f32 %v6016_v59, %v3063_v55 }
 0x311   :  { %6962 = vst [vmem:[#allocation20_spill] sm:$0xff] %v6354_v25  ;;  %v4035_v21 = vpack.c.bf16 %v6354_v25, %v6354_v25  ;;  %v6366_v47 = vmax.f32 %v3072_v51, 0.0 }
 0x312   :  { %6963 = vst [vmem:[#allocation21_spill] sm:$0xff] %v6357_v27  ;;  %v4033_v7 = vpack.c.bf16 %v6357_v27, %v6357_v27  ;;  %v3615_v8 = vadd.f32 %v3614_v46, %v6357_v27  ;;  %v6371_v53 = vmax.f32 %v3064_v50, 0.0 }
 0x313   :  { %6964 = vst [vmem:[#allocation22_spill] sm:$0xff] %v6366_v47  ;;  %3554 = vst.msk [vmem:[%s6910_s2 + $0x78] sm:$0xf] %vm3523_vm1, %v4035_v21  ;;  %v4036_v49 = vpack.c.bf16 %v6366_v47, %v6366_v47 }
 0x314   :  { %6965 = vst [vmem:[#allocation23_spill] sm:$0xff] %v6371_v53  ;;  %3552 = vst.msk [vmem:[%s6910_s2 + $0x70] sm:$0xf] %vm3523_vm1, %v4033_v7  ;;  %v4034_v59 = vpack.c.bf16 %v6371_v53, %v6371_v53  ;;  %v3616_v63 = vadd.f32 %v3615_v8, %v6371_v53  ;;  %v4318_v4 = vpop.f32.mrb[160].mxu1 }
 0x315   :  { %3555 = vst.msk [vmem:[%s6910_s2 + $0x7c] sm:$0xf] %vm3523_vm1, %v4036_v49  ;;  %v2851_v34 = vpop.f32.mrb[96].mxu0  ;;  %v3085_v16 = vadd.f32 %v6075_v2, %v4318_v4  ;;  %v3076_v39 = vpop.f32.mrb[161].mxu1 }
 0x316   :  { %3553 = vst.msk [vmem:[%s6910_s2 + $0x74] sm:$0xf] %vm3523_vm1, %v4034_v59  ;;  %v3617_v51 = vadd.f32 %v3616_v63, %v6354_v25  ;;  %v6397_v55 = vadd.f32 %v2851_v34, %v5948_v38  ;;  %v2853_v46 = vpop.f32.mrb[97].mxu0  ;;  %v3077_v56 = vadd.f32 %v6030_v52, %v3076_v39  ;;  %v4319_v50 = vpop.f32.mrb[162].mxu1 }
 0x317   :  { %v6400_v21 = vmax.f32 %v3085_v16, 0.0  ;;  %v2854_v7 = vpop.f32.mrb[98].mxu0  ;;  %v3088_v2 = vadd.f32 %v6085_v15, %v4319_v50  ;;  %v3079_v8 = vpop.f32.mrb[163].mxu1 }
 0x318   :  { %v6403_v49 = vmax.f32 %v3077_v56, 0.0  ;;  %v3618_v4 = vadd.f32 %v3617_v51, %v6366_v47  ;;  %v6407_v59 = vadd.f32 %v2854_v7, %v5953_v17  ;;  %v2856_v63 = vpop.f32.mrb[99].mxu0  ;;  %v3080_v38 = vadd.f32 %v6039_v18, %v3079_v8  ;;  %v6970_v8 = vld [vmem:[#allocation3_spill] sm:$0xff] }
 0x319   :  { %6966 = vst [vmem:[#allocation24_spill] sm:$0xff] %v6400_v21  ;;  %v4039_v52 = vpack.c.bf16 %v6400_v21, %v6400_v21  ;;  %v6412_v34 = vmax.f32 %v3088_v2, 0.0 }
 0x31a   :  { %6967 = vst [vmem:[#allocation25_spill] sm:$0xff] %v6403_v49  ;;  %v4037_v16 = vpack.c.bf16 %v6403_v49, %v6403_v49  ;;  %v3619_v15 = vadd.f32 %v3618_v4, %v6403_v49  ;;  %v6417_v39 = vmax.f32 %v3080_v38, 0.0 }
 0x31b   :  { %6968 = vst [vmem:[#allocation26_spill] sm:$0xff] %v6412_v34  ;;  %3558 = vst.msk [vmem:[%s6910_s2 + $0x88] sm:$0xf] %vm3523_vm1, %v4039_v52  ;;  %v4040_v17 = vpack.c.bf16 %v6412_v34, %v6412_v34 }
 0x31c   :  { %6969 = vst [vmem:[#allocation27_spill] sm:$0xff] %v6417_v39  ;;  %3556 = vst.msk [vmem:[%s6910_s2 + $0x80] sm:$0xf] %vm3523_vm1, %v4037_v16  ;;  %v4038_v18 = vpack.c.bf16 %v6417_v39, %v6417_v39  ;;  %v3620_v51 = vadd.f32 %v3619_v15, %v6417_v39  ;;  %v4322_v46 = vpop.f32.mrb[164].mxu1 }
 0x31d   :  { %3559 = vst.msk [vmem:[%s6910_s2 + $0x8c] sm:$0xf] %vm3523_vm1, %v4040_v17  ;;  %v2859_v56 = vpop.f32.mrb[100].mxu0  ;;  %v3101_v50 = vadd.f32 %v6167_v1, %v4322_v46  ;;  %v3092_v7 = vpop.f32.mrb[165].mxu1 }
 0x31e   :  { %3557 = vst.msk [vmem:[%s6910_s2 + $0x84] sm:$0xf] %vm3523_vm1, %v4038_v18  ;;  %v3621_v2 = vadd.f32 %v3620_v51, %v6400_v21  ;;  %v6443_v4 = vadd.f32 %v2859_v56, %v6970_v8  ;;  %v2861_v63 = vpop.f32.mrb[101].mxu0  ;;  %v3093_v38 = vadd.f32 %v6121_v32, %v3092_v7  ;;  %v4323_v52 = vpop.f32.mrb[166].mxu1  ;;  %v6973_v18 = vld [vmem:[#allocation4_spill] sm:$0xff] }
 0x31f   :  { %v6446_v16 = vmax.f32 %v3101_v50, 0.0  ;;  %v2862_v15 = vpop.f32.mrb[102].mxu0  ;;  %v3104_v1 = vadd.f32 %v6177_v12, %v4323_v52  ;;  %v3095_v17 = vpop.f32.mrb[167].mxu1 }
 0x320   :  { %v6449_v46 = vmax.f32 %v3093_v38, 0.0  ;;  %v3622_v39 = vadd.f32 %v3621_v2, %v6412_v34  ;;  %v6453_v49 = vadd.f32 %v2862_v15, %v6973_v18  ;;  %v2864_v51 = vpop.f32.mrb[103].mxu0  ;;  %v3096_v56 = vadd.f32 %v6131_v0, %v3095_v17  ;;  %v6976_v17 = vld [vmem:[#allocation5_spill] sm:$0xff] }
 0x321   :  { %6971 = vst [vmem:[#allocation3_spill] sm:$0xff] %v6446_v16  ;;  %v4043_v32 = vpack.c.bf16 %v6446_v16, %v6446_v16  ;;  %v6458_v7 = vmax.f32 %v3104_v1, 0.0 }
 0x322   :  { %6972 = vst [vmem:[#allocation28_spill] sm:$0xff] %v6449_v46  ;;  %v4041_v50 = vpack.c.bf16 %v6449_v46, %v6449_v46  ;;  %v3623_v12 = vadd.f32 %v3622_v39, %v6449_v46  ;;  %v6463_v8 = vmax.f32 %v3096_v56, 0.0 }
 0x323   :  { %6974 = vst [vmem:[#allocation4_spill] sm:$0xff] %v6458_v7  ;;  %3562 = vst.msk [vmem:[%s6910_s2 + $0x98] sm:$0xf] %vm3523_vm1, %v4043_v32  ;;  %v4044_v0 = vpack.c.bf16 %v6458_v7, %v6458_v7 }
 0x324   :  { %6975 = vst [vmem:[#allocation29_spill] sm:$0xff] %v6463_v8  ;;  %3560 = vst.msk [vmem:[%s6910_s2 + $0x90] sm:$0xf] %vm3523_vm1, %v4041_v50  ;;  %v4042_v2 = vpack.c.bf16 %v6463_v8, %v6463_v8  ;;  %v3624_v39 = vadd.f32 %v3623_v12, %v6463_v8  ;;  %v4326_v63 = vpop.f32.mrb[168].mxu1 }
 0x325   :  { %3563 = vst.msk [vmem:[%s6910_s2 + $0x9c] sm:$0xf] %vm3523_vm1, %v4044_v0  ;;  %v2867_v38 = vpop.f32.mrb[104].mxu0  ;;  %v3117_v52 = vadd.f32 %v6259_v45, %v4326_v63  ;;  %v3108_v15 = vpop.f32.mrb[169].mxu1 }
 0x326   :  { %3561 = vst.msk [vmem:[%s6910_s2 + $0x94] sm:$0xf] %vm3523_vm1, %v4042_v2  ;;  %v3625_v1 = vadd.f32 %v3624_v39, %v6446_v16  ;;  %v6489_v18 = vadd.f32 %v2867_v38, %v6976_v17  ;;  %v2869_v51 = vpop.f32.mrb[105].mxu0  ;;  %v3109_v56 = vadd.f32 %v6213_v33, %v3108_v15  ;;  %v4327_v32 = vpop.f32.mrb[170].mxu1  ;;  %v6979_v2 = vld [vmem:[#allocation6_spill] sm:$0xff] }
 0x327   :  { %v6492_v50 = vmax.f32 %v3117_v52, 0.0  ;;  %v2870_v12 = vpop.f32.mrb[106].mxu0  ;;  %v3120_v45 = vadd.f32 %v6269_v57, %v4327_v32  ;;  %v3111_v0 = vpop.f32.mrb[171].mxu1 }
 0x328   :  { %v6495_v63 = vmax.f32 %v3109_v56, 0.0  ;;  %v3626_v8 = vadd.f32 %v3625_v1, %v6458_v7  ;;  %v6499_v46 = vadd.f32 %v2870_v12, %v6979_v2  ;;  %v2872_v39 = vpop.f32.mrb[107].mxu0  ;;  %v3112_v38 = vadd.f32 %v6223_v20, %v3111_v0  ;;  %v6982_v0 = vld [vmem:[#allocation7_spill] sm:$0xff] }
 0x329   :  { %6977 = vst [vmem:[#allocation5_spill] sm:$0xff] %v6492_v50  ;;  %v4047_v33 = vpack.c.bf16 %v6492_v50, %v6492_v50  ;;  %v6504_v15 = vmax.f32 %v3120_v45, 0.0 }
 0x32a   :  { %6978 = vst [vmem:[#allocation30_spill] sm:$0xff] %v6495_v63  ;;  %v4045_v52 = vpack.c.bf16 %v6495_v63, %v6495_v63  ;;  %v3627_v57 = vadd.f32 %v3626_v8, %v6495_v63  ;;  %v6509_v17 = vmax.f32 %v3112_v38, 0.0  ;;  %v6985_v63 = vld [vmem:[#allocation8_spill] sm:$0xff] }
 0x32b   :  { %6980 = vst [vmem:[#allocation6_spill] sm:$0xff] %v6504_v15  ;;  %3566 = vst.msk [vmem:[%s6910_s2 + $0xa8] sm:$0xf] %vm3523_vm1, %v4047_v33  ;;  %v4048_v20 = vpack.c.bf16 %v6504_v15, %v6504_v15 }
 0x32c   :  { %6981 = vst [vmem:[#allocation31_spill] sm:$0xff] %v6509_v17  ;;  %3564 = vst.msk [vmem:[%s6910_s2 + $0xa0] sm:$0xf] %vm3523_vm1, %v4045_v52  ;;  %v4046_v1 = vpack.c.bf16 %v6509_v17, %v6509_v17  ;;  %v3628_v8 = vadd.f32 %v3627_v57, %v6509_v17  ;;  %v4330_v51 = vpop.f32.mrb[172].mxu1 }
 0x32d   :  { %3567 = vst.msk [vmem:[%s6910_s2 + $0xac] sm:$0xf] %vm3523_vm1, %v4048_v20  ;;  %v2875_v56 = vpop.f32.mrb[108].mxu0  ;;  %v3133_v32 = vadd.f32 %v6351_v35, %v4330_v51  ;;  %v3124_v12 = vpop.f32.mrb[173].mxu1 }
 0x32e   :  { %3565 = vst.msk [vmem:[%s6910_s2 + $0xa4] sm:$0xf] %vm3523_vm1, %v4046_v1  ;;  %v3629_v45 = vadd.f32 %v3628_v8, %v6492_v50  ;;  %v4434_v2 = vadd.f32 %v2875_v56, %v6982_v0  ;;  %v2877_v39 = vpop.f32.mrb[109].mxu0  ;;  %v3125_v38 = vadd.f32 %v6305_v11, %v3124_v12  ;;  %v4331_v33 = vpop.f32.mrb[174].mxu1 }
 0x32f   :  { %v6536_v52 = vmax.f32 %v3133_v32, 0.0  ;;  %v2878_v57 = vpop.f32.mrb[110].mxu0  ;;  %v3136_v20 = vadd.f32 %v6361_v62, %v4331_v33  ;;  %v3127_v35 = vpop.f32.mrb[175].mxu1  ;;  %v6987_v33 = vld [vmem:[#allocation9_spill] sm:$0xff] }
 0x330   :  { %v6539_v51 = vmax.f32 %v3125_v38, 0.0  ;;  %v3630_v17 = vadd.f32 %v3629_v45, %v6504_v15  ;;  %v4435_v1 = vadd.f32 %v2878_v57, %v6985_v63  ;;  %v2880_v7 = vpop.f32.mrb[111].mxu0  ;;  %v3128_v8 = vadd.f32 %v6315_v42, %v3127_v35 }
 0x331   :  { %6983 = vst [vmem:[#allocation7_spill] sm:$0xff] %v6536_v52  ;;  %v4051_v56 = vpack.c.bf16 %v6536_v52, %v6536_v52  ;;  %v6546_v11 = vmax.f32 %v3136_v20, 0.0 }
 0x332   :  { %6984 = vst [vmem:[#allocation32_spill] sm:$0xff] %v6539_v51  ;;  %v4049_v32 = vpack.c.bf16 %v6539_v51, %v6539_v51  ;;  %v3631_v62 = vadd.f32 %v3630_v17, %v6539_v51  ;;  %v6551_v12 = vmax.f32 %v3128_v8, 0.0  ;;  %v6988_v51 = vld [vmem:[#allocation10_spill] sm:$0xff] }
 0x333   :  { %6986 = vst [vmem:[#allocation8_spill] sm:$0xff] %v6546_v11  ;;  %3570 = vst.msk [vmem:[%s6910_s2 + $0xb8] sm:$0xf] %vm3523_vm1, %v4051_v56  ;;  %v4052_v42 = vpack.c.bf16 %v6546_v11, %v6546_v11 }
 0x334   :  { %3568 = vst.msk [vmem:[%s6910_s2 + $0xb0] sm:$0xf] %vm3523_vm1, %v4049_v32  ;;  %v4050_v7 = vpack.c.bf16 %v6551_v12, %v6551_v12  ;;  %v3632_v63 = vadd.f32 %v3631_v62, %v6551_v12  ;;  %v4334_v17 = vpop.f32.mrb[176].mxu1 }
 0x335   :  { %3571 = vst.msk [vmem:[%s6910_s2 + $0xbc] sm:$0xf] %vm3523_vm1, %v4052_v42  ;;  %v2883_v45 = vpop.f32.mrb[112].mxu0  ;;  %v3149_v0 = vadd.f32 %v6443_v4, %v4334_v17  ;;  %v3140_v39 = vpop.f32.mrb[177].mxu1 }
 0x336   :  { %3569 = vst.msk [vmem:[%s6910_s2 + $0xb4] sm:$0xf] %vm3523_vm1, %v4050_v7  ;;  %v3633_v38 = vadd.f32 %v3632_v63, %v6536_v52  ;;  %v4436_v57 = vadd.f32 %v2883_v45, %v6987_v33  ;;  %v2885_v20 = vpop.f32.mrb[113].mxu0  ;;  %v3141_v35 = vadd.f32 %v6397_v55, %v3140_v39  ;;  %v4335_v8 = vpop.f32.mrb[178].mxu1 }
 0x337   :  { %v6578_v56 = vmax.f32 %v3149_v0, 0.0  ;;  %v2886_v32 = vpop.f32.mrb[114].mxu0  ;;  %v3152_v62 = vadd.f32 %v6453_v49, %v4335_v8  ;;  %v3143_v4 = vpop.f32.mrb[179].mxu1 }
 0x338   :  { %v6581_v42 = vmax.f32 %v3141_v35, 0.0  ;;  %v3634_v17 = vadd.f32 %v3633_v38, %v6546_v11  ;;  %v4437_v7 = vadd.f32 %v2886_v32, %v6988_v51  ;;  %v2888_v15 = vpop.f32.mrb[115].mxu0  ;;  %v3144_v63 = vadd.f32 %v6407_v59, %v3143_v4  ;;  %v6989_v32 = vld [vmem:[#allocation11_spill] sm:$0xff]  ;;  %v6990_v11 = vld [vmem:[#allocation12_spill] sm:$0xff] }
 0x339   :  { %v4055_v45 = vpack.c.bf16 %v6578_v56, %v6578_v56  ;;  %v6588_v55 = vmax.f32 %v3152_v62, 0.0 }
 0x33a   :  { %v4053_v0 = vpack.c.bf16 %v6581_v42, %v6581_v42  ;;  %v3635_v49 = vadd.f32 %v3634_v17, %v6581_v42  ;;  %v6593_v39 = vmax.f32 %v3144_v63, 0.0 }
 0x33b   :  { %3574 = vst.msk [vmem:[%s6910_s2 + $0xc8] sm:$0xf] %vm3523_vm1, %v4055_v45  ;;  %v4056_v59 = vpack.c.bf16 %v6588_v55, %v6588_v55 }
 0x33c   :  { %3572 = vst.msk [vmem:[%s6910_s2 + $0xc0] sm:$0xf] %vm3523_vm1, %v4053_v0  ;;  %v4054_v15 = vpack.c.bf16 %v6593_v39, %v6593_v39  ;;  %v3636_v51 = vadd.f32 %v3635_v49, %v6593_v39  ;;  %v4338_v38 = vpop.f32.mrb[180].mxu1 }
 0x33d   :  { %3575 = vst.msk [vmem:[%s6910_s2 + $0xcc] sm:$0xf] %vm3523_vm1, %v4056_v59  ;;  %v2891_v33 = vpop.f32.mrb[116].mxu0  ;;  %v3165_v20 = vadd.f32 %v4434_v2, %v4338_v38  ;;  %v3156_v35 = vpop.f32.mrb[181].mxu1 }
 0x33e   :  { %3573 = vst.msk [vmem:[%s6910_s2 + $0xc4] sm:$0xf] %vm3523_vm1, %v4054_v15  ;;  %v3637_v8 = vadd.f32 %v3636_v51, %v6578_v56  ;;  %v4438_v62 = vadd.f32 %v2891_v33, %v6989_v32  ;;  %v2893_v4 = vpop.f32.mrb[117].mxu0  ;;  %v3157_v17 = vadd.f32 %v6489_v18, %v3156_v35  ;;  %v4339_v63 = vpop.f32.mrb[182].mxu1 }
 0x33f   :  { %v6619_v45 = vmax.f32 %v3165_v20, 0.0  ;;  %v2894_v0 = vpop.f32.mrb[118].mxu0  ;;  %v3168_v49 = vadd.f32 %v4435_v1, %v4339_v63  ;;  %v3159_v59 = vpop.f32.mrb[183].mxu1 }
 0x340   :  { %v6621_v2 = vmax.f32 %v3157_v17, 0.0  ;;  %v3638_v38 = vadd.f32 %v3637_v8, %v6588_v55  ;;  %v4439_v52 = vadd.f32 %v2894_v0, %v6990_v11  ;;  %v2896_v15 = vpop.f32.mrb[119].mxu0  ;;  %v3160_v51 = vadd.f32 %v6499_v46, %v3159_v59 }
 0x341   :  { %v4059_v33 = vpack.c.bf16 %v6619_v45, %v6619_v45  ;;  %v6628_v32 = vmax.f32 %v3168_v49, 0.0  ;;  %v6991_v49 = vld [vmem:[#allocation13_spill] sm:$0xff] }
 0x342   :  { %v4057_v18 = vpack.c.bf16 %v6621_v2, %v6621_v2  ;;  %v3639_v1 = vadd.f32 %v3638_v38, %v6621_v2  ;;  %v6633_v20 = vmax.f32 %v3160_v51, 0.0 }
 0x343   :  { %3578 = vst.msk [vmem:[%s6910_s2 + $0xd8] sm:$0xf] %vm3523_vm1, %v4059_v33  ;;  %v4060_v46 = vpack.c.bf16 %v6628_v32, %v6628_v32 }
 0x344   :  { %3576 = vst.msk [vmem:[%s6910_s2 + $0xd0] sm:$0xf] %vm3523_vm1, %v4057_v18  ;;  %v4058_v11 = vpack.c.bf16 %v6633_v20, %v6633_v20  ;;  %v3640_v35 = vadd.f32 %v3639_v1, %v6633_v20  ;;  %v4342_v8 = vpop.f32.mrb[184].mxu1 }
 0x345   :  { %3579 = vst.msk [vmem:[%s6910_s2 + $0xdc] sm:$0xf] %vm3523_vm1, %v4060_v46  ;;  %v2899_v4 = vpop.f32.mrb[120].mxu0  ;;  %v3181_v17 = vadd.f32 %v4438_v62, %v4342_v8  ;;  %v3172_v63 = vpop.f32.mrb[185].mxu1  ;;  %v6992_v8 = vld [vmem:[#allocation14_spill] sm:$0xff] }
 0x346   :  { %3577 = vst.msk [vmem:[%s6910_s2 + $0xd4] sm:$0xf] %vm3523_vm1, %v4058_v11  ;;  %v3641_v0 = vadd.f32 %v3640_v35, %v6619_v45  ;;  %v4440_v59 = vadd.f32 %v2899_v4, %v6991_v49  ;;  %v2901_v38 = vpop.f32.mrb[121].mxu0  ;;  %v3173_v15 = vadd.f32 %v4436_v57, %v3172_v63  ;;  %v4343_v51 = vpop.f32.mrb[186].mxu1 }
 0x347   :  { %v6658_v33 = vmax.f32 %v3181_v17, 0.0  ;;  %v2902_v18 = vpop.f32.mrb[122].mxu0  ;;  %v3184_v1 = vadd.f32 %v4439_v52, %v4343_v51  ;;  %v3175_v46 = vpop.f32.mrb[187].mxu1  ;;  %v6993_v51 = vld [vmem:[#allocation15_spill] sm:$0xff] }
 0x348   :  { %v6660_v50 = vmax.f32 %v3173_v15, 0.0  ;;  %v3642_v62 = vadd.f32 %v3641_v0, %v6628_v32  ;;  %v4441_v16 = vadd.f32 %v2902_v18, %v6992_v8  ;;  %v2904_v34 = vpop.f32.mrb[123].mxu0  ;;  %v3176_v11 = vadd.f32 %v4437_v7, %v3175_v46 }
 0x349   :  { %v4063_v35 = vpack.c.bf16 %v6658_v33, %v6658_v33  ;;  %v6666_v4 = vmax.f32 %v3184_v1, 0.0 }
 0x34a   :  { %v4061_v57 = vpack.c.bf16 %v6660_v50, %v6660_v50  ;;  %v3643_v17 = vadd.f32 %v3642_v62, %v6660_v50  ;;  %v3260_v52 = vmax.f32 %v3176_v11, 0.0 }
 0x34b   :  { %3582 = vst.msk [vmem:[%s6910_s2 + $0xe8] sm:$0xf] %vm3523_vm1, %v4063_v35  ;;  %v4064_v34 = vpack.c.bf16 %v6666_v4, %v6666_v4 }
 0x34c   :  { %3580 = vst.msk [vmem:[%s6910_s2 + $0xe0] sm:$0xf] %vm3523_vm1, %v4061_v57  ;;  %v4062_v7 = vpack.c.bf16 %v3260_v52, %v3260_v52  ;;  %v3644_v63 = vadd.f32 %v3643_v17, %v3260_v52  ;;  %v4346_v0 = vpop.f32.mrb[188].mxu1 }
 0x34d   :  { %3583 = vst.msk [vmem:[%s6910_s2 + $0xec] sm:$0xf] %vm3523_vm1, %v4064_v34  ;;  %v2907_v49 = vpop.f32.mrb[124].mxu0  ;;  %v3188_v38 = vpop.f32.mrb[189].mxu1  ;;  %v6994_v34 = vld [vmem:[#allocation16_spill] sm:$0xff] }
 0x34e   :  { %3581 = vst.msk [vmem:[%s6910_s2 + $0xe4] sm:$0xf] %vm3523_vm1, %v4062_v7  ;;  %v3645_v15 = vadd.f32 %v3644_v63, %v6658_v33  ;;  %v4442_v18 = vadd.f32 %v2907_v49, %v6993_v51  ;;  %v2909_v1 = vpop.f32.mrb[125].mxu0  ;;  %v3189_v46 = vadd.f32 %v4440_v59, %v3188_v38  ;;  %v4347_v62 = vpop.f32.mrb[190].mxu1 }
 0x34f   :  { %v2910_v8 = vpop.f32.mrb[126].mxu0  ;;  %v3191_v11 = vpop.f32.mrb[191].mxu1 }
 0x350   :  { %v3197_v35 = vadd.f32 %v4442_v18, %v4346_v0  ;;  %v3263_v57 = vmax.f32 %v3189_v46, 0.0  ;;  %v3646_v17 = vadd.f32 %v3645_v15, %v6666_v4  ;;  %v4443_v21 = vadd.f32 %v2910_v8, %v6994_v34  ;;  %v2912_v47 = vpop.f32.mrb[127].mxu0 }
 0x351   :  { %v3192_v25 = vadd.f32 %v4441_v16, %v3191_v11 }
 0x352   :  { %v3265_v53 = vmax.f32 %v3197_v35, 0.0  ;;  %v4065_v27 = vpack.c.bf16 %v3263_v57, %v3263_v57  ;;  %v3647_v7 = vadd.f32 %v3646_v17, %v3263_v57  ;;  %v3200_v23 = vadd.f32 %v4443_v21, %v4347_v62  ;;  %v6995_v35 = vld [vmem:[#allocation17_spill] sm:$0xff] }
 0x353   :  { %v3264_v63 = vmax.f32 %v3192_v25, 0.0 }
 0x354   :  { %v4067_v3 = vpack.c.bf16 %v3265_v53, %v3265_v53  ;;  %3584 = vst.msk [vmem:[%s6910_s2 + $0xf0] sm:$0xf] %vm3523_vm1, %v4065_v27  ;;  %v3266_v59 = vmax.f32 %v3200_v23, 0.0 }
 0x355   :  { %v4066_v0 = vpack.c.bf16 %v3264_v63, %v3264_v63  ;;  %v3648_v49 = vadd.f32 %v3647_v7, %v3264_v63 }
 0x356   :  { %3586 = vst.msk [vmem:[%s6910_s2 + $0xf8] sm:$0xf] %vm3523_vm1, %v4067_v3  ;;  %v4068_v47 = vpack.c.bf16 %v3266_v59, %v3266_v59 }
 0x357   :  { %3585 = vst.msk [vmem:[%s6910_s2 + $0xf4] sm:$0xf] %vm3523_vm1, %v4066_v0  ;;  %v3649_v25 = vadd.f32 %v3648_v49, %v3265_v53 }
 0x358   :  { %3587 = vst.msk [vmem:[%s6910_s2 + $0xfc] sm:$0xf] %vm3523_vm1, %v4068_v47 }
 0x359   :  { %v3650_v23 = vadd.f32 %v3649_v25, %v3266_v59 }
 0x35b   :  { %v3651_v27 = vrot.slane %v3650_v23, 4 }
 0x35d   :  { %v3652_v21 = vadd.f32 %v3651_v27, %v3650_v23 }
 0x35f   :  { %v3653_v16 = vrot.slane %v3652_v21, 2 }
 0x361   :  { %v3654_v38 = vadd.f32 %v3653_v16, %v3652_v21 }
 0x363   :  { %v3655_v15 = vrot.slane %v3654_v38, 1 }
 0x365   :  { %v3656_v51 = vadd.f32 %v3655_v15, %v3654_v38 }
 0x367   :  { %3855 = vst [vmem:[%s6911_s3] sm:$0x1] %v3656_v51  ;;  %v6712_v3 = vmul.f32 0.001953125, %v3656_v51 }
 0x369   :  { %v6716_v18 = vsub.f32 %v6551_v12, %v6712_v3  ;;  %v6720_v1 = vsub.f32 %v6581_v42, %v6712_v3  ;;  %v6724_v46 = vsub.f32 %v6593_v39, %v6712_v3  ;;  %v6728_v62 = vsub.f32 %v6578_v56, %v6712_v3 }
 0x36a   :  { %v6732_v8 = vsub.f32 %v6588_v55, %v6712_v3  ;;  %v6736_v12 = vsub.f32 %v6621_v2, %v6712_v3  ;;  %v6740_v42 = vsub.f32 %v6633_v20, %v6712_v3  ;;  %v6744_v39 = vsub.f32 %v6619_v45, %v6712_v3 }
 0x36b   :  { %v6748_v56 = vsub.f32 %v6628_v32, %v6712_v3  ;;  %v6752_v55 = vsub.f32 %v6660_v50, %v6712_v3  ;;  %v6755_v11 = vsub.f32 %v3260_v52, %v6712_v3  ;;  %v6759_v2 = vsub.f32 %v6658_v33, %v6712_v3 }
 0x36c   :  { %v6763_v20 = vsub.f32 %v6666_v4, %v6712_v3  ;;  %v6766_v45 = vsub.f32 %v3263_v57, %v6712_v3  ;;  %v6769_v32 = vsub.f32 %v3264_v63, %v6712_v3  ;;  %v6772_v50 = vsub.f32 %v3265_v53, %v6712_v3 }
 0x36d   :  { %v6775_v52 = vsub.f32 %v3266_v59, %v6712_v3  ;;  %v3658_v33 = vsub.f32 %v6036_v22, %v6712_v3  ;;  %v3659_v17 = vsub.f32 %v6995_v35, %v6712_v3  ;;  %v3660_v4 = vsub.f32 %v6033_v41, %v6712_v3 }
 0x36e   :  { %v3661_v7 = vsub.f32 %v6044_v26, %v6712_v3  ;;  %v3662_v53 = vsub.f32 %v6081_v31, %v6712_v3  ;;  %v3663_v0 = vsub.f32 %v6095_v6, %v6712_v3  ;;  %v3664_v47 = vsub.f32 %v6078_v19, %v6712_v3 }
 0x36f   :  { %v3722_v57 = vmul.f32 %v3658_v33, %v3658_v33  ;;  %v3723_v34 = vmul.f32 %v3659_v17, %v3659_v17  ;;  %v3724_v63 = vmul.f32 %v3660_v4, %v3660_v4  ;;  %v3665_v23 = vsub.f32 %v6090_v24, %v6712_v3 }
 0x370   :  { %v3725_v22 = vmul.f32 %v3661_v7, %v3661_v7  ;;  %v3726_v25 = vmul.f32 %v3662_v53, %v3662_v53  ;;  %v3727_v27 = vmul.f32 %v3663_v0, %v3663_v0  ;;  %v3666_v31 = vsub.f32 %v6127_v29, %v6712_v3 }
 0x371   :  { %v3786_v59 = vadd.f32 %v3723_v34, %v3722_v57  ;;  %v3728_v21 = vmul.f32 %v3664_v47, %v3664_v47  ;;  %v3667_v6 = vsub.f32 %v6141_v37, %v6712_v3  ;;  %v3729_v38 = vmul.f32 %v3665_v23, %v3665_v23 }
 0x372   :  { %v3668_v19 = vsub.f32 %v6124_v60, %v6712_v3  ;;  %v3730_v51 = vmul.f32 %v3666_v31, %v3666_v31  ;;  %v3669_v24 = vsub.f32 %v6136_v13, %v6712_v3  ;;  %v3670_v29 = vsub.f32 %v6173_v58, %v6712_v3 }
 0x373   :  { %v3787_v49 = vadd.f32 %v3786_v59, %v3724_v63  ;;  %v3731_v35 = vmul.f32 %v3667_v6, %v3667_v6  ;;  %v3671_v37 = vsub.f32 %v6187_v14, %v6712_v3  ;;  %v3672_v60 = vsub.f32 %v6170_v10, %v6712_v3 }
 0x374   :  { %v3732_v4 = vmul.f32 %v3668_v19, %v3668_v19  ;;  %v3733_v34 = vmul.f32 %v3669_v24, %v3669_v24  ;;  %v3734_v53 = vmul.f32 %v3670_v29, %v3670_v29  ;;  %v3673_v13 = vsub.f32 %v6182_v48, %v6712_v3  ;;  %v6996_v29 = vld [vmem:[#allocation18_spill] sm:$0xff] }
 0x375   :  { %v3788_v41 = vadd.f32 %v3787_v49, %v3725_v22  ;;  %v3735_v59 = vmul.f32 %v3671_v37, %v3671_v37  ;;  %v3674_v58 = vsub.f32 %v6219_v54, %v6712_v3  ;;  %v3736_v22 = vmul.f32 %v3672_v60, %v3672_v60  ;;  %v6997_v37 = vld [vmem:[#allocation19_spill] sm:$0xff]  ;;  %v6998_v60 = vld [vmem:[#allocation21_spill] sm:$0xff] }
 0x376   :  { %v3675_v14 = vsub.f32 %v6233_v5, %v6712_v3  ;;  %v3737_v47 = vmul.f32 %v3673_v13, %v3673_v13  ;;  %v3676_v10 = vsub.f32 %v6216_v61, %v6712_v3  ;;  %v3677_v48 = vsub.f32 %v6228_v44, %v6712_v3  ;;  %v6999_v13 = vld [vmem:[#allocation23_spill] sm:$0xff] }
 0x377   :  { %v3789_v26 = vadd.f32 %v3788_v41, %v3726_v25  ;;  %v3738_v41 = vmul.f32 %v3674_v58, %v3674_v58  ;;  %v3678_v54 = vsub.f32 %v6265_v9, %v6712_v3  ;;  %v3679_v5 = vsub.f32 %v6279_v43, %v6712_v3  ;;  %v7000_v58 = vld [vmem:[#allocation20_spill] sm:$0xff] }
 0x378   :  { %v3740_v31 = vmul.f32 %v3676_v10, %v3676_v10  ;;  %v3680_v61 = vsub.f32 %v6262_v30, %v6712_v3  ;;  %v3681_v44 = vsub.f32 %v6274_v28, %v6712_v3  ;;  %v3682_v9 = vsub.f32 %v6311_v40, %v6712_v3 }
 0x379   :  { %v3790_v16 = vadd.f32 %v3789_v26, %v3727_v27  ;;  %v3739_v27 = vmul.f32 %v3675_v14, %v3675_v14  ;;  %v3743_v19 = vmul.f32 %v3679_v5, %v3679_v5  ;;  %v3683_v43 = vsub.f32 %v6325_v36, %v6712_v3 }
 0x37a   :  { %v3684_v30 = vsub.f32 %v6996_v29, %v6712_v3  ;;  %v3685_v28 = vsub.f32 %v6997_v37, %v6712_v3  ;;  %v3686_v40 = vsub.f32 %v6998_v60, %v6712_v3  ;;  %v3687_v36 = vsub.f32 %v6999_v13, %v6712_v3 }
 0x37b   :  { %v3791_v15 = vadd.f32 %v3790_v16, %v3728_v21  ;;  %v3741_v16 = vmul.f32 %v3677_v48, %v3677_v48 }
 0x37c   :  { %v3751_v10 = vmul.f32 %v3687_v36, %v3687_v36 }
 0x37d   :  { %v3792_v33 = vadd.f32 %v3791_v15, %v3729_v38  ;;  %v3742_v38 = vmul.f32 %v3678_v54, %v3678_v54  ;;  %v7003_v54 = vld [vmem:[#allocation27_spill] sm:$0xff] }
 0x37f   :  { %v3793_v17 = vadd.f32 %v3792_v33, %v3730_v51  ;;  %v3744_v33 = vmul.f32 %v3680_v61, %v3680_v61 }
 0x381   :  { %v3794_v57 = vadd.f32 %v3793_v17, %v3731_v35  ;;  %v3745_v35 = vmul.f32 %v3681_v44, %v3681_v44 }
 0x383   :  { %v3795_v7 = vadd.f32 %v3794_v57, %v3732_v4  ;;  %v3746_v4 = vmul.f32 %v3682_v9, %v3682_v9  ;;  %v7006_v9 = vld [vmem:[#allocation28_spill] sm:$0xff] }
 0x385   :  { %v3796_v63 = vadd.f32 %v3795_v7, %v3733_v34  ;;  %v3747_v34 = vmul.f32 %v3683_v43, %v3683_v43 }
 0x387   :  { %v3797_v0 = vadd.f32 %v3796_v63, %v3734_v53  ;;  %v3748_v53 = vmul.f32 %v3684_v30, %v3684_v30 }
 0x389   :  { %v3798_v49 = vadd.f32 %v3797_v0, %v3735_v59  ;;  %v3749_v59 = vmul.f32 %v3685_v28, %v3685_v28 }
 0x38b   :  { %v3799_v25 = vadd.f32 %v3798_v49, %v3736_v22  ;;  %v3688_v22 = vsub.f32 %v7000_v58, %v6712_v3  ;;  %v3750_v49 = vmul.f32 %v3686_v40, %v3686_v40 }
 0x38d   :  { %v3800_v23 = vadd.f32 %v3799_v25, %v3737_v47  ;;  %v7001_v47 = vld [vmem:[#allocation22_spill] sm:$0xff] }
 0x38e   :  { %v3689_v25 = vsub.f32 %v7001_v47, %v6712_v3 }
 0x38f   :  { %v3801_v26 = vadd.f32 %v3800_v23, %v3738_v41  ;;  %v7002_v23 = vld [vmem:[#allocation25_spill] sm:$0xff] }
 0x390   :  { %v3690_v48 = vsub.f32 %v7002_v23, %v6712_v3 }
 0x391   :  { %v3802_v21 = vadd.f32 %v3801_v26, %v3739_v27  ;;  %v3752_v27 = vmul.f32 %v3688_v22, %v3688_v22 }
 0x392   :  { %v3754_v61 = vmul.f32 %v3690_v48, %v3690_v48 }
 0x393   :  { %v3803_v6 = vadd.f32 %v3802_v21, %v3740_v31  ;;  %v3691_v31 = vsub.f32 %v7003_v54, %v6712_v3  ;;  %v3753_v21 = vmul.f32 %v3689_v25, %v3689_v25 }
 0x395   :  { %v3804_v15 = vadd.f32 %v3803_v6, %v3741_v16  ;;  %v7004_v16 = vld [vmem:[#allocation24_spill] sm:$0xff] }
 0x396   :  { %v3692_v6 = vsub.f32 %v7004_v16, %v6712_v3  ;;  %v7015_v16 = vld [vmem:[#allocation7_spill] sm:$0xff] }
 0x397   :  { %v3805_v51 = vadd.f32 %v3804_v15, %v3742_v38  ;;  %v7005_v15 = vld [vmem:[#allocation26_spill] sm:$0xff] }
 0x398   :  { %v3693_v44 = vsub.f32 %v7005_v15, %v6712_v3  ;;  %v7016_v15 = vld [vmem:[#allocation8_spill] sm:$0xff] }
 0x399   :  { %v3806_v24 = vadd.f32 %v3805_v51, %v3743_v19  ;;  %v3755_v19 = vmul.f32 %v3691_v31, %v3691_v31 }
 0x39a   :  { %v3757_v29 = vmul.f32 %v3693_v44, %v3693_v44  ;;  %v3705_v44 = vsub.f32 %v7016_v15, %v6712_v3 }
 0x39b   :  { %v3807_v17 = vadd.f32 %v3806_v24, %v3744_v33  ;;  %v3694_v33 = vsub.f32 %v7006_v9, %v6712_v3  ;;  %v3756_v24 = vmul.f32 %v3692_v6, %v3692_v6  ;;  %v3704_v6 = vsub.f32 %v7015_v16, %v6712_v3 }
 0x39d   :  { %v3808_v57 = vadd.f32 %v3807_v17, %v3745_v35  ;;  %v7007_v35 = vld [vmem:[#allocation29_spill] sm:$0xff]  ;;  %v3758_v37 = vmul.f32 %v3694_v33, %v3694_v33  ;;  %v3768_v9 = vmul.f32 %v3704_v6, %v3704_v6 }
 0x39e   :  { %v3695_v17 = vsub.f32 %v7007_v35, %v6712_v3  ;;  %v3770_v35 = vmul.f32 %v6720_v1, %v6720_v1  ;;  %v3775_v1 = vmul.f32 %v6740_v42, %v6740_v42  ;;  %v3780_v42 = vmul.f32 %v6759_v2, %v6759_v2 }
 0x39f   :  { %v3809_v7 = vadd.f32 %v3808_v57, %v3746_v4  ;;  %v7008_v4 = vld [vmem:[#allocation3_spill] sm:$0xff]  ;;  %v3785_v2 = vmul.f32 %v6775_v52, %v6775_v52 }
 0x3a0   :  { %v3696_v57 = vsub.f32 %v7008_v4, %v6712_v3  ;;  %v3759_v60 = vmul.f32 %v3695_v17, %v3695_v17  ;;  %v3772_v4 = vmul.f32 %v6728_v62, %v6728_v62  ;;  %v3777_v62 = vmul.f32 %v6748_v56, %v6748_v56 }
 0x3a1   :  { %v3810_v63 = vadd.f32 %v3809_v7, %v3747_v34  ;;  %v7009_v34 = vld [vmem:[#allocation4_spill] sm:$0xff]  ;;  %v3782_v56 = vmul.f32 %v6766_v45, %v6766_v45 }
 0x3a2   :  { %v3697_v7 = vsub.f32 %v7009_v34, %v6712_v3  ;;  %v3760_v13 = vmul.f32 %v3696_v57, %v3696_v57 }
 0x3a3   :  { %v3811_v0 = vadd.f32 %v3810_v63, %v3748_v53  ;;  %v7010_v53 = vld [vmem:[#allocation30_spill] sm:$0xff] }
 0x3a4   :  { %v3698_v63 = vsub.f32 %v7010_v53, %v6712_v3  ;;  %v3761_v58 = vmul.f32 %v3697_v7, %v3697_v7 }
 0x3a5   :  { %v3812_v14 = vadd.f32 %v3811_v0, %v3749_v59  ;;  %v7011_v59 = vld [vmem:[#allocation31_spill] sm:$0xff] }
 0x3a6   :  { %v3699_v0 = vsub.f32 %v7011_v59, %v6712_v3  ;;  %v3762_v47 = vmul.f32 %v3698_v63, %v3698_v63 }
 0x3a7   :  { %v3813_v41 = vadd.f32 %v3812_v14, %v3750_v49  ;;  %v7012_v49 = vld [vmem:[#allocation5_spill] sm:$0xff] }
 0x3a8   :  { %v3700_v14 = vsub.f32 %v7012_v49, %v6712_v3  ;;  %v3763_v23 = vmul.f32 %v3699_v0, %v3699_v0 }
 0x3a9   :  { %v3814_v26 = vadd.f32 %v3813_v41, %v3751_v10  ;;  %v7013_v10 = vld [vmem:[#allocation6_spill] sm:$0xff] }
 0x3aa   :  { %v3701_v41 = vsub.f32 %v7013_v10, %v6712_v3  ;;  %v3764_v54 = vmul.f32 %v3700_v14, %v3700_v14 }
 0x3ab   :  { %v3815_v5 = vadd.f32 %v3814_v26, %v3752_v27  ;;  %v7014_v27 = vld [vmem:[#allocation32_spill] sm:$0xff] }
 0x3ac   :  { %v3702_v26 = vsub.f32 %v7014_v27, %v6712_v3 }
 0x3ad   :  { %v3816_v38 = vadd.f32 %v3815_v5, %v3753_v21  ;;  %v3765_v21 = vmul.f32 %v3701_v41, %v3701_v41 }
 0x3af   :  { %v3817_v51 = vadd.f32 %v3816_v38, %v3754_v61  ;;  %v3766_v61 = vmul.f32 %v3702_v26, %v3702_v26 }
 0x3b1   :  { %v3818_v43 = vadd.f32 %v3817_v51, %v3755_v19  ;;  %v3767_v19 = vmul.f32 %v6716_v18, %v6716_v18  ;;  %v3773_v18 = vmul.f32 %v6732_v8, %v6732_v8  ;;  %v3778_v8 = vmul.f32 %v6752_v55, %v6752_v55 }
 0x3b2   :  { %v3783_v55 = vmul.f32 %v6769_v32, %v6769_v32 }
 0x3b3   :  { %v3819_v30 = vadd.f32 %v3818_v43, %v3756_v24  ;;  %v3769_v24 = vmul.f32 %v3705_v44, %v3705_v44 }
 0x3b5   :  { %v3820_v28 = vadd.f32 %v3819_v30, %v3757_v29  ;;  %v3771_v29 = vmul.f32 %v6724_v46, %v6724_v46  ;;  %v3776_v46 = vmul.f32 %v6744_v39, %v6744_v39  ;;  %v3781_v39 = vmul.f32 %v6763_v20, %v6763_v20 }
 0x3b7   :  { %v3821_v40 = vadd.f32 %v3820_v28, %v3758_v37  ;;  %v3774_v37 = vmul.f32 %v6736_v12, %v6736_v12  ;;  %v3779_v12 = vmul.f32 %v6755_v11, %v6755_v11  ;;  %v3784_v11 = vmul.f32 %v6772_v50, %v6772_v50 }
 0x3b9   :  { %v3822_v36 = vadd.f32 %v3821_v40, %v3759_v60 }
 0x3bb   :  { %v3823_v22 = vadd.f32 %v3822_v36, %v3760_v13 }
 0x3bd   :  { %v3824_v25 = vadd.f32 %v3823_v22, %v3761_v58 }
 0x3bf   :  { %v3825_v48 = vadd.f32 %v3824_v25, %v3762_v47 }
 0x3c1   :  { %v3826_v31 = vadd.f32 %v3825_v48, %v3763_v23 }
 0x3c3   :  { %v3827_v5 = vadd.f32 %v3826_v31, %v3764_v54 }
 0x3c5   :  { %v3828_v38 = vadd.f32 %v3827_v5, %v3765_v21 }
 0x3c7   :  { %v3829_v51 = vadd.f32 %v3828_v38, %v3766_v61 }
 0x3c9   :  { %v3830_v33 = vadd.f32 %v3829_v51, %v3767_v19 }
 0x3cb   :  { %v3831_v43 = vadd.f32 %v3830_v33, %v3768_v9 }
 0x3cd   :  { %v3832_v17 = vadd.f32 %v3831_v43, %v3769_v24 }
 0x3cf   :  { %v3833_v30 = vadd.f32 %v3832_v17, %v3770_v35 }
 0x3d1   :  { %v3834_v3 = vadd.f32 %v3833_v30, %v3771_v29 }
 0x3d3   :  { %v3835_v57 = vadd.f32 %v3834_v3, %v3772_v4 }
 0x3d5   :  { %v3836_v28 = vadd.f32 %v3835_v57, %v3773_v18 }
 0x3d7   :  { %v3837_v34 = vadd.f32 %v3836_v28, %v3774_v37 }
 0x3d9   :  { %v3838_v7 = vadd.f32 %v3837_v34, %v3775_v1 }
 0x3db   :  { %v3839_v60 = vadd.f32 %v3838_v7, %v3776_v46 }
 0x3dd   :  { %v3840_v40 = vadd.f32 %v3839_v60, %v3777_v62 }
 0x3df   :  { %v3841_v53 = vadd.f32 %v3840_v40, %v3778_v8 }
 0x3e1   :  { %v3842_v63 = vadd.f32 %v3841_v53, %v3779_v12 }
 0x3e3   :  { %v3843_v13 = vadd.f32 %v3842_v63, %v3780_v42 }
 0x3e5   :  { %v3844_v36 = vadd.f32 %v3843_v13, %v3781_v39 }
 0x3e7   :  { %v3845_v59 = vadd.f32 %v3844_v36, %v3782_v56 }
 0x3e9   :  { %v3846_v0 = vadd.f32 %v3845_v59, %v3783_v55 }
 0x3eb   :  { %v3847_v58 = vadd.f32 %v3846_v0, %v3784_v11 }
 0x3ed   :  { %v3848_v22 = vadd.f32 %v3847_v58, %v3785_v2 }
 0x3ef   :  { %v3849_v49 = vrot.slane %v3848_v22, 4 }
 0x3f1   :  { %v3850_v20 = vadd.f32 %v3849_v49, %v3848_v22 }
 0x3f3   :  { %v3851_v14 = vrot.slane %v3850_v20, 2 }
 0x3f5   :  { %v3852_v47 = vadd.f32 %v3851_v14, %v3850_v20 }
 0x3f7   :  { %v3853_v25 = vrot.slane %v3852_v47, 1 }
 0x3f9   :  { %v3854_v45 = vadd.f32 %v3853_v25, %v3852_v47 }
 0x3fb   :  { %3856 = vst [vmem:[%s6912_s4] sm:$0x1] %v3854_v45 }

// kernel: residual_block_no_bn.3
= control target key start
LH: loop header
LB: loop body
LE: loop exit
PB: predicated region body
PF: predicated region fallthrough
CT: control target
= control target key end

     0   :  { %v4744_v0 = vmov 0   ;;  %v4745_v2 = vmov 0.0   ;;  %vm400_vm0 = vcmask 31744   ;;  %s6648_s2 = inlined_call_operand.vmem [shape: bf16[1152,128], index: 2, kind: input, shape index: {}]   ;;  %s6649_s0 = inlined_call_operand.vmem [shape: bf16[2,16,16,4], index: 0, kind: input, shape index: {}]   ;;  %s6650_s3 = inlined_call_operand.vmem [shape: f32[1,4], index: 3, kind: input, shape index: {}]   ;;  %s6651_s4 = inlined_call_operand.vmem [shape: f32[1,4], index: 4, kind: input, shape index: {}]   ;;  %s6652_s1 = inlined_call_operand.vmem [shape: bf16[2,16,16,4], index: 1, kind: input, shape index: {}]   ;;  %s6653_s5 = inlined_call_operand.vmem [shape: f32[2,16,16,4], index: 5, kind: output, shape index: {}]  }
   0x1   :  { %1906 = vmatprep.subr.bf16.mxu1 %v4744_v0  ;;  %2195 = vmatprep.subr.bf16.mxu0 %v4744_v0  ;;  %v4782_v1 = vld [vmem:[%s6648_s2] sm:$0xff]   ;;  %291 = vst [vmem:[#allocation2] sm:$0xff] %v4745_v2  ;;  %292 = vst [vmem:[#allocation2 + $0x8] sm:$0xff] %v4745_v2  ;;  %v4671_v4 = vld [vmem:[%s6648_s2 + $0x8] sm:$0xff]  }
   0x2   :  { %293 = vst [vmem:[#allocation2 + $0x10] sm:$0x3] %v4745_v2  ;;  %294 = vst [vmem:[#allocation2 + $0x18] sm:$0xff] %v4745_v2  ;;  %v4895_v3 = vld [vmem:[%s6648_s2 + $0x80] sm:$0xff]   ;;  %1907 = vmatpush1.bf16.msra.mxu1 %v4782_v1  ;;  %v4906_v5 = vld [vmem:[%s6648_s2 + $0x88] sm:$0xff]  }
   0x3   :  { %295 = vst [vmem:[#allocation2 + $0x20] sm:$0xff] %v4745_v2  ;;  %296 = vst [vmem:[#allocation2 + $0x28] sm:$0x3] %v4745_v2  ;;  %2196 = vmatpush1.bf16.msra.mxu0 %v4895_v3  ;;  %1908 = vmatprep.subr.bf16.mxu1 %v4744_v0  ;;  %v4673_v6 = vld [vmem:[%s6648_s2 + $0x10] sm:$0xff]   ;;  %v4675_v8 = vld [vmem:[%s6648_s2 + $0x18] sm:$0xff]  }
   0x4   :  { %297 = vst [vmem:[#allocation2 + $0x30] sm:$0xff] %v4745_v2  ;;  %298 = vst [vmem:[#allocation2 + $0x38] sm:$0xff] %v4745_v2  ;;  %2197 = vmatprep.subr.bf16.mxu0 %v4744_v0  ;;  %v4917_v7 = vld [vmem:[%s6648_s2 + $0x90] sm:$0xff]   ;;  %v4928_v9 = vld [vmem:[%s6648_s2 + $0x98] sm:$0xff]  }
   0x5   :  { %299 = vst [vmem:[#allocation2 + $0x40] sm:$0x3] %v4745_v2  ;;  %300 = vst [vmem:[#allocation2 + $0x48] sm:$0xff] %v4745_v2  ;;  %v4677_v10 = vld [vmem:[%s6648_s2 + $0x20] sm:$0xff]   ;;  %v4679_v12 = vld [vmem:[%s6648_s2 + $0x28] sm:$0xff]  }
   0x6   :  { %301 = vst [vmem:[#allocation2 + $0x50] sm:$0xff] %v4745_v2  ;;  %302 = vst [vmem:[#allocation2 + $0x58] sm:$0x3] %v4745_v2  ;;  %1909 = vmatpush1.bf16.msra.mxu1 %v4671_v4  ;;  %v4939_v11 = vld [vmem:[%s6648_s2 + $0xa0] sm:$0xff]   ;;  %v4950_v13 = vld [vmem:[%s6648_s2 + $0xa8] sm:$0xff]  }
   0x7   :  { %303 = vst [vmem:[#allocation2 + $0x60] sm:$0xff] %v4745_v2  ;;  %304 = vst [vmem:[#allocation2 + $0x68] sm:$0xff] %v4745_v2  ;;  %2198 = vmatpush1.bf16.msra.mxu0 %v4906_v5  ;;  %1910 = vmatprep.subr.bf16.mxu1 %v4744_v0  ;;  %v4681_v14 = vld [vmem:[%s6648_s2 + $0x30] sm:$0xff]   ;;  %v4683_v16 = vld [vmem:[%s6648_s2 + $0x38] sm:$0xff]  }
   0x8   :  { %305 = vst [vmem:[#allocation2 + $0x70] sm:$0x3] %v4745_v2  ;;  %306 = vst [vmem:[#allocation2 + $0x78] sm:$0xff] %v4745_v2  ;;  %2199 = vmatprep.subr.bf16.mxu0 %v4744_v0  ;;  %v4961_v15 = vld [vmem:[%s6648_s2 + $0xb0] sm:$0xff]   ;;  %v4972_v17 = vld [vmem:[%s6648_s2 + $0xb8] sm:$0xff]  }
   0x9   :  { %307 = vst [vmem:[#allocation2 + $0x80] sm:$0xff] %v4745_v2  ;;  %308 = vst [vmem:[#allocation2 + $0x88] sm:$0x3] %v4745_v2  ;;  %v4685_v18 = vld [vmem:[%s6648_s2 + $0x40] sm:$0xff]   ;;  %v562_v21 = vld [vmem:[#allocation2 + $0x9] sm:$0xff] }
   0xa   :  { %309 = vst [vmem:[#allocation2 + $0x90] sm:$0xff] %v4745_v2  ;;  %310 = vst [vmem:[#allocation2 + $0x98] sm:$0xff] %v4745_v2  ;;  %1911 = vmatpush1.bf16.msra.mxu1 %v4673_v6  ;;  %v4983_v19 = vld [vmem:[%s6648_s2 + $0xc0] sm:$0xff]   ;;  %v4687_v23 = vld [vmem:[%s6648_s2 + $0x48] sm:$0xff]  }
   0xb   :  { %311 = vst [vmem:[#allocation2 + $0xa0] sm:$0x3] %v4745_v2  ;;  %312 = vst [vmem:[#allocation2 + $0xa8] sm:$0xff] %v4745_v2  ;;  %2200 = vmatpush1.bf16.msra.mxu0 %v4917_v7  ;;  %1912 = vmatprep.subr.bf16.mxu1 %v4744_v0  ;;  %v561_v20 = vld [vmem:[#allocation2 + $0x1] sm:$0xff]  ;;  %v4995_v27 = vld [vmem:[%s6650_s3] ss:$0 sm:$0xff] }
   0xc   :  { %313 = vst [vmem:[#allocation2 + $0xb0] sm:$0xff] %v4745_v2  ;;  %314 = vst [vmem:[#allocation2 + $0xb8] sm:$0x3] %v4745_v2  ;;  %2201 = vmatprep.subr.bf16.mxu0 %v4744_v0  ;;  %v3878_v22 = vld [vmem:[%s6649_s0] sm:$0xff]   ;;  %v625_v24 = vpack.c.bf16 %v562_v21, %v561_v20  ;;  %v5007_v29 = vld [vmem:[%s6648_s2 + $0xc8] sm:$0xff]  }
   0xd   :  { %315 = vst [vmem:[#allocation2 + $0xc0] sm:$0xff] %v4745_v2  ;;  %316 = vst [vmem:[#allocation2 + $0xc8] sm:$0xff] %v4745_v2  ;;  %v3879_v25 = vunpack.c.l.bf16 %v3878_v22  ;;  %v3880_v26 = vunpack.c.h.bf16 %v3878_v22  ;;  %v5000_v28 = vld [vmem:[%s6651_s4] ss:$0 sm:$0xff]  ;;  %v4133_v32 = vld [vmem:[%s6649_s0 + $0x8] sm:$0xff]  }
   0xe   :  { %317 = vst [vmem:[#allocation2 + $0xd0] sm:$0x3] %v4745_v2  ;;  %318 = vst [vmem:[#allocation2 + $0xd8] sm:$0xff] %v4745_v2  ;;  %1913 = vmatpush1.bf16.msra.mxu1 %v4675_v8  ;;  %1938 = vmatprep.mubr.bf16.mxu1 %v625_v24  ;;  %v3883_v35 = vunpack.c.l.bf16 %v4133_v32  ;;  %v3884_v36 = vunpack.c.h.bf16 %v4133_v32  ;;  %v4689_v37 = vld [vmem:[%s6648_s2 + $0x50] sm:$0xff]   ;;  %v4135_v48 = vld [vmem:[%s6649_s0 + $0x18] sm:$0xff]  }
   0xf   :  { %319 = vst [vmem:[#allocation2 + $0xe0] sm:$0xff] %v4745_v2  ;;  %320 = vst [vmem:[#allocation2 + $0xe8] sm:$0x3] %v4745_v2  ;;  %2202 = vmatpush1.bf16.msra.mxu0 %v4928_v9  ;;  %1914 = vmatprep.subr.bf16.mxu1 %v4744_v0  ;;  %v156_v30 = vmul.f32 %v3879_v25, %v4995_v27  ;;  %v157_v31 = vmul.f32 %v3880_v26, %v4995_v27  ;;  %v4134_v38 = vld [vmem:[%s6649_s0 + $0x10] sm:$0xff]   ;;  %v4691_v49 = vld [vmem:[%s6648_s2 + $0x58] sm:$0xff]   ;;  %v3891_v50 = vunpack.c.l.bf16 %v4135_v48 }
  0x10   :  { %321 = vst [vmem:[#allocation2 + $0xf0] sm:$0xff] %v4745_v2  ;;  %322 = vst [vmem:[#allocation2 + $0xf8] sm:$0xff] %v4745_v2  ;;  %2203 = vmatprep.subr.bf16.mxu0 %v4744_v0  ;;  %v5028_v39 = vld [vmem:[%s6648_s2 + $0xd0] sm:$0xff]   ;;  %v158_v40 = vmul.f32 %v3883_v35, %v4995_v27  ;;  %v159_v41 = vmul.f32 %v3884_v36, %v4995_v27  ;;  %v3887_v42 = vunpack.c.l.bf16 %v4134_v38  ;;  %v3888_v43 = vunpack.c.h.bf16 %v4134_v38  ;;  %v5050_v52 = vld [vmem:[%s6648_s2 + $0xd8] sm:$0xff]  }
  0x11   :  { %323 = vst [vmem:[#allocation2 + $0x100] sm:$0x3] %v4745_v2  ;;  %324 = vst [vmem:[#allocation2 + $0x108] sm:$0xff] %v4745_v2  ;;  %v227_v33 = vadd.f32 %v5000_v28, %v156_v30  ;;  %v228_v34 = vadd.f32 %v5000_v28, %v157_v31  ;;  %v3892_v51 = vunpack.c.h.bf16 %v4135_v48  ;;  %v4136_v55 = vld [vmem:[%s6649_s0 + $0x20] sm:$0xff]   ;;  %v162_v56 = vmul.f32 %v3891_v50, %v4995_v27  ;;  %v4137_v60 = vld [vmem:[%s6649_s0 + $0x28] sm:$0xff]  }
  0x12   :  { %325 = vst [vmem:[#allocation2 + $0x110] sm:$0xff] %v4745_v2  ;;  %326 = vst [vmem:[#allocation2 + $0x118] sm:$0x3] %v4745_v2  ;;  %1915 = vmatpush1.bf16.msra.mxu1 %v4677_v10  ;;  %v229_v44 = vadd.f32 %v5000_v28, %v158_v40  ;;  %v230_v45 = vadd.f32 %v5000_v28, %v159_v41  ;;  %v160_v46 = vmul.f32 %v3887_v42, %v4995_v27  ;;  %v4693_v61 = vld [vmem:[%s6648_s2 + $0x60] sm:$0xff]   ;;  %v4695_v22 = vld [vmem:[%s6648_s2 + $0x68] sm:$0xff]  }
  0x13   :  { %327 = vst [vmem:[#allocation2 + $0x120] sm:$0xff] %v4745_v2  ;;  %328 = vst [vmem:[#allocation2 + $0x128] sm:$0xff] %v4745_v2  ;;  %2204 = vmatpush1.bf16.msra.mxu0 %v4939_v11  ;;  %1916 = vmatprep.subr.bf16.mxu1 %v4744_v0  ;;  %v161_v47 = vmul.f32 %v3888_v43, %v4995_v27  ;;  %v163_v57 = vmul.f32 %v3892_v51, %v4995_v27  ;;  %v3895_v58 = vunpack.c.l.bf16 %v4136_v55  ;;  %v5079_v8 = vld [vmem:[%s6648_s2 + $0xe0] sm:$0xff]   ;;  %v4697_v26 = vld [vmem:[%s6648_s2 + $0x70] sm:$0xff]  }
  0x14   :  { %329 = vst [vmem:[#allocation2 + $0x130] sm:$0x3] %v4745_v2  ;;  %330 = vst [vmem:[#allocation2 + $0x138] sm:$0xff] %v4745_v2  ;;  %2205 = vmatprep.subr.bf16.mxu0 %v4744_v0  ;;  %v231_v53 = vadd.f32 %v5000_v28, %v160_v46  ;;  %v3896_v59 = vunpack.c.h.bf16 %v4136_v55  ;;  %v233_v1 = vadd.f32 %v5000_v28, %v162_v56  ;;  %v4138_v30 = vld [vmem:[%s6649_s0 + $0x30] sm:$0xff]   ;;  %v4699_v36 = vld [vmem:[%s6648_s2 + $0x78] sm:$0xff]   ;;  %v4746_v55 = vmov 0.0|0.0  }
  0x15   :  { %331 = vst [vmem:[#allocation2 + $0x140] sm:$0xff] %v4745_v2  ;;  %332 = vst [vmem:[#allocation2 + $0x148] sm:$0x3] %v4745_v2  ;;  %v232_v54 = vadd.f32 %v5000_v28, %v161_v47  ;;  %v164_v4 = vmul.f32 %v3895_v58, %v4995_v27  ;;  %v5119_v31 = vld [vmem:[%s6648_s2 + $0xf0] sm:$0xff]   ;;  %v3903_v32 = vunpack.c.l.bf16 %v4138_v30  ;;  %v657_v38 = vld [vmem:[#allocation2 + $0x2] sm:$0xff] }
  0x16   :  { %333 = vst [vmem:[#allocation2 + $0x150] sm:$0xff] %v4745_v2  ;;  %334 = vst [vmem:[#allocation2 + $0x158] sm:$0xff] %v4745_v2  ;;  %1917 = vmatpush1.bf16.msra.mxu1 %v4679_v12  ;;  %v165_v6 = vmul.f32 %v3896_v59, %v4995_v27  ;;  %v3899_v12 = vunpack.c.l.bf16 %v4137_v60  ;;  %v658_v40 = vld [vmem:[#allocation2 + $0xa] sm:$0xff]  ;;  %v4139_v48 = vld [vmem:[%s6649_s0 + $0x38] sm:$0xff]  }
  0x17   :  { %335 = vst [vmem:[#allocation2 + $0x160] sm:$0x3] %v4745_v2  ;;  %336 = vst [vmem:[#allocation2 + $0x168] sm:$0xff] %v4745_v2  ;;  %2206 = vmatpush1.bf16.msra.mxu0 %v4950_v13  ;;  %1918 = vmatprep.subr.bf16.mxu1 %v4744_v0  ;;  %v721_v47 = vpack.c.bf16 %v658_v40, %v657_v38  ;;  %v3907_v51 = vunpack.c.l.bf16 %v4139_v48  ;;  %v4702_v56 = vld [vmem:[%s6648_s2 + $0x108] sm:$0xff]  }
  0x18   :  { %337 = vst [vmem:[#allocation2 + $0x170] sm:$0xff] %v4745_v2  ;;  %338 = vst [vmem:[#allocation2 + $0x178] sm:$0x3] %v4745_v2  ;;  %2207 = vmatprep.subr.bf16.mxu0 %v4744_v0  ;;  %v166_v20 = vmul.f32 %v3899_v12, %v4995_v27 }
  0x19   :  { %339 = vst [vmem:[#allocation2 + $0x180] sm:$0xff] %v4745_v2  ;;  %340 = vst [vmem:[#allocation2 + $0x188] sm:$0xff] %v4745_v2 }
  0x1a   :  { %341 = vst [vmem:[#allocation2 + $0x190] sm:$0x3] %v4745_v2  ;;  %342 = vst [vmem:[#allocation2 + $0x198] sm:$0xff] %v4745_v2  ;;  %1919 = vmatpush1.bf16.msra.mxu1 %v4681_v14  ;;  %v3900_v14 = vunpack.c.h.bf16 %v4137_v60  ;;  %v237_v24 = vadd.f32 %v5000_v28, %v166_v20  ;;  %v170_v60 = vmul.f32 %v3907_v51, %v4995_v27  ;;  %v4146_v51 = vld [vmem:[%s6649_s0 + $0x70] sm:$0xff]  }
  0x1b   :  { %343 = vst [vmem:[#allocation2 + $0x1a0] sm:$0xff] %v4745_v2  ;;  %344 = vst [vmem:[#allocation2 + $0x1a8] sm:$0x3] %v4745_v2  ;;  %2208 = vmatpush1.bf16.msra.mxu0 %v4961_v15  ;;  %1920 = vmatprep.subr.bf16.mxu1 %v4744_v0 }
  0x1c   :  { %345 = vst [vmem:[#allocation2 + $0x1b0] sm:$0xff] %v4745_v2  ;;  %346 = vst [vmem:[#allocation2 + $0x1b8] sm:$0xff] %v4745_v2  ;;  %2209 = vmatprep.subr.bf16.mxu0 %v4744_v0  ;;  %v167_v21 = vmul.f32 %v3900_v14, %v4995_v27 }
  0x1d   :  { %347 = vst [vmem:[#allocation2 + $0x1c0] sm:$0x3] %v4745_v2  ;;  %348 = vst [vmem:[#allocation2 + $0x1c8] sm:$0xff] %v4745_v2 }
  0x1e   :  { %349 = vst [vmem:[#allocation2 + $0x1d0] sm:$0xff] %v4745_v2  ;;  %350 = vst [vmem:[#allocation2 + $0x1d8] sm:$0x3] %v4745_v2  ;;  %1921 = vmatpush1.bf16.msra.mxu1 %v4683_v16  ;;  %v235_v16 = vadd.f32 %v5000_v28, %v164_v4  ;;  %v238_v25 = vadd.f32 %v5000_v28, %v167_v21 }
  0x1f   :  { %351 = vst [vmem:[#allocation2 + $0x1e0] sm:$0xff] %v4745_v2  ;;  %352 = vst [vmem:[#allocation2 + $0x1e8] sm:$0xff] %v4745_v2  ;;  %2210 = vmatpush1.bf16.msra.mxu0 %v4972_v17  ;;  %1922 = vmatprep.subr.bf16.mxu1 %v4744_v0 }
  0x20   :  { %353 = vst [vmem:[#allocation2 + $0x1f0] sm:$0x3] %v4745_v2  ;;  %354 = vst [vmem:[#allocation2 + $0x1f8] sm:$0xff] %v4745_v2  ;;  %2211 = vmatprep.subr.bf16.mxu0 %v4744_v0 }
  0x21   :  { %355 = vst [vmem:[#allocation2 + $0x200] sm:$0xff] %v4745_v2  ;;  %356 = vst [vmem:[#allocation2 + $0x208] sm:$0x3] %v4745_v2 }
  0x22   :  { %357 = vst [vmem:[#allocation2 + $0x210] sm:$0xff] %v4745_v2  ;;  %358 = vst [vmem:[#allocation2 + $0x218] sm:$0xff] %v4745_v2  ;;  %1923 = vmatpush1.bf16.msra.mxu1 %v4685_v18  ;;  %v236_v18 = vadd.f32 %v5000_v28, %v165_v6  ;;  %v241_v6 = vadd.f32 %v5000_v28, %v170_v60 }
  0x23   :  { %359 = vst [vmem:[#allocation2 + $0x220] sm:$0x3] %v4745_v2  ;;  %360 = vst [vmem:[#allocation2 + $0x228] sm:$0xff] %v4745_v2  ;;  %2212 = vmatpush1.bf16.msra.mxu0 %v4983_v19  ;;  %1924 = vmatprep.subr.bf16.mxu1 %v4744_v0 }
  0x24   :  { %361 = vst [vmem:[#allocation2 + $0x230] sm:$0xff] %v4745_v2  ;;  %362 = vst [vmem:[#allocation2 + $0x238] sm:$0x3] %v4745_v2  ;;  %2213 = vmatprep.subr.bf16.mxu0 %v4744_v0 }
  0x25   :  { %363 = vst [vmem:[#allocation2 + $0x240] sm:$0xff] %v4745_v2  ;;  %364 = vst [vmem:[#allocation2 + $0x248] sm:$0xff] %v4745_v2 }
  0x26   :  { %365 = vst [vmem:[#allocation2 + $0x250] sm:$0x3] %v4745_v2  ;;  %366 = vst [vmem:[#allocation2 + $0x258] sm:$0xff] %v4745_v2  ;;  %1925 = vmatpush1.bf16.msra.mxu1 %v4687_v23  ;;  %v5101_v23 = vld [vmem:[%s6648_s2 + $0xe8] sm:$0xff]  }
  0x27   :  { %367 = vst [vmem:[#allocation2 + $0x260] sm:$0xff] %v4745_v2  ;;  %368 = vst [vmem:[#allocation2 + $0x268] sm:$0x3] %v4745_v2  ;;  %2214 = vmatpush1.bf16.msra.mxu0 %v5007_v29  ;;  %1926 = vmatprep.subr.bf16.mxu1 %v4744_v0 }
  0x28   :  { %369 = vst [vmem:[#allocation2 + $0x270] sm:$0xff] %v4745_v2  ;;  %370 = vst [vmem:[#allocation2 + $0x278] sm:$0xff] %v4745_v2  ;;  %2215 = vmatprep.subr.bf16.mxu0 %v4744_v0 }
  0x29   :  { %371 = vst [vmem:[#allocation2 + $0x280] sm:$0x3] %v4745_v2  ;;  %372 = vst [vmem:[#allocation2 + $0x288] sm:$0xff] %v4745_v2 }
  0x2a   :  { %373 = vst [vmem:[#allocation2 + $0x290] sm:$0xff] %v4745_v2  ;;  %374 = vst [vmem:[#allocation2 + $0x298] sm:$0x3] %v4745_v2  ;;  %1927 = vmatpush1.bf16.msra.mxu1 %v4689_v37  ;;  %v5130_v37 = vld [vmem:[%s6648_s2 + $0xf8] sm:$0xff]  }
  0x2b   :  { %375 = vst [vmem:[#allocation2 + $0x2a0] sm:$0xff] %v4745_v2  ;;  %376 = vst [vmem:[#allocation2 + $0x2a8] sm:$0xff] %v4745_v2  ;;  %2216 = vmatpush1.bf16.msra.mxu0 %v5028_v39  ;;  %1928 = vmatprep.subr.bf16.mxu1 %v4744_v0 }
  0x2c   :  { %377 = vst [vmem:[#allocation2 + $0x2b0] sm:$0x3] %v4745_v2  ;;  %378 = vst [vmem:[#allocation2 + $0x2b8] sm:$0xff] %v4745_v2  ;;  %2217 = vmatprep.subr.bf16.mxu0 %v4744_v0 }
  0x2d   :  { %379 = vst [vmem:[#allocation2 + $0x2c0] sm:$0xff] %v4745_v2  ;;  %380 = vst [vmem:[#allocation2 + $0x2c8] sm:$0x3] %v4745_v2 }
  0x2e   :  { %381 = vst [vmem:[#allocation2 + $0x2d0] sm:$0xff] %v4745_v2  ;;  %382 = vst [vmem:[#allocation2 + $0x2d8] sm:$0xff] %v4745_v2  ;;  %1929 = vmatpush1.bf16.msra.mxu1 %v4691_v49  ;;  %v4701_v49 = vld [vmem:[%s6648_s2 + $0x100] sm:$0xff]  }
  0x2f   :  { %383 = vst [vmem:[#allocation2 + $0x2e0] sm:$0x3] %v4745_v2  ;;  %384 = vst [vmem:[#allocation2 + $0x2e8] sm:$0xff] %v4745_v2  ;;  %2218 = vmatpush1.bf16.msra.mxu0 %v5050_v52  ;;  %1930 = vmatprep.subr.bf16.mxu1 %v4744_v0 }
  0x30   :  { %385 = vst [vmem:[#allocation2 + $0x2f0] sm:$0xff] %v4745_v2  ;;  %386 = vst [vmem:[#allocation2 + $0x2f8] sm:$0x3] %v4745_v2  ;;  %2219 = vmatprep.subr.bf16.mxu0 %v4744_v0 }
  0x31   :  { %387 = vst [vmem:[#allocation2 + $0x300] sm:$0xff] %v4745_v2  ;;  %388 = vst [vmem:[#allocation2 + $0x308] sm:$0xff] %v4745_v2 }
  0x32   :  { %389 = vst [vmem:[#allocation2 + $0x310] sm:$0x3] %v4745_v2  ;;  %390 = vst [vmem:[#allocation2 + $0x318] sm:$0xff] %v4745_v2  ;;  %1931 = vmatpush1.bf16.msra.mxu1 %v4693_v61 }
  0x33   :  { %391 = vst [vmem:[#allocation2 + $0x320] sm:$0xff] %v4745_v2  ;;  %392 = vst [vmem:[#allocation2 + $0x328] sm:$0x3] %v4745_v2  ;;  %2220 = vmatpush1.bf16.msra.mxu0 %v5079_v8  ;;  %1932 = vmatprep.subr.bf16.mxu1 %v4744_v0 }
  0x34   :  { %393 = vst [vmem:[#allocation2 + $0x330] sm:$0xff] %v4745_v2  ;;  %394 = vst [vmem:[#allocation2 + $0x338] sm:$0xff] %v4745_v2  ;;  %2221 = vmatprep.subr.bf16.mxu0 %v4744_v0 }
  0x35   :  { %395 = vst [vmem:[#allocation2 + $0x340] sm:$0x3] %v4745_v2  ;;  %396 = vst [vmem:[#allocation2 + $0x348] sm:$0xff] %v4745_v2 }
  0x36   :  { %397 = vst [vmem:[#allocation2 + $0x350] sm:$0xff] %v4745_v2  ;;  %398 = vst [vmem:[#allocation2 + $0x358] sm:$0x3] %v4745_v2  ;;  %v234_v2 = vadd.f32 %v5000_v28, %v163_v57  ;;  %1933 = vmatpush1.bf16.msra.mxu1 %v4695_v22 }
  0x37   :  { %401 = vst.msk [vmem:[#allocation2 + $0x19] sm:$0xff] %vm400_vm0, %v227_v33  ;;  %402 = vst.msk [vmem:[#allocation2 + $0x21] sm:$0xff] %vm400_vm0, %v228_v34  ;;  %2222 = vmatpush1.bf16.msra.mxu0 %v5101_v23  ;;  %1934 = vmatprep.subr.bf16.mxu1 %v4744_v0  ;;  %v3904_v33 = vunpack.c.h.bf16 %v4138_v30  ;;  %v168_v34 = vmul.f32 %v3903_v32, %v4995_v27 }
  0x38   :  { %403 = vst.msk [vmem:[#allocation2 + $0x31] sm:$0xff] %vm400_vm0, %v229_v44  ;;  %404 = vst.msk [vmem:[#allocation2 + $0x39] sm:$0xff] %vm400_vm0, %v230_v45  ;;  %2223 = vmatprep.subr.bf16.mxu0 %v4744_v0 }
  0x39   :  { %405 = vst.msk [vmem:[#allocation2 + $0x49] sm:$0xff] %vm400_vm0, %v231_v53  ;;  %406 = vst.msk [vmem:[#allocation2 + $0x51] sm:$0xff] %vm400_vm0, %v232_v54  ;;  %v169_v35 = vmul.f32 %v3904_v33, %v4995_v27  ;;  %v239_v41 = vadd.f32 %v5000_v28, %v168_v34  ;;  %v3908_v53 = vunpack.c.h.bf16 %v4139_v48 }
  0x3a   :  { %407 = vst.msk [vmem:[#allocation2 + $0x61] sm:$0xff] %vm400_vm0, %v233_v1  ;;  %408 = vst.msk [vmem:[#allocation2 + $0x69] sm:$0xff] %vm400_vm0, %v234_v2  ;;  %1935 = vmatpush1.bf16.msra.mxu1 %v4697_v26  ;;  %v4141_v2 = vld [vmem:[%s6649_s0 + $0x48] sm:$0xff]  }
  0x3b   :  { %409 = vst.msk [vmem:[#allocation2 + $0x79] sm:$0xff] %vm400_vm0, %v235_v16  ;;  %410 = vst.msk [vmem:[#allocation2 + $0x81] sm:$0xff] %vm400_vm0, %v236_v18  ;;  %2224 = vmatpush1.bf16.msra.mxu0 %v5119_v31  ;;  %1936 = vmatprep.subr.bf16.mxu1 %v4744_v0  ;;  %v240_v44 = vadd.f32 %v5000_v28, %v169_v35  ;;  %v171_v61 = vmul.f32 %v3908_v53, %v4995_v27  ;;  %v3915_v14 = vunpack.c.l.bf16 %v4141_v2  ;;  %v4143_v18 = vld [vmem:[%s6649_s0 + $0x58] sm:$0xff]  }
  0x3c   :  { %411 = vst.msk [vmem:[#allocation2 + $0x91] sm:$0xff] %vm400_vm0, %v237_v24  ;;  %412 = vst.msk [vmem:[#allocation2 + $0x99] sm:$0xff] %vm400_vm0, %v238_v25  ;;  %2225 = vmatprep.subr.bf16.mxu0 %v4744_v0  ;;  %v3916_v16 = vunpack.c.h.bf16 %v4141_v2  ;;  %v3923_v33 = vunpack.c.l.bf16 %v4143_v18  ;;  %v3924_v34 = vunpack.c.h.bf16 %v4143_v18  ;;  %v4704_v53 = vld [vmem:[%s6648_s2 + $0x118] sm:$0xff]   ;;  %v3935_v2 = vunpack.c.l.bf16 %v4146_v51 }
  0x3d   :  { %413 = vst.msk [vmem:[#allocation2 + $0xa9] sm:$0xff] %vm400_vm0, %v239_v41  ;;  %414 = vst.msk [vmem:[#allocation2 + $0xb1] sm:$0xff] %vm400_vm0, %v240_v44  ;;  %v242_v12 = vadd.f32 %v5000_v28, %v171_v61  ;;  %v174_v30 = vmul.f32 %v3915_v14, %v4995_v27 }
  0x3e   :  { %v753_v62 = vld [vmem:[#allocation2 + $0x18] sm:$0xff]  ;;  %v754_v63 = vld [vmem:[#allocation2 + $0x20] sm:$0xff]  ;;  %1937 = vmatpush1.bf16.msra.mxu1 %v4699_v36  ;;  %415 = vst.msk [vmem:[#allocation2 + $0xc1] sm:$0xff] %vm400_vm0, %v241_v6  ;;  %v175_v32 = vmul.f32 %v3916_v16, %v4995_v27  ;;  %v4703_v36 = vld [vmem:[%s6648_s2 + $0x110] sm:$0xff]   ;;  %v178_v48 = vmul.f32 %v3923_v33, %v4995_v27 }
  0x3f   :  { %v5081_v10 = vpack.c.bf16 %v754_v63, %v753_v62  ;;  %v563_v42 = vld [vmem:[#allocation2 + $0x19] sm:$0xff]  ;;  %v564_v43 = vld [vmem:[#allocation2 + $0x21] sm:$0xff]  ;;  %v755_v45 = vld [vmem:[#allocation2 + $0x30] sm:$0xff]  ;;  %2226 = vmatpush1.bf16.msra.mxu0 %v5130_v37  ;;  %4315 = vmatprep.subr.bf16.mxu1 %v4744_v0  ;;  %416 = vst.msk [vmem:[#allocation2 + $0xc9] sm:$0xff] %vm400_vm0, %v242_v12 }
  0x40   :  { %v756_v46 = vld [vmem:[#allocation2 + $0x38] sm:$0xff]  ;;  %v5147_v50 = vpack.c.bf16 %v564_v43, %v563_v42  ;;  %2484 = vmatprep.subr.bf16.mxu0 %v4744_v0  ;;  %v660_v58 = vld [vmem:[#allocation2 + $0x22] sm:$0xff]  ;;  %v758_v21 = vld [vmem:[#allocation2 + $0x50] sm:$0xff]  ;;  %v245_v43 = vadd.f32 %v5000_v28, %v174_v30  ;;  %v246_v44 = vadd.f32 %v5000_v28, %v175_v32 }
  0x41   :  { %2227 = vmatprep.mubr.bf16.mxu0 %v5081_v10  ;;  %v5150_v54 = vpack.c.bf16 %v756_v46, %v755_v45  ;;  %1939 = vmatmul.mubr.bf16.vlgmr.msra.gmra.mrb[0].mxu1 %v4746_v55  ;;  %v659_v57 = vld [vmem:[#allocation2 + $0x1a] sm:$0xff]  ;;  %v565_v59 = vld [vmem:[#allocation2 + $0x31] sm:$0xff]  ;;  %v757_v20 = vld [vmem:[#allocation2 + $0x48] sm:$0xff] }
  0x42   :  { %v4140_v62 = vld [vmem:[%s6649_s0 + $0x40] sm:$0xff]   ;;  %2228 = vmatmul.mubr.bf16.vlgmr.msra.gmra.mrb[0].mxu0 %v721_v47  ;;  %4331 = vmatpush1.bf16.msra.mxu1 %v4895_v3  ;;  %v4142_v3 = vld [vmem:[%s6649_s0 + $0x50] sm:$0xff]   ;;  %v5183_v35 = vpack.c.bf16 %v660_v58, %v659_v57  ;;  %v5193_v42 = vpack.c.bf16 %v758_v21, %v757_v20  ;;  %419 = vst.msk [vmem:[#allocation2 + $0xf1] sm:$0xff] %vm400_vm0, %v245_v43  ;;  %420 = vst.msk [vmem:[#allocation2 + $0xf9] sm:$0xff] %vm400_vm0, %v246_v44 }
  0x43   :  { %v3911_v63 = vunpack.c.l.bf16 %v4140_v62  ;;  %v3912_v1 = vunpack.c.h.bf16 %v4140_v62  ;;  %2485 = vmatpush1.bf16.msra.mxu0 %v4701_v49  ;;  %1946 = vmatprep.mubr.bf16.mxu1 %v5147_v50  ;;  %v566_v4 = vld [vmem:[#allocation2 + $0x39] sm:$0xff]  ;;  %v3919_v25 = vunpack.c.l.bf16 %v4142_v3  ;;  %v3920_v26 = vunpack.c.h.bf16 %v4142_v3  ;;  %v567_v62 = vld [vmem:[#allocation2 + $0x49] sm:$0xff]  ;;  %v568_v6 = vld [vmem:[#allocation2 + $0x51] sm:$0xff] }
  0x44   :  { %2486 = vmatprep.subr.bf16.mxu0 %v4744_v0  ;;  %2235 = vmatprep.mubr.bf16.mxu0 %v5150_v54  ;;  %v5188_v38 = vpack.c.bf16 %v566_v4, %v565_v59  ;;  %v4144_v45 = vld [vmem:[%s6649_s0 + $0x60] sm:$0xff]   ;;  %v179_v49 = vmul.f32 %v3924_v34, %v4995_v27  ;;  %v3936_v3 = vunpack.c.h.bf16 %v4146_v51  ;;  %v760_v20 = vld [vmem:[#allocation2 + $0x68] sm:$0xff]  ;;  %v5250_v34 = vpack.c.bf16 %v568_v6, %v567_v62  ;;  %v4150_v43 = vld [vmem:[%s6649_s0 + $0x90] sm:$0xff]  }
  0x45   :  { %v172_v22 = vmul.f32 %v3911_v63, %v4995_v27  ;;  %v173_v24 = vmul.f32 %v3912_v1, %v4995_v27  ;;  %4316 = vmatprep.subr.bf16.mxu1 %v4744_v0  ;;  %v176_v46 = vmul.f32 %v3919_v25, %v4995_v27  ;;  %v177_v47 = vmul.f32 %v3920_v26, %v4995_v27  ;;  %v662_v57 = vld [vmem:[#allocation2 + $0x3a] sm:$0xff]  ;;  %v4149_v33 = vld [vmem:[%s6649_s0 + $0x88] sm:$0xff]  }
  0x46   :  { %4332 = vmatpush1.bf16.msra.mxu1 %v4906_v5  ;;  %v4145_v5 = vld [vmem:[%s6649_s0 + $0x68] sm:$0xff]   ;;  %v3927_v58 = vunpack.c.l.bf16 %v4144_v45  ;;  %v3928_v59 = vunpack.c.h.bf16 %v4144_v45  ;;  %v249_v1 = vadd.f32 %v5000_v28, %v178_v48  ;;  %v4148_v4 = vld [vmem:[%s6649_s0 + $0x80] sm:$0xff]   ;;  %v250_v12 = vadd.f32 %v5000_v28, %v179_v49 }
  0x47   :  { %v243_v40 = vadd.f32 %v5000_v28, %v172_v22  ;;  %v244_v41 = vadd.f32 %v5000_v28, %v173_v24  ;;  %2487 = vmatpush1.bf16.msra.mxu0 %v4702_v56  ;;  %4317 = vmatprep.subr.bf16.mxu1 %v4744_v0  ;;  %v661_v56 = vld [vmem:[#allocation2 + $0x32] sm:$0xff]  ;;  %v3931_v60 = vunpack.c.l.bf16 %v4145_v5  ;;  %v3932_v61 = vunpack.c.h.bf16 %v4145_v5  ;;  %v759_v18 = vld [vmem:[#allocation2 + $0x60] sm:$0xff] }
  0x48   :  { %2488 = vmatprep.subr.bf16.mxu0 %v4744_v0  ;;  %v248_v63 = vadd.f32 %v5000_v28, %v177_v47  ;;  %v180_v14 = vmul.f32 %v3927_v58, %v4995_v27  ;;  %v181_v16 = vmul.f32 %v3928_v59, %v4995_v27  ;;  %423 = vst.msk [vmem:[#allocation2 + $0x121] sm:$0xff] %vm400_vm0, %v249_v1  ;;  %v3943_v25 = vunpack.c.l.bf16 %v4148_v4  ;;  %v4705_v44 = vld [vmem:[%s6648_s2 + $0x120] sm:$0xff]   ;;  %v664_v59 = vld [vmem:[#allocation2 + $0x52] sm:$0xff] }
  0x49   :  { %417 = vst.msk [vmem:[#allocation2 + $0xd9] sm:$0xff] %vm400_vm0, %v243_v40  ;;  %418 = vst.msk [vmem:[#allocation2 + $0xe1] sm:$0xff] %vm400_vm0, %v244_v41  ;;  %1947 = vmatmul.mubr.bf16.gmra.mrb[4].mxu1 %v5081_v10  ;;  %v247_v10 = vadd.f32 %v5000_v28, %v176_v46  ;;  %v182_v21 = vmul.f32 %v3931_v60, %v4995_v27  ;;  %v183_v22 = vmul.f32 %v3932_v61, %v4995_v27  ;;  %v569_v60 = vld [vmem:[#allocation2 + $0x61] sm:$0xff]  ;;  %v570_v61 = vld [vmem:[#allocation2 + $0x69] sm:$0xff] }
  0x4a   :  { %2236 = vmatmul.mubr.bf16.gmra.mrb[4].mxu0 %v5183_v35  ;;  %1954 = vmatprep.mubr.bf16.mxu1 %v5188_v38  ;;  %422 = vst.msk [vmem:[#allocation2 + $0x111] sm:$0xff] %vm400_vm0, %v248_v63  ;;  %v184_v24 = vmul.f32 %v3935_v2, %v4995_v27  ;;  %v5240_v26 = vpack.c.bf16 %v662_v57, %v661_v56  ;;  %424 = vst.msk [vmem:[#allocation2 + $0x129] sm:$0xff] %vm400_vm0, %v250_v12  ;;  %v3944_v46 = vunpack.c.h.bf16 %v4148_v4  ;;  %v663_v56 = vld [vmem:[#allocation2 + $0x4a] sm:$0xff]  ;;  %v762_v63 = vld [vmem:[#allocation2 + $0x80] sm:$0xff] }
  0x4b   :  { %2489 = vmatpush1.bf16.msra.mxu0 %v4703_v36  ;;  %2243 = vmatprep.mubr.bf16.mxu0 %v5193_v42  ;;  %421 = vst.msk [vmem:[#allocation2 + $0x109] sm:$0xff] %vm400_vm0, %v247_v10  ;;  %v252_v30 = vadd.f32 %v5000_v28, %v181_v16  ;;  %v185_v32 = vmul.f32 %v3936_v3, %v4995_v27  ;;  %v3947_v48 = vunpack.c.l.bf16 %v4149_v33  ;;  %v3948_v49 = vunpack.c.h.bf16 %v4149_v33  ;;  %v761_v10 = vld [vmem:[#allocation2 + $0x78] sm:$0xff]  ;;  %v4707_v16 = vld [vmem:[%s6648_s2 + $0x130] sm:$0xff]  }
  0x4c   :  { %2490 = vmatprep.subr.bf16.mxu0 %v4744_v0  ;;  %4333 = vmatpush1.bf16.msra.mxu1 %v4917_v7  ;;  %v251_v7 = vadd.f32 %v5000_v28, %v180_v14  ;;  %v253_v36 = vadd.f32 %v5000_v28, %v182_v21  ;;  %v254_v40 = vadd.f32 %v5000_v28, %v183_v22  ;;  %v3952_v58 = vunpack.c.h.bf16 %v4150_v43  ;;  %v4708_v21 = vld [vmem:[%s6648_s2 + $0x138] sm:$0xff]   ;;  %v665_v22 = vld [vmem:[#allocation2 + $0x62] sm:$0xff] }
  0x4d   :  { %4318 = vmatprep.subr.bf16.mxu1 %v4744_v0  ;;  %v255_v41 = vadd.f32 %v5000_v28, %v184_v24  ;;  %v5261_v45 = vpack.c.bf16 %v760_v20, %v759_v18  ;;  %426 = vst.msk [vmem:[#allocation2 + $0x141] sm:$0xff] %vm400_vm0, %v252_v30  ;;  %v256_v5 = vadd.f32 %v5000_v28, %v185_v32  ;;  %v572_v24 = vld [vmem:[#allocation2 + $0x81] sm:$0xff]  ;;  %v4151_v30 = vld [vmem:[%s6649_s0 + $0x98] sm:$0xff]  }
  0x4e   :  { %425 = vst.msk [vmem:[#allocation2 + $0x139] sm:$0xff] %vm400_vm0, %v251_v7  ;;  %427 = vst.msk [vmem:[#allocation2 + $0x151] sm:$0xff] %vm400_vm0, %v253_v36  ;;  %v188_v47 = vmul.f32 %v3943_v25, %v4995_v27  ;;  %v189_v51 = vmul.f32 %v3944_v46, %v4995_v27  ;;  %v191_v1 = vmul.f32 %v3948_v49, %v4995_v27  ;;  %v763_v25 = vld [vmem:[#allocation2 + $0x90] sm:$0xff]  ;;  %v764_v7 = vld [vmem:[#allocation2 + $0x98] sm:$0xff]  ;;  %v3955_v32 = vunpack.c.l.bf16 %v4151_v30 }
  0x4f   :  { %2491 = vmatpush1.bf16.msra.mxu0 %v4704_v53  ;;  %428 = vst.msk [vmem:[#allocation2 + $0x159] sm:$0xff] %vm400_vm0, %v254_v40  ;;  %429 = vst.msk [vmem:[#allocation2 + $0x169] sm:$0xff] %vm400_vm0, %v255_v41  ;;  %v3951_v53 = vunpack.c.l.bf16 %v4150_v43  ;;  %v193_v6 = vmul.f32 %v3952_v58, %v4995_v27  ;;  %v5294_v12 = vpack.c.bf16 %v664_v59, %v663_v56  ;;  %v3956_v33 = vunpack.c.h.bf16 %v4151_v30  ;;  %v4152_v41 = vld [vmem:[%s6649_s0 + $0xa0] sm:$0xff]  }
  0x50   :  { %2492 = vmatprep.subr.bf16.mxu0 %v4744_v0  ;;  %4334 = vmatpush1.bf16.msra.mxu1 %v4928_v9  ;;  %430 = vst.msk [vmem:[#allocation2 + $0x171] sm:$0xff] %vm400_vm0, %v256_v5  ;;  %v4706_v9 = vld [vmem:[%s6648_s2 + $0x128] sm:$0xff]   ;;  %v259_v57 = vadd.f32 %v5000_v28, %v188_v47  ;;  %v260_v62 = vadd.f32 %v5000_v28, %v189_v51  ;;  %v3959_v46 = vunpack.c.l.bf16 %v4152_v41  ;;  %v3960_v47 = vunpack.c.h.bf16 %v4152_v41  ;;  %v667_v49 = vld [vmem:[#allocation2 + $0x7a] sm:$0xff] }
  0x51   :  { %1955 = vmatmul.mubr.bf16.gmra.mrb[8].mxu1 %v5150_v54  ;;  %4319 = vmatprep.subr.bf16.mxu1 %v4744_v0  ;;  %v190_v54 = vmul.f32 %v3947_v48, %v4995_v27  ;;  %v192_v4 = vmul.f32 %v3951_v53, %v4995_v27  ;;  %v5296_v14 = vpack.c.bf16 %v570_v61, %v569_v60  ;;  %v4710_v48 = vld [vmem:[%s6648_s2 + $0x148] sm:$0xff]   ;;  %v573_v53 = vld [vmem:[#allocation2 + $0x91] sm:$0xff]  ;;  %v767_v30 = vld [vmem:[#allocation2 + $0xc0] sm:$0xff] }
  0x52   :  { %2244 = vmatmul.mubr.bf16.gmra.mrb[8].mxu0 %v5240_v26  ;;  %1962 = vmatprep.mubr.bf16.mxu1 %v5250_v34  ;;  %433 = vst.msk [vmem:[#allocation2 + $0x1c9] sm:$0xff] %vm400_vm0, %v259_v57  ;;  %434 = vst.msk [vmem:[#allocation2 + $0x1d1] sm:$0xff] %vm400_vm0, %v260_v62  ;;  %v5303_v3 = vpack.c.bf16 %v762_v63, %v761_v10  ;;  %v264_v20 = vadd.f32 %v5000_v28, %v193_v6  ;;  %v668_v51 = vld [vmem:[#allocation2 + $0x82] sm:$0xff] }
  0x53   :  { %2493 = vmatpush1.bf16.msra.mxu0 %v4705_v44  ;;  %2251 = vmatprep.mubr.bf16.mxu0 %v5261_v45  ;;  %v261_v2 = vadd.f32 %v5000_v28, %v190_v54  ;;  %v263_v18 = vadd.f32 %v5000_v28, %v192_v4  ;;  %v5336_v43 = vpack.c.bf16 %v764_v7, %v763_v25  ;;  %v765_v57 = vld [vmem:[#allocation2 + $0xa8] sm:$0xff]  ;;  %v766_v54 = vld [vmem:[#allocation2 + $0xb0] sm:$0xff]  ;;  %v670_v25 = vld [vmem:[#allocation2 + $0x9a] sm:$0xff] }
  0x54   :  { %2494 = vmatprep.subr.bf16.mxu0 %v4744_v0  ;;  %4335 = vmatpush1.bf16.msra.mxu1 %v4939_v11  ;;  %v262_v11 = vadd.f32 %v5000_v28, %v191_v1  ;;  %438 = vst.msk [vmem:[#allocation2 + $0x201] sm:$0xff] %vm400_vm0, %v264_v20  ;;  %v194_v44 = vmul.f32 %v3955_v32, %v4995_v27  ;;  %v4711_v1 = vld [vmem:[%s6648_s2 + $0x150] sm:$0xff]   ;;  %v4147_v20 = vld [vmem:[%s6649_s0 + $0x78] sm:$0xff]   ;;  %v768_v32 = vld [vmem:[#allocation2 + $0xc8] sm:$0xff] }
  0x55   :  { %4320 = vmatprep.subr.bf16.mxu1 %v4744_v0  ;;  %435 = vst.msk [vmem:[#allocation2 + $0x1e1] sm:$0xff] %vm400_vm0, %v261_v2  ;;  %437 = vst.msk [vmem:[#allocation2 + $0x1f9] sm:$0xff] %vm400_vm0, %v263_v18  ;;  %v195_v5 = vmul.f32 %v3956_v33, %v4995_v27  ;;  %v196_v58 = vmul.f32 %v3959_v46, %v4995_v27  ;;  %v197_v59 = vmul.f32 %v3960_v47, %v4995_v27  ;;  %v4154_v18 = vld [vmem:[%s6649_s0 + $0xb0] sm:$0xff]  }
  0x56   :  { %436 = vst.msk [vmem:[#allocation2 + $0x1e9] sm:$0xff] %vm400_vm0, %v262_v11  ;;  %v5369_v4 = vpack.c.bf16 %v668_v51, %v667_v49  ;;  %v5376_v11 = vpack.c.bf16 %v766_v54, %v765_v57  ;;  %v575_v7 = vld [vmem:[#allocation2 + $0xa9] sm:$0xff]  ;;  %v5414_v51 = vpack.c.bf16 %v768_v32, %v767_v30 }
  0x57   :  { %2495 = vmatpush1.bf16.msra.mxu0 %v4706_v9  ;;  %v265_v9 = vadd.f32 %v5000_v28, %v194_v44  ;;  %v266_v56 = vadd.f32 %v5000_v28, %v195_v5  ;;  %v267_v62 = vadd.f32 %v5000_v28, %v196_v58  ;;  %v268_v10 = vadd.f32 %v5000_v28, %v197_v59  ;;  %v578_v54 = vld [vmem:[#allocation2 + $0xc9] sm:$0xff] }
  0x58   :  { %2496 = vmatprep.subr.bf16.mxu0 %v4744_v0  ;;  %4336 = vmatpush1.bf16.msra.mxu1 %v4950_v13  ;;  %v666_v13 = vld [vmem:[#allocation2 + $0x6a] sm:$0xff] }
  0x59   :  { %1963 = vmatmul.mubr.bf16.gmra.mrb[12].mxu1 %v5193_v42  ;;  %4321 = vmatprep.subr.bf16.mxu1 %v4744_v0  ;;  %v571_v42 = vld [vmem:[#allocation2 + $0x79] sm:$0xff]  ;;  %v5326_v36 = vpack.c.bf16 %v666_v13, %v665_v22  ;;  %439 = vst.msk [vmem:[#allocation2 + $0x211] sm:$0xff] %vm400_vm0, %v265_v9  ;;  %440 = vst.msk [vmem:[#allocation2 + $0x219] sm:$0xff] %vm400_vm0, %v266_v56  ;;  %v3968_v22 = vunpack.c.h.bf16 %v4154_v18  ;;  %v3939_v13 = vunpack.c.l.bf16 %v4147_v20  ;;  %v4714_v56 = vld [vmem:[%s6648_s2 + $0x168] sm:$0xff]  }
  0x5a   :  { %2252 = vmatmul.mubr.bf16.gmra.mrb[12].mxu0 %v5294_v12  ;;  %1970 = vmatprep.mubr.bf16.mxu1 %v5296_v14  ;;  %v5328_v40 = vpack.c.bf16 %v572_v24, %v571_v42  ;;  %441 = vst.msk [vmem:[#allocation2 + $0x229] sm:$0xff] %vm400_vm0, %v267_v62  ;;  %442 = vst.msk [vmem:[#allocation2 + $0x231] sm:$0xff] %vm400_vm0, %v268_v10  ;;  %v3940_v42 = vunpack.c.h.bf16 %v4147_v20  ;;  %v669_v24 = vld [vmem:[#allocation2 + $0x92] sm:$0xff] }
  0x5b   :  { %2497 = vmatpush1.bf16.msra.mxu0 %v4707_v16  ;;  %2259 = vmatprep.mubr.bf16.mxu0 %v5303_v3  ;;  %v201_v41 = vmul.f32 %v3968_v22, %v4995_v27  ;;  %v5406_v47 = vpack.c.bf16 %v670_v25, %v669_v24  ;;  %v4155_v9 = vld [vmem:[%s6649_s0 + $0xb8] sm:$0xff]   ;;  %v484_v24 = vld [vmem:[#allocation2 + $0xe0] sm:$0xff] }
  0x5c   :  { %2498 = vmatprep.subr.bf16.mxu0 %v4744_v0  ;;  %4337 = vmatpush1.bf16.msra.mxu1 %v4961_v15  ;;  %v4709_v15 = vld [vmem:[%s6648_s2 + $0x140] sm:$0xff]   ;;  %v187_v46 = vmul.f32 %v3940_v42, %v4995_v27  ;;  %v3972_v57 = vunpack.c.h.bf16 %v4155_v9  ;;  %v483_v42 = vld [vmem:[#allocation2 + $0xd8] sm:$0xff] }
  0x5d   :  { %4322 = vmatprep.subr.bf16.mxu1 %v4744_v0  ;;  %v272_v5 = vadd.f32 %v5000_v28, %v201_v41  ;;  %v581_v25 = vld [vmem:[#allocation2 + $0xf1] sm:$0xff] }
  0x5e   :  { %v203_v59 = vmul.f32 %v3972_v57, %v4995_v27 }
  0x5f   :  { %2499 = vmatpush1.bf16.msra.mxu0 %v4708_v21  ;;  %v4712_v21 = vld [vmem:[%s6648_s2 + $0x158] sm:$0xff]   ;;  %446 = vst.msk [vmem:[#allocation2 + $0x261] sm:$0xff] %vm400_vm0, %v272_v5 }
  0x60   :  { %2500 = vmatprep.subr.bf16.mxu0 %v4744_v0  ;;  %4338 = vmatpush1.bf16.msra.mxu1 %v4972_v17  ;;  %v4153_v17 = vld [vmem:[%s6649_s0 + $0xa8] sm:$0xff]  }
  0x61   :  { %1971 = vmatmul.mubr.bf16.gmra.mrb[16].mxu1 %v5261_v45  ;;  %4323 = vmatprep.subr.bf16.mxu1 %v4744_v0  ;;  %v574_v45 = vld [vmem:[#allocation2 + $0x99] sm:$0xff]  ;;  %v3963_v60 = vunpack.c.l.bf16 %v4153_v17  ;;  %v3964_v61 = vunpack.c.h.bf16 %v4153_v17  ;;  %v671_v17 = vld [vmem:[#allocation2 + $0xaa] sm:$0xff] }
  0x62   :  { %2260 = vmatmul.mubr.bf16.gmra.mrb[16].mxu0 %v5326_v36  ;;  %1978 = vmatprep.mubr.bf16.mxu1 %v5328_v40  ;;  %v5371_v6 = vpack.c.bf16 %v574_v45, %v573_v53  ;;  %v258_v53 = vadd.f32 %v5000_v28, %v187_v46  ;;  %v3971_v45 = vunpack.c.l.bf16 %v4155_v9  ;;  %v485_v46 = vld [vmem:[#allocation2 + $0xf0] sm:$0xff] }
  0x63   :  { %2501 = vmatpush1.bf16.msra.mxu0 %v4709_v15  ;;  %2267 = vmatprep.mubr.bf16.mxu0 %v5336_v43  ;;  %v198_v63 = vmul.f32 %v3963_v60, %v4995_v27  ;;  %v199_v2 = vmul.f32 %v3964_v61, %v4995_v27  ;;  %v186_v15 = vmul.f32 %v3939_v13, %v4995_v27 }
  0x64   :  { %2502 = vmatprep.subr.bf16.mxu0 %v4744_v0  ;;  %4339 = vmatpush1.bf16.msra.mxu1 %v4983_v19  ;;  %432 = vst.msk [vmem:[#allocation2 + $0x189] sm:$0xff] %vm400_vm0, %v258_v53  ;;  %v202_v58 = vmul.f32 %v3971_v45, %v4995_v27  ;;  %v274_v61 = vadd.f32 %v5000_v28, %v203_v59  ;;  %v4720_v53 = vld [vmem:[%s6648_s2 + $0x198] sm:$0xff]   ;;  %v488_v59 = vld [vmem:[#allocation2 + $0x110] sm:$0xff] }
  0x65   :  { %4324 = vmatprep.subr.bf16.mxu1 %v4744_v0  ;;  %v269_v19 = vadd.f32 %v5000_v28, %v198_v63  ;;  %v270_v16 = vadd.f32 %v5000_v28, %v199_v2  ;;  %v257_v49 = vadd.f32 %v5000_v28, %v186_v15  ;;  %v4715_v63 = vld [vmem:[%s6648_s2 + $0x170] sm:$0xff]   ;;  %v580_v2 = vld [vmem:[#allocation2 + $0xe1] sm:$0xff] }
  0x66   :  { %v273_v60 = vadd.f32 %v5000_v28, %v202_v58  ;;  %448 = vst.msk [vmem:[#allocation2 + $0x279] sm:$0xff] %vm400_vm0, %v274_v61  ;;  %v4158_v15 = vld [vmem:[%s6649_s0 + $0xd0] sm:$0xff]   ;;  %v487_v58 = vld [vmem:[#allocation2 + $0x108] sm:$0xff] }
  0x67   :  { %2503 = vmatpush1.bf16.msra.mxu0 %v4710_v48  ;;  %443 = vst.msk [vmem:[#allocation2 + $0x241] sm:$0xff] %vm400_vm0, %v269_v19  ;;  %444 = vst.msk [vmem:[#allocation2 + $0x249] sm:$0xff] %vm400_vm0, %v270_v16  ;;  %v5467_v19 = vld [vmem:[%s6650_s3] ss:$0 sm:$0xff]  ;;  %v3984_v5 = vunpack.c.h.bf16 %v4158_v15  ;;  %v586_v61 = vld [vmem:[#allocation2 + $0x129] sm:$0xff] }
  0x68   :  { %2504 = vmatprep.subr.bf16.mxu0 %v4744_v0  ;;  %4340 = vmatpush1.bf16.msra.mxu1 %v5007_v29  ;;  %v3967_v29 = vunpack.c.l.bf16 %v4154_v18  ;;  %431 = vst.msk [vmem:[#allocation2 + $0x181] sm:$0xff] %vm400_vm0, %v257_v49  ;;  %447 = vst.msk [vmem:[#allocation2 + $0x271] sm:$0xff] %vm400_vm0, %v273_v60  ;;  %v486_v49 = vld [vmem:[#allocation2 + $0xf8] sm:$0xff]  ;;  %v585_v60 = vld [vmem:[#allocation2 + $0x121] sm:$0xff] }
  0x69   :  { %1979 = vmatmul.mubr.bf16.gmra.mrb[20].mxu1 %v5303_v3  ;;  %4325 = vmatprep.subr.bf16.mxu1 %v4744_v0  ;;  %v576_v3 = vld [vmem:[#allocation2 + $0xb1] sm:$0xff] }
  0x6a   :  { %2268 = vmatmul.mubr.bf16.gmra.mrb[20].mxu0 %v5369_v4  ;;  %1986 = vmatprep.mubr.bf16.mxu1 %v5371_v6  ;;  %v200_v33 = vmul.f32 %v3967_v29, %v4995_v27  ;;  %v5408_v48 = vpack.c.bf16 %v576_v3, %v575_v7  ;;  %v4156_v27 = vld [vmem:[%s6649_s0 + $0xc0] sm:$0xff]   ;;  %v4718_v3 = vld [vmem:[%s6648_s2 + $0x188] sm:$0xff]  }
  0x6b   :  { %2505 = vmatpush1.bf16.msra.mxu0 %v4711_v1  ;;  %2275 = vmatprep.mubr.bf16.mxu0 %v5376_v11  ;;  %v4716_v1 = vld [vmem:[%s6648_s2 + $0x178] sm:$0xff]   ;;  %v4717_v29 = vld [vmem:[%s6648_s2 + $0x180] sm:$0xff]  }
  0x6c   :  { %2506 = vmatprep.subr.bf16.mxu0 %v4744_v0  ;;  %4341 = vmatpush1.bf16.msra.mxu1 %v5028_v39  ;;  %v271_v44 = vadd.f32 %v5000_v28, %v200_v33  ;;  %v4713_v39 = vld [vmem:[%s6648_s2 + $0x160] sm:$0xff]   ;;  %v3975_v28 = vunpack.c.l.bf16 %v4156_v27 }
  0x6d   :  { %4326 = vmatprep.subr.bf16.mxu1 %v4744_v0  ;;  %v582_v7 = vld [vmem:[#allocation2 + $0xf9] sm:$0xff] }
  0x6e   :  { %445 = vst.msk [vmem:[#allocation2 + $0x259] sm:$0xff] %vm400_vm0, %v271_v44  ;;  %v5504_v41 = vpack.c.bf16 %v582_v7, %v581_v25  ;;  %v3983_v44 = vunpack.c.l.bf16 %v4158_v15  ;;  %v4726_v15 = vld [vmem:[%s6648_s2 + $0x1c8] sm:$0xff]  }
  0x6f   :  { %2507 = vmatpush1.bf16.msra.mxu0 %v4712_v21 }
  0x70   :  { %2508 = vmatprep.subr.bf16.mxu0 %v4744_v0  ;;  %4342 = vmatpush1.bf16.msra.mxu1 %v5050_v52  ;;  %v672_v52 = vld [vmem:[#allocation2 + $0xb2] sm:$0xff]  ;;  %v208_v9 = vmul.f32 %v5467_v19, %v3983_v44 }
  0x71   :  { %1987 = vmatmul.mubr.bf16.gmra.mrb[24].mxu1 %v5336_v43  ;;  %4327 = vmatprep.subr.bf16.mxu1 %v4744_v0  ;;  %v577_v43 = vld [vmem:[#allocation2 + $0xc1] sm:$0xff]  ;;  %v5441_v62 = vpack.c.bf16 %v672_v52, %v671_v17  ;;  %v4159_v52 = vld [vmem:[%s6649_s0 + $0xd8] sm:$0xff]  }
  0x72   :  { %2276 = vmatmul.mubr.bf16.gmra.mrb[24].mxu0 %v5406_v47  ;;  %1994 = vmatprep.mubr.bf16.mxu1 %v5408_v48  ;;  %v5443_v10 = vpack.c.bf16 %v578_v54, %v577_v43  ;;  %v3987_v43 = vunpack.c.l.bf16 %v4159_v52  ;;  %v3988_v54 = vunpack.c.h.bf16 %v4159_v52 }
  0x73   :  { %2509 = vmatpush1.bf16.msra.mxu0 %v4713_v39  ;;  %2283 = vmatprep.mubr.bf16.mxu0 %v5414_v51  ;;  %v583_v39 = vld [vmem:[#allocation2 + $0x109] sm:$0xff] }
  0x74   :  { %2510 = vmatprep.subr.bf16.mxu0 %v4744_v0  ;;  %4343 = vmatpush1.bf16.msra.mxu1 %v5079_v8  ;;  %v3976_v8 = vunpack.c.h.bf16 %v4156_v27  ;;  %v210_v27 = vmul.f32 %v5467_v19, %v3987_v43  ;;  %v959_v43 = vld [vmem:[#allocation2 + $0xc2] sm:$0xff] }
  0x75   :  { %4328 = vmatprep.subr.bf16.mxu1 %v4744_v0 }
  0x76   :  { %v205_v16 = vmul.f32 %v5467_v19, %v3976_v8 }
  0x77   :  { %2511 = vmatpush1.bf16.msra.mxu0 %v4714_v56  ;;  %v209_v56 = vmul.f32 %v5467_v19, %v3984_v5 }
  0x78   :  { %2512 = vmatprep.subr.bf16.mxu0 %v4744_v0  ;;  %4344 = vmatpush1.bf16.msra.mxu1 %v5101_v23  ;;  %v579_v23 = vld [vmem:[#allocation2 + $0xd9] sm:$0xff] }
  0x79   :  { %1995 = vmatmul.mubr.bf16.gmra.mrb[28].mxu1 %v5376_v11  ;;  %4329 = vmatprep.subr.bf16.mxu1 %v4744_v0  ;;  %v204_v11 = vmul.f32 %v5467_v19, %v3975_v28  ;;  %v5473_v18 = vpack.c.bf16 %v580_v2, %v579_v23  ;;  %v211_v28 = vmul.f32 %v5467_v19, %v3988_v54  ;;  %v4160_v2 = vld [vmem:[%s6649_s0 + $0xe0] sm:$0xff]   ;;  %v960_v54 = vld [vmem:[#allocation2 + $0xca] sm:$0xff] }
  0x7a   :  { %2284 = vmatmul.mubr.bf16.gmra.mrb[28].mxu0 %v5441_v62  ;;  %2002 = vmatprep.mubr.bf16.mxu1 %v5443_v10  ;;  %v5548_v23 = vpack.c.bf16 %v586_v61, %v585_v60  ;;  %v5613_v61 = vpack.c.bf16 %v960_v54, %v959_v43  ;;  %v972_v43 = vld [vmem:[#allocation2 + $0x15a] sm:$0xff] }
  0x7b   :  { %2513 = vmatpush1.bf16.msra.mxu0 %v4715_v63  ;;  %2516 = vmatprep.mubr.bf16.mxu0 %v5183_v35  ;;  %v5478_v35 = vld [vmem:[%s6651_s4] ss:$0 sm:$0xff]  ;;  %v4722_v63 = vld [vmem:[%s6648_s2 + $0x1a8] sm:$0xff]  }
  0x7c   :  { %2514 = vmatprep.subr.bf16.mxu0 %v4744_v0  ;;  %4345 = vmatpush1.bf16.msra.mxu1 %v5119_v31  ;;  %v275_v20 = vadd.f32 %v5478_v35, %v204_v11  ;;  %v276_v21 = vadd.f32 %v5478_v35, %v205_v16  ;;  %v4157_v31 = vld [vmem:[%s6649_s0 + $0xc8] sm:$0xff]   ;;  %v279_v17 = vadd.f32 %v5478_v35, %v208_v9  ;;  %v3991_v11 = vunpack.c.l.bf16 %v4160_v2 }
  0x7d   :  { %4330 = vmatprep.subr.bf16.mxu1 %v4744_v0  ;;  %v3979_v22 = vunpack.c.l.bf16 %v4157_v31  ;;  %v3980_v13 = vunpack.c.h.bf16 %v4157_v31  ;;  %v280_v45 = vadd.f32 %v5478_v35, %v209_v56  ;;  %v281_v8 = vadd.f32 %v5478_v35, %v210_v27  ;;  %v588_v31 = vld [vmem:[#allocation2 + $0x141] sm:$0xff]  ;;  %v493_v56 = vld [vmem:[#allocation2 + $0x150] sm:$0xff]  ;;  %v4728_v27 = vld [vmem:[%s6648_s2 + $0x1d8] sm:$0xff]  }
  0x7e   :  { %449 = vst.msk [vmem:[#allocation2 + $0x289] sm:$0xff] %vm400_vm0, %v275_v20  ;;  %450 = vst.msk [vmem:[#allocation2 + $0x291] sm:$0xff] %vm400_vm0, %v276_v21  ;;  %v3992_v16 = vunpack.c.h.bf16 %v4160_v2  ;;  %v489_v20 = vld [vmem:[#allocation2 + $0x120] sm:$0xff]  ;;  %v490_v21 = vld [vmem:[#allocation2 + $0x128] sm:$0xff] }
  0x7f   :  { %2515 = vmatpush1.bf16.msra.mxu0 %v4716_v1  ;;  %v207_v30 = vmul.f32 %v5467_v19, %v3980_v13  ;;  %453 = vst.msk [vmem:[#allocation2 + $0x2b9] sm:$0xff] %vm400_vm0, %v279_v17  ;;  %454 = vst.msk [vmem:[#allocation2 + $0x2c1] sm:$0xff] %vm400_vm0, %v280_v45  ;;  %v282_v1 = vadd.f32 %v5478_v35, %v211_v28  ;;  %v212_v13 = vmul.f32 %v5467_v19, %v3991_v11  ;;  %v591_v17 = vld [vmem:[#allocation2 + $0x169] sm:$0xff]  ;;  %v592_v45 = vld [vmem:[#allocation2 + $0x171] sm:$0xff] }
  0x80   :  { %2773 = vmatprep.subr.bf16.mxu0 %v4744_v0  ;;  %4346 = vmatpush1.bf16.msra.mxu1 %v5130_v37  ;;  %v206_v37 = vmul.f32 %v5467_v19, %v3979_v22  ;;  %455 = vst.msk [vmem:[#allocation2 + $0x2d1] sm:$0xff] %vm400_vm0, %v281_v8  ;;  %v4724_v22 = vld [vmem:[%s6648_s2 + $0x1b8] sm:$0xff]   ;;  %v5611_v60 = vpack.c.bf16 %v592_v45, %v591_v17  ;;  %v595_v11 = vld [vmem:[#allocation2 + $0x1c9] sm:$0xff] }
  0x81   :  { %2003 = vmatmul.mubr.bf16.gmra.mrb[32].mxu1 %v5414_v51  ;;  %v278_v33 = vadd.f32 %v5478_v35, %v207_v30  ;;  %v584_v51 = vld [vmem:[#allocation2 + $0x111] sm:$0xff]  ;;  %456 = vst.msk [vmem:[#allocation2 + $0x2d9] sm:$0xff] %vm400_vm0, %v282_v1  ;;  %v961_v8 = vld [vmem:[#allocation2 + $0xda] sm:$0xff]  ;;  %v962_v1 = vld [vmem:[#allocation2 + $0xe2] sm:$0xff] }
  0x82   :  { %2517 = vmatmul.mubr.bf16.vlgmr.msra.gmra.mrb[0].mxu0 %v5147_v50  ;;  %2010 = vmatprep.mubr.bf16.mxu1 %v5473_v18  ;;  %v538_v50 = vpack.c.bf16 %v484_v24, %v483_v42  ;;  %v277_v32 = vadd.f32 %v5478_v35, %v206_v37  ;;  %v5526_v57 = vpack.c.bf16 %v584_v51, %v583_v39  ;;  %v4162_v51 = vld [vmem:[%s6649_s0 + $0xf0] sm:$0xff]   ;;  %v506_v17 = vld [vmem:[#allocation2 + $0x218] sm:$0xff] }
  0x83   :  { %2774 = vmatpush1.bf16.msra.mxu0 %v4717_v29  ;;  %2524 = vmatprep.mubr.bf16.mxu0 %v5240_v26  ;;  %v4719_v26 = vld [vmem:[%s6648_s2 + $0x190] sm:$0xff]   ;;  %452 = vst.msk [vmem:[#allocation2 + $0x2a9] sm:$0xff] %vm400_vm0, %v278_v33  ;;  %v587_v29 = vld [vmem:[#allocation2 + $0x139] sm:$0xff]  ;;  %v213_v42 = vmul.f32 %v5467_v19, %v3992_v16  ;;  %v283_v24 = vadd.f32 %v5478_v35, %v212_v13  ;;  %v4000_v9 = vunpack.c.h.bf16 %v4162_v51 }
  0x84   :  { %2775 = vmatprep.subr.bf16.mxu0 %v4744_v0  ;;  %451 = vst.msk [vmem:[#allocation2 + $0x2a1] sm:$0xff] %vm400_vm0, %v277_v32  ;;  %v5570_v7 = vpack.c.bf16 %v588_v31, %v587_v29  ;;  %v492_v32 = vld [vmem:[#allocation2 + $0x140] sm:$0xff]  ;;  %v589_v33 = vld [vmem:[#allocation2 + $0x151] sm:$0xff]  ;;  %v603_v45 = vld [vmem:[#allocation2 + $0x229] sm:$0xff] }
  0x85   :  { %v284_v25 = vadd.f32 %v5478_v35, %v213_v42  ;;  %457 = vst.msk [vmem:[#allocation2 + $0x2e9] sm:$0xff] %vm400_vm0, %v283_v24  ;;  %v217_v52 = vmul.f32 %v5467_v19, %v4000_v9  ;;  %v593_v28 = vld [vmem:[#allocation2 + $0x1b1] sm:$0xff]  ;;  %v5638_v42 = vld [vmem:[%s6648_s2 + $0x200] sm:$0xff]   ;;  %v598_v24 = vld [vmem:[#allocation2 + $0x1e9] sm:$0xff] }
  0x86   :  { %v596_v16 = vld [vmem:[#allocation2 + $0x1d1] sm:$0xff]  ;;  %4235 = vmatprep.subr.bf16.mxu1 %v5638_v42 }
  0x87   :  { %2776 = vmatpush1.bf16.msra.mxu0 %v4718_v3  ;;  %458 = vst.msk [vmem:[#allocation2 + $0x2f1] sm:$0xff] %vm400_vm0, %v284_v25  ;;  %v4161_v3 = vld [vmem:[%s6649_s0 + $0xe8] sm:$0xff]   ;;  %v5625_v29 = vpack.c.bf16 %v596_v16, %v595_v11  ;;  %v500_v13 = vld [vmem:[#allocation2 + $0x1d0] sm:$0xff]  ;;  %v509_v11 = vld [vmem:[#allocation2 + $0x240] sm:$0xff] }
  0x88   :  { %2777 = vmatprep.subr.bf16.mxu0 %v4744_v0  ;;  %v3995_v37 = vunpack.c.l.bf16 %v4161_v3  ;;  %v3996_v30 = vunpack.c.h.bf16 %v4161_v3  ;;  %v966_v25 = vld [vmem:[#allocation2 + $0x112] sm:$0xff]  ;;  %v510_v16 = vld [vmem:[#allocation2 + $0x248] sm:$0xff] }
  0x89   :  { %2011 = vmatmul.mubr.bf16.gmra.mrb[36].mxu1 %v538_v50  ;;  %v491_v50 = vld [vmem:[#allocation2 + $0x138] sm:$0xff] }
  0x8a   :  { %2525 = vmatmul.mubr.bf16.gmra.mrb[4].mxu0 %v5188_v38  ;;  %2018 = vmatprep.mubr.bf16.mxu1 %v5504_v41  ;;  %v539_v38 = vpack.c.bf16 %v486_v49, %v485_v46  ;;  %v214_v44 = vmul.f32 %v5467_v19, %v3995_v37  ;;  %v215_v5 = vmul.f32 %v5467_v19, %v3996_v30  ;;  %v501_v37 = vld [vmem:[#allocation2 + $0x1e0] sm:$0xff]  ;;  %v502_v30 = vld [vmem:[#allocation2 + $0x1e8] sm:$0xff] }
  0x8b   :  { %2532 = vmatprep.mubr.bf16.mxu0 %v5294_v12  ;;  %2778 = vmatpush1.bf16.msra.mxu0 %v4719_v26  ;;  %v4721_v12 = vld [vmem:[%s6648_s2 + $0x1a0] sm:$0xff]  }
  0x8c   :  { %2779 = vmatprep.subr.bf16.mxu0 %v4744_v0  ;;  %v590_v26 = vld [vmem:[#allocation2 + $0x159] sm:$0xff]  ;;  %v285_v46 = vadd.f32 %v5478_v35, %v214_v44  ;;  %v286_v49 = vadd.f32 %v5478_v35, %v215_v5 }
  0x8d   :  { %v5592_v39 = vpack.c.bf16 %v590_v26, %v589_v33  ;;  %v967_v33 = vld [vmem:[#allocation2 + $0x122] sm:$0xff]  ;;  %v968_v26 = vld [vmem:[#allocation2 + $0x12a] sm:$0xff] }
  0x8e   :  { %459 = vst.msk [vmem:[#allocation2 + $0x301] sm:$0xff] %vm400_vm0, %v285_v46  ;;  %460 = vst.msk [vmem:[#allocation2 + $0x309] sm:$0xff] %vm400_vm0, %v286_v49  ;;  %v5652_v5 = vpack.c.bf16 %v968_v26, %v967_v33  ;;  %v4731_v46 = vld [vmem:[%s6648_s2 + $0x1e8] sm:$0xff]   ;;  %v601_v49 = vld [vmem:[#allocation2 + $0x211] sm:$0xff] }
  0x8f   :  { %2780 = vmatpush1.bf16.msra.mxu0 %v4720_v53  ;;  %v3999_v53 = vunpack.c.l.bf16 %v4162_v51  ;;  %v969_v51 = vld [vmem:[#allocation2 + $0x13a] sm:$0xff]  ;;  %v977_v33 = vld [vmem:[#allocation2 + $0x1ca] sm:$0xff]  ;;  %v978_v26 = vld [vmem:[#allocation2 + $0x1d2] sm:$0xff] }
  0x90   :  { %2781 = vmatprep.subr.bf16.mxu0 %v4744_v0 }
  0x91   :  { %2019 = vmatmul.mubr.bf16.gmra.mrb[40].mxu1 %v539_v38  ;;  %v494_v38 = vld [vmem:[#allocation2 + $0x158] sm:$0xff] }
  0x92   :  { %2533 = vmatmul.mubr.bf16.gmra.mrb[8].mxu0 %v5250_v34  ;;  %2026 = vmatprep.mubr.bf16.mxu1 %v5526_v57  ;;  %v540_v34 = vpack.c.bf16 %v488_v59, %v487_v58  ;;  %v543_v58 = vpack.c.bf16 %v494_v38, %v493_v56  ;;  %v288_v59 = vadd.f32 %v5478_v35, %v217_v52  ;;  %v505_v38 = vld [vmem:[#allocation2 + $0x210] sm:$0xff] }
  0x93   :  { %2540 = vmatprep.mubr.bf16.mxu0 %v5326_v36  ;;  %2782 = vmatpush1.bf16.msra.mxu0 %v4721_v12  ;;  %v4723_v36 = vld [vmem:[%s6648_s2 + $0x1b0] sm:$0xff]   ;;  %v216_v12 = vmul.f32 %v5467_v19, %v3999_v53  ;;  %v970_v53 = vld [vmem:[#allocation2 + $0x142] sm:$0xff]  ;;  %v549_v54 = vpack.c.bf16 %v506_v17, %v505_v38 }
  0x94   :  { %2783 = vmatprep.subr.bf16.mxu0 %v4744_v0  ;;  %462 = vst.msk [vmem:[#allocation2 + $0x321] sm:$0xff] %vm400_vm0, %v288_v59  ;;  %v971_v52 = vld [vmem:[#allocation2 + $0x152] sm:$0xff] }
  0x95   :  { %v508_v59 = vld [vmem:[#allocation2 + $0x230] sm:$0xff] }
  0x97   :  { %2784 = vmatpush1.bf16.msra.mxu0 %v4722_v63  ;;  %v496_v63 = vld [vmem:[#allocation2 + $0x170] sm:$0xff] }
  0x98   :  { %2785 = vmatprep.subr.bf16.mxu0 %v4744_v0 }
  0x99   :  { %2027 = vmatmul.mubr.bf16.gmra.mrb[44].mxu1 %v540_v34  ;;  %v594_v34 = vld [vmem:[#allocation2 + $0x1b9] sm:$0xff] }
  0x9a   :  { %2541 = vmatmul.mubr.bf16.gmra.mrb[12].mxu0 %v5296_v14  ;;  %2034 = vmatprep.mubr.bf16.mxu1 %v5548_v23  ;;  %v541_v14 = vpack.c.bf16 %v490_v21, %v489_v20  ;;  %v641_v2 = vpack.c.bf16 %v594_v34, %v593_v28  ;;  %v963_v20 = vld [vmem:[#allocation2 + $0xf2] sm:$0xff]  ;;  %v964_v21 = vld [vmem:[#allocation2 + $0xfa] sm:$0xff]  ;;  %v973_v28 = vld [vmem:[#allocation2 + $0x16a] sm:$0xff] }
  0x9b   :  { %2548 = vmatprep.mubr.bf16.mxu0 %v5369_v4  ;;  %2786 = vmatpush1.bf16.msra.mxu0 %v4723_v36  ;;  %v4725_v4 = vld [vmem:[%s6648_s2 + $0x1c0] sm:$0xff]   ;;  %v5627_v31 = vpack.c.bf16 %v964_v21, %v963_v20  ;;  %v974_v34 = vld [vmem:[#allocation2 + $0x172] sm:$0xff] }
  0x9c   :  { %2787 = vmatprep.subr.bf16.mxu0 %v4744_v0  ;;  %v608_v20 = vld [vmem:[#allocation2 + $0x261] sm:$0xff] }
  0x9f   :  { %2788 = vmatpush1.bf16.msra.mxu0 %v4724_v22  ;;  %v499_v22 = vld [vmem:[#allocation2 + $0x1c8] sm:$0xff] }
  0xa0   :  { %2789 = vmatprep.subr.bf16.mxu0 %v4744_v0 }
  0xa1   :  { %2035 = vmatmul.mubr.bf16.gmra.mrb[48].mxu1 %v541_v14  ;;  %v597_v14 = vld [vmem:[#allocation2 + $0x1e1] sm:$0xff] }
  0xa2   :  { %2549 = vmatmul.mubr.bf16.gmra.mrb[16].mxu0 %v5328_v40  ;;  %2042 = vmatprep.mubr.bf16.mxu1 %v5570_v7  ;;  %v542_v40 = vpack.c.bf16 %v492_v32, %v491_v50  ;;  %v599_v50 = vld [vmem:[#allocation2 + $0x1f9] sm:$0xff]  ;;  %v600_v32 = vld [vmem:[#allocation2 + $0x201] sm:$0xff] }
  0xa3   :  { %2556 = vmatprep.mubr.bf16.mxu0 %v5406_v47  ;;  %2790 = vmatpush1.bf16.msra.mxu0 %v4725_v4  ;;  %v4727_v47 = vld [vmem:[%s6648_s2 + $0x1d0] sm:$0xff]   ;;  %v5643_v4 = vpack.c.bf16 %v598_v24, %v597_v14  ;;  %v5650_v44 = vpack.c.bf16 %v600_v32, %v599_v50  ;;  %v551_v14 = vpack.c.bf16 %v510_v16, %v509_v11  ;;  %v610_v32 = vld [vmem:[#allocation2 + $0x279] sm:$0xff] }
  0xa4   :  { %2791 = vmatprep.subr.bf16.mxu0 %v4744_v0  ;;  %v609_v50 = vld [vmem:[#allocation2 + $0x271] sm:$0xff] }
  0xa7   :  { %2792 = vmatpush1.bf16.msra.mxu0 %v4726_v15  ;;  %v547_v15 = vpack.c.bf16 %v502_v30, %v501_v37  ;;  %v879_v37 = vld [vmem:[#allocation2 + $0x181] sm:$0xff]  ;;  %v4734_v30 = vld [vmem:[%s6648_s2 + $0x1f8] sm:$0xff]  }
  0xa8   :  { %2793 = vmatprep.subr.bf16.mxu0 %v4744_v0 }
  0xa9   :  { %2043 = vmatmul.mubr.bf16.gmra.mrb[52].mxu1 %v542_v40  ;;  %v504_v40 = vld [vmem:[#allocation2 + $0x200] sm:$0xff] }
  0xaa   :  { %2557 = vmatmul.mubr.bf16.gmra.mrb[20].mxu0 %v5371_v6  ;;  %2050 = vmatprep.mubr.bf16.mxu1 %v5592_v39  ;;  %v287_v6 = vadd.f32 %v5478_v35, %v216_v12  ;;  %v604_v12 = vld [vmem:[#allocation2 + $0x231] sm:$0xff] }
  0xab   :  { %2564 = vmatprep.mubr.bf16.mxu0 %v5441_v62  ;;  %2794 = vmatpush1.bf16.msra.mxu0 %v4727_v47  ;;  %v495_v62 = vld [vmem:[#allocation2 + $0x168] sm:$0xff]  ;;  %v602_v47 = vld [vmem:[#allocation2 + $0x219] sm:$0xff] }
  0xac   :  { %2795 = vmatprep.subr.bf16.mxu0 %v4744_v0  ;;  %461 = vst.msk [vmem:[#allocation2 + $0x319] sm:$0xff] %vm400_vm0, %v287_v6  ;;  %v544_v36 = vpack.c.bf16 %v496_v63, %v495_v62  ;;  %v5661_v56 = vpack.c.bf16 %v602_v47, %v601_v49  ;;  %v5670_v6 = vpack.c.bf16 %v972_v43, %v971_v52  ;;  %v4733_v62 = vld [vmem:[%s6648_s2 + $0x1f0] sm:$0xff]   ;;  %v605_v63 = vld [vmem:[#allocation2 + $0x241] sm:$0xff]  ;;  %v514_v49 = vld [vmem:[#allocation2 + $0x278] sm:$0xff] }
  0xad   :  { %v611_v47 = vld [vmem:[#allocation2 + $0x289] sm:$0xff]  ;;  %v613_v43 = vld [vmem:[#allocation2 + $0x2a1] sm:$0xff] }
  0xae   :  { %v516_v52 = vld [vmem:[#allocation2 + $0x290] sm:$0xff] }
  0xaf   :  { %2796 = vmatpush1.bf16.msra.mxu0 %v4728_v27  ;;  %v606_v27 = vld [vmem:[#allocation2 + $0x249] sm:$0xff] }
  0xb0   :  { %2797 = vmatprep.subr.bf16.mxu0 %v4744_v0 }
  0xb1   :  { %2051 = vmatmul.mubr.bf16.gmra.mrb[56].mxu1 %v543_v58  ;;  %v5668_v58 = vpack.c.bf16 %v604_v12, %v603_v45  ;;  %v515_v12 = vld [vmem:[#allocation2 + $0x288] sm:$0xff] }
  0xb2   :  { %2565 = vmatmul.mubr.bf16.gmra.mrb[24].mxu0 %v5408_v48  ;;  %2058 = vmatprep.mubr.bf16.mxu1 %v5611_v60  ;;  %v1017_v48 = vpack.c.bf16 %v962_v1, %v961_v8  ;;  %v5679_v1 = vpack.c.bf16 %v606_v27, %v605_v63 }
  0xb3   :  { %2572 = vmatprep.mubr.bf16.mxu0 %v5613_v61 }
  0xb9   :  { %2059 = vmatmul.mubr.bf16.gmra.mrb[60].mxu1 %v544_v36  ;;  %v4163_v36 = vld [vmem:[%s6649_s0 + $0xf8] sm:$0xff]  }
  0xba   :  { %2573 = vmatmul.mubr.bf16.gmra.mrb[28].mxu0 %v5443_v10  ;;  %2066 = vmatprep.mubr.bf16.mxu1 %v641_v2  ;;  %v4729_v10 = vld [vmem:[%s6648_s2 + $0x1e0] sm:$0xff]   ;;  %v4003_v2 = vunpack.c.l.bf16 %v4163_v36 }
  0xbb   :  { %2580 = vmatprep.mubr.bf16.mxu0 %v1017_v48  ;;  %2798 = vmatpush1.bf16.msra.mxu0 %v4729_v10  ;;  %v4004_v48 = vunpack.c.h.bf16 %v4163_v36  ;;  %v976_v10 = vld [vmem:[#allocation2 + $0x18a] sm:$0xff]  ;;  %v983_v36 = vld [vmem:[#allocation2 + $0x212] sm:$0xff] }
  0xbc   :  { %2799 = vmatprep.subr.bf16.mxu0 %v4744_v0  ;;  %v218_v21 = vmul.f32 %v5467_v19, %v4003_v2  ;;  %v984_v2 = vld [vmem:[#allocation2 + $0x21a] sm:$0xff] }
  0xbd   :  { %v5724_v16 = vpack.c.bf16 %v984_v2, %v983_v36  ;;  %v991_v2 = vld [vmem:[#allocation2 + $0x272] sm:$0xff] }
  0xbe   :  { %v289_v24 = vadd.f32 %v5478_v35, %v218_v21  ;;  %v618_v21 = vld [vmem:[#allocation2 + $0x2d9] sm:$0xff] }
  0xbf   :  { %2800 = vmatpush1.bf16.msra.mxu0 %v4731_v46  ;;  %v513_v46 = vld [vmem:[#allocation2 + $0x270] sm:$0xff] }
  0xc0   :  { %2801 = vmatprep.subr.bf16.mxu0 %v4744_v0  ;;  %463 = vst.msk [vmem:[#allocation2 + $0x331] sm:$0xff] %vm400_vm0, %v289_v24  ;;  %v553_v38 = vpack.c.bf16 %v514_v49, %v513_v46 }
  0xc1   :  { %2067 = vmatmul.mubr.bf16.gmra.mrb[64].mxu1 %v4746_v55  ;;  %v965_v55 = vld [vmem:[#allocation2 + $0x10a] sm:$0xff] }
  0xc2   :  { %2581 = vmatmul.mubr.bf16.gmra.mrb[32].mxu0 %v5473_v18  ;;  %2074 = vmatprep.mubr.bf16.mxu1 %v5625_v29  ;;  %v546_v18 = vpack.c.bf16 %v500_v13, %v499_v22  ;;  %v5645_v3 = vpack.c.bf16 %v966_v25, %v965_v55  ;;  %v219_v22 = vmul.f32 %v5467_v19, %v4004_v48  ;;  %v975_v13 = vld [vmem:[#allocation2 + $0x182] sm:$0xff] }
  0xc3   :  { %2588 = vmatprep.mubr.bf16.mxu0 %v5627_v31  ;;  %2802 = vmatpush1.bf16.msra.mxu0 %v4733_v62  ;;  %v1024_v25 = vpack.c.bf16 %v976_v10, %v975_v13  ;;  %v512_v19 = vld [vmem:[#allocation2 + $0x260] sm:$0xff]  ;;  %v554_v62 = vpack.c.bf16 %v516_v52, %v515_v12  ;;  %v985_v13 = vld [vmem:[#allocation2 + $0x22a] sm:$0xff]  ;;  %v986_v10 = vld [vmem:[#allocation2 + $0x232] sm:$0xff] }
  0xc4   :  { %2803 = vmatprep.subr.bf16.mxu0 %v4744_v0  ;;  %v607_v0 = vld [vmem:[#allocation2 + $0x259] sm:$0xff]  ;;  %v290_v55 = vadd.f32 %v5478_v35, %v219_v22  ;;  %v880_v35 = vld [vmem:[#allocation2 + $0x189] sm:$0xff] }
  0xc5   :  { %v989_v12 = vld [vmem:[#allocation2 + $0x25a] sm:$0xff]  ;;  %v990_v52 = vld [vmem:[#allocation2 + $0x262] sm:$0xff] }
  0xc6   :  { %464 = vst.msk [vmem:[#allocation2 + $0x339] sm:$0xff] %vm400_vm0, %v290_v55 }
  0xc7   :  { %2804 = vmatpush1.bf16.msra.mxu0 %v4734_v30  ;;  %v619_v30 = vld [vmem:[#allocation2 + $0x2e9] sm:$0xff] }
  0xc9   :  { %2075 = vmatmul.mubr.bf16.gmra.mrb[68].mxu1 %v546_v18  ;;  %v511_v18 = vld [vmem:[#allocation2 + $0x258] sm:$0xff] }
  0xca   :  { %2589 = vmatmul.mubr.bf16.gmra.mrb[36].mxu0 %v5504_v41  ;;  %2082 = vmatprep.mubr.bf16.mxu1 %v5643_v4  ;;  %v503_v41 = vld [vmem:[#allocation2 + $0x1f8] sm:$0xff] }
  0xcb   :  { %2596 = vmatprep.mubr.bf16.mxu0 %v5645_v3  ;;  %v548_v9 = vpack.c.bf16 %v504_v40, %v503_v41  ;;  %v928_v41 = vpack.c.bf16 %v880_v35, %v879_v37  ;;  %v5702_v40 = vpack.c.bf16 %v610_v32, %v609_v50  ;;  %v522_v37 = vld [vmem:[#allocation2 + $0x2d8] sm:$0xff]  ;;  %v987_v32 = vld [vmem:[#allocation2 + $0x242] sm:$0xff] }
  0xcc   :  { %v620_v35 = vld [vmem:[#allocation2 + $0x2f1] sm:$0xff] }
  0xcd   :  { %v5749_v46 = vpack.c.bf16 %v620_v35, %v619_v30  ;;  %v993_v30 = vld [vmem:[#allocation2 + $0x28a] sm:$0xff]  ;;  %v994_v35 = vld [vmem:[#allocation2 + $0x292] sm:$0xff] }
  0xd1   :  { %2083 = vmatmul.mubr.bf16.gmra.mrb[72].mxu1 %v547_v15  ;;  %v552_v15 = vpack.c.bf16 %v512_v19, %v511_v18  ;;  %v5737_v18 = vpack.c.bf16 %v986_v10, %v985_v13  ;;  %v521_v19 = vld [vmem:[#allocation2 + $0x2d0] sm:$0xff]  ;;  %v527_v10 = vld [vmem:[#allocation2 + $0x318] sm:$0xff] }
  0xd2   :  { %2597 = vmatmul.mubr.bf16.gmra.mrb[40].mxu0 %v5526_v57  ;;  %2090 = vmatprep.mubr.bf16.mxu1 %v5650_v44  ;;  %v5663_v57 = vpack.c.bf16 %v970_v53, %v969_v51  ;;  %v612_v51 = vld [vmem:[#allocation2 + $0x291] sm:$0xff]  ;;  %v979_v53 = vld [vmem:[#allocation2 + $0x1e2] sm:$0xff] }
  0xd3   :  { %2604 = vmatprep.mubr.bf16.mxu0 %v5652_v5  ;;  %v5708_v17 = vpack.c.bf16 %v612_v51, %v611_v47  ;;  %v523_v47 = vld [vmem:[#allocation2 + $0x2e8] sm:$0xff]  ;;  %v524_v51 = vld [vmem:[#allocation2 + $0x2f0] sm:$0xff] }
  0xd9   :  { %2091 = vmatmul.mubr.bf16.gmra.mrb[76].mxu1 %v548_v9  ;;  %v980_v9 = vld [vmem:[#allocation2 + $0x1ea] sm:$0xff] }
  0xda   :  { %2605 = vmatmul.mubr.bf16.gmra.mrb[44].mxu0 %v5548_v23  ;;  %2098 = vmatprep.mubr.bf16.mxu1 %v5661_v56  ;;  %v507_v23 = vld [vmem:[#allocation2 + $0x228] sm:$0xff]  ;;  %v5710_v45 = vpack.c.bf16 %v980_v9, %v979_v53 }
  0xdb   :  { %2612 = vmatprep.mubr.bf16.mxu0 %v5663_v57  ;;  %v550_v8 = vpack.c.bf16 %v508_v59, %v507_v23  ;;  %v981_v23 = vld [vmem:[#allocation2 + $0x1fa] sm:$0xff]  ;;  %v982_v59 = vld [vmem:[#allocation2 + $0x202] sm:$0xff] }
  0xdc   :  { %v5717_v27 = vpack.c.bf16 %v982_v59, %v981_v23  ;;  %v621_v53 = vld [vmem:[#allocation2 + $0x301] sm:$0xff]  ;;  %v622_v9 = vld [vmem:[#allocation2 + $0x309] sm:$0xff] }
  0xdd   :  { %v5763_v59 = vpack.c.bf16 %v622_v9, %v621_v53  ;;  %v772_v9 = vld [vmem:[#allocation2 + $0xf8] sm:$0xff] }
  0xe1   :  { %2099 = vmatmul.mubr.bf16.gmra.mrb[80].mxu1 %v549_v54  ;;  %v614_v54 = vld [vmem:[#allocation2 + $0x2a9] sm:$0xff] }
  0xe2   :  { %2613 = vmatmul.mubr.bf16.gmra.mrb[48].mxu0 %v5570_v7  ;;  %2106 = vmatprep.mubr.bf16.mxu1 %v5668_v58  ;;  %v5681_v7 = vpack.c.bf16 %v974_v34, %v973_v28  ;;  %v5715_v63 = vpack.c.bf16 %v614_v54, %v613_v43  ;;  %v518_v28 = vld [vmem:[#allocation2 + $0x2a8] sm:$0xff]  ;;  %v615_v34 = vld [vmem:[#allocation2 + $0x2b9] sm:$0xff]  ;;  %v5759_v54 = vpack.c.bf16 %v524_v51, %v523_v47  ;;  %v771_v51 = vld [vmem:[#allocation2 + $0xf0] sm:$0xff] }
  0xe3   :  { %2620 = vmatprep.mubr.bf16.mxu0 %v5670_v6  ;;  %v5793_v47 = vpack.c.bf16 %v994_v35, %v993_v30 }
  0xe9   :  { %2107 = vmatmul.mubr.bf16.gmra.mrb[84].mxu1 %v550_v8  ;;  %v616_v8 = vld [vmem:[#allocation2 + $0x2c1] sm:$0xff] }
  0xea   :  { %2621 = vmatmul.mubr.bf16.gmra.mrb[52].mxu0 %v5592_v39  ;;  %2114 = vmatprep.mubr.bf16.mxu1 %v5679_v1  ;;  %v5693_v39 = vpack.c.bf16 %v608_v20, %v607_v0  ;;  %v5722_v11 = vpack.c.bf16 %v616_v8, %v615_v34  ;;  %v520_v0 = vld [vmem:[#allocation2 + $0x2c0] sm:$0xff]  ;;  %v617_v20 = vld [vmem:[#allocation2 + $0x2d1] sm:$0xff] }
  0xeb   :  { %2628 = vmatprep.mubr.bf16.mxu0 %v5681_v7  ;;  %v623_v34 = vld [vmem:[#allocation2 + $0x319] sm:$0xff]  ;;  %v624_v8 = vld [vmem:[#allocation2 + $0x321] sm:$0xff] }
  0xf1   :  { %2115 = vmatmul.mubr.bf16.gmra.mrb[88].mxu1 %v551_v14 }
  0xf2   :  { %2629 = vmatmul.mubr.bf16.gmra.mrb[56].mxu0 %v5611_v60  ;;  %2122 = vmatprep.mubr.bf16.mxu1 %v5693_v39  ;;  %v5704_v60 = vpack.c.bf16 %v978_v26, %v977_v33  ;;  %v988_v33 = vld [vmem:[#allocation2 + $0x24a] sm:$0xff] }
  0xf3   :  { %2636 = vmatprep.mubr.bf16.mxu0 %v1024_v25  ;;  %v5735_v25 = vpack.c.bf16 %v618_v21, %v617_v20  ;;  %v5751_v49 = vpack.c.bf16 %v988_v33, %v987_v32  ;;  %v5777_v21 = vpack.c.bf16 %v624_v8, %v623_v34  ;;  %v675_v8 = vld [vmem:[#allocation2 + $0xda] sm:$0xff] }
  0xf9   :  { %2123 = vmatmul.mubr.bf16.gmra.mrb[92].mxu1 %v552_v15  ;;  %v5745_v15 = vpack.c.bf16 %v522_v37, %v521_v19  ;;  %v770_v19 = vld [vmem:[#allocation2 + $0xe0] sm:$0xff] }
  0xfa   :  { %2637 = vmatmul.mubr.bf16.gmra.mrb[60].mxu0 %v928_v41  ;;  %2130 = vmatprep.mubr.bf16.mxu1 %v5702_v40 }
  0xfb   :  { %2644 = vmatprep.mubr.bf16.mxu0 %v5704_v60 }
 0x101   :  { %2131 = vmatmul.mubr.bf16.gmra.mrb[96].mxu1 %v553_v38 }
 0x102   :  { %2645 = vmatmul.mubr.bf16.gmra.mrb[64].mxu0 %v5625_v29  ;;  %2138 = vmatprep.mubr.bf16.mxu1 %v5708_v17  ;;  %v517_v29 = vld [vmem:[#allocation2 + $0x2a0] sm:$0xff] }
 0x103   :  { %2652 = vmatprep.mubr.bf16.mxu0 %v5710_v45  ;;  %v555_v48 = vpack.c.bf16 %v518_v28, %v517_v29  ;;  %v525_v29 = vld [vmem:[#allocation2 + $0x300] sm:$0xff]  ;;  %v526_v28 = vld [vmem:[#allocation2 + $0x308] sm:$0xff] }
 0x109   :  { %2139 = vmatmul.mubr.bf16.gmra.mrb[100].mxu1 %v554_v62  ;;  %v5765_v62 = vpack.c.bf16 %v990_v52, %v989_v12  ;;  %v995_v12 = vld [vmem:[#allocation2 + $0x2a2] sm:$0xff]  ;;  %v996_v52 = vld [vmem:[#allocation2 + $0x2aa] sm:$0xff] }
 0x10a   :  { %2653 = vmatmul.mubr.bf16.gmra.mrb[68].mxu0 %v5643_v4  ;;  %2146 = vmatprep.mubr.bf16.mxu1 %v5715_v63  ;;  %v519_v4 = vld [vmem:[#allocation2 + $0x2b8] sm:$0xff]  ;;  %v5805_v34 = vpack.c.bf16 %v996_v52, %v995_v12 }
 0x10b   :  { %2660 = vmatprep.mubr.bf16.mxu0 %v5717_v27  ;;  %v5731_v24 = vpack.c.bf16 %v520_v0, %v519_v4  ;;  %v5773_v0 = vpack.c.bf16 %v526_v28, %v525_v29  ;;  %v5803_v28 = vpack.c.bf16 %v772_v9, %v771_v51  ;;  %v776_v51 = vld [vmem:[#allocation2 + $0x128] sm:$0xff]  ;;  %v999_v12 = vld [vmem:[#allocation2 + $0x2d2] sm:$0xff]  ;;  %v1000_v52 = vld [vmem:[#allocation2 + $0x2da] sm:$0xff] }
 0x111   :  { %2147 = vmatmul.mubr.bf16.gmra.mrb[104].mxu1 %v555_v48  ;;  %v992_v48 = vld [vmem:[#allocation2 + $0x27a] sm:$0xff] }
 0x112   :  { %2661 = vmatmul.mubr.bf16.gmra.mrb[72].mxu0 %v5650_v44  ;;  %2154 = vmatprep.mubr.bf16.mxu1 %v5722_v11  ;;  %v5779_v13 = vpack.c.bf16 %v992_v48, %v991_v2  ;;  %v676_v2 = vld [vmem:[#allocation2 + $0xe2] sm:$0xff] }
 0x113   :  { %2668 = vmatprep.mubr.bf16.mxu0 %v5724_v16  ;;  %v773_v48 = vld [vmem:[#allocation2 + $0x108] sm:$0xff] }
 0x114   :  { %v5729_v22 = vpop.f32.mrb[0].mxu1 }
 0x115   :  { %v1942_v14 = vpop.f32.mrb[1].mxu1 }
 0x116   :  { %v5733_v55 = vpop.f32.mrb[2].mxu1  ;;  %v528_v14 = vld [vmem:[#allocation2 + $0x320] sm:$0xff] }
 0x117   :  { %v1945_v44 = vpop.f32.mrb[3].mxu1  ;;  %v5787_v33 = vpack.c.bf16 %v528_v14, %v527_v10  ;;  %v997_v14 = vld [vmem:[#allocation2 + $0x2ba] sm:$0xff] }
 0x118   :  { %v769_v44 = vld [vmem:[#allocation2 + $0xd8] sm:$0xff] }
 0x119   :  { %2155 = vmatmul.mubr.bf16.gmra.mrb[108].mxu1 %v5731_v24 }
 0x11a   :  { %2669 = vmatmul.mubr.bf16.gmra.mrb[76].mxu0 %v5661_v56  ;;  %2162 = vmatprep.mubr.bf16.mxu1 %v5735_v25 }
 0x11b   :  { %2676 = vmatprep.mubr.bf16.mxu0 %v5737_v18 }
 0x11c   :  { %v5743_v50 = vpop.f32.mrb[4].mxu1 }
 0x11d   :  { %v1950_v26 = vpop.f32.mrb[5].mxu1 }
 0x11e   :  { %v5747_v41 = vpop.f32.mrb[6].mxu1 }
 0x11f   :  { %v1953_v56 = vpop.f32.mrb[7].mxu1 }
 0x120   :  { %v5791_v56 = vpack.c.bf16 %v770_v19, %v769_v44  ;;  %v5820_v44 = vpack.c.bf16 %v676_v2, %v675_v8  ;;  %v5844_v2 = vpack.c.bf16 %v1000_v52, %v999_v12 }
 0x121   :  { %2163 = vmatmul.mubr.bf16.gmra.mrb[112].mxu1 %v5745_v15 }
 0x122   :  { %2677 = vmatmul.mubr.bf16.gmra.mrb[80].mxu0 %v5668_v58  ;;  %2170 = vmatprep.mubr.bf16.mxu1 %v5749_v46 }
 0x123   :  { %2684 = vmatprep.mubr.bf16.mxu0 %v5751_v49 }
 0x124   :  { %v5757_v38 = vpop.f32.mrb[8].mxu1 }
 0x125   :  { %v1958_v43 = vpop.f32.mrb[9].mxu1 }
 0x126   :  { %v5761_v23 = vpop.f32.mrb[10].mxu1 }
 0x127   :  { %v1961_v58 = vpop.f32.mrb[11].mxu1 }
 0x129   :  { %2171 = vmatmul.mubr.bf16.gmra.mrb[116].mxu1 %v5759_v54 }
 0x12a   :  { %2685 = vmatmul.mubr.bf16.gmra.mrb[84].mxu0 %v5679_v1  ;;  %2178 = vmatprep.mubr.bf16.mxu1 %v5763_v59 }
 0x12b   :  { %2692 = vmatprep.mubr.bf16.mxu0 %v5765_v62 }
 0x12c   :  { %v5771_v36 = vpop.f32.mrb[12].mxu1 }
 0x12d   :  { %v1966_v4 = vpop.f32.mrb[13].mxu1 }
 0x12e   :  { %v5775_v20 = vpop.f32.mrb[14].mxu1  ;;  %v774_v4 = vld [vmem:[#allocation2 + $0x110] sm:$0xff] }
 0x12f   :  { %v1969_v1 = vpop.f32.mrb[15].mxu1  ;;  %v5824_v19 = vpack.c.bf16 %v774_v4, %v773_v48  ;;  %v4738_v48 = vld [vmem:[%s6648_s2 + $0x228] sm:$0xff]   ;;  %v777_v4 = vld [vmem:[#allocation2 + $0x138] sm:$0xff] }
 0x130   :  { %v4735_v1 = vld [vmem:[%s6648_s2 + $0x210] sm:$0xff]  }
 0x131   :  { %2179 = vmatmul.mubr.bf16.gmra.mrb[120].mxu1 %v5773_v0 }
 0x132   :  { %2693 = vmatmul.mubr.bf16.gmra.mrb[88].mxu0 %v5693_v39  ;;  %2186 = vmatprep.mubr.bf16.mxu1 %v5777_v21 }
 0x133   :  { %2700 = vmatprep.mubr.bf16.mxu0 %v5779_v13 }
 0x134   :  { %v5785_v37 = vpop.f32.mrb[16].mxu1 }
 0x135   :  { %v1974_v32 = vpop.f32.mrb[17].mxu1 }
 0x136   :  { %v5789_v26 = vpop.f32.mrb[18].mxu1  ;;  %v4736_v32 = vld [vmem:[%s6648_s2 + $0x218] sm:$0xff]  }
 0x137   :  { %v1977_v39 = vpop.f32.mrb[19].mxu1 }
 0x138   :  { %v775_v39 = vld [vmem:[#allocation2 + $0x120] sm:$0xff] }
 0x139   :  { %2187 = vmatmul.mubr.bf16.gmra.mrb[124].mxu1 %v5787_v33 }
 0x13a   :  { %2701 = vmatmul.mubr.bf16.gmra.mrb[92].mxu0 %v5702_v40  ;;  %2291 = vmatprep.mubr.bf16.mxu1 %v5791_v56  ;;  %v4732_v40 = vld [vmem:[%s6648_s2 + $0x208] sm:$0xff]  }
 0x13b   :  { %2708 = vmatprep.mubr.bf16.mxu0 %v5793_v47 }
 0x13c   :  { %v5799_v53 = vpop.f32.mrb[20].mxu1 }
 0x13d   :  { %v1982_v43 = vpop.f32.mrb[21].mxu1 }
 0x13e   :  { %v5801_v58 = vpop.f32.mrb[22].mxu1  ;;  %v4737_v43 = vld [vmem:[%s6648_s2 + $0x220] sm:$0xff]  }
 0x13f   :  { %v1985_v29 = vpop.f32.mrb[23].mxu1 }
 0x141   :  { %2292 = vmatmul.mubr.bf16.vlgmr.msra.gmra.mrb[32].mxu1 %v5613_v61  ;;  %v998_v61 = vld [vmem:[#allocation2 + $0x2c2] sm:$0xff] }
 0x142   :  { %2709 = vmatmul.mubr.bf16.gmra.mrb[96].mxu0 %v5708_v17  ;;  %4236 = vmatpush3.bf16.msra.mxu1 %v5638_v42  ;;  %v5826_v35 = vpack.c.bf16 %v998_v61, %v997_v14  ;;  %v1001_v14 = vld [vmem:[#allocation2 + $0x2ea] sm:$0xff]  ;;  %v1002_v61 = vld [vmem:[#allocation2 + $0x2f2] sm:$0xff] }
 0x143   :  { %2299 = vmatprep.mubr.bf16.mxu1 %v5803_v28  ;;  %2716 = vmatprep.mubr.bf16.mxu0 %v5805_v34 }
 0x144   :  { %v5818_v10 = vpop.f32.mrb[24].mxu1  ;;  %4237 = vmatprep.subr.bf16.mxu1 %v4732_v40 }
 0x145   :  { %v1990_v17 = vpop.f32.mrb[25].mxu1 }
 0x146   :  { %v5822_v42 = vpop.f32.mrb[26].mxu1  ;;  %4238 = vmatpush3.bf16.msra.mxu1 %v4732_v40  ;;  %v4739_v17 = vld [vmem:[%s6648_s2 + $0x230] sm:$0xff]  }
 0x147   :  { %v1993_v30 = vpop.f32.mrb[27].mxu1  ;;  %4239 = vmatprep.subr.bf16.mxu1 %v4735_v1 }
 0x149   :  { %2300 = vmatmul.mubr.bf16.gmra.mrb[36].mxu1 %v5820_v44 }
 0x14a   :  { %2717 = vmatmul.mubr.bf16.gmra.mrb[100].mxu0 %v5715_v63  ;;  %2307 = vmatprep.mubr.bf16.mxu1 %v5824_v19  ;;  %v5842_v63 = vpack.c.bf16 %v776_v51, %v775_v39  ;;  %v1003_v39 = vld [vmem:[#allocation2 + $0x302] sm:$0xff]  ;;  %v1004_v51 = vld [vmem:[#allocation2 + $0x30a] sm:$0xff] }
 0x14b   :  { %2724 = vmatprep.mubr.bf16.mxu0 %v5826_v35  ;;  %4240 = vmatpush3.bf16.msra.mxu1 %v4735_v1  ;;  %v778_v1 = vld [vmem:[#allocation2 + $0x140] sm:$0xff]  ;;  %v5866_v52 = vpack.c.bf16 %v1004_v51, %v1003_v39  ;;  %v1138_v39 = vld [vmem:[#allocation2 + $0x31] sm:$0xff] }
 0x14c   :  { %v5835_v9 = vpop.f32.mrb[28].mxu1  ;;  %4241 = vmatprep.subr.bf16.mxu1 %v4736_v32  ;;  %v5856_v30 = vpack.c.bf16 %v778_v1, %v777_v4  ;;  %v784_v4 = vld [vmem:[#allocation2 + $0x188] sm:$0xff]  ;;  %v1007_v1 = vld [vmem:[#allocation2 + $0x332] sm:$0xff] }
 0x14d   :  { %6654 = vst [vmem:[#allocation3_spill] sm:$0xff] %v5835_v9  ;;  %v1998_v29 = vpop.f32.mrb[29].mxu1  ;;  %v1139_v51 = vld [vmem:[#allocation2 + $0x39] sm:$0xff] }
 0x14e   :  { %v5840_v40 = vpop.f32.mrb[30].mxu1  ;;  %v1006_v29 = vld [vmem:[#allocation2 + $0x322] sm:$0xff] }
 0x14f   :  { %6655 = vst [vmem:[#allocation4_spill] sm:$0xff] %v5840_v40  ;;  %v2001_v8 = vpop.f32.mrb[31].mxu1  ;;  %4242 = vmatpush3.bf16.msra.mxu1 %v4736_v32  ;;  %v5858_v32 = vpack.c.bf16 %v1002_v61, %v1001_v14  ;;  %v1008_v14 = vld [vmem:[#allocation2 + $0x33a] sm:$0xff] }
 0x150   :  { %4243 = vmatprep.subr.bf16.mxu1 %v4737_v43 }
 0x151   :  { %2308 = vmatmul.mubr.bf16.gmra.mrb[40].mxu1 %v5627_v31  ;;  %v779_v31 = vld [vmem:[#allocation2 + $0x150] sm:$0xff] }
 0x152   :  { %2725 = vmatmul.mubr.bf16.gmra.mrb[104].mxu0 %v5722_v11  ;;  %2315 = vmatprep.mubr.bf16.mxu1 %v5842_v63  ;;  %v780_v11 = vld [vmem:[#allocation2 + $0x158] sm:$0xff] }
 0x153   :  { %2732 = vmatprep.mubr.bf16.mxu0 %v5844_v2  ;;  %4244 = vmatpush3.bf16.msra.mxu1 %v4737_v43  ;;  %v5864_v12 = vpack.c.bf16 %v780_v11, %v779_v31  ;;  %v1005_v43 = vld [vmem:[#allocation2 + $0x31a] sm:$0xff]  ;;  %v785_v31 = vld [vmem:[#allocation2 + $0x1c8] sm:$0xff]  ;;  %v786_v11 = vld [vmem:[#allocation2 + $0x1d0] sm:$0xff] }
 0x154   :  { %4245 = vmatprep.subr.bf16.mxu1 %v4738_v48 }
 0x157   :  { %4246 = vmatpush3.bf16.msra.mxu1 %v4738_v48  ;;  %v5874_v48 = vpack.c.bf16 %v1006_v29, %v1005_v43  ;;  %v1202_v43 = vpack.c.bf16 %v1139_v51, %v1138_v39  ;;  %v689_v29 = vld [vmem:[#allocation2 + $0x1b2] sm:$0xff]  ;;  %v1142_v39 = vld [vmem:[#allocation2 + $0x61] sm:$0xff]  ;;  %v1143_v51 = vld [vmem:[#allocation2 + $0x69] sm:$0xff] }
 0x158   :  { %4247 = vmatprep.subr.bf16.mxu1 %v4739_v17 }
 0x159   :  { %2316 = vmatmul.mubr.bf16.gmra.mrb[44].mxu1 %v5645_v3  ;;  %v781_v3 = vld [vmem:[#allocation2 + $0x168] sm:$0xff] }
 0x15a   :  { %2733 = vmatmul.mubr.bf16.gmra.mrb[108].mxu0 %v5735_v25  ;;  %2323 = vmatprep.mubr.bf16.mxu1 %v5856_v30  ;;  %v782_v25 = vld [vmem:[#allocation2 + $0x170] sm:$0xff] }
 0x15b   :  { %2740 = vmatprep.mubr.bf16.mxu0 %v5858_v32  ;;  %4248 = vmatpush3.bf16.msra.mxu1 %v4739_v17  ;;  %v5872_v8 = vpack.c.bf16 %v782_v25, %v781_v3  ;;  %v1040_v17 = vpack.c.bf16 %v1008_v14, %v1007_v1  ;;  %v833_v25 = vpack.c.bf16 %v786_v11, %v785_v31  ;;  %v1140_v1 = vld [vmem:[#allocation2 + $0x49] sm:$0xff]  ;;  %v1141_v14 = vld [vmem:[#allocation2 + $0x51] sm:$0xff]  ;;  %v790_v11 = vld [vmem:[#allocation2 + $0x200] sm:$0xff] }
 0x15c   :  { %v789_v31 = vld [vmem:[#allocation2 + $0x1f8] sm:$0xff] }
 0x161   :  { %2324 = vmatmul.mubr.bf16.gmra.mrb[48].mxu1 %v5652_v5  ;;  %v4740_v5 = vld [vmem:[%s6648_s2 + $0x238] sm:$0xff]  }
 0x162   :  { %2741 = vmatmul.mubr.bf16.gmra.mrb[112].mxu0 %v5749_v46  ;;  %2331 = vmatprep.mubr.bf16.mxu1 %v5864_v12  ;;  %v783_v46 = vld [vmem:[#allocation2 + $0x180] sm:$0xff] }
 0x163   :  { %2748 = vmatprep.mubr.bf16.mxu0 %v5866_v52  ;;  %4249 = vmatprep.subr.bf16.mxu1 %v4740_v5  ;;  %v5883_v61 = vpack.c.bf16 %v784_v4, %v783_v46  ;;  %v787_v46 = vld [vmem:[#allocation2 + $0x1e0] sm:$0xff]  ;;  %v788_v4 = vld [vmem:[#allocation2 + $0x1e8] sm:$0xff] }
 0x164   :  { %4250 = vmatpush3.bf16.msra.mxu1 %v4740_v5  ;;  %v1042_v5 = vld [vmem:[#allocation2 + $0x30] sm:$0xff]  ;;  %v5889_v9 = vpack.c.bf16 %v788_v4, %v787_v46  ;;  %v1145_v46 = vld [vmem:[#allocation2 + $0x81] sm:$0xff] }
 0x169   :  { %2332 = vmatmul.mubr.bf16.gmra.mrb[52].mxu1 %v5663_v57  ;;  %v911_v57 = vld [vmem:[#allocation2 + $0x331] sm:$0xff] }
 0x16a   :  { %2749 = vmatmul.mubr.bf16.gmra.mrb[116].mxu0 %v5763_v59  ;;  %2339 = vmatprep.mubr.bf16.mxu1 %v5872_v8  ;;  %v912_v59 = vld [vmem:[#allocation2 + $0x339] sm:$0xff] }
 0x16b   :  { %2756 = vmatprep.mubr.bf16.mxu0 %v5874_v48  ;;  %v944_v3 = vpack.c.bf16 %v912_v59, %v911_v57  ;;  %v1203_v57 = vpack.c.bf16 %v1141_v14, %v1140_v1  ;;  %v1045_v59 = vld [vmem:[#allocation2 + $0x50] sm:$0xff] }
 0x171   :  { %2340 = vmatmul.mubr.bf16.gmra.mrb[56].mxu1 %v5670_v6  ;;  %v690_v6 = vld [vmem:[#allocation2 + $0x1ba] sm:$0xff] }
 0x172   :  { %2757 = vmatmul.mubr.bf16.gmra.mrb[120].mxu0 %v5777_v21  ;;  %2347 = vmatprep.mubr.bf16.mxu1 %v5883_v61  ;;  %v1043_v21 = vld [vmem:[#allocation2 + $0x38] sm:$0xff] }
 0x173   :  { %2764 = vmatprep.mubr.bf16.mxu0 %v1040_v17  ;;  %v737_v17 = vpack.c.bf16 %v690_v6, %v689_v29  ;;  %v1106_v40 = vpack.c.bf16 %v1043_v21, %v1042_v5  ;;  %v1046_v29 = vld [vmem:[#allocation2 + $0x60] sm:$0xff]  ;;  %v791_v6 = vld [vmem:[#allocation2 + $0x210] sm:$0xff]  ;;  %v792_v5 = vld [vmem:[#allocation2 + $0x218] sm:$0xff] }
 0x174   :  { %v1144_v21 = vld [vmem:[#allocation2 + $0x79] sm:$0xff]  ;;  %v5896_v1 = vpack.c.bf16 %v792_v5, %v791_v6  ;;  %v1149_v6 = vld [vmem:[#allocation2 + $0xb1] sm:$0xff] }
 0x175   :  { %v1205_v14 = vpack.c.bf16 %v1145_v46, %v1144_v21 }
 0x179   :  { %2348 = vmatmul.mubr.bf16.gmra.mrb[60].mxu1 %v5681_v7  ;;  %v1044_v7 = vld [vmem:[#allocation2 + $0x48] sm:$0xff] }
 0x17a   :  { %2765 = vmatmul.mubr.bf16.gmra.mrb[124].mxu0 %v944_v3  ;;  %2355 = vmatprep.mubr.bf16.mxu1 %v833_v25  ;;  %v1107_v3 = vpack.c.bf16 %v1045_v59, %v1044_v7  ;;  %v5892_v25 = vpack.c.bf16 %v790_v11, %v789_v31  ;;  %v794_v7 = vld [vmem:[#allocation2 + $0x230] sm:$0xff]  ;;  %v1147_v31 = vld [vmem:[#allocation2 + $0x99] sm:$0xff] }
 0x17b   :  { %2805 = vmatprep.mubr.bf16.mxu0 %v1202_v43  ;;  %v1204_v43 = vpack.c.bf16 %v1143_v51, %v1142_v39  ;;  %v1146_v59 = vld [vmem:[#allocation2 + $0x91] sm:$0xff] }
 0x17c   :  { %v1206_v51 = vpack.c.bf16 %v1147_v31, %v1146_v59 }
 0x181   :  { %2356 = vmatmul.mubr.bf16.gmra.mrb[64].mxu1 %v737_v17  ;;  %v1049_v17 = vld [vmem:[#allocation2 + $0x80] sm:$0xff] }
 0x182   :  { %2806 = vmatmul.mubr.bf16.vlgmr.msra.gmra.mrb[0].mxu0 %v1106_v40  ;;  %2363 = vmatprep.mubr.bf16.mxu1 %v5889_v9  ;;  %v1047_v40 = vld [vmem:[#allocation2 + $0x68] sm:$0xff] }
 0x183   :  { %2813 = vmatprep.mubr.bf16.mxu0 %v1203_v57  ;;  %v1108_v4 = vpack.c.bf16 %v1047_v40, %v1046_v29  ;;  %v793_v57 = vld [vmem:[#allocation2 + $0x228] sm:$0xff] }
 0x184   :  { %v5900_v39 = vpack.c.bf16 %v794_v7, %v793_v57  ;;  %v796_v29 = vld [vmem:[#allocation2 + $0x248] sm:$0xff] }
 0x185   :  { %v1148_v40 = vld [vmem:[#allocation2 + $0xa9] sm:$0xff] }
 0x186   :  { %v1207_v46 = vpack.c.bf16 %v1149_v6, %v1148_v40  ;;  %v1151_v57 = vld [vmem:[#allocation2 + $0xc9] sm:$0xff] }
 0x189   :  { %2364 = vmatmul.mubr.bf16.gmra.mrb[68].mxu1 %v5704_v60  ;;  %v1048_v60 = vld [vmem:[#allocation2 + $0x78] sm:$0xff] }
 0x18a   :  { %2814 = vmatmul.mubr.bf16.gmra.mrb[4].mxu0 %v1107_v3  ;;  %2371 = vmatprep.mubr.bf16.mxu1 %v5892_v25  ;;  %v1109_v11 = vpack.c.bf16 %v1049_v17, %v1048_v60  ;;  %v1051_v3 = vld [vmem:[#allocation2 + $0x98] sm:$0xff]  ;;  %v798_v60 = vld [vmem:[#allocation2 + $0x260] sm:$0xff] }
 0x18b   :  { %2821 = vmatprep.mubr.bf16.mxu0 %v1204_v43  ;;  %v795_v43 = vld [vmem:[#allocation2 + $0x240] sm:$0xff] }
 0x18c   :  { %v5904_v21 = vpack.c.bf16 %v796_v29, %v795_v43  ;;  %v1150_v17 = vld [vmem:[#allocation2 + $0xc1] sm:$0xff] }
 0x18d   :  { %v1208_v31 = vpack.c.bf16 %v1151_v57, %v1150_v17  ;;  %v1153_v43 = vld [vmem:[#allocation2 + $0xe1] sm:$0xff]  ;;  %v1156_v17 = vld [vmem:[#allocation2 + $0x109] sm:$0xff]  ;;  %v1157_v57 = vld [vmem:[#allocation2 + $0x111] sm:$0xff] }
 0x191   :  { %2372 = vmatmul.mubr.bf16.gmra.mrb[72].mxu1 %v5710_v45  ;;  %v1050_v45 = vld [vmem:[#allocation2 + $0x90] sm:$0xff] }
 0x192   :  { %2822 = vmatmul.mubr.bf16.gmra.mrb[8].mxu0 %v1108_v4  ;;  %2379 = vmatprep.mubr.bf16.mxu1 %v5896_v1  ;;  %v1110_v5 = vpack.c.bf16 %v1051_v3, %v1050_v45  ;;  %v1053_v4 = vld [vmem:[#allocation2 + $0xb0] sm:$0xff]  ;;  %v800_v45 = vld [vmem:[#allocation2 + $0x278] sm:$0xff] }
 0x193   :  { %2829 = vmatprep.mubr.bf16.mxu0 %v1205_v14  ;;  %v797_v14 = vld [vmem:[#allocation2 + $0x258] sm:$0xff] }
 0x194   :  { %v5908_v59 = vpack.c.bf16 %v798_v60, %v797_v14  ;;  %v1152_v3 = vld [vmem:[#allocation2 + $0xd9] sm:$0xff] }
 0x195   :  { %v1209_v6 = vpack.c.bf16 %v1153_v43, %v1152_v3  ;;  %v803_v60 = vld [vmem:[#allocation2 + $0x2a0] sm:$0xff] }
 0x196   :  { %v1169_v43 = vld [vmem:[#allocation2 + $0x1a1] sm:$0xff] }
 0x199   :  { %2380 = vmatmul.mubr.bf16.gmra.mrb[76].mxu1 %v5717_v27  ;;  %v1052_v27 = vld [vmem:[#allocation2 + $0xa8] sm:$0xff] }
 0x19a   :  { %2830 = vmatmul.mubr.bf16.gmra.mrb[12].mxu0 %v1109_v11  ;;  %2387 = vmatprep.mubr.bf16.mxu1 %v5900_v39  ;;  %v1111_v7 = vpack.c.bf16 %v1053_v4, %v1052_v27  ;;  %v1055_v11 = vld [vmem:[#allocation2 + $0xc8] sm:$0xff]  ;;  %v1155_v27 = vld [vmem:[#allocation2 + $0xf9] sm:$0xff] }
 0x19b   :  { %2837 = vmatprep.mubr.bf16.mxu0 %v1206_v51  ;;  %v799_v51 = vld [vmem:[#allocation2 + $0x270] sm:$0xff] }
 0x19c   :  { %v5912_v40 = vpack.c.bf16 %v800_v45, %v799_v51  ;;  %v1161_v51 = vld [vmem:[#allocation2 + $0x141] sm:$0xff] }
 0x1a1   :  { %2388 = vmatmul.mubr.bf16.gmra.mrb[80].mxu1 %v5724_v16  ;;  %v1054_v16 = vld [vmem:[#allocation2 + $0xc0] sm:$0xff] }
 0x1a2   :  { %2838 = vmatmul.mubr.bf16.gmra.mrb[16].mxu0 %v1110_v5  ;;  %2395 = vmatprep.mubr.bf16.mxu1 %v5904_v21  ;;  %v1112_v29 = vpack.c.bf16 %v1055_v11, %v1054_v16  ;;  %v802_v5 = vld [vmem:[#allocation2 + $0x290] sm:$0xff]  ;;  %v1160_v11 = vld [vmem:[#allocation2 + $0x139] sm:$0xff] }
 0x1a3   :  { %2845 = vmatprep.mubr.bf16.mxu0 %v1207_v46  ;;  %v1154_v46 = vld [vmem:[#allocation2 + $0xf1] sm:$0xff]  ;;  %v1159_v16 = vld [vmem:[#allocation2 + $0x129] sm:$0xff]  ;;  %v1213_v45 = vpack.c.bf16 %v1161_v51, %v1160_v11  ;;  %v1175_v11 = vld [vmem:[#allocation2 + $0x219] sm:$0xff] }
 0x1a4   :  { %v1210_v14 = vpack.c.bf16 %v1155_v27, %v1154_v46  ;;  %v1237_v46 = vld [vmem:[#allocation2 + $0x52] sm:$0xff]  ;;  %v1239_v27 = vld [vmem:[#allocation2 + $0x6a] sm:$0xff] }
 0x1a9   :  { %2396 = vmatmul.mubr.bf16.gmra.mrb[84].mxu1 %v5737_v18  ;;  %v801_v18 = vld [vmem:[#allocation2 + $0x288] sm:$0xff] }
 0x1aa   :  { %2846 = vmatmul.mubr.bf16.gmra.mrb[20].mxu0 %v1111_v7  ;;  %2403 = vmatprep.mubr.bf16.mxu1 %v5908_v59  ;;  %v5916_v4 = vpack.c.bf16 %v802_v5, %v801_v18 }
 0x1ab   :  { %2853 = vmatprep.mubr.bf16.mxu0 %v1208_v31  ;;  %v1211_v31 = vpack.c.bf16 %v1157_v57, %v1156_v17 }
 0x1b1   :  { %2404 = vmatmul.mubr.bf16.gmra.mrb[88].mxu1 %v5751_v49  ;;  %v804_v49 = vld [vmem:[#allocation2 + $0x2a8] sm:$0xff] }
 0x1b2   :  { %2854 = vmatmul.mubr.bf16.gmra.mrb[24].mxu0 %v1112_v29  ;;  %2411 = vmatprep.mubr.bf16.mxu1 %v5912_v40  ;;  %v5921_v7 = vpack.c.bf16 %v804_v49, %v803_v60  ;;  %v1171_v29 = vld [vmem:[#allocation2 + $0x1e9] sm:$0xff]  ;;  %v1173_v60 = vld [vmem:[#allocation2 + $0x201] sm:$0xff] }
 0x1b3   :  { %2861 = vmatprep.mubr.bf16.mxu0 %v1209_v6 }
 0x1b9   :  { %2412 = vmatmul.mubr.bf16.gmra.mrb[92].mxu1 %v5765_v62  ;;  %v1158_v62 = vld [vmem:[#allocation2 + $0x121] sm:$0xff] }
 0x1ba   :  { %2862 = vmatmul.mubr.bf16.gmra.mrb[28].mxu0 %v5791_v56  ;;  %2419 = vmatprep.mubr.bf16.mxu1 %v5916_v4  ;;  %v1212_v56 = vpack.c.bf16 %v1159_v16, %v1158_v62  ;;  %v1241_v62 = vld [vmem:[#allocation2 + $0x82] sm:$0xff]  ;;  %v1243_v16 = vld [vmem:[#allocation2 + $0x9a] sm:$0xff] }
 0x1bb   :  { %2869 = vmatprep.mubr.bf16.mxu0 %v1210_v14  ;;  %v1172_v14 = vld [vmem:[#allocation2 + $0x1f9] sm:$0xff] }
 0x1bc   :  { %v1219_v57 = vpack.c.bf16 %v1173_v60, %v1172_v14 }
 0x1c1   :  { %2420 = vmatmul.mubr.bf16.gmra.mrb[96].mxu1 %v5779_v13  ;;  %v1162_v13 = vld [vmem:[#allocation2 + $0x151] sm:$0xff] }
 0x1c2   :  { %2870 = vmatmul.mubr.bf16.gmra.mrb[32].mxu0 %v5803_v28  ;;  %2427 = vmatprep.mubr.bf16.mxu1 %v5921_v7  ;;  %v1163_v28 = vld [vmem:[#allocation2 + $0x159] sm:$0xff] }
 0x1c3   :  { %2877 = vmatprep.mubr.bf16.mxu0 %v1211_v31  ;;  %v1214_v3 = vpack.c.bf16 %v1163_v28, %v1162_v13  ;;  %v1240_v31 = vld [vmem:[#allocation2 + $0x7a] sm:$0xff]  ;;  %v1244_v28 = vld [vmem:[#allocation2 + $0xaa] sm:$0xff] }
 0x1c4   :  { %v1301_v51 = vpack.c.bf16 %v1241_v62, %v1240_v31  ;;  %v1258_v31 = vld [vmem:[#allocation2 + $0x152] sm:$0xff]  ;;  %v1259_v62 = vld [vmem:[#allocation2 + $0x15a] sm:$0xff] }
 0x1c9   :  { %2428 = vmatmul.mubr.bf16.gmra.mrb[100].mxu1 %v5793_v47  ;;  %v1165_v47 = vld [vmem:[#allocation2 + $0x171] sm:$0xff] }
 0x1ca   :  { %2878 = vmatmul.mubr.bf16.gmra.mrb[36].mxu0 %v5824_v19  ;;  %2435 = vmatprep.mubr.bf16.mxu1 %v5731_v24  ;;  %v1164_v24 = vld [vmem:[#allocation2 + $0x169] sm:$0xff] }
 0x1cb   :  { %2885 = vmatprep.mubr.bf16.mxu0 %v1212_v56  ;;  %v1215_v19 = vpack.c.bf16 %v1165_v47, %v1164_v24  ;;  %v1174_v56 = vld [vmem:[#allocation2 + $0x211] sm:$0xff]  ;;  %v1246_v24 = vld [vmem:[#allocation2 + $0xc2] sm:$0xff] }
 0x1cc   :  { %v1220_v13 = vpack.c.bf16 %v1175_v11, %v1174_v56  ;;  %v1176_v47 = vld [vmem:[#allocation2 + $0x229] sm:$0xff]  ;;  %v1183_v56 = vld [vmem:[#allocation2 + $0x279] sm:$0xff] }
 0x1d1   :  { %2436 = vmatmul.mubr.bf16.gmra.mrb[104].mxu1 %v5805_v34  ;;  %v1167_v34 = vld [vmem:[#allocation2 + $0x189] sm:$0xff] }
 0x1d2   :  { %2886 = vmatmul.mubr.bf16.gmra.mrb[40].mxu0 %v5842_v63  ;;  %2443 = vmatprep.mubr.bf16.mxu1 %v5745_v15  ;;  %v1166_v15 = vld [vmem:[#allocation2 + $0x181] sm:$0xff] }
 0x1d3   :  { %2893 = vmatprep.mubr.bf16.mxu0 %v1213_v45  ;;  %v1216_v63 = vpack.c.bf16 %v1167_v34, %v1166_v15 }
 0x1d9   :  { %2444 = vmatmul.mubr.bf16.gmra.mrb[108].mxu1 %v5826_v35  ;;  %v816_v35 = vld [vmem:[#allocation2 + $0x338] sm:$0xff] }
 0x1da   :  { %2894 = vmatmul.mubr.bf16.gmra.mrb[44].mxu0 %v5856_v30  ;;  %2451 = vmatprep.mubr.bf16.mxu1 %v5759_v54  ;;  %v815_v54 = vld [vmem:[#allocation2 + $0x330] sm:$0xff]  ;;  %v1168_v30 = vld [vmem:[#allocation2 + $0x199] sm:$0xff] }
 0x1db   :  { %2901 = vmatprep.mubr.bf16.mxu0 %v1214_v3  ;;  %v1245_v3 = vld [vmem:[#allocation2 + $0xb2] sm:$0xff] }
 0x1dc   :  { %v1303_v15 = vpack.c.bf16 %v1245_v3, %v1244_v28 }
 0x1e1   :  { %2452 = vmatmul.mubr.bf16.gmra.mrb[112].mxu1 %v5844_v2  ;;  %v5941_v2 = vpack.c.bf16 %v816_v35, %v815_v54  ;;  %v1250_v54 = vld [vmem:[#allocation2 + $0xf2] sm:$0xff]  ;;  %v1251_v35 = vld [vmem:[#allocation2 + $0xfa] sm:$0xff] }
 0x1e2   :  { %2902 = vmatmul.mubr.bf16.gmra.mrb[48].mxu0 %v5864_v12  ;;  %2459 = vmatprep.mubr.bf16.mxu1 %v5773_v0  ;;  %v1217_v12 = vpack.c.bf16 %v1169_v43, %v1168_v30  ;;  %v1234_v0 = vld [vmem:[#allocation2 + $0x32] sm:$0xff]  ;;  %v1179_v43 = vld [vmem:[#allocation2 + $0x249] sm:$0xff] }
 0x1e3   :  { %2909 = vmatprep.mubr.bf16.mxu0 %v1215_v19  ;;  %v1177_v19 = vld [vmem:[#allocation2 + $0x231] sm:$0xff] }
 0x1e9   :  { %2460 = vmatmul.mubr.bf16.gmra.mrb[116].mxu1 %v5858_v32  ;;  %v1235_v32 = vld [vmem:[#allocation2 + $0x3a] sm:$0xff] }
 0x1ea   :  { %2910 = vmatmul.mubr.bf16.gmra.mrb[52].mxu0 %v5872_v8  ;;  %2467 = vmatprep.mubr.bf16.mxu1 %v5787_v33  ;;  %v1170_v8 = vld [vmem:[#allocation2 + $0x1e1] sm:$0xff]  ;;  %v1298_v18 = vpack.c.bf16 %v1235_v32, %v1234_v0  ;;  %v1306_v32 = vpack.c.bf16 %v1251_v35, %v1250_v54 }
 0x1eb   :  { %2917 = vmatprep.mubr.bf16.mxu0 %v1216_v63  ;;  %v4743_v33 = vld [vmem:[#allocation2] sm:$0xff]  ;;  %v1218_v5 = vpack.c.bf16 %v1171_v29, %v1170_v8  ;;  %v1221_v63 = vpack.c.bf16 %v1177_v19, %v1176_v47  ;;  %v1263_v47 = vld [vmem:[#allocation2 + $0x18a] sm:$0xff] }
 0x1ec   :  { %v5946_v6 = vpack.c.bf16 %v4743_v33, %v4743_v33  ;;  %v1253_v33 = vld [vmem:[#allocation2 + $0x112] sm:$0xff] }
 0x1f1   :  { %2468 = vmatmul.mubr.bf16.gmra.mrb[120].mxu1 %v5866_v52  ;;  %v1236_v52 = vld [vmem:[#allocation2 + $0x4a] sm:$0xff] }
 0x1f2   :  { %2918 = vmatmul.mubr.bf16.gmra.mrb[56].mxu0 %v5883_v61  ;;  %2475 = vmatprep.mubr.bf16.mxu1 %v5941_v2  ;;  %v1238_v61 = vld [vmem:[#allocation2 + $0x62] sm:$0xff]  ;;  %v1299_v49 = vpack.c.bf16 %v1237_v46, %v1236_v52  ;;  %v1180_v46 = vld [vmem:[#allocation2 + $0x259] sm:$0xff] }
 0x1f3   :  { %2925 = vmatprep.mubr.bf16.mxu0 %v1217_v12  ;;  %v1300_v17 = vpack.c.bf16 %v1239_v27, %v1238_v61  ;;  %v1181_v61 = vld [vmem:[#allocation2 + $0x261] sm:$0xff] }
 0x1f9   :  { %2476 = vmatmul.mubr.bf16.gmra.mrb[124].mxu1 %v5874_v48  ;;  %v1242_v48 = vld [vmem:[#allocation2 + $0x92] sm:$0xff] }
 0x1fa   :  { %2926 = vmatmul.mubr.bf16.gmra.mrb[60].mxu0 %v5946_v6  ;;  %4251 = vmatprep.mubr.bf16.mxu1 %v1298_v18  ;;  %v1302_v45 = vpack.c.bf16 %v1243_v16, %v1242_v48  ;;  %v1254_v18 = vld [vmem:[#allocation2 + $0x122] sm:$0xff]  ;;  %v1182_v16 = vld [vmem:[#allocation2 + $0x271] sm:$0xff] }
 0x1fb   :  { %2933 = vmatprep.mubr.bf16.mxu0 %v1218_v5  ;;  %v1255_v5 = vld [vmem:[#allocation2 + $0x12a] sm:$0xff]  ;;  %v1224_v3 = vpack.c.bf16 %v1183_v56, %v1182_v16 }
 0x201   :  { %4252 = vmatmul.mubr.bf16.vlgmr.msra.gmra.mrb[128].mxu1 %v1299_v49  ;;  %v1308_v49 = vpack.c.bf16 %v1255_v5, %v1254_v18  ;;  %v1187_v18 = vld [vmem:[#allocation2 + $0x2a9] sm:$0xff] }
 0x202   :  { %2934 = vmatmul.mubr.bf16.gmra.mrb[64].mxu0 %v5889_v9  ;;  %4255 = vmatprep.mubr.bf16.mxu1 %v1300_v17  ;;  %v1247_v9 = vld [vmem:[#allocation2 + $0xca] sm:$0xff] }
 0x203   :  { %2941 = vmatprep.mubr.bf16.mxu0 %v1219_v57  ;;  %v1304_v34 = vpack.c.bf16 %v1247_v9, %v1246_v24  ;;  %v1223_v57 = vpack.c.bf16 %v1181_v61, %v1180_v46  ;;  %v1261_v24 = vld [vmem:[#allocation2 + $0x172] sm:$0xff]  ;;  %v1262_v9 = vld [vmem:[#allocation2 + $0x182] sm:$0xff] }
 0x209   :  { %4256 = vmatmul.mubr.bf16.gmra.mrb[132].mxu1 %v1301_v51 }
 0x20a   :  { %2942 = vmatmul.mubr.bf16.gmra.mrb[68].mxu0 %v5892_v25  ;;  %4259 = vmatprep.mubr.bf16.mxu1 %v1302_v45  ;;  %v1178_v25 = vld [vmem:[#allocation2 + $0x241] sm:$0xff] }
 0x20b   :  { %2949 = vmatprep.mubr.bf16.mxu0 %v1220_v13  ;;  %v1222_v29 = vpack.c.bf16 %v1179_v43, %v1178_v25  ;;  %v1310_v13 = vpack.c.bf16 %v1259_v62, %v1258_v31  ;;  %v1312_v25 = vpack.c.bf16 %v1263_v47, %v1262_v9  ;;  %v1188_v31 = vld [vmem:[#allocation2 + $0x2b9] sm:$0xff]  ;;  %v1189_v62 = vld [vmem:[#allocation2 + $0x2c1] sm:$0xff]  ;;  %v1275_v47 = vld [vmem:[#allocation2 + $0x24a] sm:$0xff] }
 0x20c   :  { %v1274_v9 = vld [vmem:[#allocation2 + $0x242] sm:$0xff] }
 0x211   :  { %4260 = vmatmul.mubr.bf16.gmra.mrb[136].mxu1 %v1303_v15  ;;  %v1184_v15 = vld [vmem:[#allocation2 + $0x289] sm:$0xff] }
 0x212   :  { %2950 = vmatmul.mubr.bf16.gmra.mrb[72].mxu0 %v5896_v1  ;;  %4263 = vmatprep.mubr.bf16.mxu1 %v1304_v34  ;;  %v1252_v1 = vld [vmem:[#allocation2 + $0x10a] sm:$0xff] }
 0x213   :  { %2957 = vmatprep.mubr.bf16.mxu0 %v1221_v63  ;;  %v1307_v14 = vpack.c.bf16 %v1253_v33, %v1252_v1  ;;  %v1185_v34 = vld [vmem:[#allocation2 + $0x291] sm:$0xff]  ;;  %v1186_v33 = vld [vmem:[#allocation2 + $0x2a1] sm:$0xff] }
 0x214   :  { %v5953_v30 = vpop.f32.mrb[32].mxu1 }
 0x215   :  { %v2295_v12 = vpop.f32.mrb[33].mxu1 }
 0x216   :  { %v5955_v0 = vpop.f32.mrb[34].mxu1  ;;  %v1225_v12 = vpack.c.bf16 %v1185_v34, %v1184_v15  ;;  %v1190_v34 = vld [vmem:[#allocation2 + $0x2d1] sm:$0xff] }
 0x217   :  { %v2298_v8 = vpop.f32.mrb[35].mxu1 }
 0x218   :  { %v1266_v8 = vld [vmem:[#allocation2 + $0x1e2] sm:$0xff] }
 0x219   :  { %4264 = vmatmul.mubr.bf16.gmra.mrb[140].mxu1 %v5820_v44  ;;  %v1256_v44 = vld [vmem:[#allocation2 + $0x13a] sm:$0xff] }
 0x21a   :  { %2958 = vmatmul.mubr.bf16.gmra.mrb[76].mxu0 %v5900_v39  ;;  %4267 = vmatprep.mubr.bf16.mxu1 %v1306_v32  ;;  %v1257_v39 = vld [vmem:[#allocation2 + $0x142] sm:$0xff] }
 0x21b   :  { %2965 = vmatprep.mubr.bf16.mxu0 %v1222_v29  ;;  %v1309_v51 = vpack.c.bf16 %v1257_v39, %v1256_v44  ;;  %v1265_v32 = vld [vmem:[#allocation2 + $0x1a2] sm:$0xff]  ;;  %v1267_v29 = vld [vmem:[#allocation2 + $0x1ea] sm:$0xff]  ;;  %v1271_v44 = vld [vmem:[#allocation2 + $0x21a] sm:$0xff] }
 0x21c   :  { %v5959_v52 = vpop.f32.mrb[36].mxu1 }
 0x21d   :  { %v2303_v27 = vpop.f32.mrb[37].mxu1 }
 0x21e   :  { %v5961_v60 = vpop.f32.mrb[38].mxu1  ;;  %v1314_v27 = vpack.c.bf16 %v1267_v29, %v1266_v8  ;;  %v1094_v8 = vld [vmem:[#allocation2 + $0x2d0] sm:$0xff]  ;;  %v1276_v29 = vld [vmem:[#allocation2 + $0x25a] sm:$0xff] }
 0x21f   :  { %v2306_v17 = vpop.f32.mrb[39].mxu1 }
 0x220   :  { %v1269_v17 = vld [vmem:[#allocation2 + $0x202] sm:$0xff] }
 0x221   :  { %4268 = vmatmul.mubr.bf16.gmra.mrb[144].mxu1 %v1307_v14 }
 0x222   :  { %2966 = vmatmul.mubr.bf16.gmra.mrb[80].mxu0 %v5904_v21  ;;  %4271 = vmatprep.mubr.bf16.mxu1 %v1308_v49  ;;  %v1260_v21 = vld [vmem:[#allocation2 + $0x16a] sm:$0xff]  ;;  %v1226_v49 = vpack.c.bf16 %v1187_v18, %v1186_v33  ;;  %v1277_v33 = vld [vmem:[#allocation2 + $0x262] sm:$0xff]  ;;  %v1095_v18 = vld [vmem:[#allocation2 + $0x2d8] sm:$0xff] }
 0x223   :  { %2973 = vmatprep.mubr.bf16.mxu0 %v1223_v57  ;;  %v1311_v54 = vpack.c.bf16 %v1261_v24, %v1260_v21  ;;  %v1270_v57 = vld [vmem:[#allocation2 + $0x212] sm:$0xff]  ;;  %v1093_v24 = vld [vmem:[#allocation2 + $0x2c0] sm:$0xff] }
 0x224   :  { %v5964_v48 = vpop.f32.mrb[40].mxu1  ;;  %v1273_v21 = vld [vmem:[#allocation2 + $0x232] sm:$0xff] }
 0x225   :  { %v2311_v11 = vpop.f32.mrb[41].mxu1 }
 0x226   :  { %v5966_v45 = vpop.f32.mrb[42].mxu1 }
 0x227   :  { %v2314_v28 = vpop.f32.mrb[43].mxu1 }
 0x228   :  { %v1227_v28 = vpack.c.bf16 %v1189_v62, %v1188_v31 }
 0x229   :  { %4272 = vmatmul.mubr.bf16.gmra.mrb[148].mxu1 %v1309_v51  ;;  %v1316_v51 = vpack.c.bf16 %v1271_v44, %v1270_v57  ;;  %v1132_v44 = vpack.c.bf16 %v1095_v18, %v1094_v8 }
 0x22a   :  { %2974 = vmatmul.mubr.bf16.gmra.mrb[84].mxu0 %v5908_v59  ;;  %4275 = vmatprep.mubr.bf16.mxu1 %v1310_v13  ;;  %v1264_v59 = vld [vmem:[#allocation2 + $0x19a] sm:$0xff] }
 0x22b   :  { %2981 = vmatprep.mubr.bf16.mxu0 %v1224_v3  ;;  %v1313_v46 = vpack.c.bf16 %v1265_v32, %v1264_v59  ;;  %v1272_v3 = vld [vmem:[#allocation2 + $0x22a] sm:$0xff]  ;;  %v1318_v59 = vpack.c.bf16 %v1275_v47, %v1274_v9 }
 0x22c   :  { %v5969_v19 = vpop.f32.mrb[44].mxu1  ;;  %v1195_v9 = vld [vmem:[#allocation2 + $0x309] sm:$0xff] }
 0x22d   :  { %v2319_v63 = vpop.f32.mrb[45].mxu1 }
 0x22e   :  { %v5971_v35 = vpop.f32.mrb[46].mxu1  ;;  %v1191_v63 = vld [vmem:[#allocation2 + $0x2d9] sm:$0xff] }
 0x22f   :  { %v2322_v43 = vpop.f32.mrb[47].mxu1 }
 0x231   :  { %4276 = vmatmul.mubr.bf16.gmra.mrb[152].mxu1 %v1311_v54 }
 0x232   :  { %2982 = vmatmul.mubr.bf16.gmra.mrb[88].mxu0 %v5912_v40  ;;  %4279 = vmatprep.mubr.bf16.mxu1 %v1312_v25  ;;  %v1268_v40 = vld [vmem:[#allocation2 + $0x1fa] sm:$0xff]  ;;  %v1317_v25 = vpack.c.bf16 %v1273_v21, %v1272_v3  ;;  %v1283_v3 = vld [vmem:[#allocation2 + $0x2aa] sm:$0xff] }
 0x233   :  { %2989 = vmatprep.mubr.bf16.mxu0 %v1225_v12  ;;  %v1315_v56 = vpack.c.bf16 %v1269_v17, %v1268_v40  ;;  %v1319_v17 = vpack.c.bf16 %v1277_v33, %v1276_v29 }
 0x234   :  { %v5974_v1 = vpop.f32.mrb[48].mxu1 }
 0x235   :  { %v2327_v5 = vpop.f32.mrb[49].mxu1 }
 0x236   :  { %v5976_v61 = vpop.f32.mrb[50].mxu1  ;;  %v1278_v5 = vld [vmem:[#allocation2 + $0x272] sm:$0xff] }
 0x237   :  { %v2330_v14 = vpop.f32.mrb[51].mxu1 }
 0x238   :  { %v1192_v14 = vld [vmem:[#allocation2 + $0x2e9] sm:$0xff] }
 0x239   :  { %4280 = vmatmul.mubr.bf16.gmra.mrb[156].mxu1 %v1313_v46  ;;  %v1279_v46 = vld [vmem:[#allocation2 + $0x27a] sm:$0xff] }
 0x23a   :  { %2990 = vmatmul.mubr.bf16.gmra.mrb[92].mxu0 %v5916_v4  ;;  %4283 = vmatprep.mubr.bf16.mxu1 %v1314_v27  ;;  %v1092_v4 = vld [vmem:[#allocation2 + $0x2b8] sm:$0xff]  ;;  %v1320_v31 = vpack.c.bf16 %v1279_v46, %v1278_v5  ;;  %v1098_v5 = vld [vmem:[#allocation2 + $0x300] sm:$0xff] }
 0x23b   :  { %2997 = vmatprep.mubr.bf16.mxu0 %v1226_v49  ;;  %v1131_v12 = vpack.c.bf16 %v1093_v24, %v1092_v4  ;;  %v1193_v49 = vld [vmem:[#allocation2 + $0x2f1] sm:$0xff]  ;;  %v1282_v4 = vld [vmem:[#allocation2 + $0x2a2] sm:$0xff]  ;;  %v1284_v46 = vld [vmem:[#allocation2 + $0x2ba] sm:$0xff] }
 0x23c   :  { %v5979_v39 = vpop.f32.mrb[52].mxu1  ;;  %v1194_v24 = vld [vmem:[#allocation2 + $0x301] sm:$0xff] }
 0x23d   :  { %v2335_v16 = vpop.f32.mrb[53].mxu1  ;;  %v1230_v29 = vpack.c.bf16 %v1195_v9, %v1194_v24 }
 0x23e   :  { %v5981_v11 = vpop.f32.mrb[54].mxu1  ;;  %v1229_v16 = vpack.c.bf16 %v1193_v49, %v1192_v14  ;;  %v1285_v14 = vld [vmem:[#allocation2 + $0x2c2] sm:$0xff]  ;;  %v1286_v49 = vld [vmem:[#allocation2 + $0x2d2] sm:$0xff] }
 0x23f   :  { %v2338_v13 = vpop.f32.mrb[55].mxu1 }
 0x240   :  { %v1281_v13 = vld [vmem:[#allocation2 + $0x292] sm:$0xff] }
 0x241   :  { %4284 = vmatmul.mubr.bf16.gmra.mrb[160].mxu1 %v1315_v56  ;;  %v1096_v56 = vld [vmem:[#allocation2 + $0x2e8] sm:$0xff] }
 0x242   :  { %2998 = vmatmul.mubr.bf16.gmra.mrb[96].mxu0 %v5921_v7  ;;  %4287 = vmatprep.mubr.bf16.mxu1 %v1316_v51  ;;  %v1228_v7 = vpack.c.bf16 %v1191_v63, %v1190_v34  ;;  %v1280_v51 = vld [vmem:[#allocation2 + $0x28a] sm:$0xff] }
 0x243   :  { %3005 = vmatprep.mubr.bf16.mxu0 %v1227_v28  ;;  %v1097_v28 = vld [vmem:[#allocation2 + $0x2f0] sm:$0xff]  ;;  %v1321_v63 = vpack.c.bf16 %v1281_v13, %v1280_v51 }
 0x244   :  { %v5984_v15 = vpop.f32.mrb[56].mxu1 }
 0x245   :  { %v2343_v54 = vpop.f32.mrb[57].mxu1 }
 0x246   :  { %v5986_v43 = vpop.f32.mrb[58].mxu1 }
 0x247   :  { %v2346_v32 = vpop.f32.mrb[59].mxu1 }
 0x248   :  { %v1322_v32 = vpack.c.bf16 %v1283_v3, %v1282_v4 }
 0x249   :  { %4288 = vmatmul.mubr.bf16.gmra.mrb[164].mxu1 %v1317_v25 }
 0x24a   :  { %3006 = vmatmul.mubr.bf16.gmra.mrb[100].mxu0 %v1131_v12  ;;  %4291 = vmatprep.mubr.bf16.mxu1 %v1318_v59  ;;  %v1133_v59 = vpack.c.bf16 %v1097_v28, %v1096_v56  ;;  %v1323_v56 = vpack.c.bf16 %v1285_v14, %v1284_v46 }
 0x24b   :  { %3013 = vmatprep.mubr.bf16.mxu0 %v1228_v7 }
 0x24c   :  { %v5988_v27 = vpop.f32.mrb[60].mxu1 }
 0x24d   :  { %v2351_v40 = vpop.f32.mrb[61].mxu1 }
 0x24e   :  { %v5990_v57 = vpop.f32.mrb[62].mxu1  ;;  %v1287_v40 = vld [vmem:[#allocation2 + $0x2da] sm:$0xff] }
 0x24f   :  { %v2354_v62 = vpop.f32.mrb[63].mxu1  ;;  %v1324_v4 = vpack.c.bf16 %v1287_v40, %v1286_v49 }
 0x251   :  { %4292 = vmatmul.mubr.bf16.gmra.mrb[168].mxu1 %v1319_v17 }
 0x252   :  { %3014 = vmatmul.mubr.bf16.gmra.mrb[104].mxu0 %v1132_v44  ;;  %4295 = vmatprep.mubr.bf16.mxu1 %v1320_v31  ;;  %v1196_v44 = vld [vmem:[#allocation2 + $0x319] sm:$0xff]  ;;  %v1197_v31 = vld [vmem:[#allocation2 + $0x321] sm:$0xff] }
 0x253   :  { %3021 = vmatprep.mubr.bf16.mxu0 %v1229_v16  ;;  %v1231_v9 = vpack.c.bf16 %v1197_v31, %v1196_v44 }
 0x254   :  { %v5992_v21 = vpop.f32.mrb[64].mxu1 }
 0x255   :  { %v2807_v47 = vpop.f32.mrb[0].mxu0  ;;  %v2359_v34 = vpop.f32.mrb[65].mxu1 }
 0x256   :  { %v5995_v54 = vadd.f32 %v2807_v47, %v5729_v22  ;;  %v2809_v25 = vpop.f32.mrb[1].mxu0  ;;  %v5997_v12 = vpop.f32.mrb[66].mxu1  ;;  %v1099_v22 = vld [vmem:[#allocation2 + $0x308] sm:$0xff] }
 0x257   :  { %v2810_v7 = vpop.f32.mrb[2].mxu0  ;;  %v2362_v8 = vpop.f32.mrb[67].mxu1  ;;  %v1134_v28 = vpack.c.bf16 %v1099_v22, %v1098_v5  ;;  %v1288_v25 = vld [vmem:[#allocation2 + $0x2ea] sm:$0xff] }
 0x258   :  { %v6000_v33 = vadd.f32 %v2810_v7, %v5733_v55  ;;  %v2812_v18 = vpop.f32.mrb[3].mxu0  ;;  %v1291_v7 = vld [vmem:[#allocation2 + $0x30a] sm:$0xff] }
 0x259   :  { %4296 = vmatmul.mubr.bf16.gmra.mrb[172].mxu1 %v1321_v63  ;;  %v1100_v63 = vld [vmem:[#allocation2 + $0x318] sm:$0xff] }
 0x25a   :  { %3022 = vmatmul.mubr.bf16.gmra.mrb[108].mxu0 %v1133_v59  ;;  %4299 = vmatprep.mubr.bf16.mxu1 %v1322_v32  ;;  %v1289_v59 = vld [vmem:[#allocation2 + $0x2f2] sm:$0xff]  ;;  %v1290_v32 = vld [vmem:[#allocation2 + $0x302] sm:$0xff] }
 0x25b   :  { %3029 = vmatprep.mubr.bf16.mxu0 %v1230_v29  ;;  %v1198_v29 = vld [vmem:[#allocation2 + $0x331] sm:$0xff]  ;;  %v1199_v18 = vld [vmem:[#allocation2 + $0x339] sm:$0xff]  ;;  %v1325_v14 = vpack.c.bf16 %v1289_v59, %v1288_v25  ;;  %v1326_v44 = vpack.c.bf16 %v1291_v7, %v1290_v32 }
 0x25c   :  { %v6002_v17 = vpop.f32.mrb[68].mxu1 }
 0x25d   :  { %v2815_v62 = vpop.f32.mrb[4].mxu0  ;;  %v2367_v16 = vpop.f32.mrb[69].mxu1 }
 0x25e   :  { %v6005_v55 = vadd.f32 %v2815_v62, %v5743_v50  ;;  %v2817_v51 = vpop.f32.mrb[5].mxu0  ;;  %v6007_v13 = vpop.f32.mrb[70].mxu1  ;;  %v1101_v50 = vld [vmem:[#allocation2 + $0x320] sm:$0xff]  ;;  %v1232_v16 = vpack.c.bf16 %v1199_v18, %v1198_v29 }
 0x25f   :  { %v2818_v3 = vpop.f32.mrb[6].mxu0  ;;  %v2370_v24 = vpop.f32.mrb[71].mxu1  ;;  %v1135_v40 = vpack.c.bf16 %v1101_v50, %v1100_v63 }
 0x260   :  { %v6010_v47 = vadd.f32 %v2818_v3, %v5747_v41  ;;  %v2820_v34 = vpop.f32.mrb[7].mxu0  ;;  %v1295_v3 = vld [vmem:[#allocation2 + $0x33a] sm:$0xff] }
 0x261   :  { %4300 = vmatmul.mubr.bf16.gmra.mrb[176].mxu1 %v1323_v56  ;;  %v1201_v34 = vld [vmem:[#allocation2 + $0x351] sm:$0xff] }
 0x262   :  { %3030 = vmatmul.mubr.bf16.gmra.mrb[112].mxu0 %v1134_v28  ;;  %4303 = vmatprep.mubr.bf16.mxu1 %v1324_v4  ;;  %v1292_v28 = vld [vmem:[#allocation2 + $0x31a] sm:$0xff]  ;;  %v1293_v4 = vld [vmem:[#allocation2 + $0x322] sm:$0xff] }
 0x263   :  { %3037 = vmatprep.mubr.bf16.mxu0 %v1231_v9  ;;  %v1200_v9 = vld [vmem:[#allocation2 + $0x349] sm:$0xff]  ;;  %v1327_v59 = vpack.c.bf16 %v1293_v4, %v1292_v28 }
 0x264   :  { %v6012_v8 = vpop.f32.mrb[72].mxu1 }
 0x265   :  { %v2823_v5 = vpop.f32.mrb[8].mxu0  ;;  %v2375_v46 = vpop.f32.mrb[73].mxu1 }
 0x266   :  { %v6015_v41 = vadd.f32 %v2823_v5, %v5757_v38  ;;  %v2825_v22 = vpop.f32.mrb[9].mxu0  ;;  %v6017_v49 = vpop.f32.mrb[74].mxu1  ;;  %v1294_v38 = vld [vmem:[#allocation2 + $0x332] sm:$0xff]  ;;  %v1233_v5 = vpack.c.bf16 %v1201_v34, %v1200_v9 }
 0x267   :  { %v2826_v31 = vpop.f32.mrb[10].mxu0  ;;  %v2378_v62 = vpop.f32.mrb[75].mxu1  ;;  %v1328_v7 = vpack.c.bf16 %v1295_v3, %v1294_v38  ;;  %v1296_v22 = vld [vmem:[#allocation2 + $0x34a] sm:$0xff] }
 0x268   :  { %v6020_v56 = vadd.f32 %v2826_v31, %v5761_v23  ;;  %v2828_v51 = vpop.f32.mrb[11].mxu0 }
 0x269   :  { %4304 = vmatmul.mubr.bf16.gmra.mrb[180].mxu1 %v1325_v14 }
 0x26a   :  { %3038 = vmatmul.mubr.bf16.gmra.mrb[116].mxu0 %v1135_v40  ;;  %4307 = vmatprep.mubr.bf16.mxu1 %v1326_v44  ;;  %v1297_v40 = vld [vmem:[#allocation2 + $0x352] sm:$0xff] }
 0x26b   :  { %3045 = vmatprep.mubr.bf16.mxu0 %v1232_v16  ;;  %v1329_v62 = vpack.c.bf16 %v1297_v40, %v1296_v22 }
 0x26c   :  { %v6022_v24 = vpop.f32.mrb[76].mxu1 }
 0x26d   :  { %v2831_v63 = vpop.f32.mrb[12].mxu0  ;;  %v2383_v25 = vpop.f32.mrb[77].mxu1 }
 0x26e   :  { %v6025_v50 = vadd.f32 %v2831_v63, %v5771_v36  ;;  %v2833_v23 = vpop.f32.mrb[13].mxu0  ;;  %v6027_v32 = vpop.f32.mrb[78].mxu1 }
 0x26f   :  { %v2834_v29 = vpop.f32.mrb[14].mxu0  ;;  %v2386_v18 = vpop.f32.mrb[79].mxu1 }
 0x270   :  { %v6030_v46 = vadd.f32 %v2834_v29, %v5775_v20  ;;  %v2836_v14 = vpop.f32.mrb[15].mxu0 }
 0x271   :  { %4308 = vmatmul.mubr.bf16.gmra.mrb[184].mxu1 %v1327_v59 }
 0x272   :  { %3046 = vmatmul.mubr.bf16.gmra.mrb[120].mxu0 %v5941_v2  ;;  %4311 = vmatprep.mubr.bf16.mxu1 %v1328_v7 }
 0x273   :  { %3053 = vmatprep.mubr.bf16.mxu0 %v1233_v5 }
 0x274   :  { %v6033_v36 = vpop.f32.mrb[80].mxu1 }
 0x275   :  { %v2839_v44 = vpop.f32.mrb[16].mxu0  ;;  %v2391_v31 = vpop.f32.mrb[81].mxu1 }
 0x276   :  { %v6036_v16 = vadd.f32 %v2839_v44, %v5785_v37  ;;  %v2841_v51 = vpop.f32.mrb[17].mxu0  ;;  %v6038_v28 = vpop.f32.mrb[82].mxu1 }
 0x277   :  { %v2842_v20 = vpop.f32.mrb[18].mxu0  ;;  %v2394_v4 = vpop.f32.mrb[83].mxu1 }
 0x278   :  { %v6041_v38 = vadd.f32 %v2842_v20, %v5789_v26  ;;  %v2844_v2 = vpop.f32.mrb[19].mxu0  ;;  %v6656_v20 = vld [vmem:[#allocation3_spill] sm:$0xff] }
 0x279   :  { %4312 = vmatmul.mubr.bf16.gmra.mrb[188].mxu1 %v1329_v62 }
 0x27a   :  { %3054 = vmatmul.mubr.bf16.gmra.mrb[124].mxu0 %v5946_v6 }
 0x27c   :  { %v6044_v3 = vpop.f32.mrb[84].mxu1 }
 0x27d   :  { %v2847_v9 = vpop.f32.mrb[20].mxu0  ;;  %v2399_v34 = vpop.f32.mrb[85].mxu1 }
 0x27e   :  { %v6047_v63 = vadd.f32 %v2847_v9, %v5799_v53  ;;  %v2849_v37 = vpop.f32.mrb[21].mxu0  ;;  %v6049_v25 = vpop.f32.mrb[86].mxu1 }
 0x27f   :  { %v2850_v59 = vpop.f32.mrb[22].mxu0  ;;  %v2402_v23 = vpop.f32.mrb[87].mxu1  ;;  %v6658_v37 = vld [vmem:[#allocation4_spill] sm:$0xff] }
 0x280   :  { %v6052_v7 = vadd.f32 %v2850_v59, %v5801_v58  ;;  %v2852_v26 = vpop.f32.mrb[23].mxu0 }
 0x284   :  { %v6054_v29 = vpop.f32.mrb[88].mxu1 }
 0x285   :  { %v2855_v18 = vpop.f32.mrb[24].mxu0  ;;  %v2407_v6 = vpop.f32.mrb[89].mxu1 }
 0x286   :  { %v6057_v5 = vadd.f32 %v2855_v18, %v5818_v10  ;;  %v2857_v14 = vpop.f32.mrb[25].mxu0  ;;  %v6059_v22 = vpop.f32.mrb[90].mxu1 }
 0x287   :  { %v2858_v53 = vpop.f32.mrb[26].mxu0  ;;  %v2410_v40 = vpop.f32.mrb[91].mxu1 }
 0x288   :  { %v6062_v44 = vadd.f32 %v2858_v53, %v5822_v42  ;;  %v2860_v31 = vpop.f32.mrb[27].mxu0 }
 0x28c   :  { %v6064_v62 = vpop.f32.mrb[92].mxu1 }
 0x28d   :  { %v2863_v58 = vpop.f32.mrb[28].mxu0  ;;  %v2415_v51 = vpop.f32.mrb[93].mxu1 }
 0x28e   :  { %v6067_v4 = vadd.f32 %v2863_v58, %v6656_v20  ;;  %v2865_v2 = vpop.f32.mrb[29].mxu0  ;;  %v6069_v9 = vpop.f32.mrb[94].mxu1 }
 0x28f   :  { %6657 = vst [vmem:[#allocation3_spill] sm:$0xff] %v6069_v9  ;;  %v2866_v10 = vpop.f32.mrb[30].mxu0  ;;  %v2418_v34 = vpop.f32.mrb[95].mxu1 }
 0x290   :  { %v6072_v59 = vadd.f32 %v2866_v10, %v6658_v37  ;;  %v2868_v23 = vpop.f32.mrb[31].mxu0 }
 0x294   :  { %v6074_v26 = vpop.f32.mrb[96].mxu1 }
 0x295   :  { %6659 = vst [vmem:[#allocation4_spill] sm:$0xff] %v6074_v26  ;;  %v2871_v42 = vpop.f32.mrb[32].mxu0  ;;  %v2423_v18 = vpop.f32.mrb[97].mxu1 }
 0x296   :  { %v6077_v6 = vadd.f32 %v2871_v42, %v5953_v30  ;;  %v2873_v14 = vpop.f32.mrb[33].mxu0  ;;  %v6079_v53 = vpop.f32.mrb[98].mxu1 }
 0x297   :  { %6660 = vst [vmem:[#allocation5_spill] sm:$0xff] %v6079_v53  ;;  %v2874_v40 = vpop.f32.mrb[34].mxu0  ;;  %v2426_v31 = vpop.f32.mrb[99].mxu1 }
 0x298   :  { %v6082_v58 = vadd.f32 %v2874_v40, %v5955_v0  ;;  %v2876_v51 = vpop.f32.mrb[35].mxu0 }
 0x29c   :  { %v6084_v20 = vpop.f32.mrb[100].mxu1 }
 0x29d   :  { %6661 = vst [vmem:[#allocation6_spill] sm:$0xff] %v6084_v20  ;;  %v2879_v2 = vpop.f32.mrb[36].mxu0  ;;  %v2431_v10 = vpop.f32.mrb[101].mxu1 }
 0x29e   :  { %v6087_v34 = vadd.f32 %v2879_v2, %v5959_v52  ;;  %v2881_v37 = vpop.f32.mrb[37].mxu0  ;;  %v6089_v23 = vpop.f32.mrb[102].mxu1 }
 0x29f   :  { %6662 = vst [vmem:[#allocation7_spill] sm:$0xff] %v6089_v23  ;;  %v2882_v30 = vpop.f32.mrb[38].mxu0  ;;  %v2434_v42 = vpop.f32.mrb[103].mxu1 }
 0x2a0   :  { %v6092_v18 = vadd.f32 %v2882_v30, %v5961_v60  ;;  %v2884_v14 = vpop.f32.mrb[39].mxu0 }
 0x2a4   :  { %v6094_v31 = vpop.f32.mrb[104].mxu1 }
 0x2a5   :  { %6663 = vst [vmem:[#allocation8_spill] sm:$0xff] %v6094_v31  ;;  %v2887_v0 = vpop.f32.mrb[40].mxu0  ;;  %v2439_v40 = vpop.f32.mrb[105].mxu1 }
 0x2a6   :  { %v6097_v51 = vadd.f32 %v2887_v0, %v5964_v48  ;;  %v2889_v10 = vpop.f32.mrb[41].mxu0  ;;  %v6099_v20 = vpop.f32.mrb[106].mxu1 }
 0x2a7   :  { %6664 = vst [vmem:[#allocation9_spill] sm:$0xff] %v6099_v20  ;;  %v2890_v52 = vpop.f32.mrb[42].mxu0  ;;  %v2442_v2 = vpop.f32.mrb[107].mxu1 }
 0x2a8   :  { %v6102_v37 = vadd.f32 %v2890_v52, %v5966_v45  ;;  %v2892_v42 = vpop.f32.mrb[43].mxu0 }
 0x2ac   :  { %v6104_v23 = vpop.f32.mrb[108].mxu1 }
 0x2ad   :  { %6665 = vst [vmem:[#allocation10_spill] sm:$0xff] %v6104_v23  ;;  %v2895_v60 = vpop.f32.mrb[44].mxu0  ;;  %v2447_v30 = vpop.f32.mrb[109].mxu1 }
 0x2ae   :  { %v6107_v14 = vadd.f32 %v2895_v60, %v5969_v19  ;;  %v2897_v40 = vpop.f32.mrb[45].mxu0  ;;  %v6109_v31 = vpop.f32.mrb[110].mxu1 }
 0x2af   :  { %6666 = vst [vmem:[#allocation11_spill] sm:$0xff] %v6109_v31  ;;  %v2898_v48 = vpop.f32.mrb[46].mxu0  ;;  %v2450_v0 = vpop.f32.mrb[111].mxu1 }
 0x2b0   :  { %v6112_v10 = vadd.f32 %v2898_v48, %v5971_v35  ;;  %v2900_v2 = vpop.f32.mrb[47].mxu0 }
 0x2b4   :  { %v6114_v20 = vpop.f32.mrb[112].mxu1 }
 0x2b5   :  { %6667 = vst [vmem:[#allocation12_spill] sm:$0xff] %v6114_v20  ;;  %v2903_v45 = vpop.f32.mrb[48].mxu0  ;;  %v2455_v52 = vpop.f32.mrb[113].mxu1 }
 0x2b6   :  { %v6117_v42 = vadd.f32 %v2903_v45, %v5974_v1  ;;  %v2905_v30 = vpop.f32.mrb[49].mxu0  ;;  %v6119_v23 = vpop.f32.mrb[114].mxu1 }
 0x2b7   :  { %6668 = vst [vmem:[#allocation13_spill] sm:$0xff] %v6119_v23  ;;  %v2906_v19 = vpop.f32.mrb[50].mxu0  ;;  %v2458_v60 = vpop.f32.mrb[115].mxu1 }
 0x2b8   :  { %v6122_v40 = vadd.f32 %v2906_v19, %v5976_v61  ;;  %v2908_v0 = vpop.f32.mrb[51].mxu0 }
 0x2bc   :  { %v6124_v31 = vpop.f32.mrb[116].mxu1 }
 0x2bd   :  { %6669 = vst [vmem:[#allocation14_spill] sm:$0xff] %v6124_v31  ;;  %v2911_v35 = vpop.f32.mrb[52].mxu0  ;;  %v2463_v48 = vpop.f32.mrb[117].mxu1 }
 0x2be   :  { %v6127_v2 = vadd.f32 %v2911_v35, %v5979_v39  ;;  %v2913_v52 = vpop.f32.mrb[53].mxu0  ;;  %v6129_v20 = vpop.f32.mrb[118].mxu1 }
 0x2bf   :  { %6670 = vst [vmem:[#allocation15_spill] sm:$0xff] %v6129_v20  ;;  %v2914_v1 = vpop.f32.mrb[54].mxu0  ;;  %v2466_v45 = vpop.f32.mrb[119].mxu1 }
 0x2c0   :  { %v6132_v30 = vadd.f32 %v2914_v1, %v5981_v11  ;;  %v2916_v60 = vpop.f32.mrb[55].mxu0 }
 0x2c4   :  { %v6134_v23 = vpop.f32.mrb[120].mxu1 }
 0x2c5   :  { %6671 = vst [vmem:[#allocation16_spill] sm:$0xff] %v6134_v23  ;;  %v2919_v61 = vpop.f32.mrb[56].mxu0  ;;  %v2471_v19 = vpop.f32.mrb[121].mxu1 }
 0x2c6   :  { %v6137_v0 = vadd.f32 %v2919_v61, %v5984_v15  ;;  %v2921_v48 = vpop.f32.mrb[57].mxu0  ;;  %v6139_v31 = vpop.f32.mrb[122].mxu1 }
 0x2c7   :  { %6673 = vst [vmem:[#allocation18_spill] sm:$0xff] %v6139_v31  ;;  %v2922_v39 = vpop.f32.mrb[58].mxu0  ;;  %v2474_v35 = vpop.f32.mrb[123].mxu1 }
 0x2c8   :  { %6672 = vst [vmem:[#allocation17_spill] sm:$0xff] %v6137_v0  ;;  %v6142_v52 = vadd.f32 %v2922_v39, %v5986_v43  ;;  %v2924_v45 = vpop.f32.mrb[59].mxu0  ;;  %v4164_v43 = vld [vmem:[%s6652_s1 + $0x8] sm:$0xff]   ;;  %v4006_v39 = vld [vmem:[%s6652_s1] sm:$0xff]  }
 0x2c9   :  { %v4012_v26 = vunpack.c.h.bf16 %v4164_v43 }
 0x2ca   :  { %6674 = vst [vmem:[#allocation19_spill] sm:$0xff] %v6142_v52 }
 0x2cc   :  { %v6144_v20 = vpop.f32.mrb[124].mxu1 }
 0x2cd   :  { %6675 = vst [vmem:[#allocation20_spill] sm:$0xff] %v6144_v20  ;;  %v2927_v11 = vpop.f32.mrb[60].mxu0  ;;  %v2479_v1 = vpop.f32.mrb[125].mxu1 }
 0x2ce   :  { %v6147_v60 = vadd.f32 %v2927_v11, %v5988_v27  ;;  %v2929_v19 = vpop.f32.mrb[61].mxu0  ;;  %v6149_v23 = vpop.f32.mrb[126].mxu1 }
 0x2cf   :  { %6676 = vst [vmem:[#allocation21_spill] sm:$0xff] %v6149_v23  ;;  %v2930_v15 = vpop.f32.mrb[62].mxu0  ;;  %v2482_v61 = vpop.f32.mrb[127].mxu1 }
 0x2d0   :  { %v6152_v48 = vadd.f32 %v2930_v15, %v5990_v57  ;;  %v2932_v35 = vpop.f32.mrb[63].mxu0  ;;  %v4011_v61 = vunpack.c.l.bf16 %v4164_v43 }
 0x2d1   :  { %v4007_v35 = vunpack.c.l.bf16 %v4006_v39 }
 0x2d2   :  { %6677 = vst [vmem:[#allocation22_spill] sm:$0xff] %v6152_v48 }
 0x2d4   :  { %v4253_v45 = vpop.f32.mrb[128].mxu1 }
 0x2d5   :  { %v2935_v27 = vpop.f32.mrb[64].mxu0  ;;  %v3105_v11 = vadd.f32 %v6005_v55, %v4253_v45  ;;  %v3096_v1 = vpop.f32.mrb[129].mxu1 }
 0x2d6   :  { %v6162_v19 = vadd.f32 %v2935_v27, %v5992_v21  ;;  %v2937_v57 = vpop.f32.mrb[65].mxu0  ;;  %v3097_v15 = vadd.f32 %v5995_v54, %v3096_v1  ;;  %v4254_v23 = vpop.f32.mrb[130].mxu1  ;;  %v4008_v1 = vunpack.c.h.bf16 %v4006_v39 }
 0x2d7   :  { %vm3353_vm1 = vcmp.ge.f32.partialorder %v3105_v11, 0.0  ;;  %v3417_v20 = vmul.f32 0.01, %v3105_v11  ;;  %v2938_v31 = vpop.f32.mrb[66].mxu0  ;;  %v3108_v53 = vadd.f32 %v6010_v47, %v4254_v23  ;;  %v3099_v52 = vpop.f32.mrb[131].mxu1  ;;  %v4166_v23 = vld [vmem:[%s6652_s1 + $0x18] sm:$0xff]  }
 0x2d8   :  { %6678 = vst [vmem:[#allocation23_spill] sm:$0xff] %v6162_v19  ;;  %vm3351_vm2 = vcmp.ge.f32.partialorder %v3097_v15, 0.0  ;;  %v3415_v9 = vmul.f32 0.01, %v3097_v15  ;;  %v6167_v55 = vadd.f32 %v2938_v31, %v5997_v12  ;;  %v2940_v21 = vpop.f32.mrb[67].mxu0  ;;  %v3100_v45 = vadd.f32 %v6000_v33, %v3099_v52  ;;  %v4165_v12 = vld [vmem:[%s6652_s1 + $0x10] sm:$0xff]  }
 0x2d9   :  { %v3481_v27 = vsel %vm3353_vm1, %v3105_v11, %v3417_v20  ;;  %vm3354_vm3 = vcmp.ge.f32.partialorder %v3108_v53, 0.0  ;;  %v3418_v54 = vmul.f32 0.01, %v3108_v53 }
 0x2da   :  { %v3673_v57 = vadd.f32 %v4011_v61, %v3481_v27  ;;  %v3479_v19 = vsel %vm3351_vm2, %v3097_v15, %v3415_v9  ;;  %vm3352_vm4 = vcmp.ge.f32.partialorder %v3100_v45, 0.0  ;;  %v3416_v48 = vmul.f32 0.01, %v3100_v45 }
 0x2db   :  { %v3671_v0 = vadd.f32 %v4007_v35, %v3479_v19  ;;  %v3482_v47 = vsel %vm3354_vm3, %v3108_v53, %v3418_v54  ;;  %v4015_v19 = vunpack.c.l.bf16 %v4165_v12  ;;  %v4020_v35 = vunpack.c.h.bf16 %v4166_v23 }
 0x2dc   :  { %3737 = vst.msk [vmem:[%s6653_s5 + $0x10] sm:$0xff] %vm400_vm0, %v3673_v57  ;;  %v3674_v33 = vadd.f32 %v4012_v26, %v3482_v47  ;;  %v3480_v20 = vsel %vm3352_vm4, %v3100_v45, %v3416_v48  ;;  %v4257_v9 = vpop.f32.mrb[132].mxu1  ;;  %v4019_v26 = vunpack.c.l.bf16 %v4166_v23  ;;  %v4016_v57 = vunpack.c.h.bf16 %v4165_v12  ;;  %v4168_v23 = vld [vmem:[%s6652_s1 + $0x28] sm:$0xff]  }
 0x2dd   :  { %3735 = vst.msk [vmem:[%s6653_s5] sm:$0xff] %vm400_vm0, %v3671_v0  ;;  %v3672_v53 = vadd.f32 %v4008_v1, %v3480_v20  ;;  %v2943_v31 = vpop.f32.mrb[68].mxu0  ;;  %v3121_v52 = vadd.f32 %v6025_v50, %v4257_v9  ;;  %v3112_v43 = vpop.f32.mrb[133].mxu1 }
 0x2de   :  { %3738 = vst.msk [vmem:[%s6653_s5 + $0x18] sm:$0xff] %vm400_vm0, %v3674_v33  ;;  %v6190_v39 = vadd.f32 %v2943_v31, %v6002_v17  ;;  %v2945_v48 = vpop.f32.mrb[69].mxu0  ;;  %v3113_v11 = vadd.f32 %v6015_v41, %v3112_v43  ;;  %v4258_v61 = vpop.f32.mrb[134].mxu1 }
 0x2df   :  { %3736 = vst.msk [vmem:[%s6653_s5 + $0x8] sm:$0xff] %vm400_vm0, %v3672_v53  ;;  %vm3357_vm5 = vcmp.ge.f32.partialorder %v3121_v52, 0.0  ;;  %v3421_v50 = vmul.f32 0.01, %v3121_v52  ;;  %v2946_v0 = vpop.f32.mrb[70].mxu0  ;;  %v3124_v15 = vadd.f32 %v6030_v46, %v4258_v61  ;;  %v3115_v21 = vpop.f32.mrb[135].mxu1 }
 0x2e0   :  { %vm3355_vm6 = vcmp.ge.f32.partialorder %v3113_v11, 0.0  ;;  %v3419_v17 = vmul.f32 0.01, %v3113_v11  ;;  %v6199_v45 = vadd.f32 %v2946_v0, %v6007_v13  ;;  %v2948_v41 = vpop.f32.mrb[71].mxu0  ;;  %v3116_v27 = vadd.f32 %v6020_v56, %v3115_v21  ;;  %v4167_v13 = vld [vmem:[%s6652_s1 + $0x20] sm:$0xff]  }
 0x2e1   :  { %v3485_v54 = vsel %vm3357_vm5, %v3121_v52, %v3421_v50  ;;  %vm3358_vm7 = vcmp.ge.f32.partialorder %v3124_v15, 0.0  ;;  %v3422_v1 = vmul.f32 0.01, %v3124_v15  ;;  %v4023_v50 = vunpack.c.l.bf16 %v4167_v13 }
 0x2e2   :  { %v3677_v47 = vadd.f32 %v4019_v26, %v3485_v54  ;;  %v3483_v33 = vsel %vm3355_vm6, %v3113_v11, %v3419_v17  ;;  %vm3356_vm8 = vcmp.ge.f32.partialorder %v3116_v27, 0.0  ;;  %v3420_v20 = vmul.f32 0.01, %v3116_v27 }
 0x2e3   :  { %v3675_v9 = vadd.f32 %v4015_v19, %v3483_v33  ;;  %v3486_v46 = vsel %vm3358_vm7, %v3124_v15, %v3422_v1  ;;  %v4027_v11 = vunpack.c.l.bf16 %v4168_v23  ;;  %v4028_v21 = vunpack.c.h.bf16 %v4168_v23 }
 0x2e4   :  { %3741 = vst.msk [vmem:[%s6653_s5 + $0x30] sm:$0xff] %vm400_vm0, %v3677_v47  ;;  %v3678_v56 = vadd.f32 %v4020_v35, %v3486_v46  ;;  %v3484_v12 = vsel %vm3356_vm8, %v3116_v27, %v3420_v20  ;;  %v4261_v53 = vpop.f32.mrb[136].mxu1  ;;  %v4170_v46 = vld [vmem:[%s6652_s1 + $0x38] sm:$0xff]  }
 0x2e5   :  { %3739 = vst.msk [vmem:[%s6653_s5 + $0x20] sm:$0xff] %vm400_vm0, %v3675_v9  ;;  %v3676_v31 = vadd.f32 %v4016_v57, %v3484_v12  ;;  %v2951_v52 = vpop.f32.mrb[72].mxu0  ;;  %v3137_v43 = vadd.f32 %v6047_v63, %v4261_v53  ;;  %v3128_v26 = vpop.f32.mrb[137].mxu1  ;;  %v4024_v57 = vunpack.c.h.bf16 %v4167_v13 }
 0x2e6   :  { %3742 = vst.msk [vmem:[%s6653_s5 + $0x38] sm:$0xff] %vm400_vm0, %v3678_v56  ;;  %v6222_v48 = vadd.f32 %v2951_v52, %v6012_v8  ;;  %v2953_v19 = vpop.f32.mrb[73].mxu0  ;;  %v3129_v61 = vadd.f32 %v6036_v16, %v3128_v26  ;;  %v4262_v0 = vpop.f32.mrb[138].mxu1 }
 0x2e7   :  { %3740 = vst.msk [vmem:[%s6653_s5 + $0x28] sm:$0xff] %vm400_vm0, %v3676_v31  ;;  %vm3361_vm9 = vcmp.ge.f32.partialorder %v3137_v43, 0.0  ;;  %v3425_v63 = vmul.f32 0.01, %v3137_v43  ;;  %v2954_v15 = vpop.f32.mrb[74].mxu0  ;;  %v3140_v35 = vadd.f32 %v6052_v7, %v4262_v0  ;;  %v3131_v17 = vpop.f32.mrb[139].mxu1 }
 0x2e8   :  { %vm3359_vm10 = vcmp.ge.f32.partialorder %v3129_v61, 0.0  ;;  %v3423_v8 = vmul.f32 0.01, %v3129_v61  ;;  %v6231_v41 = vadd.f32 %v2954_v15, %v6017_v49  ;;  %v2956_v16 = vpop.f32.mrb[75].mxu0  ;;  %v3132_v27 = vadd.f32 %v6041_v38, %v3131_v17  ;;  %v4169_v49 = vld [vmem:[%s6652_s1 + $0x30] sm:$0xff]  }
 0x2e9   :  { %v3489_v54 = vsel %vm3361_vm9, %v3137_v43, %v3425_v63  ;;  %vm3362_vm11 = vcmp.ge.f32.partialorder %v3140_v35, 0.0  ;;  %v3426_v1 = vmul.f32 0.01, %v3140_v35  ;;  %v4035_v43 = vunpack.c.l.bf16 %v4170_v46 }
 0x2ea   :  { %v3681_v47 = vadd.f32 %v4027_v11, %v3489_v54  ;;  %v3487_v33 = vsel %vm3359_vm10, %v3129_v61, %v3423_v8  ;;  %vm3360_vm12 = vcmp.ge.f32.partialorder %v3132_v27, 0.0  ;;  %v3424_v20 = vmul.f32 0.01, %v3132_v27 }
 0x2eb   :  { %v3679_v9 = vadd.f32 %v4023_v50, %v3487_v33  ;;  %v3490_v7 = vsel %vm3362_vm11, %v3140_v35, %v3426_v1  ;;  %v4031_v19 = vunpack.c.l.bf16 %v4169_v49  ;;  %v4036_v63 = vunpack.c.h.bf16 %v4170_v46 }
 0x2ec   :  { %3745 = vst.msk [vmem:[%s6653_s5 + $0x50] sm:$0xff] %vm400_vm0, %v3681_v47  ;;  %v3682_v38 = vadd.f32 %v4028_v21, %v3490_v7  ;;  %v3488_v23 = vsel %vm3360_vm12, %v3132_v27, %v3424_v20  ;;  %v4265_v13 = vpop.f32.mrb[140].mxu1  ;;  %v4032_v16 = vunpack.c.h.bf16 %v4169_v49  ;;  %v4172_v47 = vld [vmem:[%s6652_s1 + $0x48] sm:$0xff]  }
 0x2ed   :  { %3743 = vst.msk [vmem:[%s6653_s5 + $0x40] sm:$0xff] %vm400_vm0, %v3679_v9  ;;  %v3680_v56 = vadd.f32 %v4024_v57, %v3488_v23  ;;  %v2959_v12 = vpop.f32.mrb[76].mxu0  ;;  %v3153_v53 = vadd.f32 %v6067_v4, %v4265_v13  ;;  %v3144_v31 = vpop.f32.mrb[141].mxu1  ;;  %v4043_v23 = vunpack.c.l.bf16 %v4172_v47 }
 0x2ee   :  { %3746 = vst.msk [vmem:[%s6653_s5 + $0x58] sm:$0xff] %vm400_vm0, %v3682_v38  ;;  %v6254_v52 = vadd.f32 %v2959_v12, %v6022_v24  ;;  %v2961_v26 = vpop.f32.mrb[77].mxu0  ;;  %v3145_v11 = vadd.f32 %v6057_v5, %v3144_v31  ;;  %v4266_v61 = vpop.f32.mrb[142].mxu1 }
 0x2ef   :  { %3744 = vst.msk [vmem:[%s6653_s5 + $0x48] sm:$0xff] %vm400_vm0, %v3680_v56  ;;  %vm3365_vm13 = vcmp.ge.f32.partialorder %v3153_v53, 0.0  ;;  %v3429_v4 = vmul.f32 0.01, %v3153_v53  ;;  %v2962_v50 = vpop.f32.mrb[78].mxu0  ;;  %v3156_v0 = vadd.f32 %v6072_v59, %v4266_v61  ;;  %v3147_v15 = vpop.f32.mrb[143].mxu1  ;;  %v4044_v26 = vunpack.c.h.bf16 %v4172_v47 }
 0x2f0   :  { %vm3363_vm14 = vcmp.ge.f32.partialorder %v3145_v11, 0.0  ;;  %v3427_v24 = vmul.f32 0.01, %v3145_v11  ;;  %v6263_v35 = vadd.f32 %v2962_v50, %v6027_v32  ;;  %v2964_v5 = vpop.f32.mrb[79].mxu0  ;;  %v3148_v21 = vadd.f32 %v6062_v44, %v3147_v15  ;;  %v4171_v32 = vld [vmem:[%s6652_s1 + $0x40] sm:$0xff]  }
 0x2f1   :  { %v3493_v17 = vsel %vm3365_vm13, %v3153_v53, %v3429_v4  ;;  %vm3366_vm15 = vcmp.ge.f32.partialorder %v3156_v0, 0.0  ;;  %v3430_v8 = vmul.f32 0.01, %v3156_v0  ;;  %v4039_v12 = vunpack.c.l.bf16 %v4171_v32 }
 0x2f2   :  { %v3685_v27 = vadd.f32 %v4035_v43, %v3493_v17  ;;  %v3491_v54 = vsel %vm3363_vm14, %v3145_v11, %v3427_v24  ;;  %vm3364_vm1 = vcmp.ge.f32.partialorder %v3148_v21, 0.0  ;;  %v3428_v1 = vmul.f32 0.01, %v3148_v21 }
 0x2f3   :  { %v3683_v57 = vadd.f32 %v4031_v19, %v3491_v54  ;;  %v3494_v59 = vsel %vm3366_vm15, %v3156_v0, %v3430_v8  ;;  %v4040_v0 = vunpack.c.h.bf16 %v4171_v32 }
 0x2f4   :  { %3749 = vst.msk [vmem:[%s6653_s5 + $0x70] sm:$0xff] %vm400_vm0, %v3685_v27  ;;  %v3686_v44 = vadd.f32 %v4036_v63, %v3494_v59  ;;  %v3492_v33 = vsel %vm3364_vm1, %v3148_v21, %v3428_v1  ;;  %v4269_v20 = vpop.f32.mrb[144].mxu1  ;;  %v4174_v21 = vld [vmem:[%s6652_s1 + $0x58] sm:$0xff]  }
 0x2f5   :  { %3747 = vst.msk [vmem:[%s6653_s5 + $0x60] sm:$0xff] %vm400_vm0, %v3683_v57  ;;  %v3684_v9 = vadd.f32 %v4032_v16, %v3492_v33  ;;  %v2967_v7 = vpop.f32.mrb[80].mxu0  ;;  %v3169_v46 = vadd.f32 %v6087_v34, %v4269_v20  ;;  %v3160_v49 = vpop.f32.mrb[145].mxu1  ;;  %v4051_v59 = vunpack.c.l.bf16 %v4174_v21 }
 0x2f6   :  { %3750 = vst.msk [vmem:[%s6653_s5 + $0x78] sm:$0xff] %vm400_vm0, %v3686_v44  ;;  %v6286_v38 = vadd.f32 %v2967_v7, %v6033_v36  ;;  %v2969_v13 = vpop.f32.mrb[81].mxu0  ;;  %v3161_v56 = vadd.f32 %v6077_v6, %v3160_v49  ;;  %v4270_v53 = vpop.f32.mrb[146].mxu1  ;;  %v4052_v7 = vunpack.c.h.bf16 %v4174_v21 }
 0x2f7   :  { %3748 = vst.msk [vmem:[%s6653_s5 + $0x68] sm:$0xff] %vm400_vm0, %v3684_v9  ;;  %vm3369_vm2 = vcmp.ge.f32.partialorder %v3169_v46, 0.0  ;;  %v3433_v34 = vmul.f32 0.01, %v3169_v46  ;;  %v2970_v31 = vpop.f32.mrb[82].mxu0  ;;  %v3172_v43 = vadd.f32 %v6092_v18, %v4270_v53  ;;  %v3163_v11 = vpop.f32.mrb[147].mxu1 }
 0x2f8   :  { %vm3367_vm3 = vcmp.ge.f32.partialorder %v3161_v56, 0.0  ;;  %v3431_v36 = vmul.f32 0.01, %v3161_v56  ;;  %v6295_v19 = vadd.f32 %v2970_v31, %v6038_v28  ;;  %v2972_v6 = vpop.f32.mrb[83].mxu0  ;;  %v3164_v61 = vadd.f32 %v6082_v58, %v3163_v11  ;;  %v4173_v28 = vld [vmem:[%s6652_s1 + $0x50] sm:$0xff]  }
 0x2f9   :  { %v3497_v4 = vsel %vm3369_vm2, %v3169_v46, %v3433_v34  ;;  %vm3370_vm4 = vcmp.ge.f32.partialorder %v3172_v43, 0.0  ;;  %v3434_v50 = vmul.f32 0.01, %v3172_v43  ;;  %v4047_v44 = vunpack.c.l.bf16 %v4173_v28 }
 0x2fa   :  { %v3689_v63 = vadd.f32 %v4043_v23, %v3497_v4  ;;  %v3495_v15 = vsel %vm3367_vm3, %v3161_v56, %v3431_v36  ;;  %vm3368_vm5 = vcmp.ge.f32.partialorder %v3164_v61, 0.0  ;;  %v3432_v24 = vmul.f32 0.01, %v3164_v61 }
 0x2fb   :  { %v3687_v5 = vadd.f32 %v4039_v12, %v3495_v15  ;;  %v3498_v18 = vsel %vm3370_vm4, %v3172_v43, %v3434_v50  ;;  %v4048_v12 = vunpack.c.h.bf16 %v4173_v28 }
 0x2fc   :  { %3753 = vst.msk [vmem:[%s6653_s5 + $0x90] sm:$0xff] %vm400_vm0, %v3689_v63  ;;  %v3690_v58 = vadd.f32 %v4044_v26, %v3498_v18  ;;  %v3496_v17 = vsel %vm3368_vm5, %v3164_v61, %v3432_v24  ;;  %v4273_v8 = vpop.f32.mrb[148].mxu1  ;;  %v4176_v26 = vld [vmem:[%s6652_s1 + $0x68] sm:$0xff]  }
 0x2fd   :  { %3751 = vst.msk [vmem:[%s6653_s5 + $0x80] sm:$0xff] %vm400_vm0, %v3687_v5  ;;  %v3688_v16 = vadd.f32 %v4040_v0, %v3496_v17  ;;  %v2975_v27 = vpop.f32.mrb[84].mxu0  ;;  %v3185_v54 = vadd.f32 %v6107_v14, %v4273_v8  ;;  %v3176_v1 = vpop.f32.mrb[149].mxu1  ;;  %v4059_v63 = vunpack.c.l.bf16 %v4176_v26 }
 0x2fe   :  { %3754 = vst.msk [vmem:[%s6653_s5 + $0x98] sm:$0xff] %vm400_vm0, %v3690_v58  ;;  %v6318_v57 = vadd.f32 %v2975_v27, %v6044_v3  ;;  %v2977_v47 = vpop.f32.mrb[85].mxu0  ;;  %v3177_v32 = vadd.f32 %v6097_v51, %v3176_v1  ;;  %v4274_v33 = vpop.f32.mrb[150].mxu1  ;;  %v4060_v58 = vunpack.c.h.bf16 %v4176_v26 }
 0x2ff   :  { %3752 = vst.msk [vmem:[%s6653_s5 + $0x88] sm:$0xff] %vm400_vm0, %v3688_v16  ;;  %vm3373_vm6 = vcmp.ge.f32.partialorder %v3185_v54, 0.0  ;;  %v3437_v14 = vmul.f32 0.01, %v3185_v54  ;;  %v2978_v20 = vpop.f32.mrb[86].mxu0  ;;  %v3188_v9 = vadd.f32 %v6112_v10, %v4274_v33  ;;  %v3179_v46 = vpop.f32.mrb[151].mxu1 }
 0x300   :  { %vm3371_vm7 = vcmp.ge.f32.partialorder %v3177_v32, 0.0  ;;  %v3435_v3 = vmul.f32 0.01, %v3177_v32  ;;  %v6327_v49 = vadd.f32 %v2978_v20, %v6049_v25  ;;  %v2980_v51 = vpop.f32.mrb[87].mxu0  ;;  %v3180_v23 = vadd.f32 %v6102_v37, %v3179_v46  ;;  %v4175_v25 = vld [vmem:[%s6652_s1 + $0x60] sm:$0xff]   ;;  %v4178_v33 = vld [vmem:[%s6652_s1 + $0x78] sm:$0xff]  }
 0x301   :  { %v3501_v13 = vsel %vm3373_vm6, %v3185_v54, %v3437_v14  ;;  %vm3374_vm8 = vcmp.ge.f32.partialorder %v3188_v9, 0.0  ;;  %v3438_v56 = vmul.f32 0.01, %v3188_v9  ;;  %v4055_v5 = vunpack.c.l.bf16 %v4175_v25 }
 0x302   :  { %v3693_v53 = vadd.f32 %v4051_v59, %v3501_v13  ;;  %v3499_v34 = vsel %vm3371_vm7, %v3177_v32, %v3435_v3  ;;  %vm3372_vm9 = vcmp.ge.f32.partialorder %v3180_v23, 0.0  ;;  %v3436_v31 = vmul.f32 0.01, %v3180_v23 }
 0x303   :  { %v3691_v43 = vadd.f32 %v4047_v44, %v3499_v34  ;;  %v3502_v10 = vsel %vm3374_vm8, %v3188_v9, %v3438_v56  ;;  %v4056_v1 = vunpack.c.h.bf16 %v4175_v25  ;;  %v6679_v56 = vld [vmem:[#allocation17_spill] sm:$0xff]  ;;  %v4068_v26 = vunpack.c.h.bf16 %v4178_v33 }
 0x304   :  { %3757 = vst.msk [vmem:[%s6653_s5 + $0xb0] sm:$0xff] %vm400_vm0, %v3693_v53  ;;  %v3694_v37 = vadd.f32 %v4052_v7, %v3502_v10  ;;  %v3500_v11 = vsel %vm3372_vm9, %v3180_v23, %v3436_v31  ;;  %v4277_v36 = vpop.f32.mrb[152].mxu1  ;;  %v4067_v23 = vunpack.c.l.bf16 %v4178_v33 }
 0x305   :  { %3755 = vst.msk [vmem:[%s6653_s5 + $0xa0] sm:$0xff] %vm400_vm0, %v3691_v43  ;;  %v3692_v6 = vadd.f32 %v4048_v12, %v3500_v11  ;;  %v2983_v61 = vpop.f32.mrb[88].mxu0  ;;  %v3201_v4 = vadd.f32 %v6127_v2, %v4277_v36  ;;  %v3192_v50 = vpop.f32.mrb[153].mxu1  ;;  %v6680_v43 = vld [vmem:[#allocation22_spill] sm:$0xff] }
 0x306   :  { %3758 = vst.msk [vmem:[%s6653_s5 + $0xb8] sm:$0xff] %vm400_vm0, %v3694_v37  ;;  %v6350_v0 = vadd.f32 %v2983_v61, %v6054_v29  ;;  %v2985_v15 = vpop.f32.mrb[89].mxu0  ;;  %v3193_v24 = vadd.f32 %v6117_v42, %v3192_v50  ;;  %v4278_v18 = vpop.f32.mrb[154].mxu1  ;;  %v6681_v37 = vld [vmem:[#allocation3_spill] sm:$0xff] }
 0x307   :  { %3756 = vst.msk [vmem:[%s6653_s5 + $0xa8] sm:$0xff] %vm400_vm0, %v3692_v6  ;;  %vm3377_vm10 = vcmp.ge.f32.partialorder %v3201_v4, 0.0  ;;  %v3441_v2 = vmul.f32 0.01, %v3201_v4  ;;  %v2986_v21 = vpop.f32.mrb[90].mxu0  ;;  %v3204_v28 = vadd.f32 %v6132_v30, %v4278_v18  ;;  %v3195_v17 = vpop.f32.mrb[155].mxu1 }
 0x308   :  { %vm3375_vm11 = vcmp.ge.f32.partialorder %v3193_v24, 0.0  ;;  %v3439_v29 = vmul.f32 0.01, %v3193_v24  ;;  %v6359_v8 = vadd.f32 %v2986_v21, %v6059_v22  ;;  %v2988_v42 = vpop.f32.mrb[91].mxu0  ;;  %v3196_v16 = vadd.f32 %v6122_v40, %v3195_v17  ;;  %v4177_v22 = vld [vmem:[%s6652_s1 + $0x70] sm:$0xff]   ;;  %v6682_v6 = vld [vmem:[#allocation19_spill] sm:$0xff] }
 0x309   :  { %v3505_v27 = vsel %vm3377_vm10, %v3201_v4, %v3441_v2  ;;  %vm3378_vm12 = vcmp.ge.f32.partialorder %v3204_v28, 0.0  ;;  %v3442_v54 = vmul.f32 0.01, %v3204_v28  ;;  %v4063_v53 = vunpack.c.l.bf16 %v4177_v22  ;;  %v4180_v21 = vld [vmem:[%s6652_s1 + $0x88] sm:$0xff]  }
 0x30a   :  { %v3697_v59 = vadd.f32 %v4059_v63, %v3505_v27  ;;  %v3503_v47 = vsel %vm3375_vm11, %v3193_v24, %v3439_v29  ;;  %vm3376_vm13 = vcmp.ge.f32.partialorder %v3196_v16, 0.0  ;;  %v3440_v32 = vmul.f32 0.01, %v3196_v16 }
 0x30b   :  { %v3695_v44 = vadd.f32 %v4055_v5, %v3503_v47  ;;  %v3506_v30 = vsel %vm3378_vm12, %v3204_v28, %v3442_v54  ;;  %v4064_v63 = vunpack.c.h.bf16 %v4177_v22  ;;  %v4179_v28 = vld [vmem:[%s6652_s1 + $0x80] sm:$0xff]   ;;  %v4075_v47 = vunpack.c.l.bf16 %v4180_v21 }
 0x30c   :  { %3761 = vst.msk [vmem:[%s6653_s5 + $0xd0] sm:$0xff] %vm400_vm0, %v3697_v59  ;;  %v3698_v40 = vadd.f32 %v4060_v58, %v3506_v30  ;;  %v3504_v14 = vsel %vm3376_vm13, %v3196_v16, %v3440_v32  ;;  %v4281_v20 = vpop.f32.mrb[156].mxu1  ;;  %v4071_v33 = vunpack.c.l.bf16 %v4179_v28 }
 0x30d   :  { %3759 = vst.msk [vmem:[%s6653_s5 + $0xc0] sm:$0xff] %vm400_vm0, %v3695_v44  ;;  %v3696_v9 = vadd.f32 %v4056_v1, %v3504_v14  ;;  %v2991_v7 = vpop.f32.mrb[92].mxu0  ;;  %v3217_v46 = vadd.f32 %v6147_v60, %v4281_v20  ;;  %v3208_v3 = vpop.f32.mrb[157].mxu1  ;;  %v6683_v1 = vld [vmem:[#allocation4_spill] sm:$0xff]  ;;  %v6684_v44 = vld [vmem:[#allocation23_spill] sm:$0xff]  ;;  %v4076_v20 = vunpack.c.h.bf16 %v4180_v21 }
 0x30e   :  { %3762 = vst.msk [vmem:[%s6653_s5 + $0xd8] sm:$0xff] %vm400_vm0, %v3698_v40  ;;  %v6382_v51 = vadd.f32 %v2991_v7, %v6064_v62  ;;  %v2993_v13 = vpop.f32.mrb[93].mxu0  ;;  %v3209_v12 = vadd.f32 %v6679_v56, %v3208_v3  ;;  %v4282_v34 = vpop.f32.mrb[158].mxu1 }
 0x30f   :  { %3760 = vst.msk [vmem:[%s6653_s5 + $0xc8] sm:$0xff] %vm400_vm0, %v3696_v9  ;;  %vm3381_vm14 = vcmp.ge.f32.partialorder %v3217_v46, 0.0  ;;  %v3445_v60 = vmul.f32 0.01, %v3217_v46  ;;  %v2994_v31 = vpop.f32.mrb[94].mxu0  ;;  %v3220_v10 = vadd.f32 %v6680_v43, %v4282_v34  ;;  %v3211_v25 = vpop.f32.mrb[159].mxu1 }
 0x310   :  { %vm3379_vm15 = vcmp.ge.f32.partialorder %v3209_v12, 0.0  ;;  %v3443_v62 = vmul.f32 0.01, %v3209_v12  ;;  %v6391_v11 = vadd.f32 %v2994_v31, %v6681_v37  ;;  %v2996_v36 = vpop.f32.mrb[95].mxu0  ;;  %v3212_v61 = vadd.f32 %v6682_v6, %v3211_v25 }
 0x311   :  { %v3509_v4 = vsel %vm3381_vm14, %v3217_v46, %v3445_v60  ;;  %vm3382_vm1 = vcmp.ge.f32.partialorder %v3220_v10, 0.0  ;;  %v3446_v50 = vmul.f32 0.01, %v3220_v10  ;;  %v6685_v46 = vld [vmem:[#allocation5_spill] sm:$0xff] }
 0x312   :  { %v3701_v15 = vadd.f32 %v4067_v23, %v3509_v4  ;;  %v3507_v24 = vsel %vm3379_vm15, %v3209_v12, %v3443_v62  ;;  %vm3380_vm2 = vcmp.ge.f32.partialorder %v3212_v61, 0.0  ;;  %v3444_v5 = vmul.f32 0.01, %v3212_v61  ;;  %v6686_v4 = vld [vmem:[#allocation6_spill] sm:$0xff] }
 0x313   :  { %v3699_v18 = vadd.f32 %v4063_v53, %v3507_v24  ;;  %v3510_v2 = vsel %vm3382_vm1, %v3220_v10, %v3446_v50  ;;  %v4072_v53 = vunpack.c.h.bf16 %v4179_v28  ;;  %v4182_v10 = vld [vmem:[%s6652_s1 + $0x98] sm:$0xff]  }
 0x314   :  { %3765 = vst.msk [vmem:[%s6653_s5 + $0xf0] sm:$0xff] %vm400_vm0, %v3701_v15  ;;  %v3702_v58 = vadd.f32 %v4068_v26, %v3510_v2  ;;  %v3508_v17 = vsel %vm3380_vm2, %v3212_v61, %v3444_v5  ;;  %v4285_v29 = vpop.f32.mrb[160].mxu1  ;;  %v4181_v26 = vld [vmem:[%s6652_s1 + $0x90] sm:$0xff]   ;;  %v4084_v28 = vunpack.c.h.bf16 %v4182_v10 }
 0x315   :  { %3763 = vst.msk [vmem:[%s6653_s5 + $0xe0] sm:$0xff] %vm400_vm0, %v3699_v18  ;;  %v3700_v42 = vadd.f32 %v4064_v63, %v3508_v17  ;;  %v2999_v16 = vpop.f32.mrb[96].mxu0  ;;  %v3233_v27 = vadd.f32 %v6190_v39, %v4285_v29  ;;  %v3224_v54 = vpop.f32.mrb[161].mxu1  ;;  %v4083_v63 = vunpack.c.l.bf16 %v4182_v10  ;;  %v4079_v5 = vunpack.c.l.bf16 %v4181_v26  ;;  %v6687_v29 = vld [vmem:[#allocation7_spill] sm:$0xff] }
 0x316   :  { %3766 = vst.msk [vmem:[%s6653_s5 + $0xf8] sm:$0xff] %vm400_vm0, %v3702_v58  ;;  %v6414_v59 = vadd.f32 %v2999_v16, %v6683_v1  ;;  %v3001_v32 = vpop.f32.mrb[97].mxu0  ;;  %v3225_v30 = vadd.f32 %v6684_v44, %v3224_v54  ;;  %v4286_v22 = vpop.f32.mrb[162].mxu1  ;;  %v4080_v1 = vunpack.c.h.bf16 %v4181_v26  ;;  %v6689_v26 = vld [vmem:[#allocation9_spill] sm:$0xff] }
 0x317   :  { %3764 = vst.msk [vmem:[%s6653_s5 + $0xe8] sm:$0xff] %vm400_vm0, %v3700_v42  ;;  %vm3385_vm3 = vcmp.ge.f32.partialorder %v3233_v27, 0.0  ;;  %v3449_v39 = vmul.f32 0.01, %v3233_v27  ;;  %v3002_v40 = vpop.f32.mrb[98].mxu0  ;;  %v3236_v14 = vadd.f32 %v6199_v45, %v4286_v22  ;;  %v3227_v9 = vpop.f32.mrb[163].mxu1 }
 0x318   :  { %vm3383_vm4 = vcmp.ge.f32.partialorder %v3225_v30, 0.0  ;;  %v3447_v7 = vmul.f32 0.01, %v3225_v30  ;;  %v6423_v3 = vadd.f32 %v3002_v40, %v6685_v46  ;;  %v3004_v23 = vpop.f32.mrb[99].mxu0  ;;  %v3228_v13 = vadd.f32 %v6167_v55, %v3227_v9  ;;  %v4183_v22 = vld [vmem:[%s6652_s1 + $0xa0] sm:$0xff]   ;;  %v6688_v46 = vld [vmem:[#allocation8_spill] sm:$0xff] }
 0x319   :  { %v3513_v56 = vsel %vm3385_vm3, %v3233_v27, %v3449_v39  ;;  %vm3386_vm5 = vcmp.ge.f32.partialorder %v3236_v14, 0.0  ;;  %v3450_v12 = vmul.f32 0.01, %v3236_v14 }
 0x31a   :  { %v3705_v34 = vadd.f32 %v4075_v47, %v3513_v56  ;;  %v3511_v60 = vsel %vm3383_vm4, %v3225_v30, %v3447_v7  ;;  %vm3384_vm6 = vcmp.ge.f32.partialorder %v3228_v13, 0.0  ;;  %v3448_v31 = vmul.f32 0.01, %v3228_v13 }
 0x31b   :  { %v3703_v43 = vadd.f32 %v4071_v33, %v3511_v60  ;;  %v3514_v45 = vsel %vm3386_vm5, %v3236_v14, %v3450_v12  ;;  %v4184_v33 = vld [vmem:[%s6652_s1 + $0xa8] sm:$0xff]  }
 0x31c   :  { %3769 = vst.msk [vmem:[%s6653_s5 + $0x110] sm:$0xff] %vm400_vm0, %v3705_v34  ;;  %v3706_v55 = vadd.f32 %v4076_v20, %v3514_v45  ;;  %v3512_v25 = vsel %vm3384_vm6, %v3228_v13, %v3448_v31  ;;  %v4289_v62 = vpop.f32.mrb[164].mxu1  ;;  %v4091_v13 = vunpack.c.l.bf16 %v4184_v33 }
 0x31d   :  { %3767 = vst.msk [vmem:[%s6653_s5 + $0x100] sm:$0xff] %vm400_vm0, %v3703_v43  ;;  %v3704_v37 = vadd.f32 %v4072_v53, %v3512_v25  ;;  %v3007_v36 = vpop.f32.mrb[100].mxu0  ;;  %v3249_v6 = vadd.f32 %v6254_v52, %v4289_v62  ;;  %v3240_v61 = vpop.f32.mrb[165].mxu1  ;;  %v4087_v53 = vunpack.c.l.bf16 %v4183_v22  ;;  %v4092_v43 = vunpack.c.h.bf16 %v4184_v33 }
 0x31e   :  { %3770 = vst.msk [vmem:[%s6653_s5 + $0x118] sm:$0xff] %vm400_vm0, %v3706_v55  ;;  %v6446_v50 = vadd.f32 %v3007_v36, %v6686_v4  ;;  %v3009_v15 = vpop.f32.mrb[101].mxu0  ;;  %v3241_v24 = vadd.f32 %v6222_v48, %v3240_v61  ;;  %v4290_v18 = vpop.f32.mrb[166].mxu1  ;;  %v4088_v36 = vunpack.c.h.bf16 %v4183_v22 }
 0x31f   :  { %3768 = vst.msk [vmem:[%s6653_s5 + $0x108] sm:$0xff] %vm400_vm0, %v3704_v37  ;;  %vm3389_vm7 = vcmp.ge.f32.partialorder %v3249_v6, 0.0  ;;  %v3453_v52 = vmul.f32 0.01, %v3249_v6  ;;  %v3010_v2 = vpop.f32.mrb[102].mxu0  ;;  %v3252_v21 = vadd.f32 %v6263_v35, %v4290_v18  ;;  %v3243_v58 = vpop.f32.mrb[167].mxu1 }
 0x320   :  { %vm3387_vm8 = vcmp.ge.f32.partialorder %v3241_v24, 0.0  ;;  %v3451_v17 = vmul.f32 0.01, %v3241_v24  ;;  %v6455_v42 = vadd.f32 %v3010_v2, %v6687_v29  ;;  %v3012_v48 = vpop.f32.mrb[103].mxu0  ;;  %v3244_v16 = vadd.f32 %v6231_v41, %v3243_v58  ;;  %v4186_v15 = vld [vmem:[%s6652_s1 + $0xb8] sm:$0xff]  }
 0x321   :  { %v3517_v27 = vsel %vm3389_vm7, %v3249_v6, %v3453_v52  ;;  %vm3390_vm9 = vcmp.ge.f32.partialorder %v3252_v21, 0.0  ;;  %v3454_v54 = vmul.f32 0.01, %v3252_v21  ;;  %v6690_v58 = vld [vmem:[#allocation10_spill] sm:$0xff]  ;;  %v4099_v29 = vunpack.c.l.bf16 %v4186_v15 }
 0x322   :  { %v3709_v47 = vadd.f32 %v4083_v63, %v3517_v27  ;;  %v3515_v32 = vsel %vm3387_vm8, %v3241_v24, %v3451_v17  ;;  %vm3388_vm10 = vcmp.ge.f32.partialorder %v3244_v16, 0.0  ;;  %v3452_v44 = vmul.f32 0.01, %v3244_v16  ;;  %v4185_v24 = vld [vmem:[%s6652_s1 + $0xb0] sm:$0xff]  }
 0x323   :  { %v3707_v30 = vadd.f32 %v4079_v5, %v3515_v32  ;;  %v3518_v35 = vsel %vm3390_vm9, %v3252_v21, %v3454_v54  ;;  %v4095_v27 = vunpack.c.l.bf16 %v4185_v24  ;;  %v4100_v32 = vunpack.c.h.bf16 %v4186_v15 }
 0x324   :  { %3773 = vst.msk [vmem:[%s6653_s5 + $0x130] sm:$0xff] %vm400_vm0, %v3709_v47  ;;  %v3710_v41 = vadd.f32 %v4084_v28, %v3518_v35  ;;  %v3516_v39 = vsel %vm3388_vm10, %v3244_v16, %v3452_v44  ;;  %v4293_v40 = vpop.f32.mrb[168].mxu1  ;;  %v6691_v35 = vld [vmem:[#allocation11_spill] sm:$0xff] }
 0x325   :  { %3771 = vst.msk [vmem:[%s6653_s5 + $0x120] sm:$0xff] %vm400_vm0, %v3707_v30  ;;  %v3708_v14 = vadd.f32 %v4080_v1, %v3516_v39  ;;  %v3015_v20 = vpop.f32.mrb[104].mxu0  ;;  %v3265_v9 = vadd.f32 %v6318_v57, %v4293_v40  ;;  %v3256_v7 = vpop.f32.mrb[169].mxu1  ;;  %v4096_v40 = vunpack.c.h.bf16 %v4185_v24 }
 0x326   :  { %3774 = vst.msk [vmem:[%s6653_s5 + $0x138] sm:$0xff] %vm400_vm0, %v3710_v41  ;;  %v6478_v23 = vadd.f32 %v3015_v20, %v6688_v46  ;;  %v3017_v56 = vpop.f32.mrb[105].mxu0  ;;  %v3257_v12 = vadd.f32 %v6286_v38, %v3256_v7  ;;  %v4294_v34 = vpop.f32.mrb[170].mxu1  ;;  %v4188_v46 = vld [vmem:[%s6652_s1 + $0xc8] sm:$0xff]  }
 0x327   :  { %3772 = vst.msk [vmem:[%s6653_s5 + $0x128] sm:$0xff] %vm400_vm0, %v3708_v14  ;;  %vm3393_vm11 = vcmp.ge.f32.partialorder %v3265_v9, 0.0  ;;  %v3457_v57 = vmul.f32 0.01, %v3265_v9  ;;  %v3018_v60 = vpop.f32.mrb[106].mxu0  ;;  %v3268_v31 = vadd.f32 %v6327_v49, %v4294_v34  ;;  %v3259_v45 = vpop.f32.mrb[171].mxu1 }
 0x328   :  { %vm3391_vm12 = vcmp.ge.f32.partialorder %v3257_v12, 0.0  ;;  %v3455_v10 = vmul.f32 0.01, %v3257_v12  ;;  %v6487_v55 = vadd.f32 %v3018_v60, %v6689_v26  ;;  %v3020_v38 = vpop.f32.mrb[107].mxu0  ;;  %v3260_v25 = vadd.f32 %v6295_v19, %v3259_v45 }
 0x329   :  { %v3521_v62 = vsel %vm3393_vm11, %v3265_v9, %v3457_v57  ;;  %vm3394_vm13 = vcmp.ge.f32.partialorder %v3268_v31, 0.0  ;;  %v3458_v37 = vmul.f32 0.01, %v3268_v31  ;;  %v4107_v45 = vunpack.c.l.bf16 %v4188_v46 }
 0x32a   :  { %v3713_v6 = vadd.f32 %v4091_v13, %v3521_v62  ;;  %v3519_v61 = vsel %vm3391_vm12, %v3257_v12, %v3455_v10  ;;  %vm3392_vm14 = vcmp.ge.f32.partialorder %v3260_v25, 0.0  ;;  %v3456_v4 = vmul.f32 0.01, %v3260_v25  ;;  %v4187_v13 = vld [vmem:[%s6652_s1 + $0xc0] sm:$0xff]  }
 0x32b   :  { %v3711_v63 = vadd.f32 %v4087_v53, %v3519_v61  ;;  %v3522_v49 = vsel %vm3394_vm13, %v3268_v31, %v3458_v37  ;;  %v6692_v31 = vld [vmem:[#allocation12_spill] sm:$0xff]  ;;  %v4103_v38 = vunpack.c.l.bf16 %v4187_v13 }
 0x32c   :  { %3777 = vst.msk [vmem:[%s6653_s5 + $0x150] sm:$0xff] %vm400_vm0, %v3713_v6  ;;  %v3714_v19 = vadd.f32 %v4092_v43, %v3522_v49  ;;  %v3520_v5 = vsel %vm3392_vm14, %v3260_v25, %v3456_v4  ;;  %v4297_v18 = vpop.f32.mrb[172].mxu1  ;;  %v6693_v4 = vld [vmem:[#allocation13_spill] sm:$0xff] }
 0x32d   :  { %3775 = vst.msk [vmem:[%s6653_s5 + $0x140] sm:$0xff] %vm400_vm0, %v3711_v63  ;;  %v3712_v52 = vadd.f32 %v4088_v36, %v3520_v5  ;;  %v3023_v2 = vpop.f32.mrb[108].mxu0  ;;  %v3281_v21 = vadd.f32 %v6382_v51, %v4297_v18  ;;  %v3272_v28 = vpop.f32.mrb[173].mxu1  ;;  %v4108_v36 = vunpack.c.h.bf16 %v4188_v46 }
 0x32e   :  { %3778 = vst.msk [vmem:[%s6653_s5 + $0x158] sm:$0xff] %vm400_vm0, %v3714_v19  ;;  %v6510_v17 = vadd.f32 %v3023_v2, %v6690_v58  ;;  %v3025_v48 = vpop.f32.mrb[109].mxu0  ;;  %v3273_v16 = vadd.f32 %v6350_v0, %v3272_v28  ;;  %v4298_v54 = vpop.f32.mrb[174].mxu1  ;;  %v4104_v19 = vunpack.c.h.bf16 %v4187_v13  ;;  %v4189_v28 = vld [vmem:[%s6652_s1 + $0xd0] sm:$0xff]  }
 0x32f   :  { %3776 = vst.msk [vmem:[%s6653_s5 + $0x148] sm:$0xff] %vm400_vm0, %v3712_v52  ;;  %vm3397_vm15 = vcmp.ge.f32.partialorder %v3281_v21, 0.0  ;;  %v3461_v51 = vmul.f32 0.01, %v3281_v21  ;;  %v3026_v1 = vpop.f32.mrb[110].mxu0  ;;  %v3284_v47 = vadd.f32 %v6391_v11, %v4298_v54  ;;  %v3275_v44 = vpop.f32.mrb[175].mxu1  ;;  %v4112_v46 = vunpack.c.h.bf16 %v4189_v28 }
 0x330   :  { %vm3395_vm1 = vcmp.ge.f32.partialorder %v3273_v16, 0.0  ;;  %v3459_v30 = vmul.f32 0.01, %v3273_v16  ;;  %v6519_v33 = vadd.f32 %v3026_v1, %v6691_v35  ;;  %v3028_v0 = vpop.f32.mrb[111].mxu0  ;;  %v3276_v22 = vadd.f32 %v6359_v8, %v3275_v44 }
 0x331   :  { %v3525_v41 = vsel %vm3397_vm15, %v3281_v21, %v3461_v51  ;;  %vm3398_vm2 = vcmp.ge.f32.partialorder %v3284_v47, 0.0  ;;  %v3462_v39 = vmul.f32 0.01, %v3284_v47  ;;  %v4190_v21 = vld [vmem:[%s6652_s1 + $0xd8] sm:$0xff]  }
 0x332   :  { %v3717_v14 = vadd.f32 %v4099_v29, %v3525_v41  ;;  %v3523_v20 = vsel %vm3395_vm1, %v3273_v16, %v3459_v30  ;;  %vm3396_vm3 = vcmp.ge.f32.partialorder %v3276_v22, 0.0  ;;  %v3460_v9 = vmul.f32 0.01, %v3276_v22  ;;  %v6694_v51 = vld [vmem:[#allocation14_spill] sm:$0xff] }
 0x333   :  { %v3715_v7 = vadd.f32 %v4095_v27, %v3523_v20  ;;  %v3526_v11 = vsel %vm3398_vm2, %v3284_v47, %v3462_v39  ;;  %v4115_v47 = vunpack.c.l.bf16 %v4190_v21  ;;  %v4111_v30 = vunpack.c.l.bf16 %v4189_v28 }
 0x334   :  { %3781 = vst.msk [vmem:[%s6653_s5 + $0x170] sm:$0xff] %vm400_vm0, %v3717_v14  ;;  %v3718_v8 = vadd.f32 %v4100_v32, %v3526_v11  ;;  %v3524_v56 = vsel %vm3396_vm3, %v3276_v22, %v3460_v9  ;;  %v4301_v12 = vpop.f32.mrb[176].mxu1  ;;  %v4116_v41 = vunpack.c.h.bf16 %v4190_v21  ;;  %v6695_v14 = vld [vmem:[#allocation15_spill] sm:$0xff] }
 0x335   :  { %3779 = vst.msk [vmem:[%s6653_s5 + $0x160] sm:$0xff] %vm400_vm0, %v3715_v7  ;;  %v3716_v53 = vadd.f32 %v4096_v40, %v3524_v56  ;;  %v3031_v34 = vpop.f32.mrb[112].mxu0  ;;  %v3297_v57 = vadd.f32 %v6446_v50, %v4301_v12  ;;  %v3288_v60 = vpop.f32.mrb[177].mxu1 }
 0x336   :  { %3782 = vst.msk [vmem:[%s6653_s5 + $0x178] sm:$0xff] %vm400_vm0, %v3718_v8  ;;  %v6542_v43 = vadd.f32 %v3031_v34, %v6692_v31  ;;  %v3033_v10 = vpop.f32.mrb[113].mxu0  ;;  %v3289_v26 = vadd.f32 %v6414_v59, %v3288_v60  ;;  %v4302_v25 = vpop.f32.mrb[178].mxu1  ;;  %v4191_v34 = vld [vmem:[%s6652_s1 + $0xe0] sm:$0xff]  }
 0x337   :  { %3780 = vst.msk [vmem:[%s6653_s5 + $0x168] sm:$0xff] %vm400_vm0, %v3716_v53  ;;  %vm3401_vm4 = vcmp.ge.f32.partialorder %v3297_v57, 0.0  ;;  %v3465_v50 = vmul.f32 0.01, %v3297_v57  ;;  %v3034_v62 = vpop.f32.mrb[114].mxu0  ;;  %v3300_v37 = vadd.f32 %v6455_v42, %v4302_v25  ;;  %v3291_v6 = vpop.f32.mrb[179].mxu1 }
 0x338   :  { %vm3399_vm5 = vcmp.ge.f32.partialorder %v3289_v26, 0.0  ;;  %v3463_v61 = vmul.f32 0.01, %v3289_v26  ;;  %v6551_v63 = vadd.f32 %v3034_v62, %v6693_v4  ;;  %v3036_v59 = vpop.f32.mrb[115].mxu0  ;;  %v3292_v49 = vadd.f32 %v6423_v3, %v3291_v6 }
 0x339   :  { %v3529_v15 = vsel %vm3401_vm4, %v3297_v57, %v3465_v50  ;;  %vm3402_vm6 = vcmp.ge.f32.partialorder %v3300_v37, 0.0  ;;  %v3466_v24 = vmul.f32 0.01, %v3300_v37 }
 0x33a   :  { %v3721_v5 = vadd.f32 %v4107_v45, %v3529_v15  ;;  %v3527_v18 = vsel %vm3399_vm5, %v3289_v26, %v3463_v61  ;;  %vm3400_vm7 = vcmp.ge.f32.partialorder %v3292_v49, 0.0  ;;  %v3464_v52 = vmul.f32 0.01, %v3292_v49 }
 0x33b   :  { %v3719_v2 = vadd.f32 %v4103_v38, %v3527_v18  ;;  %v3530_v42 = vsel %vm3402_vm6, %v3300_v37, %v3466_v24  ;;  %v6696_v38 = vld [vmem:[#allocation16_spill] sm:$0xff] }
 0x33c   :  { %3785 = vst.msk [vmem:[%s6653_s5 + $0x190] sm:$0xff] %vm400_vm0, %v3721_v5  ;;  %v3722_v3 = vadd.f32 %v4108_v36, %v3530_v42  ;;  %v3528_v58 = vsel %vm3400_vm7, %v3292_v49, %v3464_v52  ;;  %v4305_v29 = vpop.f32.mrb[180].mxu1  ;;  %v4119_v36 = vunpack.c.l.bf16 %v4191_v34  ;;  %v4120_v42 = vunpack.c.h.bf16 %v4191_v34 }
 0x33d   :  { %3783 = vst.msk [vmem:[%s6653_s5 + $0x180] sm:$0xff] %vm400_vm0, %v3719_v2  ;;  %v3720_v48 = vadd.f32 %v4104_v19, %v3528_v58  ;;  %v3039_v16 = vpop.f32.mrb[116].mxu0  ;;  %v3313_v27 = vadd.f32 %v6510_v17, %v4305_v29  ;;  %v3304_v54 = vpop.f32.mrb[181].mxu1  ;;  %v6697_v19 = vld [vmem:[#allocation18_spill] sm:$0xff] }
 0x33e   :  { %3786 = vst.msk [vmem:[%s6653_s5 + $0x198] sm:$0xff] %vm400_vm0, %v3722_v3  ;;  %v4405_v1 = vadd.f32 %v3039_v16, %v6694_v51  ;;  %v3041_v32 = vpop.f32.mrb[117].mxu0  ;;  %v3305_v44 = vadd.f32 %v6478_v23, %v3304_v54  ;;  %v4306_v35 = vpop.f32.mrb[182].mxu1 }
 0x33f   :  { %3784 = vst.msk [vmem:[%s6653_s5 + $0x188] sm:$0xff] %vm400_vm0, %v3720_v48  ;;  %vm3405_vm8 = vcmp.ge.f32.partialorder %v3313_v27, 0.0  ;;  %v3469_v17 = vmul.f32 0.01, %v3313_v27  ;;  %v3042_v0 = vpop.f32.mrb[118].mxu0  ;;  %v3316_v22 = vadd.f32 %v6519_v33, %v4306_v35  ;;  %v3307_v39 = vpop.f32.mrb[183].mxu1 }
 0x340   :  { %vm3403_vm9 = vcmp.ge.f32.partialorder %v3305_v44, 0.0  ;;  %v3467_v40 = vmul.f32 0.01, %v3305_v44  ;;  %v4406_v20 = vadd.f32 %v3042_v0, %v6695_v14  ;;  %v3044_v9 = vpop.f32.mrb[119].mxu0  ;;  %v3308_v23 = vadd.f32 %v6487_v55, %v3307_v39  ;;  %v4192_v33 = vld [vmem:[%s6652_s1 + $0xe8] sm:$0xff]   ;;  %v6699_v14 = vld [vmem:[#allocation21_spill] sm:$0xff] }
 0x341   :  { %v3533_v7 = vsel %vm3405_vm8, %v3313_v27, %v3469_v17  ;;  %vm3406_vm10 = vcmp.ge.f32.partialorder %v3316_v22, 0.0  ;;  %v3470_v11 = vmul.f32 0.01, %v3316_v22  ;;  %v4123_v50 = vunpack.c.l.bf16 %v4192_v33 }
 0x342   :  { %v3725_v13 = vadd.f32 %v4115_v47, %v3533_v7  ;;  %v3531_v8 = vsel %vm3403_vm9, %v3305_v44, %v3467_v40  ;;  %vm3404_vm11 = vcmp.ge.f32.partialorder %v3308_v23, 0.0  ;;  %v3468_v56 = vmul.f32 0.01, %v3308_v23  ;;  %v6698_v47 = vld [vmem:[#allocation20_spill] sm:$0xff]  ;;  %v4194_v44 = vld [vmem:[%s6652_s1 + $0xf8] sm:$0xff]  }
 0x343   :  { %v3723_v12 = vadd.f32 %v4111_v30, %v3531_v8  ;;  %v3534_v53 = vsel %vm3406_vm10, %v3316_v22, %v3470_v11  ;;  %v4124_v49 = vunpack.c.h.bf16 %v4192_v33 }
 0x344   :  { %3789 = vst.msk [vmem:[%s6653_s5 + $0x1b0] sm:$0xff] %vm400_vm0, %v3725_v13  ;;  %v3726_v55 = vadd.f32 %v4116_v41, %v3534_v53  ;;  %v3532_v57 = vsel %vm3404_vm11, %v3308_v23, %v3468_v56  ;;  %v4309_v60 = vpop.f32.mrb[184].mxu1  ;;  %v4131_v23 = vunpack.c.l.bf16 %v4194_v44 }
 0x345   :  { %3787 = vst.msk [vmem:[%s6653_s5 + $0x1a0] sm:$0xff] %vm400_vm0, %v3723_v12  ;;  %v3724_v31 = vadd.f32 %v4112_v46, %v3532_v57  ;;  %v3047_v45 = vpop.f32.mrb[120].mxu0  ;;  %v3329_v10 = vadd.f32 %v4405_v1, %v4309_v60  ;;  %v3320_v26 = vpop.f32.mrb[185].mxu1  ;;  %v4132_v12 = vunpack.c.h.bf16 %v4194_v44 }
 0x346   :  { %3790 = vst.msk [vmem:[%s6653_s5 + $0x1b8] sm:$0xff] %vm400_vm0, %v3726_v55  ;;  %v4407_v25 = vadd.f32 %v3047_v45, %v6696_v38  ;;  %v3049_v62 = vpop.f32.mrb[121].mxu0  ;;  %v3321_v37 = vadd.f32 %v6542_v43, %v3320_v26  ;;  %v4310_v6 = vpop.f32.mrb[186].mxu1 }
 0x347   :  { %3788 = vst.msk [vmem:[%s6653_s5 + $0x1a8] sm:$0xff] %vm400_vm0, %v3724_v31  ;;  %vm3409_vm12 = vcmp.ge.f32.partialorder %v3329_v10, 0.0  ;;  %v3473_v61 = vmul.f32 0.01, %v3329_v10  ;;  %v3050_v4 = vpop.f32.mrb[122].mxu0  ;;  %v3332_v59 = vadd.f32 %v4406_v20, %v4310_v6  ;;  %v3323_v15 = vpop.f32.mrb[187].mxu1 }
 0x348   :  { %vm3407_vm13 = vcmp.ge.f32.partialorder %v3321_v37, 0.0  ;;  %v3471_v24 = vmul.f32 0.01, %v3321_v37  ;;  %v4408_v5 = vadd.f32 %v3050_v4, %v6697_v19  ;;  %v3052_v18 = vpop.f32.mrb[123].mxu0  ;;  %v3324_v43 = vadd.f32 %v6551_v63, %v3323_v15  ;;  %v4193_v63 = vld [vmem:[%s6652_s1 + $0xf0] sm:$0xff]  }
 0x349   :  { %v3537_v52 = vsel %vm3409_vm12, %v3329_v10, %v3473_v61  ;;  %vm3410_vm14 = vcmp.ge.f32.partialorder %v3332_v59, 0.0  ;;  %v3474_v2 = vmul.f32 0.01, %v3332_v59  ;;  %v4127_v0 = vunpack.c.l.bf16 %v4193_v63 }
 0x34a   :  { %v3729_v21 = vadd.f32 %v4123_v50, %v3537_v52  ;;  %v3535_v28 = vsel %vm3407_vm13, %v3321_v37, %v3471_v24  ;;  %vm3408_vm15 = vcmp.ge.f32.partialorder %v3324_v43, 0.0  ;;  %v3472_v3 = vmul.f32 0.01, %v3324_v43 }
 0x34b   :  { %v3727_v58 = vadd.f32 %v4119_v36, %v3535_v28  ;;  %v3538_v29 = vsel %vm3410_vm14, %v3332_v59, %v3474_v2  ;;  %v4128_v11 = vunpack.c.h.bf16 %v4193_v63 }
 0x34c   :  { %3793 = vst.msk [vmem:[%s6653_s5 + $0x1d0] sm:$0xff] %vm400_vm0, %v3729_v21  ;;  %v3730_v48 = vadd.f32 %v4124_v49, %v3538_v29  ;;  %v3536_v16 = vsel %vm3408_vm15, %v3324_v43, %v3472_v3  ;;  %v4313_v27 = vpop.f32.mrb[188].mxu1 }
 0x34d   :  { %3791 = vst.msk [vmem:[%s6653_s5 + $0x1c0] sm:$0xff] %vm400_vm0, %v3727_v58  ;;  %v3728_v54 = vadd.f32 %v4120_v42, %v3536_v16  ;;  %v3055_v51 = vpop.f32.mrb[124].mxu0  ;;  %v3336_v1 = vpop.f32.mrb[189].mxu1 }
 0x34e   :  { %3794 = vst.msk [vmem:[%s6653_s5 + $0x1d8] sm:$0xff] %vm400_vm0, %v3730_v48  ;;  %v4409_v32 = vadd.f32 %v3055_v51, %v6698_v47  ;;  %v3057_v30 = vpop.f32.mrb[125].mxu0  ;;  %v3337_v35 = vadd.f32 %v4407_v25, %v3336_v1  ;;  %v4314_v17 = vpop.f32.mrb[190].mxu1 }
 0x34f   :  { %3792 = vst.msk [vmem:[%s6653_s5 + $0x1c8] sm:$0xff] %vm400_vm0, %v3728_v54  ;;  %v3058_v22 = vpop.f32.mrb[126].mxu0  ;;  %v3339_v41 = vpop.f32.mrb[191].mxu1 }
 0x350   :  { %v3345_v39 = vadd.f32 %v4409_v32, %v4313_v27  ;;  %vm3411_vm1 = vcmp.ge.f32.partialorder %v3337_v35, 0.0  ;;  %v3475_v40 = vmul.f32 0.01, %v3337_v35  ;;  %v4410_v20 = vadd.f32 %v3058_v22, %v6699_v14  ;;  %v3060_v9 = vpop.f32.mrb[127].mxu0 }
 0x351   :  { %v3340_v7 = vadd.f32 %v4408_v5, %v3339_v41 }
 0x352   :  { %vm3413_vm2 = vcmp.ge.f32.partialorder %v3345_v39, 0.0  ;;  %v3477_v46 = vmul.f32 0.01, %v3345_v39  ;;  %v3539_v13 = vsel %vm3411_vm1, %v3337_v35, %v3475_v40  ;;  %v3348_v8 = vadd.f32 %v4410_v20, %v4314_v17 }
 0x353   :  { %v3731_v56 = vadd.f32 %v4127_v0, %v3539_v13  ;;  %vm3412_vm3 = vcmp.ge.f32.partialorder %v3340_v7, 0.0  ;;  %v3476_v53 = vmul.f32 0.01, %v3340_v7 }
 0x354   :  { %v3541_v33 = vsel %vm3413_vm2, %v3345_v39, %v3477_v46  ;;  %vm3414_vm4 = vcmp.ge.f32.partialorder %v3348_v8, 0.0  ;;  %v3478_v34 = vmul.f32 0.01, %v3348_v8 }
 0x355   :  { %v3733_v55 = vadd.f32 %v4131_v23, %v3541_v33  ;;  %3795 = vst.msk [vmem:[%s6653_s5 + $0x1e0] sm:$0xff] %vm400_vm0, %v3731_v56  ;;  %v3540_v57 = vsel %vm3412_vm3, %v3340_v7, %v3476_v53 }
 0x356   :  { %v3542_v60 = vsel %vm3414_vm4, %v3348_v8, %v3478_v34  ;;  %v3732_v31 = vadd.f32 %v4128_v11, %v3540_v57 }
 0x357   :  { %3797 = vst.msk [vmem:[%s6653_s5 + $0x1f0] sm:$0xff] %vm400_vm0, %v3733_v55  ;;  %v3734_v45 = vadd.f32 %v4132_v12, %v3542_v60 }
 0x358   :  { %3796 = vst.msk [vmem:[%s6653_s5 + $0x1e8] sm:$0xff] %vm400_vm0, %v3732_v31 }
 0x359   :  { %3798 = vst.msk [vmem:[%s6653_s5 + $0x1f8] sm:$0xff] %vm400_vm0, %v3734_v45 }

</bundles_post_ra>
